<compile_context>
chip_gen: v7x
topology: tpu7x:2x2x1
jax: 0.10.0
libtpu: 0.0.40
codegen_flags: <defaults>
</compile_context>

<pallas_src>
import functools

import jax
import jax.numpy as jnp
from jax import lax
from jax.experimental import pallas as pl
from jax.experimental.pallas import tpu as pltpu

BN_EPS = 1e-5

MAX_TM_DECONV = 1024   # output-row block cap for the deconv-layer matmuls
MAX_TM_FINAL = 2048    # output-row block cap for the final conv matmul
MAX_TN = 512           # output-channel block cap (multiple of 128)
MAX_TK = 2048          # single-tile reduction cap; above this -> multi-step K fallback


def _round_up(x, m):
    return ((x + m - 1) // m) * m


# --------------------------------------------------------------------------------------
# Pallas kernels: fused  out = act(A @ B + bias)
#   A: (M, K) bf16, B: (K, N) bf16, bias: (1, N) f32, out: (M, N) out_dtype.
# --------------------------------------------------------------------------------------
def _fused_matmul_kernel(a_ref, b_ref, bias_ref, o_ref, *, relu):
    """Single K step: one MXU matmul + bias/act epilogue + ONE store (no init / RMW)."""
    y = jnp.dot(a_ref[...], b_ref[...], preferred_element_type=jnp.float32) + bias_ref[...]
    if relu:
        y = jnp.maximum(y, 0.0)
    o_ref[...] = y.astype(o_ref.dtype)


def _multi_k_matmul_kernel(a_ref, b_ref, bias_ref, o_ref, acc_ref, *, relu):
    """Fallback when K does not fit a single tile: f32 VMEM accumulator, single final store."""
    k = pl.program_id(2)
    part = jnp.dot(a_ref[...], b_ref[...], preferred_element_type=jnp.float32)

    @pl.when(k == 0)
    def _():
        acc_ref[...] = part

    @pl.when(k > 0)
    def _():
        acc_ref[...] += part

    @pl.when(k == pl.num_programs(2) - 1)
    def _():
        y = acc_ref[...] + bias_ref[...]
        if relu:
            y = jnp.maximum(y, 0.0)
        o_ref[...] = y.astype(o_ref.dtype)


def matmul_bias_act(a, b, bias, *, relu, out_dtype=jnp.float32, max_tm=MAX_TM_DECONV):
    """act(a @ b + bias): bf16 MXU operands, f32 accumulate, `out_dtype` store.
    a: (M, K), b: (K, N) with N a multiple of 128 (preprocessed), bias: (N,) f32.
    M may be ragged w.r.t. the row block; Pallas masks the boundary-block stores."""
    M, K = a.shape
    K2, N = b.shape
    assert K2 == K and bias.shape == (N,)
    assert N % 128 == 0, "weights must be preprocessed to a lane-dense channel count"

    a = a.astype(jnp.bfloat16)
    b = b.astype(jnp.bfloat16)
    bias2 = bias.astype(jnp.float32).reshape(1, N)

    # Balanced M tile (multiple of 16 rows for bf16-friendly sublane tiling).
    nm = pl.cdiv(M, max_tm)
    tm = min(_round_up(pl.cdiv(M, nm), 16), _round_up(M, 16))
    grid_m = pl.cdiv(M, tm)

    # N tile.
    tn = min(N, MAX_TN)
    grid_n = pl.cdiv(N, tn)

    # Guarantee >=2 blocks on the parallel axes so both v7x TensorCores get work.
    if grid_m * grid_n == 1 and N >= 256:
        tn = max(128, (N // 2) // 128 * 128)
        grid_n = pl.cdiv(N, tn)

    # Reduction: single tile whenever K fits (always, for this model); otherwise a zero-padded
    # multi-step reduction (zeros are harmless in the accumulation).
    if K <= MAX_TK:
        tk, nk = K, 1
    else:
        tk = MAX_TK
        kp = _round_up(K, tk)
        if kp != K:
            a = jnp.pad(a, ((0, 0), (0, kp - K)))
            b = jnp.pad(b, ((0, kp - K), (0, 0)))
            K = kp
        nk = K // tk

    # Explicit VMEM budget: double-buffered A/B/bias/out blocks (+ scratch acc if multi-K).
    out_itemsize = jnp.dtype(out_dtype).itemsize
    est = 2 * (tm * tk * 2 + tk * tn * 2 + tn * 4 + tm * tn * out_itemsize)
    if nk > 1:
        est += tm * tn * 4
    vmem_limit = int(min(48 * 1024 * 1024, max(3 * est, 16 * 1024 * 1024)))

    if nk == 1:
        kernel = functools.partial(_fused_matmul_kernel, relu=relu)
        scratch = ()
    else:
        kernel = functools.partial(_multi_k_matmul_kernel, relu=relu)
        scratch = (pltpu.VMEM((tm, tn), jnp.float32),)

    return pl.pallas_call(
        kernel,
        out_shape=jax.ShapeDtypeStruct((M, N), out_dtype),
        grid=(grid_m, grid_n, nk),
        in_specs=[
            pl.BlockSpec((tm, tk), lambda i, j, k: (i, k)),
            pl.BlockSpec((tk, tn), lambda i, j, k: (k, j)),
            pl.BlockSpec((1, tn), lambda i, j, k: (0, j)),
        ],
        out_specs=pl.BlockSpec((tm, tn), lambda i, j, k: (i, j)),
        scratch_shapes=scratch,
        compiler_params=pltpu.CompilerParams(
            dimension_semantics=("parallel", "parallel", "arbitrary"),
            vmem_limit_bytes=vmem_limit),
    )(a, b, bias2)


# --------------------------------------------------------------------------------------
# Layer wrappers (NHWC bf16 activations; only layout plumbing outside the kernel)
# --------------------------------------------------------------------------------------
def _pixel_shuffle_2x(y, B, S, T, OC):
    """(B*S*T, 4*OC) matmul output -> (B, 2S, 2T, OC) by interleaving the 2x2 phase groups."""
    y = y.reshape(B, S, T, 2, 2, OC)
    y = jnp.transpose(y, (0, 1, 3, 2, 4, 5))
    return y.reshape(B, 2 * S, 2 * T, OC)


def _zero_border(y):
    """Zero the 1-pixel spatial border of an NHWC tensor (fuses into the producing XLA pass).
    border_zero(un-cropped pixel-shuffle) == pad(crop(un-cropped), 1): it IS the next layer's
    padded input, so the per-layer crop->pad HBM bounce disappears."""
    _, hh, ww, _ = y.shape
    r = jnp.arange(hh)
    c = jnp.arange(ww)
    mask = ((r > 0) & (r < hh - 1))[:, None] & ((c > 0) & (c < ww - 1))[None, :]
    return jnp.where(mask[None, :, :, None], y, jnp.zeros((), y.dtype))


def deconv_layer(x, layer):
    """One ConvTranspose2d(stride=2, bias=False) + folded BN + ReLU (NHWC, bf16 in/out).

    kernel_size == 4: `x` is the zero-border-PADDED input (B, H+2, W+2, C); returns the
    border-zeroed, un-cropped pixel-shuffle output (B, 2H+2, 2W+2, OC), which is directly the
    next layer's padded input (true layer output = interior crop [1:-1, 1:-1]).
    kernel_size == 2: `x` is unpadded (B, H, W, C); returns (B, 2H, 2W, OC)."""
    B = x.shape[0]
    OC = layer['oc']
    if layer['k'] == 4:                         # k=4, s=2, p=1 -> sub-pixel 2x2 conv + shuffle
        _, Hp, Wp, C = x.shape
        S, T = Hp - 1, Wp - 1
        # TODO(synk): this im2col is still one XLA pass; fusing the 4 overlapping taps into the
        # kernel needs manual element-offset DMA windows.
        taps = [x[:, dh:dh + S, dw:dw + T, :] for dh in range(2) for dw in range(2)]
        a = jnp.stack(taps, axis=3).reshape(B * S * T, 4 * C)
        out = matmul_bias_act(a, layer['w'], layer['bias'], relu=True, out_dtype=jnp.bfloat16)
        y = _pixel_shuffle_2x(out, B, S, T, OC)
        return _zero_border(y)
    elif layer['k'] == 2:                       # k=2, s=2, p=0 -> pure pixel-shuffle of 1x1 conv
        _, H, W, C = x.shape
        a = x.reshape(B * H * W, C)
        out = matmul_bias_act(a, layer['w'], layer['bias'], relu=True, out_dtype=jnp.bfloat16)
        return _pixel_shuffle_2x(out, B, H, W, OC)
    else:
        # TODO(synk): kernel_size == 3 (stride 2, padding 1, output_padding 1) is not lowered
        # to the sub-pixel Pallas path.
        raise NotImplementedError("Pallas DeconvHead path supports kernel_size 2 or 4")


def final_conv(x, fl, *, padded):
    """Final Conv2d (1x1 or 3x3/pad 1); bias (+ optional folded BN/ReLU) in the epilogue.
    `padded=True` means x already carries a zero border (the k=4 deconv path): the 3x3 taps use
    it directly as their padded input, and the 1x1 conv crops its own (cheap) output instead."""
    B = x.shape[0]
    nv = fl['n_valid']
    if fl['k'] == 3:
        xp = x if padded else jnp.pad(x, ((0, 0), (1, 1), (1, 1), (0, 0)))
        _, Hp, Wp, C = xp.shape
        OH, OW = Hp - 2, Wp - 2
        taps = [xp[:, i:i + OH, j:j + OW, :] for i in range(3) for j in range(3)]
        a = jnp.stack(taps, axis=3).reshape(B * OH * OW, 9 * C)
        out = matmul_bias_act(a, fl['w'], fl['bias'], relu=fl['relu'],
                              out_dtype=jnp.float32, max_tm=MAX_TM_FINAL)
        return out.reshape(B, OH, OW, -1)[..., :nv]
    else:                                       # 1x1
        _, Hx, Wx, C = x.shape
        a = x.reshape(B * Hx * Wx, C)
        out = matmul_bias_act(a, fl['w'], fl['bias'], relu=fl['relu'],
                              out_dtype=jnp.float32, max_tm=MAX_TM_FINAL)
        out = out.reshape(B, Hx, Wx, -1)
        if padded:                              # drop the border rows/cols of the padded input
            out = out[:, 1:Hx - 1, 1:Wx - 1, :]
        return out[..., :nv]


def deconv_head_forward(prep, x_nchw):
    """Pallas DeconvHead forward: (B, C, H, W) -> (B, num_joints*depth_dim, H*2^L, W*2^L)."""
    x = jnp.transpose(x_nchw, (0, 2, 3, 1)).astype(jnp.bfloat16)    # NHWC, bf16 activations
    padded = prep['kernel_size'] == 4
    if padded:
        x = jnp.pad(x, ((0, 0), (1, 1), (1, 1), (0, 0)))            # one-time pad of the input
    for layer in prep['deconvs']:
        x = deconv_layer(x, layer)
    y = final_conv(x, prep['final'], padded=padded)
    return jnp.transpose(y, (0, 3, 1, 2))


# --------------------------------------------------------------------------------------
# Parameters: raw (PyTorch layout) + one-time preprocessing (re-layout / BN fold / bf16)
# --------------------------------------------------------------------------------------
def init_raw_params(key, *, in_channels, num_layers, num_filters, kernel_size,
                    conv_kernel_size, num_joints, depth_dim, with_bias_end=True):
    """Shapes/layout mirror the PyTorch DeconvHead.  Conv/deconv weights ~ N(0, 0.001) as in the
    module; BN running stats and the final bias are mildly randomized (a 'trained' module) so the
    BN-fold and bias paths are actually exercised."""
    assert kernel_size in (2, 3, 4) and conv_kernel_size in (1, 3)
    padding, output_padding = 1, 0
    if kernel_size == 3:
        output_padding = 1
    elif kernel_size == 2:
        padding = 0
    keys = iter(jax.random.split(key, 4 * num_layers + 8))
    deconvs = []
    in_ch = in_channels
    for _ in range(num_layers):
        w = 0.001 * jax.random.normal(next(keys), (in_ch, num_filters, kernel_size, kernel_size),
                                      jnp.float32)
        bn = {'gamma': jnp.ones((num_filters,), jnp.float32),
              'beta': jnp.zeros((num_filters,), jnp.float32),
              'mean': 0.01 * jax.random.normal(next(keys), (num_filters,), jnp.float32),
              'var': 1.0 + 0.1 * jax.random.uniform(next(keys), (num_filters,), jnp.float32)}
        deconvs.append({'w': w, 'bn': bn, 'padding': padding, 'output_padding': output_padding})
        in_ch = num_filters
    cnf = num_joints * depth_dim
    final = {'w': 0.001 * jax.random.normal(next(keys), (cnf, num_filters,
                                                         conv_kernel_size, conv_kernel_size),
                                            jnp.float32),
             'with_bias_end': with_bias_end}
    if with_bias_end:
        final['b'] = 0.01 * jax.random.normal(next(keys), (cnf,), jnp.float32)
    else:
        final['bn'] = {'gamma': jnp.ones((cnf,), jnp.float32),
                       'beta': jnp.zeros((cnf,), jnp.float32),
                       'mean': 0.01 * jax.random.normal(next(keys), (cnf,), jnp.float32),
                       'var': 1.0 + 0.1 * jax.random.uniform(next(keys), (cnf,), jnp.float32)}
    return {'deconvs': deconvs, 'final': final}


def preprocess_params(raw):
    """One-time host-side re-layout: fold eval-mode BN into weights/bias, build matmul-shaped
    weights, cast MXU operands to bf16.  Runs once, outside the forward path."""
    ks = int(raw['deconvs'][0]['w'].shape[2]) if raw['deconvs'] else 1
    prep = {'deconvs': [], 'final': None, 'kernel_size': ks}
    for layer in raw['deconvs']:
        w = layer['w']                                   # (IC, OC, k, k) ConvTranspose2d layout
        IC, OC, K, _ = w.shape
        bn = layer['bn']
        scale = bn['gamma'] / jnp.sqrt(bn['var'] + BN_EPS)
        bias = bn['beta'] - bn['mean'] * scale
        if K == 4:
            # Sub-pixel decomposition of ConvTranspose2d(k=4, s=2, p=1): a stride-1 2x2 conv over
            # the 1-padded input; tap (oh,ow), phase (d,e):  kh = 2+d-2*oh, kw = 2+e-2*ow.
            w2 = jnp.zeros((2, 2, IC, 2, 2, OC), jnp.float32)
            for oh in range(2):
                for ow in range(2):
                    for d in range(2):
                        for e in range(2):
                            w2 = w2.at[oh, ow, :, d, e, :].set(w[:, :, 2 + d - 2 * oh, 2 + e - 2 * ow])
            w_mat = (w2 * scale[None, None, None, None, None, :]).reshape(4 * IC, 4 * OC)
        elif K == 2:
            # ConvTranspose2d(k=2, s=2, p=0) is a pure pixel-shuffle of a 1x1 conv.
            w2 = jnp.transpose(w, (0, 2, 3, 1))          # (IC, d, e, OC)
            w_mat = (w2 * scale[None, None, None, :]).reshape(IC, 4 * OC)
        else:
            # TODO(synk): kernel_size == 3 transposed conv not lowered to the sub-pixel path.
            raise NotImplementedError("kernel_size must be 2 or 4 for the Pallas path")
        prep['deconvs'].append({'w': w_mat.astype(jnp.bfloat16),
                                'bias': jnp.tile(bias, 4).astype(jnp.float32),
                                'oc': OC, 'k': K})
    fl = raw['final']
    fw = fl['w']                                         # (OCf, IC, ck, ck) Conv2d layout
    OCf, ICf, CK, _ = fw.shape
    w_mat = jnp.transpose(fw, (2, 3, 1, 0)).reshape(CK * CK * ICf, OCf)
    if fl['with_bias_end']:
        bias, relu = fl['b'], False
    else:
        bn = fl['bn']
        scale = bn['gamma'] / jnp.sqrt(bn['var'] + BN_EPS)
        bias, relu = bn['beta'] - bn['mean'] * scale, True
        w_mat = w_mat * scale[None, :]
    n_pad = _round_up(OCf, 128)                          # lane-dense stores for the tiny head
    w_mat = jnp.pad(w_mat, ((0, 0), (0, n_pad - OCf)))
    bias = jnp.pad(bias, (0, n_pad - OCf))
    prep['final'] = {'w': w_mat.astype(jnp.bfloat16), 'bias': bias.astype(jnp.float32),
                     'n_valid': OCf, 'k': CK, 'relu': relu}
    return prep


# --------------------------------------------------------------------------------------
# Pure-JAX f32 reference (for a correctness check against the Pallas path)
# --------------------------------------------------------------------------------------
def reference_forward(raw, x_nchw):
    x = jnp.transpose(x_nchw, (0, 2, 3, 1)).astype(jnp.float32)
    for layer in raw['deconvs']:
        w = layer['w']
        k = w.shape[2]
        p, op = layer['padding'], layer['output_padding']
        w_hwio = jnp.transpose(w[:, :, ::-1, ::-1], (2, 3, 0, 1))
        lo = k - 1 - p
        x = lax.conv_general_dilated(x, w_hwio, window_strides=(1, 1),
                                     padding=((lo, lo + op), (lo, lo + op)),
                                     lhs_dilation=(2, 2),
                                     dimension_numbers=('NHWC', 'HWIO', 'NHWC'))
        bn = layer['bn']
        x = (x - bn['mean']) / jnp.sqrt(bn['var'] + BN_EPS) * bn['gamma'] + bn['beta']
        x = jnp.maximum(x, 0.0)
    fl = raw['final']
    fw = fl['w']
    ck = fw.shape[2]
    pad = 1 if ck == 3 else 0
    w_hwio = jnp.transpose(fw, (2, 3, 1, 0))
    x = lax.conv_general_dilated(x, w_hwio, window_strides=(1, 1),
                                 padding=((pad, pad), (pad, pad)),
                                 dimension_numbers=('NHWC', 'HWIO', 'NHWC'))
    if fl['with_bias_end']:
        x = x + fl['b']
    else:
        bn = fl['bn']
        x = (x - bn['mean']) / jnp.sqrt(bn['var'] + BN_EPS) * bn['gamma'] + bn['beta']
        x = jnp.maximum(x, 0.0)
    return jnp.transpose(x, (0, 3, 1, 2))


# --------------------------------------------------------------------------------------
if __name__ == "__main__":
    key = jax.random.PRNGKey(0)
    k_par, k_in = jax.random.split(key)

    # Small DeconvHead: in_channels=256, 3 deconv layers of 128 filters (k=4, s=2, p=1),
    # final 1x1 conv to num_joints * depth_dim = 14 channels (with bias).
    B, IN_CH, H, W = 2, 256, 8, 8
    NUM_LAYERS, NUM_FILTERS = 3, 128
    NUM_JOINTS, DEPTH_DIM = 14, 1

    raw = init_raw_params(k_par, in_channels=IN_CH, num_layers=NUM_LAYERS,
                          num_filters=NUM_FILTERS, kernel_size=4, conv_kernel_size=1,
                          num_joints=NUM_JOINTS, depth_dim=DEPTH_DIM, with_bias_end=True)
    prep = preprocess_params(raw)            # one-time weight re-layout / BN fold / bf16 cast

    x = jax.random.normal(k_in, (B, IN_CH, H, W), jnp.float32)

    fwd = jax.jit(functools.partial(deconv_head_forward, prep))
    out = fwd(x)
    jax.block_until_ready(out)

    OH = H * (2 ** NUM_LAYERS)
    assert out.shape == (B, NUM_JOINTS * DEPTH_DIM, OH, OH), out.shape
    assert bool(jnp.all(jnp.isfinite(out)))

    # numerical check vs the pure-JAX reference (bf16 MXU operands -> loose tolerance)
    ref = reference_forward(raw, x)
    err = float(jnp.max(jnp.abs(out - ref)))
    scale = float(jnp.max(jnp.abs(ref))) + 1e-12
    assert err <= 0.05 * scale + 1e-5, ("mismatch vs reference", err, scale)

    print("KERNEL_OK")
</pallas_src>

<mosaic_0001>
module attributes {stable_mosaic.version = 11 : i64} {
  func.func @_fused_matmul_kernel(%arg0: i32, %arg1: i32, %arg2: i32, %arg3: memref<176x1024xbf16, #tpu.memory_space<vmem>>, %arg4: memref<1024x256xbf16, #tpu.memory_space<vmem>>, %arg5: memref<1x256xf32, #tpu.memory_space<vmem>>, %arg6: memref<176x256xbf16, #tpu.memory_space<vmem>>) attributes {dimension_semantics = [#tpu.dimension_semantics<parallel>, #tpu.dimension_semantics<parallel>, #tpu.dimension_semantics<arbitrary>], iteration_bounds = array<i64: 1, 2, 1>, scalar_prefetch = 0 : i64, scratch_operands = 0 : i64, tpu.core_type = #tpu.core_type<tc>, window_params = [{transform_indices = @transform_0, window_bounds = array<i64: 176, 1024>}, {transform_indices = @transform_1, window_bounds = array<i64: 1024, 256>}, {transform_indices = @transform_2, window_bounds = array<i64: 1, 256>}, {transform_indices = @transform_3, window_bounds = array<i64: 176, 256>}]} {
    %c0 = arith.constant 0 : index
    %c0_0 = arith.constant 0 : index
    %0 = vector.load %arg3[%c0, %c0_0] : memref<176x1024xbf16, #tpu.memory_space<vmem>>, vector<176x1024xbf16>
    %c0_1 = arith.constant 0 : index
    %c0_2 = arith.constant 0 : index
    %1 = vector.load %arg4[%c0_1, %c0_2] : memref<1024x256xbf16, #tpu.memory_space<vmem>>, vector<1024x256xbf16>
    %cst = arith.constant dense<0.000000e+00> : vector<176x256xf32>
    %2 = tpu.matmul %0, %1, %cst {dimension_numbers = #tpu.dot_dimension_numbers<[1], [0], [0], [1], [0, 0, 1, 1], [], []>} : vector<176x1024xbf16>, vector<1024x256xbf16>, vector<176x256xf32> -> vector<176x256xf32>
    %c0_3 = arith.constant 0 : index
    %c0_4 = arith.constant 0 : index
    %3 = vector.load %arg5[%c0_3, %c0_4] : memref<1x256xf32, #tpu.memory_space<vmem>>, vector<1x256xf32>
    %4 = vector.broadcast %3 : vector<1x256xf32> to vector<176x256xf32>
    %5 = arith.addf %2, %4 : vector<176x256xf32>
    %cst_5 = arith.constant 0.000000e+00 : f32
    %6 = vector.broadcast %cst_5 : f32 to vector<176x256xf32>
    %7 = arith.maximumf %5, %6 : vector<176x256xf32>
    %8 = arith.truncf %7 : vector<176x256xf32> to vector<176x256xbf16>
    %c0_6 = arith.constant 0 : index
    %c0_7 = arith.constant 0 : index
    %9 = vector.load %arg6[%c0_6, %c0_7] : memref<176x256xbf16, #tpu.memory_space<vmem>>, vector<176x256xbf16>
    tpu.vector_store %arg6[%c0_6, %c0_7], %8 {strides = array<i32>} : memref<176x256xbf16, #tpu.memory_space<vmem>>, vector<176x256xbf16>,
    return
  }
  func.func @transform_0(%arg0: i32, %arg1: i32, %arg2: i32) -> (i32, i32) {
    %c0_i32 = arith.constant 0 : i32
    return %arg0, %arg2 : i32, i32
  }
  func.func @transform_1(%arg0: i32, %arg1: i32, %arg2: i32) -> (i32, i32) {
    %c0_i32 = arith.constant 0 : i32
    return %arg2, %arg1 : i32, i32
  }
  func.func @transform_2(%arg0: i32, %arg1: i32, %arg2: i32) -> (i32, i32) {
    %c0_i32 = arith.constant 0 : i32
    %c0_i32_0 = arith.constant 0 : i32
    return %c0_i32, %arg1 : i32, i32
  }
  func.func @transform_3(%arg0: i32, %arg1: i32, %arg2: i32) -> (i32, i32) {
    %c0_i32 = arith.constant 0 : i32
    return %arg0, %arg1 : i32, i32
  }
}

module attributes {stable_mosaic.version = 11 : i64} {
  func.func @_fused_matmul_kernel(%arg0: i32, %arg1: i32, %arg2: i32, %arg3: memref<592x512xbf16, #tpu.memory_space<vmem>>, %arg4: memref<512x256xbf16, #tpu.memory_space<vmem>>, %arg5: memref<1x256xf32, #tpu.memory_space<vmem>>, %arg6: memref<592x256xbf16, #tpu.memory_space<vmem>>) attributes {dimension_semantics = [#tpu.dimension_semantics<parallel>, #tpu.dimension_semantics<parallel>, #tpu.dimension_semantics<arbitrary>], iteration_bounds = array<i64: 1, 2, 1>, scalar_prefetch = 0 : i64, scratch_operands = 0 : i64, tpu.core_type = #tpu.core_type<tc>, window_params = [{transform_indices = @transform_0, window_bounds = array<i64: 592, 512>}, {transform_indices = @transform_1, window_bounds = array<i64: 512, 256>}, {transform_indices = @transform_2, window_bounds = array<i64: 1, 256>}, {transform_indices = @transform_3, window_bounds = array<i64: 592, 256>}]} {
    %c0 = arith.constant 0 : index
    %c0_0 = arith.constant 0 : index
    %0 = vector.load %arg3[%c0, %c0_0] : memref<592x512xbf16, #tpu.memory_space<vmem>>, vector<592x512xbf16>
    %c0_1 = arith.constant 0 : index
    %c0_2 = arith.constant 0 : index
    %1 = vector.load %arg4[%c0_1, %c0_2] : memref<512x256xbf16, #tpu.memory_space<vmem>>, vector<512x256xbf16>
    %cst = arith.constant dense<0.000000e+00> : vector<592x256xf32>
    %2 = tpu.matmul %0, %1, %cst {dimension_numbers = #tpu.dot_dimension_numbers<[1], [0], [0], [1], [0, 0, 1, 1], [], []>} : vector<592x512xbf16>, vector<512x256xbf16>, vector<592x256xf32> -> vector<592x256xf32>
    %c0_3 = arith.constant 0 : index
    %c0_4 = arith.constant 0 : index
    %3 = vector.load %arg5[%c0_3, %c0_4] : memref<1x256xf32, #tpu.memory_space<vmem>>, vector<1x256xf32>
    %4 = vector.broadcast %3 : vector<1x256xf32> to vector<592x256xf32>
    %5 = arith.addf %2, %4 : vector<592x256xf32>
    %cst_5 = arith.constant 0.000000e+00 : f32
    %6 = vector.broadcast %cst_5 : f32 to vector<592x256xf32>
    %7 = arith.maximumf %5, %6 : vector<592x256xf32>
    %8 = arith.truncf %7 : vector<592x256xf32> to vector<592x256xbf16>
    %c0_6 = arith.constant 0 : index
    %c0_7 = arith.constant 0 : index
    %9 = vector.load %arg6[%c0_6, %c0_7] : memref<592x256xbf16, #tpu.memory_space<vmem>>, vector<592x256xbf16>
    tpu.vector_store %arg6[%c0_6, %c0_7], %8 {strides = array<i32>} : memref<592x256xbf16, #tpu.memory_space<vmem>>, vector<592x256xbf16>,
    return
  }
  func.func @transform_0(%arg0: i32, %arg1: i32, %arg2: i32) -> (i32, i32) {
    %c0_i32 = arith.constant 0 : i32
    return %arg0, %arg2 : i32, i32
  }
  func.func @transform_1(%arg0: i32, %arg1: i32, %arg2: i32) -> (i32, i32) {
    %c0_i32 = arith.constant 0 : i32
    return %arg2, %arg1 : i32, i32
  }
  func.func @transform_2(%arg0: i32, %arg1: i32, %arg2: i32) -> (i32, i32) {
    %c0_i32 = arith.constant 0 : i32
    %c0_i32_0 = arith.constant 0 : i32
    return %c0_i32, %arg1 : i32, i32
  }
  func.func @transform_3(%arg0: i32, %arg1: i32, %arg2: i32) -> (i32, i32) {
    %c0_i32 = arith.constant 0 : i32
    return %arg0, %arg1 : i32, i32
  }
}

module attributes {stable_mosaic.version = 11 : i64} {
  func.func @_fused_matmul_kernel(%arg0: i32, %arg1: i32, %arg2: i32, %arg3: memref<736x512xbf16, #tpu.memory_space<vmem>>, %arg4: memref<512x512xbf16, #tpu.memory_space<vmem>>, %arg5: memref<1x512xf32, #tpu.memory_space<vmem>>, %arg6: memref<736x512xbf16, #tpu.memory_space<vmem>>) attributes {dimension_semantics = [#tpu.dimension_semantics<parallel>, #tpu.dimension_semantics<parallel>, #tpu.dimension_semantics<arbitrary>], iteration_bounds = array<i64: 3, 1, 1>, scalar_prefetch = 0 : i64, scratch_operands = 0 : i64, tpu.core_type = #tpu.core_type<tc>, window_params = [{transform_indices = @transform_0, window_bounds = array<i64: 736, 512>}, {transform_indices = @transform_1, window_bounds = array<i64: 512, 512>}, {transform_indices = @transform_2, window_bounds = array<i64: 1, 512>}, {transform_indices = @transform_3, window_bounds = array<i64: 736, 512>}]} {
    %c0 = arith.constant 0 : index
    %c0_0 = arith.constant 0 : index
    %0 = vector.load %arg3[%c0, %c0_0] : memref<736x512xbf16, #tpu.memory_space<vmem>>, vector<736x512xbf16>
    %c0_1 = arith.constant 0 : index
    %c0_2 = arith.constant 0 : index
    %1 = vector.load %arg4[%c0_1, %c0_2] : memref<512x512xbf16, #tpu.memory_space<vmem>>, vector<512x512xbf16>
    %cst = arith.constant dense<0.000000e+00> : vector<736x512xf32>
    %2 = tpu.matmul %0, %1, %cst {dimension_numbers = #tpu.dot_dimension_numbers<[1], [0], [0], [1], [0, 0, 1, 1], [], []>} : vector<736x512xbf16>, vector<512x512xbf16>, vector<736x512xf32> -> vector<736x512xf32>
    %c0_3 = arith.constant 0 : index
    %c0_4 = arith.constant 0 : index
    %3 = vector.load %arg5[%c0_3, %c0_4] : memref<1x512xf32, #tpu.memory_space<vmem>>, vector<1x512xf32>
    %4 = vector.broadcast %3 : vector<1x512xf32> to vector<736x512xf32>
    %5 = arith.addf %2, %4 : vector<736x512xf32>
    %cst_5 = arith.constant 0.000000e+00 : f32
    %6 = vector.broadcast %cst_5 : f32 to vector<736x512xf32>
    %7 = arith.maximumf %5, %6 : vector<736x512xf32>
    %8 = arith.truncf %7 : vector<736x512xf32> to vector<736x512xbf16>
    %c0_6 = arith.constant 0 : index
    %c0_7 = arith.constant 0 : index
    %9 = vector.load %arg6[%c0_6, %c0_7] : memref<736x512xbf16, #tpu.memory_space<vmem>>, vector<736x512xbf16>
    tpu.vector_store %arg6[%c0_6, %c0_7], %8 {strides = array<i32>} : memref<736x512xbf16, #tpu.memory_space<vmem>>, vector<736x512xbf16>,
    return
  }
  func.func @transform_0(%arg0: i32, %arg1: i32, %arg2: i32) -> (i32, i32) {
    %c0_i32 = arith.constant 0 : i32
    return %arg0, %arg2 : i32, i32
  }
  func.func @transform_1(%arg0: i32, %arg1: i32, %arg2: i32) -> (i32, i32) {
    %c0_i32 = arith.constant 0 : i32
    return %arg2, %arg1 : i32, i32
  }
  func.func @transform_2(%arg0: i32, %arg1: i32, %arg2: i32) -> (i32, i32) {
    %c0_i32 = arith.constant 0 : i32
    %c0_i32_0 = arith.constant 0 : i32
    return %c0_i32, %arg1 : i32, i32
  }
  func.func @transform_3(%arg0: i32, %arg1: i32, %arg2: i32) -> (i32, i32) {
    %c0_i32 = arith.constant 0 : i32
    return %arg0, %arg1 : i32, i32
  }
}

module attributes {stable_mosaic.version = 11 : i64} {
  func.func @_fused_matmul_kernel(%arg0: i32, %arg1: i32, %arg2: i32, %arg3: memref<1744x128xbf16, #tpu.memory_space<vmem>>, %arg4: memref<128x128xbf16, #tpu.memory_space<vmem>>, %arg5: memref<1x128xf32, #tpu.memory_space<vmem>>, %arg6: memref<1744x128xf32, #tpu.memory_space<vmem>>) attributes {dimension_semantics = [#tpu.dimension_semantics<parallel>, #tpu.dimension_semantics<parallel>, #tpu.dimension_semantics<arbitrary>], iteration_bounds = array<i64: 5, 1, 1>, scalar_prefetch = 0 : i64, scratch_operands = 0 : i64, tpu.core_type = #tpu.core_type<tc>, window_params = [{transform_indices = @transform_0, window_bounds = array<i64: 1744, 128>}, {transform_indices = @transform_1, window_bounds = array<i64: 128, 128>}, {transform_indices = @transform_2, window_bounds = array<i64: 1, 128>}, {transform_indices = @transform_3, window_bounds = array<i64: 1744, 128>}]} {
    %c0 = arith.constant 0 : index
    %c0_0 = arith.constant 0 : index
    %0 = vector.load %arg3[%c0, %c0_0] : memref<1744x128xbf16, #tpu.memory_space<vmem>>, vector<1744x128xbf16>
    %c0_1 = arith.constant 0 : index
    %c0_2 = arith.constant 0 : index
    %1 = vector.load %arg4[%c0_1, %c0_2] : memref<128x128xbf16, #tpu.memory_space<vmem>>, vector<128x128xbf16>
    %cst = arith.constant dense<0.000000e+00> : vector<1744x128xf32>
    %2 = tpu.matmul %0, %1, %cst {dimension_numbers = #tpu.dot_dimension_numbers<[1], [0], [0], [1], [0, 0, 1, 1], [], []>} : vector<1744x128xbf16>, vector<128x128xbf16>, vector<1744x128xf32> -> vector<1744x128xf32>
    %c0_3 = arith.constant 0 : index
    %c0_4 = arith.constant 0 : index
    %3 = vector.load %arg5[%c0_3, %c0_4] : memref<1x128xf32, #tpu.memory_space<vmem>>, vector<1x128xf32>
    %4 = vector.broadcast %3 : vector<1x128xf32> to vector<1744x128xf32>
    %5 = arith.addf %2, %4 : vector<1744x128xf32>
    %c0_5 = arith.constant 0 : index
    %c0_6 = arith.constant 0 : index
    %6 = vector.load %arg6[%c0_5, %c0_6] : memref<1744x128xf32, #tpu.memory_space<vmem>>, vector<1744x128xf32>
    tpu.vector_store %arg6[%c0_5, %c0_6], %5 {strides = array<i32>} : memref<1744x128xf32, #tpu.memory_space<vmem>>, vector<1744x128xf32>,
    return
  }
  func.func @transform_0(%arg0: i32, %arg1: i32, %arg2: i32) -> (i32, i32) {
    %c0_i32 = arith.constant 0 : i32
    return %arg0, %arg2 : i32, i32
  }
  func.func @transform_1(%arg0: i32, %arg1: i32, %arg2: i32) -> (i32, i32) {
    %c0_i32 = arith.constant 0 : i32
    return %arg2, %arg1 : i32, i32
  }
  func.func @transform_2(%arg0: i32, %arg1: i32, %arg2: i32) -> (i32, i32) {
    %c0_i32 = arith.constant 0 : i32
    %c0_i32_0 = arith.constant 0 : i32
    return %c0_i32, %arg1 : i32, i32
  }
  func.func @transform_3(%arg0: i32, %arg1: i32, %arg2: i32) -> (i32, i32) {
    %c0_i32 = arith.constant 0 : i32
    return %arg0, %arg1 : i32, i32
  }
}

</mosaic_0001>

<bundles_post_ra>
// kernel: deconv_head_forward.4
= control target key start
LH: loop header
LB: loop body
LE: loop exit
PB: predicated region body
PF: predicated region fallthrough
CT: control target
= control target key end

     0   :  { %s4050_s12 = smov 0   ;;  %s4052_s13 = smov 0   ;;  %s4927_s0 = inlined_call_operand.vmem [shape: bf16[162,1024], index: 0, kind: input, shape index: {}]   ;;  %s4928_s1 = inlined_call_operand.vmem [shape: bf16[1024,512], index: 1, kind: input, shape index: {}]   ;;  %s4929_s2 = inlined_call_operand.vmem [shape: f32[1,512], index: 2, kind: input, shape index: {}]   ;;  %s4930_s3 = inlined_call_operand.vmem [shape: bf16[162,512], index: 3, kind: output, shape index: {}]  }
   0x1   :  { %s4054_s14 = smov 0   ;;  %s4056_s15 = smov 0  }
   0x2   :  { %s4058_s16 = smov 0  }
   0x3 LB: > { %s28_s17 = sadd.s32 1, %s4020_s15  ;;  %s3246_s18 = sadd.s32 4294967295, %s4024_s16   ;;  %s4024_s16 = sphi %s4058_s16, %s13_s16   ;;  %s4020_s15 = sphi %s4056_s15, %s4935_s15   ;;  %s4016_s14 = sphi %s4054_s14, %s4934_s14   ;;  %s4012_s13 = sphi %s4052_s13, %s4933_s13   ;;  %s4008_s12 = sphi %s4050_s12, %s4932_s12  }
   0x4   : > { %p30_p0 = scmp.ge.s32.totalorder %s28_s17, 2  ;;  %p76_p1 = scmp.ne.s32.totalorder %s4012_s13, %s4008_s12 }
   0x5   : > { %p77_p2 = scmp.eq.s32.totalorder %s4024_s16, 0  ;;  %p134_p4 = scmp.eq.s32.totalorder %s3246_s18, 1 }
   0x6   : > { %s4937_s17 = smov (%p30_p0, %s28_s17), 0  ;;  %s69_s20 = sadd.s32 1, %s4012_s13 }
   0x7   : > { %p78_p3 = por %p77_p2, %p76_p1  ;;  %s65_s19 = ssub.s32 %s4020_s15, %s4937_s17 }
   0x8   : > { %p67_p5 = scmp.eq.s32.totalorder %s65_s19, 0  ;;  %p4085_p6 = por %p134_p4, %p76_p1 }
   0x9   : > { %p3250_p7 = scmp.ge.s32.totalorder %s4024_s16, 2 }
   0xa   : > { %s4090_s22 = scalar_select %p67_p5, %s4012_s13, %s69_s20  }
   0xb   : > { %177 = sbr.rel (%p3250_p7) target bundleno = 86 (0x56), region = 20 }
  0x12   : > { %180 = sbr.rel (!%p78_p3) target bundleno = 86 (0x56), region = 24  ;;  %s182_s23 = sand.u32 (%p78_p3), 1, %s4012_s13  }
  0x13   : > { %s3505_s24 = sshll.u32 (%p78_p3), %s4020_s15, 3  ;;  %s3251_s25 = sshll.u32 (%p78_p3), %s182_s23, 10 }
  0x14   : > { %s4098_s28 = scalar_lea.vmem (%p78_p3), %s4928_s1, %s3505_s24  ;;  %s4103_s29 = scalar_lea.vmem (%p78_p3), [#allocation2], %s3251_s25 }
  0x15   : > { %v472_v0 = vld [vmem:[%s4098_s28] sm:$0xff] (%p78_p3)  ;;  %v474_v1 = vld [vmem:[%s4098_s28 + $0x10] sm:$0xff] (%p78_p3) }
  0x16   : > { %v476_v2 = vld [vmem:[%s4098_s28 + $0x20] sm:$0xff] (%p78_p3)  ;;  %473 = vst [vmem:[%s4103_s29] sm:$0xff] (%p78_p3), %v472_v0  ;;  %475 = vst [vmem:[%s4103_s29 + $0x8] sm:$0xff] (%p78_p3), %v474_v1  ;;  %v478_v3 = vld [vmem:[%s4098_s28 + $0x30] sm:$0xff] (%p78_p3) }
  0x17   : > { %477 = vst [vmem:[%s4103_s29 + $0x10] sm:$0xff] (%p78_p3), %v476_v2  ;;  %v480_v4 = vld [vmem:[%s4098_s28 + $0x40] sm:$0xff] (%p78_p3)  ;;  %v482_v5 = vld [vmem:[%s4098_s28 + $0x50] sm:$0xff] (%p78_p3)  ;;  %479 = vst [vmem:[%s4103_s29 + $0x18] sm:$0xff] (%p78_p3), %v478_v3 }
  0x18   : > { %481 = vst [vmem:[%s4103_s29 + $0x20] sm:$0xff] (%p78_p3), %v480_v4  ;;  %483 = vst [vmem:[%s4103_s29 + $0x28] sm:$0xff] (%p78_p3), %v482_v5  ;;  %v484_v6 = vld [vmem:[%s4098_s28 + $0x60] sm:$0xff] (%p78_p3)  ;;  %v486_v7 = vld [vmem:[%s4098_s28 + $0x70] sm:$0xff] (%p78_p3) }
  0x19   : > { %v488_v8 = vld [vmem:[%s4098_s28 + $0x80] sm:$0xff]  ;;  %485 = vst [vmem:[%s4103_s29 + $0x30] sm:$0xff] %v484_v6  ;;  %487 = vst [vmem:[%s4103_s29 + $0x38] sm:$0xff] %v486_v7  ;;  %v490_v9 = vld [vmem:[%s4098_s28 + $0x90] sm:$0xff] }
  0x1a   : > { %489 = vst [vmem:[%s4103_s29 + $0x40] sm:$0xff] %v488_v8  ;;  %v492_v10 = vld [vmem:[%s4098_s28 + $0xa0] sm:$0xff]  ;;  %v494_v11 = vld [vmem:[%s4098_s28 + $0xb0] sm:$0xff]  ;;  %491 = vst [vmem:[%s4103_s29 + $0x48] sm:$0xff] %v490_v9 }
  0x1b   : > { %493 = vst [vmem:[%s4103_s29 + $0x50] sm:$0xff] %v492_v10  ;;  %495 = vst [vmem:[%s4103_s29 + $0x58] sm:$0xff] %v494_v11  ;;  %v496_v12 = vld [vmem:[%s4098_s28 + $0xc0] sm:$0xff]  ;;  %v498_v13 = vld [vmem:[%s4098_s28 + $0xd0] sm:$0xff] }
  0x1c   : > { %v500_v14 = vld [vmem:[%s4098_s28 + $0xe0] sm:$0xff]  ;;  %497 = vst [vmem:[%s4103_s29 + $0x60] sm:$0xff] %v496_v12  ;;  %499 = vst [vmem:[%s4103_s29 + $0x68] sm:$0xff] %v498_v13  ;;  %v502_v15 = vld [vmem:[%s4098_s28 + $0xf0] sm:$0xff] }
  0x1d   : > { %501 = vst [vmem:[%s4103_s29 + $0x70] sm:$0xff] %v500_v14  ;;  %v504_v16 = vld [vmem:[%s4098_s28 + $0x100] sm:$0xff]  ;;  %v506_v17 = vld [vmem:[%s4098_s28 + $0x110] sm:$0xff]  ;;  %503 = vst [vmem:[%s4103_s29 + $0x78] sm:$0xff] %v502_v15 }
  0x1e   : > { %505 = vst [vmem:[%s4103_s29 + $0x80] sm:$0xff] %v504_v16  ;;  %507 = vst [vmem:[%s4103_s29 + $0x88] sm:$0xff] %v506_v17  ;;  %v508_v18 = vld [vmem:[%s4098_s28 + $0x120] sm:$0xff]  ;;  %v510_v19 = vld [vmem:[%s4098_s28 + $0x130] sm:$0xff] }
  0x1f   : > { %v512_v20 = vld [vmem:[%s4098_s28 + $0x140] sm:$0xff]  ;;  %509 = vst [vmem:[%s4103_s29 + $0x90] sm:$0xff] %v508_v18  ;;  %511 = vst [vmem:[%s4103_s29 + $0x98] sm:$0xff] %v510_v19  ;;  %v514_v21 = vld [vmem:[%s4098_s28 + $0x150] sm:$0xff] }
  0x20   : > { %513 = vst [vmem:[%s4103_s29 + $0xa0] sm:$0xff] %v512_v20  ;;  %v516_v22 = vld [vmem:[%s4098_s28 + $0x160] sm:$0xff]  ;;  %v518_v23 = vld [vmem:[%s4098_s28 + $0x170] sm:$0xff]  ;;  %515 = vst [vmem:[%s4103_s29 + $0xa8] sm:$0xff] %v514_v21 }
  0x21   : > { %517 = vst [vmem:[%s4103_s29 + $0xb0] sm:$0xff] %v516_v22  ;;  %519 = vst [vmem:[%s4103_s29 + $0xb8] sm:$0xff] %v518_v23  ;;  %v520_v24 = vld [vmem:[%s4098_s28 + $0x180] sm:$0xff]  ;;  %v522_v25 = vld [vmem:[%s4098_s28 + $0x190] sm:$0xff] }
  0x22   : > { %v524_v26 = vld [vmem:[%s4098_s28 + $0x1a0] sm:$0xff]  ;;  %521 = vst [vmem:[%s4103_s29 + $0xc0] sm:$0xff] %v520_v24  ;;  %523 = vst [vmem:[%s4103_s29 + $0xc8] sm:$0xff] %v522_v25  ;;  %v526_v27 = vld [vmem:[%s4098_s28 + $0x1b0] sm:$0xff] }
  0x23   : > { %525 = vst [vmem:[%s4103_s29 + $0xd0] sm:$0xff] %v524_v26  ;;  %v528_v28 = vld [vmem:[%s4098_s28 + $0x1c0] sm:$0xff]  ;;  %v530_v29 = vld [vmem:[%s4098_s28 + $0x1d0] sm:$0xff]  ;;  %527 = vst [vmem:[%s4103_s29 + $0xd8] sm:$0xff] %v526_v27 }
  0x24   : > { %529 = vst [vmem:[%s4103_s29 + $0xe0] sm:$0xff] %v528_v28  ;;  %531 = vst [vmem:[%s4103_s29 + $0xe8] sm:$0xff] %v530_v29  ;;  %v532_v30 = vld [vmem:[%s4098_s28 + $0x1e0] sm:$0xff]  ;;  %v534_v31 = vld [vmem:[%s4098_s28 + $0x1f0] sm:$0xff] }
  0x25   : > { %v536_v32 = vld [vmem:[%s4098_s28 + $0x200] sm:$0xff]  ;;  %533 = vst [vmem:[%s4103_s29 + $0xf0] sm:$0xff] %v532_v30  ;;  %535 = vst [vmem:[%s4103_s29 + $0xf8] sm:$0xff] %v534_v31  ;;  %v538_v33 = vld [vmem:[%s4098_s28 + $0x210] sm:$0xff] }
  0x26   : > { %537 = vst [vmem:[%s4103_s29 + $0x100] sm:$0xff] %v536_v32  ;;  %v540_v34 = vld [vmem:[%s4098_s28 + $0x220] sm:$0xff]  ;;  %v542_v35 = vld [vmem:[%s4098_s28 + $0x230] sm:$0xff]  ;;  %539 = vst [vmem:[%s4103_s29 + $0x108] sm:$0xff] %v538_v33 }
  0x27   : > { %541 = vst [vmem:[%s4103_s29 + $0x110] sm:$0xff] %v540_v34  ;;  %543 = vst [vmem:[%s4103_s29 + $0x118] sm:$0xff] %v542_v35  ;;  %v544_v36 = vld [vmem:[%s4098_s28 + $0x240] sm:$0xff]  ;;  %v546_v37 = vld [vmem:[%s4098_s28 + $0x250] sm:$0xff] }
  0x28   : > { %v548_v38 = vld [vmem:[%s4098_s28 + $0x260] sm:$0xff]  ;;  %545 = vst [vmem:[%s4103_s29 + $0x120] sm:$0xff] %v544_v36  ;;  %547 = vst [vmem:[%s4103_s29 + $0x128] sm:$0xff] %v546_v37  ;;  %v550_v39 = vld [vmem:[%s4098_s28 + $0x270] sm:$0xff] }
  0x29   : > { %549 = vst [vmem:[%s4103_s29 + $0x130] sm:$0xff] %v548_v38  ;;  %v552_v40 = vld [vmem:[%s4098_s28 + $0x280] sm:$0xff]  ;;  %v554_v41 = vld [vmem:[%s4098_s28 + $0x290] sm:$0xff]  ;;  %551 = vst [vmem:[%s4103_s29 + $0x138] sm:$0xff] %v550_v39 }
  0x2a   : > { %553 = vst [vmem:[%s4103_s29 + $0x140] sm:$0xff] %v552_v40  ;;  %555 = vst [vmem:[%s4103_s29 + $0x148] sm:$0xff] %v554_v41  ;;  %v556_v42 = vld [vmem:[%s4098_s28 + $0x2a0] sm:$0xff]  ;;  %v558_v43 = vld [vmem:[%s4098_s28 + $0x2b0] sm:$0xff] }
  0x2b   : > { %v560_v44 = vld [vmem:[%s4098_s28 + $0x2c0] sm:$0xff]  ;;  %557 = vst [vmem:[%s4103_s29 + $0x150] sm:$0xff] %v556_v42  ;;  %559 = vst [vmem:[%s4103_s29 + $0x158] sm:$0xff] %v558_v43  ;;  %v562_v45 = vld [vmem:[%s4098_s28 + $0x2d0] sm:$0xff] }
  0x2c   : > { %561 = vst [vmem:[%s4103_s29 + $0x160] sm:$0xff] %v560_v44  ;;  %v564_v46 = vld [vmem:[%s4098_s28 + $0x2e0] sm:$0xff]  ;;  %v566_v47 = vld [vmem:[%s4098_s28 + $0x2f0] sm:$0xff]  ;;  %563 = vst [vmem:[%s4103_s29 + $0x168] sm:$0xff] %v562_v45 }
  0x2d   : > { %565 = vst [vmem:[%s4103_s29 + $0x170] sm:$0xff] %v564_v46  ;;  %567 = vst [vmem:[%s4103_s29 + $0x178] sm:$0xff] %v566_v47  ;;  %v568_v48 = vld [vmem:[%s4098_s28 + $0x300] sm:$0xff]  ;;  %v570_v49 = vld [vmem:[%s4098_s28 + $0x310] sm:$0xff] }
  0x2e   : > { %v572_v50 = vld [vmem:[%s4098_s28 + $0x320] sm:$0xff]  ;;  %569 = vst [vmem:[%s4103_s29 + $0x180] sm:$0xff] %v568_v48  ;;  %571 = vst [vmem:[%s4103_s29 + $0x188] sm:$0xff] %v570_v49  ;;  %v574_v51 = vld [vmem:[%s4098_s28 + $0x330] sm:$0xff] }
  0x2f   : > { %573 = vst [vmem:[%s4103_s29 + $0x190] sm:$0xff] %v572_v50  ;;  %v576_v52 = vld [vmem:[%s4098_s28 + $0x340] sm:$0xff]  ;;  %v578_v53 = vld [vmem:[%s4098_s28 + $0x350] sm:$0xff]  ;;  %575 = vst [vmem:[%s4103_s29 + $0x198] sm:$0xff] %v574_v51 }
  0x30   : > { %577 = vst [vmem:[%s4103_s29 + $0x1a0] sm:$0xff] %v576_v52  ;;  %579 = vst [vmem:[%s4103_s29 + $0x1a8] sm:$0xff] %v578_v53  ;;  %v580_v54 = vld [vmem:[%s4098_s28 + $0x360] sm:$0xff]  ;;  %v582_v55 = vld [vmem:[%s4098_s28 + $0x370] sm:$0xff] }
  0x31   : > { %v584_v56 = vld [vmem:[%s4098_s28 + $0x380] sm:$0xff]  ;;  %581 = vst [vmem:[%s4103_s29 + $0x1b0] sm:$0xff] %v580_v54  ;;  %583 = vst [vmem:[%s4103_s29 + $0x1b8] sm:$0xff] %v582_v55  ;;  %v586_v57 = vld [vmem:[%s4098_s28 + $0x390] sm:$0xff] }
  0x32   : > { %585 = vst [vmem:[%s4103_s29 + $0x1c0] sm:$0xff] %v584_v56  ;;  %v588_v58 = vld [vmem:[%s4098_s28 + $0x3a0] sm:$0xff]  ;;  %v590_v59 = vld [vmem:[%s4098_s28 + $0x3b0] sm:$0xff]  ;;  %587 = vst [vmem:[%s4103_s29 + $0x1c8] sm:$0xff] %v586_v57 }
  0x33   : > { %589 = vst [vmem:[%s4103_s29 + $0x1d0] sm:$0xff] %v588_v58  ;;  %591 = vst [vmem:[%s4103_s29 + $0x1d8] sm:$0xff] %v590_v59  ;;  %v592_v60 = vld [vmem:[%s4098_s28 + $0x3c0] sm:$0xff]  ;;  %v594_v61 = vld [vmem:[%s4098_s28 + $0x3d0] sm:$0xff] }
  0x34   : > { %v596_v62 = vld [vmem:[%s4098_s28 + $0x3e0] sm:$0xff]  ;;  %593 = vst [vmem:[%s4103_s29 + $0x1e0] sm:$0xff] %v592_v60  ;;  %595 = vst [vmem:[%s4103_s29 + $0x1e8] sm:$0xff] %v594_v61  ;;  %v598_v63 = vld [vmem:[%s4098_s28 + $0x3f0] sm:$0xff] }
  0x35   : > { %597 = vst [vmem:[%s4103_s29 + $0x1f0] sm:$0xff] %v596_v62  ;;  %v600_v0 = vld [vmem:[%s4098_s28 + $0x400] sm:$0xff]  ;;  %v602_v1 = vld [vmem:[%s4098_s28 + $0x410] sm:$0xff]  ;;  %599 = vst [vmem:[%s4103_s29 + $0x1f8] sm:$0xff] %v598_v63 }
  0x36   : > { %601 = vst [vmem:[%s4103_s29 + $0x200] sm:$0xff] %v600_v0  ;;  %603 = vst [vmem:[%s4103_s29 + $0x208] sm:$0xff] %v602_v1  ;;  %v604_v2 = vld [vmem:[%s4098_s28 + $0x420] sm:$0xff]  ;;  %v606_v3 = vld [vmem:[%s4098_s28 + $0x430] sm:$0xff] }
  0x37   : > { %v608_v4 = vld [vmem:[%s4098_s28 + $0x440] sm:$0xff]  ;;  %605 = vst [vmem:[%s4103_s29 + $0x210] sm:$0xff] %v604_v2  ;;  %607 = vst [vmem:[%s4103_s29 + $0x218] sm:$0xff] %v606_v3  ;;  %v610_v5 = vld [vmem:[%s4098_s28 + $0x450] sm:$0xff] }
  0x38   : > { %609 = vst [vmem:[%s4103_s29 + $0x220] sm:$0xff] %v608_v4  ;;  %v612_v6 = vld [vmem:[%s4098_s28 + $0x460] sm:$0xff]  ;;  %v614_v7 = vld [vmem:[%s4098_s28 + $0x470] sm:$0xff]  ;;  %611 = vst [vmem:[%s4103_s29 + $0x228] sm:$0xff] %v610_v5 }
  0x39   : > { %613 = vst [vmem:[%s4103_s29 + $0x230] sm:$0xff] %v612_v6  ;;  %615 = vst [vmem:[%s4103_s29 + $0x238] sm:$0xff] %v614_v7  ;;  %v616_v8 = vld [vmem:[%s4098_s28 + $0x480] sm:$0xff]  ;;  %v618_v9 = vld [vmem:[%s4098_s28 + $0x490] sm:$0xff] }
  0x3a   : > { %v620_v10 = vld [vmem:[%s4098_s28 + $0x4a0] sm:$0xff]  ;;  %617 = vst [vmem:[%s4103_s29 + $0x240] sm:$0xff] %v616_v8  ;;  %619 = vst [vmem:[%s4103_s29 + $0x248] sm:$0xff] %v618_v9  ;;  %v622_v11 = vld [vmem:[%s4098_s28 + $0x4b0] sm:$0xff] }
  0x3b   : > { %621 = vst [vmem:[%s4103_s29 + $0x250] sm:$0xff] %v620_v10  ;;  %v624_v12 = vld [vmem:[%s4098_s28 + $0x4c0] sm:$0xff]  ;;  %v626_v13 = vld [vmem:[%s4098_s28 + $0x4d0] sm:$0xff]  ;;  %623 = vst [vmem:[%s4103_s29 + $0x258] sm:$0xff] %v622_v11 }
  0x3c   : > { %625 = vst [vmem:[%s4103_s29 + $0x260] sm:$0xff] %v624_v12  ;;  %627 = vst [vmem:[%s4103_s29 + $0x268] sm:$0xff] %v626_v13  ;;  %v628_v14 = vld [vmem:[%s4098_s28 + $0x4e0] sm:$0xff]  ;;  %v630_v15 = vld [vmem:[%s4098_s28 + $0x4f0] sm:$0xff] }
  0x3d   : > { %v632_v16 = vld [vmem:[%s4098_s28 + $0x500] sm:$0xff]  ;;  %629 = vst [vmem:[%s4103_s29 + $0x270] sm:$0xff] %v628_v14  ;;  %631 = vst [vmem:[%s4103_s29 + $0x278] sm:$0xff] %v630_v15  ;;  %v634_v17 = vld [vmem:[%s4098_s28 + $0x510] sm:$0xff] }
  0x3e   : > { %633 = vst [vmem:[%s4103_s29 + $0x280] sm:$0xff] %v632_v16  ;;  %v636_v18 = vld [vmem:[%s4098_s28 + $0x520] sm:$0xff]  ;;  %v638_v19 = vld [vmem:[%s4098_s28 + $0x530] sm:$0xff]  ;;  %635 = vst [vmem:[%s4103_s29 + $0x288] sm:$0xff] %v634_v17 }
  0x3f   : > { %637 = vst [vmem:[%s4103_s29 + $0x290] sm:$0xff] %v636_v18  ;;  %639 = vst [vmem:[%s4103_s29 + $0x298] sm:$0xff] %v638_v19  ;;  %v640_v20 = vld [vmem:[%s4098_s28 + $0x540] sm:$0xff]  ;;  %v642_v21 = vld [vmem:[%s4098_s28 + $0x550] sm:$0xff] }
  0x40   : > { %v644_v22 = vld [vmem:[%s4098_s28 + $0x560] sm:$0xff]  ;;  %641 = vst [vmem:[%s4103_s29 + $0x2a0] sm:$0xff] %v640_v20  ;;  %643 = vst [vmem:[%s4103_s29 + $0x2a8] sm:$0xff] %v642_v21  ;;  %v646_v23 = vld [vmem:[%s4098_s28 + $0x570] sm:$0xff] }
  0x41   : > { %645 = vst [vmem:[%s4103_s29 + $0x2b0] sm:$0xff] %v644_v22  ;;  %v648_v24 = vld [vmem:[%s4098_s28 + $0x580] sm:$0xff]  ;;  %v650_v25 = vld [vmem:[%s4098_s28 + $0x590] sm:$0xff]  ;;  %647 = vst [vmem:[%s4103_s29 + $0x2b8] sm:$0xff] %v646_v23 }
  0x42   : > { %649 = vst [vmem:[%s4103_s29 + $0x2c0] sm:$0xff] %v648_v24  ;;  %651 = vst [vmem:[%s4103_s29 + $0x2c8] sm:$0xff] %v650_v25  ;;  %v652_v26 = vld [vmem:[%s4098_s28 + $0x5a0] sm:$0xff]  ;;  %v654_v27 = vld [vmem:[%s4098_s28 + $0x5b0] sm:$0xff] }
  0x43   : > { %v656_v28 = vld [vmem:[%s4098_s28 + $0x5c0] sm:$0xff]  ;;  %653 = vst [vmem:[%s4103_s29 + $0x2d0] sm:$0xff] %v652_v26  ;;  %655 = vst [vmem:[%s4103_s29 + $0x2d8] sm:$0xff] %v654_v27  ;;  %v658_v29 = vld [vmem:[%s4098_s28 + $0x5d0] sm:$0xff] }
  0x44   : > { %657 = vst [vmem:[%s4103_s29 + $0x2e0] sm:$0xff] %v656_v28  ;;  %v660_v30 = vld [vmem:[%s4098_s28 + $0x5e0] sm:$0xff]  ;;  %v662_v31 = vld [vmem:[%s4098_s28 + $0x5f0] sm:$0xff]  ;;  %659 = vst [vmem:[%s4103_s29 + $0x2e8] sm:$0xff] %v658_v29 }
  0x45   : > { %661 = vst [vmem:[%s4103_s29 + $0x2f0] sm:$0xff] %v660_v30  ;;  %663 = vst [vmem:[%s4103_s29 + $0x2f8] sm:$0xff] %v662_v31  ;;  %v664_v32 = vld [vmem:[%s4098_s28 + $0x600] sm:$0xff]  ;;  %v666_v33 = vld [vmem:[%s4098_s28 + $0x610] sm:$0xff] }
  0x46   : > { %v668_v34 = vld [vmem:[%s4098_s28 + $0x620] sm:$0xff]  ;;  %665 = vst [vmem:[%s4103_s29 + $0x300] sm:$0xff] %v664_v32  ;;  %667 = vst [vmem:[%s4103_s29 + $0x308] sm:$0xff] %v666_v33  ;;  %v670_v35 = vld [vmem:[%s4098_s28 + $0x630] sm:$0xff] }
  0x47   : > { %669 = vst [vmem:[%s4103_s29 + $0x310] sm:$0xff] %v668_v34  ;;  %v672_v36 = vld [vmem:[%s4098_s28 + $0x640] sm:$0xff]  ;;  %v674_v37 = vld [vmem:[%s4098_s28 + $0x650] sm:$0xff]  ;;  %671 = vst [vmem:[%s4103_s29 + $0x318] sm:$0xff] %v670_v35 }
  0x48   : > { %673 = vst [vmem:[%s4103_s29 + $0x320] sm:$0xff] %v672_v36  ;;  %675 = vst [vmem:[%s4103_s29 + $0x328] sm:$0xff] %v674_v37  ;;  %v676_v38 = vld [vmem:[%s4098_s28 + $0x660] sm:$0xff]  ;;  %v678_v39 = vld [vmem:[%s4098_s28 + $0x670] sm:$0xff] }
  0x49   : > { %v680_v40 = vld [vmem:[%s4098_s28 + $0x680] sm:$0xff]  ;;  %677 = vst [vmem:[%s4103_s29 + $0x330] sm:$0xff] %v676_v38  ;;  %679 = vst [vmem:[%s4103_s29 + $0x338] sm:$0xff] %v678_v39  ;;  %v682_v41 = vld [vmem:[%s4098_s28 + $0x690] sm:$0xff] }
  0x4a   : > { %681 = vst [vmem:[%s4103_s29 + $0x340] sm:$0xff] %v680_v40  ;;  %v684_v42 = vld [vmem:[%s4098_s28 + $0x6a0] sm:$0xff]  ;;  %v686_v43 = vld [vmem:[%s4098_s28 + $0x6b0] sm:$0xff]  ;;  %683 = vst [vmem:[%s4103_s29 + $0x348] sm:$0xff] %v682_v41 }
  0x4b   : > { %685 = vst [vmem:[%s4103_s29 + $0x350] sm:$0xff] %v684_v42  ;;  %687 = vst [vmem:[%s4103_s29 + $0x358] sm:$0xff] %v686_v43  ;;  %v688_v44 = vld [vmem:[%s4098_s28 + $0x6c0] sm:$0xff]  ;;  %v690_v45 = vld [vmem:[%s4098_s28 + $0x6d0] sm:$0xff] }
  0x4c   : > { %v692_v46 = vld [vmem:[%s4098_s28 + $0x6e0] sm:$0xff]  ;;  %689 = vst [vmem:[%s4103_s29 + $0x360] sm:$0xff] %v688_v44  ;;  %691 = vst [vmem:[%s4103_s29 + $0x368] sm:$0xff] %v690_v45  ;;  %v694_v47 = vld [vmem:[%s4098_s28 + $0x6f0] sm:$0xff] }
  0x4d   : > { %693 = vst [vmem:[%s4103_s29 + $0x370] sm:$0xff] %v692_v46  ;;  %v696_v48 = vld [vmem:[%s4098_s28 + $0x700] sm:$0xff]  ;;  %v698_v49 = vld [vmem:[%s4098_s28 + $0x710] sm:$0xff]  ;;  %695 = vst [vmem:[%s4103_s29 + $0x378] sm:$0xff] %v694_v47 }
  0x4e   : > { %697 = vst [vmem:[%s4103_s29 + $0x380] sm:$0xff] %v696_v48  ;;  %699 = vst [vmem:[%s4103_s29 + $0x388] sm:$0xff] %v698_v49  ;;  %v700_v50 = vld [vmem:[%s4098_s28 + $0x720] sm:$0xff]  ;;  %v702_v51 = vld [vmem:[%s4098_s28 + $0x730] sm:$0xff] }
  0x4f   : > { %v704_v52 = vld [vmem:[%s4098_s28 + $0x740] sm:$0xff]  ;;  %701 = vst [vmem:[%s4103_s29 + $0x390] sm:$0xff] %v700_v50  ;;  %703 = vst [vmem:[%s4103_s29 + $0x398] sm:$0xff] %v702_v51  ;;  %v706_v53 = vld [vmem:[%s4098_s28 + $0x750] sm:$0xff] }
  0x50   : > { %705 = vst [vmem:[%s4103_s29 + $0x3a0] sm:$0xff] %v704_v52  ;;  %v708_v54 = vld [vmem:[%s4098_s28 + $0x760] sm:$0xff]  ;;  %v710_v55 = vld [vmem:[%s4098_s28 + $0x770] sm:$0xff]  ;;  %707 = vst [vmem:[%s4103_s29 + $0x3a8] sm:$0xff] %v706_v53 }
  0x51   : > { %709 = vst [vmem:[%s4103_s29 + $0x3b0] sm:$0xff] %v708_v54  ;;  %711 = vst [vmem:[%s4103_s29 + $0x3b8] sm:$0xff] %v710_v55  ;;  %v712_v56 = vld [vmem:[%s4098_s28 + $0x780] sm:$0xff]  ;;  %v714_v57 = vld [vmem:[%s4098_s28 + $0x790] sm:$0xff] }
  0x52   : > { %v716_v58 = vld [vmem:[%s4098_s28 + $0x7a0] sm:$0xff]  ;;  %713 = vst [vmem:[%s4103_s29 + $0x3c0] sm:$0xff] %v712_v56  ;;  %715 = vst [vmem:[%s4103_s29 + $0x3c8] sm:$0xff] %v714_v57  ;;  %v718_v59 = vld [vmem:[%s4098_s28 + $0x7b0] sm:$0xff] }
  0x53   : > { %717 = vst [vmem:[%s4103_s29 + $0x3d0] sm:$0xff] %v716_v58  ;;  %v720_v60 = vld [vmem:[%s4098_s28 + $0x7c0] sm:$0xff]  ;;  %v722_v61 = vld [vmem:[%s4098_s28 + $0x7d0] sm:$0xff]  ;;  %719 = vst [vmem:[%s4103_s29 + $0x3d8] sm:$0xff] %v718_v59 }
  0x54   : > { %721 = vst [vmem:[%s4103_s29 + $0x3e0] sm:$0xff] %v720_v60  ;;  %723 = vst [vmem:[%s4103_s29 + $0x3e8] sm:$0xff] %v722_v61  ;;  %v724_v62 = vld [vmem:[%s4098_s28 + $0x7e0] sm:$0xff]  ;;  %v726_v63 = vld [vmem:[%s4098_s28 + $0x7f0] sm:$0xff] }
  0x55   : > { %725 = vst [vmem:[%s4103_s29 + $0x3f0] sm:$0xff] %v724_v62  ;;  %727 = vst [vmem:[%s4103_s29 + $0x3f8] sm:$0xff] %v726_v63 }
  0x56 PF: > { %p3254_p8 = scmp.ge.s32.totalorder %s4024_s16, 1  ;;  %p740_p9 = scmp.lt.s32.totalorder %s4024_s16, 3 }
  0x58   : > { %p741_p10 = pnand %p3254_p8, %p740_p9 }
  0x59   : > { %s747_s30 = sand.u32 (!%p741_p10), 1, %s4008_s12   ;;  %v4364_v0 = vld [vmem:[%s4927_s0] sm:$0xff] (!%p741_p10)  ;;  %v4374_v2 = vld [vmem:[%s4927_s0 + $0x10] sm:$0xff] (!%p741_p10)  ;;  %s3256_s5 = sshll.u32 (!%p741_p10), %s4016_s14, 1 }
  0x5a   : > { %744 = sbr.rel (%p741_p10) target bundleno = 560 (0x230), region = 66  ;;  %v4369_v1 = vld [vmem:[%s4927_s0 + $0x20] sm:$0xff] (!%p741_p10)  ;;  %s3255_s10 = sshll.u32 (!%p741_p10), %s747_s30, 10  ;;  %v4385_v5 = vld [vmem:[%s4927_s0 + $0x30] sm:$0xff] (!%p741_p10) }
  0x5b   : > { %v3257_v3 = vcombine.low (!%p741_p10), %v4364_v0, %v4369_v1  ;;  %v3258_v4 = vcombine.high (!%p741_p10), %v4364_v0, %v4369_v1  ;;  %v3261_v6 = vcombine.low (!%p741_p10), %v4374_v2, %v4385_v5  ;;  %v3262_v7 = vcombine.high (!%p741_p10), %v4374_v2, %v4385_v5  ;;  %s4391_s19 = scalar_lea.vmem (!%p741_p10), [#allocation2], %s3255_s10  ;;  %v836_v0 = vld [vmem:[%s4927_s0 + $0xa0] sm:$0xff] (!%p741_p10)  ;;  %v834_v1 = vld [vmem:[%s4927_s0 + $0x90] sm:$0xff] (!%p741_p10)  ;;  %p807_p11 = scmp.lt.s32.totalorder (!%p741_p10), %s3256_s5, 3 }
  0x5c   : > { %v3778_v8 = vld [vmem:[%s4391_s19 + $0x4] ss:$8 sps:$4 sm:$0xff] (!%p741_p10)   ;;  %v3782_v10 = vld [vmem:[%s4391_s19] ss:$8 sps:$4 sm:$0xff] (!%p741_p10)   ;;  %v3784_v12 = vld [vmem:[%s4391_s19 + $0x14] ss:$8 sps:$4 sm:$0xff] (!%p741_p10)  }
  0x5d   : > { %2156 = vmatprep.mubr.bf16.mxu1 (!%p741_p10), %v3258_v4  ;;  %v3780_v9 = vld [vmem:[%s4391_s19 + $0x204] ss:$8 sps:$4 sm:$0xff] (!%p741_p10)   ;;  %2442 = vmatprep.mubr.bf16.mxu0 (!%p741_p10), %v3262_v7  ;;  %v3783_v11 = vld [vmem:[%s4391_s19 + $0x200] ss:$8 sps:$4 sm:$0xff] (!%p741_p10)   ;;  %v3786_v13 = vld [vmem:[%s4391_s19 + $0x214] ss:$8 sps:$4 sm:$0xff] (!%p741_p10)  }
  0x5e   : > { %2124 = vmatprep.subr.bf16.mxu1 (!%p741_p10), %v3778_v8  ;;  %2410 = vmatprep.subr.bf16.mxu0 (!%p741_p10), %v3780_v9  ;;  %v3788_v14 = vld [vmem:[%s4391_s19 + $0x10] ss:$8 sps:$4 sm:$0xff] (!%p741_p10)   ;;  %v3790_v16 = vld [vmem:[%s4391_s19 + $0x24] ss:$8 sps:$4 sm:$0xff] (!%p741_p10)   ;;  %v3794_v18 = vld [vmem:[%s4391_s19 + $0x20] ss:$8 sps:$4 sm:$0xff] (!%p741_p10)  }
  0x5f   : > { %2125 = vmatpush1.bf16.msra.mxu1 (!%p741_p10), %v3782_v10  ;;  %2411 = vmatpush1.bf16.msra.mxu0 (!%p741_p10), %v3783_v11  ;;  %v3789_v15 = vld [vmem:[%s4391_s19 + $0x210] ss:$8 sps:$4 sm:$0xff] (!%p741_p10)   ;;  %v3792_v17 = vld [vmem:[%s4391_s19 + $0x224] ss:$8 sps:$4 sm:$0xff] (!%p741_p10)   ;;  %v3795_v19 = vld [vmem:[%s4391_s19 + $0x220] ss:$8 sps:$4 sm:$0xff] (!%p741_p10)  }
  0x60   : > { %2126 = vmatprep.subr.bf16.mxu1 (!%p741_p10), %v3784_v12  ;;  %2412 = vmatprep.subr.bf16.mxu0 (!%p741_p10), %v3786_v13  ;;  %v3796_v20 = vld [vmem:[%s4391_s19 + $0x34] ss:$8 sps:$4 sm:$0xff] (!%p741_p10)   ;;  %v3800_v22 = vld [vmem:[%s4391_s19 + $0x30] ss:$8 sps:$4 sm:$0xff] (!%p741_p10)   ;;  %v3802_v24 = vld [vmem:[%s4391_s19 + $0x44] ss:$8 sps:$4 sm:$0xff] (!%p741_p10)  }
  0x61   : > { %v3798_v21 = vld [vmem:[%s4391_s19 + $0x234] ss:$8 sps:$4 sm:$0xff]   ;;  %v3801_v23 = vld [vmem:[%s4391_s19 + $0x230] ss:$8 sps:$4 sm:$0xff]   ;;  %v3804_v25 = vld [vmem:[%s4391_s19 + $0x244] ss:$8 sps:$4 sm:$0xff]  }
  0x62   : > { %v3806_v26 = vld [vmem:[%s4391_s19 + $0x40] ss:$8 sps:$4 sm:$0xff]   ;;  %v3808_v28 = vld [vmem:[%s4391_s19 + $0x54] ss:$8 sps:$4 sm:$0xff]   ;;  %v3812_v30 = vld [vmem:[%s4391_s19 + $0x50] ss:$8 sps:$4 sm:$0xff]  }
  0x63   : > { %2127 = vmatpush1.bf16.msra.mxu1 %v3788_v14  ;;  %2413 = vmatpush1.bf16.msra.mxu0 %v3789_v15  ;;  %v3807_v27 = vld [vmem:[%s4391_s19 + $0x240] ss:$8 sps:$4 sm:$0xff]   ;;  %v3810_v29 = vld [vmem:[%s4391_s19 + $0x254] ss:$8 sps:$4 sm:$0xff]   ;;  %v3813_v31 = vld [vmem:[%s4391_s19 + $0x250] ss:$8 sps:$4 sm:$0xff]  }
  0x64   : > { %2128 = vmatprep.subr.bf16.mxu1 %v3790_v16  ;;  %2414 = vmatprep.subr.bf16.mxu0 %v3792_v17  ;;  %v3814_v32 = vld [vmem:[%s4391_s19 + $0x64] ss:$8 sps:$4 sm:$0xff]   ;;  %v3818_v34 = vld [vmem:[%s4391_s19 + $0x60] ss:$8 sps:$4 sm:$0xff]   ;;  %v3820_v36 = vld [vmem:[%s4391_s19 + $0x74] ss:$8 sps:$4 sm:$0xff]  }
  0x65   : > { %v3816_v33 = vld [vmem:[%s4391_s19 + $0x264] ss:$8 sps:$4 sm:$0xff]   ;;  %v3819_v35 = vld [vmem:[%s4391_s19 + $0x260] ss:$8 sps:$4 sm:$0xff]   ;;  %v3822_v37 = vld [vmem:[%s4391_s19 + $0x274] ss:$8 sps:$4 sm:$0xff]  }
  0x66   : > { %v3824_v38 = vld [vmem:[%s4391_s19 + $0x70] ss:$8 sps:$4 sm:$0xff]   ;;  %v3826_v40 = vld [vmem:[%s4391_s19 + $0x84] ss:$8 sps:$4 sm:$0xff]   ;;  %v3830_v42 = vld [vmem:[%s4391_s19 + $0x80] ss:$8 sps:$4 sm:$0xff]  }
  0x67   : > { %2129 = vmatpush1.bf16.msra.mxu1 %v3794_v18  ;;  %2415 = vmatpush1.bf16.msra.mxu0 %v3795_v19  ;;  %v3825_v39 = vld [vmem:[%s4391_s19 + $0x270] ss:$8 sps:$4 sm:$0xff]   ;;  %v3828_v41 = vld [vmem:[%s4391_s19 + $0x284] ss:$8 sps:$4 sm:$0xff]   ;;  %v3831_v43 = vld [vmem:[%s4391_s19 + $0x280] ss:$8 sps:$4 sm:$0xff]  }
  0x68   : > { %2130 = vmatprep.subr.bf16.mxu1 %v3796_v20  ;;  %2416 = vmatprep.subr.bf16.mxu0 %v3798_v21  ;;  %v3832_v44 = vld [vmem:[%s4391_s19 + $0x94] ss:$8 sps:$4 sm:$0xff]   ;;  %v3836_v46 = vld [vmem:[%s4391_s19 + $0x90] ss:$8 sps:$4 sm:$0xff]   ;;  %v3838_v48 = vld [vmem:[%s4391_s19 + $0xa4] ss:$8 sps:$4 sm:$0xff]  }
  0x69   : > { %v3834_v45 = vld [vmem:[%s4391_s19 + $0x294] ss:$8 sps:$4 sm:$0xff]   ;;  %v3837_v47 = vld [vmem:[%s4391_s19 + $0x290] ss:$8 sps:$4 sm:$0xff]   ;;  %v3840_v49 = vld [vmem:[%s4391_s19 + $0x2a4] ss:$8 sps:$4 sm:$0xff]  }
  0x6a   : > { %v3842_v50 = vld [vmem:[%s4391_s19 + $0xa0] ss:$8 sps:$4 sm:$0xff]   ;;  %v3844_v52 = vld [vmem:[%s4391_s19 + $0xb4] ss:$8 sps:$4 sm:$0xff]   ;;  %v3848_v54 = vld [vmem:[%s4391_s19 + $0xb0] ss:$8 sps:$4 sm:$0xff]  }
  0x6b   : > { %2131 = vmatpush1.bf16.msra.mxu1 %v3800_v22  ;;  %2417 = vmatpush1.bf16.msra.mxu0 %v3801_v23  ;;  %v3843_v51 = vld [vmem:[%s4391_s19 + $0x2a0] ss:$8 sps:$4 sm:$0xff]   ;;  %v3846_v53 = vld [vmem:[%s4391_s19 + $0x2b4] ss:$8 sps:$4 sm:$0xff]   ;;  %v3849_v55 = vld [vmem:[%s4391_s19 + $0x2b0] ss:$8 sps:$4 sm:$0xff]  }
  0x6c   : > { %2132 = vmatprep.subr.bf16.mxu1 %v3802_v24  ;;  %2418 = vmatprep.subr.bf16.mxu0 %v3804_v25  ;;  %v3850_v56 = vld [vmem:[%s4391_s19 + $0xc4] ss:$8 sps:$4 sm:$0xff]   ;;  %v3854_v58 = vld [vmem:[%s4391_s19 + $0xc0] ss:$8 sps:$4 sm:$0xff]   ;;  %v3856_v60 = vld [vmem:[%s4391_s19 + $0xd4] ss:$8 sps:$4 sm:$0xff]  }
  0x6d   : > { %v3852_v57 = vld [vmem:[%s4391_s19 + $0x2c4] ss:$8 sps:$4 sm:$0xff]   ;;  %v3855_v59 = vld [vmem:[%s4391_s19 + $0x2c0] ss:$8 sps:$4 sm:$0xff]   ;;  %v3858_v61 = vld [vmem:[%s4391_s19 + $0x2d4] ss:$8 sps:$4 sm:$0xff]  }
  0x6e   : > { %v3860_v62 = vld [vmem:[%s4391_s19 + $0xd0] ss:$8 sps:$4 sm:$0xff]   ;;  %v3862_v4 = vld [vmem:[%s4391_s19 + $0xe4] ss:$8 sps:$4 sm:$0xff]   ;;  %v3866_v8 = vld [vmem:[%s4391_s19 + $0xe0] ss:$8 sps:$4 sm:$0xff]  }
  0x6f   : > { %2133 = vmatpush1.bf16.msra.mxu1 %v3806_v26  ;;  %2419 = vmatpush1.bf16.msra.mxu0 %v3807_v27  ;;  %v3861_v63 = vld [vmem:[%s4391_s19 + $0x2d0] ss:$8 sps:$4 sm:$0xff]   ;;  %v3864_v7 = vld [vmem:[%s4391_s19 + $0x2e4] ss:$8 sps:$4 sm:$0xff]   ;;  %v3867_v9 = vld [vmem:[%s4391_s19 + $0x2e0] ss:$8 sps:$4 sm:$0xff]  }
  0x70   : > { %2134 = vmatprep.subr.bf16.mxu1 %v3808_v28  ;;  %2420 = vmatprep.subr.bf16.mxu0 %v3810_v29  ;;  %v3868_v10 = vld [vmem:[%s4391_s19 + $0xf4] ss:$8 sps:$4 sm:$0xff]   ;;  %v3872_v12 = vld [vmem:[%s4391_s19 + $0xf0] ss:$8 sps:$4 sm:$0xff]   ;;  %v3876_v14 = vld [vmem:[%s4391_s19 + $0x104] ss:$8 sps:$4 sm:$0xff]  }
  0x71   : > { %v3870_v11 = vld [vmem:[%s4391_s19 + $0x2f4] ss:$8 sps:$4 sm:$0xff]   ;;  %v3873_v13 = vld [vmem:[%s4391_s19 + $0x2f0] ss:$8 sps:$4 sm:$0xff]   ;;  %v3879_v15 = vld [vmem:[%s4391_s19 + $0x304] ss:$8 sps:$4 sm:$0xff]  }
  0x72   : > { %v824_v16 = vld [vmem:[%s4927_s0 + $0x40] sm:$0xff]  ;;  %v826_v18 = vld [vmem:[%s4927_s0 + $0x50] sm:$0xff]  ;;  %s4939_s5 = smov (!%p807_p11, %s3256_s5), 3  ;;  %s3705_s9 = smul.u32 176, %s747_s30 }
  0x73   : > { %2135 = vmatpush1.bf16.msra.mxu1 %v3812_v30  ;;  %2421 = vmatpush1.bf16.msra.mxu0 %v3813_v31  ;;  %v828_v17 = vld [vmem:[%s4927_s0 + $0x60] sm:$0xff]  ;;  %v830_v19 = vld [vmem:[%s4927_s0 + $0x70] sm:$0xff]  ;;  %s809_s8 = scalar_lea.vmem %s4929_s2, %s4939_s5  ;;  %s3528_s30 = sshll.u32 (%p4085_p6), %s4016_s14, 3 }
  0x74   : > { %2136 = vmatprep.subr.bf16.mxu1 %v3814_v32  ;;  %2422 = vmatprep.subr.bf16.mxu0 %v3816_v33  ;;  %v3874_v20 = vld [vmem:[%s4391_s19 + $0x100] ss:$8 sps:$4 sm:$0xff]   ;;  %v3882_v22 = vld [vmem:[%s4391_s19 + $0x114] ss:$8 sps:$4 sm:$0xff]   ;;  %v3266_v23 = vcombine.high %v824_v16, %v828_v17  ;;  %v3880_v24 = vld [vmem:[%s4391_s19 + $0x110] ss:$8 sps:$4 sm:$0xff]   ;;  %v3270_v25 = vcombine.high %v826_v18, %v830_v19  ;;  %v3269_v5 = vcombine.low %v826_v18, %v830_v19  ;;  %s4860_s18 = scalar_lea.vmem (%p4085_p6), %s4930_s3, %s3528_s30  }
  0x75   : > { %v3877_v21 = vld [vmem:[%s4391_s19 + $0x300] ss:$8 sps:$4 sm:$0xff]   ;;  %v3885_v26 = vld [vmem:[%s4391_s19 + $0x314] ss:$8 sps:$4 sm:$0xff]   ;;  %v3883_v27 = vld [vmem:[%s4391_s19 + $0x310] ss:$8 sps:$4 sm:$0xff]  }
  0x76   : > { %v3888_v28 = vld [vmem:[%s4391_s19 + $0x124] ss:$8 sps:$4 sm:$0xff]   ;;  %v838_v2 = vld [vmem:[%s4927_s0 + $0xb0] sm:$0xff]  ;;  %v3889_v31 = vld [vmem:[%s4391_s19 + $0x320] ss:$8 sps:$4 sm:$0xff]   ;;  %s4794_s12 = scalar_lea.vmem [#allocation3], %s3705_s9  }
  0x77   : > { %2137 = vmatpush1.bf16.msra.mxu1 %v3818_v34  ;;  %2423 = vmatpush1.bf16.msra.mxu0 %v3819_v35  ;;  %v3891_v29 = vld [vmem:[%s4391_s19 + $0x324] ss:$8 sps:$4 sm:$0xff]   ;;  %v3278_v33 = vcombine.high %v834_v1, %v838_v2  ;;  %v3894_v34 = vld [vmem:[%s4391_s19 + $0x134] ss:$8 sps:$4 sm:$0xff]   ;;  %s4862_s20 = smov (%p4085_p6), 0  }
  0x78   : > { %2138 = vmatprep.subr.bf16.mxu1 %v3820_v36  ;;  %2424 = vmatprep.subr.bf16.mxu0 %v3822_v37  ;;  %v832_v30 = vld [vmem:[%s4927_s0 + $0x80] sm:$0xff]  ;;  %v3897_v35 = vld [vmem:[%s4391_s19 + $0x334] ss:$8 sps:$4 sm:$0xff]   ;;  %v3892_v36 = vld [vmem:[%s4391_s19 + $0x130] ss:$8 sps:$4 sm:$0xff]  }
  0x79   : > { %v3274_v32 = vcombine.high %v832_v30, %v836_v0  ;;  %v3895_v37 = vld [vmem:[%s4391_s19 + $0x330] ss:$8 sps:$4 sm:$0xff]  }
  0x7b   : > { %2139 = vmatpush1.bf16.msra.mxu1 %v3824_v38  ;;  %2425 = vmatpush1.bf16.msra.mxu0 %v3825_v39  ;;  %v3900_v38 = vld [vmem:[%s4391_s19 + $0x144] ss:$8 sps:$4 sm:$0xff]  }
  0x7c   : > { %2140 = vmatprep.subr.bf16.mxu1 %v3826_v40  ;;  %2426 = vmatprep.subr.bf16.mxu0 %v3828_v41  ;;  %v840_v39 = vld [vmem:[%s4927_s0 + $0xc0] sm:$0xff]  ;;  %v842_v41 = vld [vmem:[%s4927_s0 + $0xd0] sm:$0xff] }
  0x7d   : > { %v844_v40 = vld [vmem:[%s4927_s0 + $0xe0] sm:$0xff] }
  0x7f   : > { %2141 = vmatpush1.bf16.msra.mxu1 %v3830_v42  ;;  %2427 = vmatpush1.bf16.msra.mxu0 %v3831_v43  ;;  %v3903_v42 = vld [vmem:[%s4391_s19 + $0x344] ss:$8 sps:$4 sm:$0xff]   ;;  %v846_v43 = vld [vmem:[%s4927_s0 + $0xf0] sm:$0xff] }
  0x80   : > { %2142 = vmatprep.subr.bf16.mxu1 %v3832_v44  ;;  %2428 = vmatprep.subr.bf16.mxu0 %v3834_v45  ;;  %v3273_v44 = vcombine.low %v832_v30, %v836_v0  ;;  %v3277_v45 = vcombine.low %v834_v1, %v838_v2  ;;  %v3928_v30 = vld [vmem:[%s4391_s19 + $0x190] ss:$8 sps:$4 sm:$0xff]   ;;  %v3936_v1 = vld [vmem:[%s4391_s19 + $0x1a4] ss:$8 sps:$4 sm:$0xff]  }
  0x81   : > { %v3931_v0 = vld [vmem:[%s4391_s19 + $0x390] ss:$8 sps:$4 sm:$0xff]   ;;  %v3939_v2 = vld [vmem:[%s4391_s19 + $0x3a4] ss:$8 sps:$4 sm:$0xff]  }
  0x83   : > { %2143 = vmatpush1.bf16.msra.mxu1 %v3836_v46  ;;  %2429 = vmatpush1.bf16.msra.mxu0 %v3837_v47  ;;  %v3898_v46 = vld [vmem:[%s4391_s19 + $0x140] ss:$8 sps:$4 sm:$0xff]   ;;  %v3282_v47 = vcombine.high %v840_v39, %v844_v40 }
  0x84   : > { %2144 = vmatprep.subr.bf16.mxu1 %v3838_v48  ;;  %2430 = vmatprep.subr.bf16.mxu0 %v3840_v49  ;;  %v3286_v48 = vcombine.high %v842_v41, %v846_v43  ;;  %v3901_v49 = vld [vmem:[%s4391_s19 + $0x340] ss:$8 sps:$4 sm:$0xff]  }
  0x87   : > { %2145 = vmatpush1.bf16.msra.mxu1 %v3842_v50  ;;  %2431 = vmatpush1.bf16.msra.mxu0 %v3843_v51  ;;  %v3906_v50 = vld [vmem:[%s4391_s19 + $0x154] ss:$8 sps:$4 sm:$0xff]   ;;  %v3904_v51 = vld [vmem:[%s4391_s19 + $0x150] ss:$8 sps:$4 sm:$0xff]  }
  0x88   : > { %2146 = vmatprep.subr.bf16.mxu1 %v3844_v52  ;;  %2432 = vmatprep.subr.bf16.mxu0 %v3846_v53  ;;  %v3909_v52 = vld [vmem:[%s4391_s19 + $0x354] ss:$8 sps:$4 sm:$0xff]   ;;  %v3907_v53 = vld [vmem:[%s4391_s19 + $0x350] ss:$8 sps:$4 sm:$0xff]  }
  0x8b   : > { %2147 = vmatpush1.bf16.msra.mxu1 %v3848_v54  ;;  %2433 = vmatpush1.bf16.msra.mxu0 %v3849_v55  ;;  %v848_v54 = vld [vmem:[%s4927_s0 + $0x100] sm:$0xff] }
  0x8c   : > { %2148 = vmatprep.subr.bf16.mxu1 %v3850_v56  ;;  %2434 = vmatprep.subr.bf16.mxu0 %v3852_v57  ;;  %v852_v55 = vld [vmem:[%s4927_s0 + $0x120] sm:$0xff]  ;;  %v850_v56 = vld [vmem:[%s4927_s0 + $0x110] sm:$0xff] }
  0x8d   : > { %v854_v57 = vld [vmem:[%s4927_s0 + $0x130] sm:$0xff]  ;;  %v3289_v18 = vcombine.low %v848_v54, %v852_v55 }
  0x8e   : > { %v3293_v19 = vcombine.low %v850_v56, %v854_v57 }
  0x8f   : > { %2149 = vmatpush1.bf16.msra.mxu1 %v3854_v58  ;;  %2435 = vmatpush1.bf16.msra.mxu0 %v3855_v59  ;;  %v3912_v58 = vld [vmem:[%s4391_s19 + $0x164] ss:$8 sps:$4 sm:$0xff]  }
  0x90   : > { %2150 = vmatprep.subr.bf16.mxu1 %v3856_v60  ;;  %2436 = vmatprep.subr.bf16.mxu0 %v3858_v61  ;;  %v3915_v59 = vld [vmem:[%s4391_s19 + $0x364] ss:$8 sps:$4 sm:$0xff]   ;;  %v3281_v60 = vcombine.low %v840_v39, %v844_v40  ;;  %v3285_v61 = vcombine.low %v842_v41, %v846_v43  ;;  %v878_v39 = vld [vmem:[%s4927_s0 + $0x1f0] sm:$0xff] }
  0x91   : > { %v3940_v40 = vld [vmem:[%s4391_s19 + $0x1b0] ss:$8 sps:$4 sm:$0xff]   ;;  %v3951_v43 = vld [vmem:[%s4391_s19 + $0x3c4] ss:$8 sps:$4 sm:$0xff]  }
  0x92   : > { %v3943_v41 = vld [vmem:[%s4391_s19 + $0x3b0] ss:$8 sps:$4 sm:$0xff]  }
  0x93   : > { %2151 = vmatpush1.bf16.msra.mxu1 %v3860_v62  ;;  %2437 = vmatpush1.bf16.msra.mxu0 %v3861_v63  ;;  %v3290_v62 = vcombine.high %v848_v54, %v852_v55  ;;  %v3294_v63 = vcombine.high %v850_v56, %v854_v57  ;;  %v882_v54 = vld [vmem:[%s4927_s0 + $0x210] sm:$0xff] }
  0x94   : > { %2152 = vmatprep.subr.bf16.mxu1 %v3862_v4  ;;  %2438 = vmatprep.subr.bf16.mxu0 %v3864_v7  ;;  %v3910_v4 = vld [vmem:[%s4391_s19 + $0x160] ss:$8 sps:$4 sm:$0xff]   ;;  %v886_v55 = vld [vmem:[%s4927_s0 + $0x230] sm:$0xff] }
  0x95   : > { %v3913_v7 = vld [vmem:[%s4391_s19 + $0x360] ss:$8 sps:$4 sm:$0xff]   ;;  %v3952_v56 = vld [vmem:[%s4391_s19 + $0x1d0] ss:$8 sps:$4 sm:$0xff]  }
  0x96   : > { %v3955_v57 = vld [vmem:[%s4391_s19 + $0x3d0] ss:$8 sps:$4 sm:$0xff]  }
  0x97   : > { %2153 = vmatpush1.bf16.msra.mxu1 %v3866_v8  ;;  %2439 = vmatpush1.bf16.msra.mxu0 %v3867_v9  ;;  %v3918_v8 = vld [vmem:[%s4391_s19 + $0x174] ss:$8 sps:$4 sm:$0xff]  }
  0x98   : > { %2154 = vmatprep.subr.bf16.mxu1 %v3868_v10  ;;  %2440 = vmatprep.subr.bf16.mxu0 %v3870_v11  ;;  %v3921_v9 = vld [vmem:[%s4391_s19 + $0x374] ss:$8 sps:$4 sm:$0xff]   ;;  %v856_v10 = vld [vmem:[%s4927_s0 + $0x140] sm:$0xff] }
  0x99   : > { %v860_v11 = vld [vmem:[%s4927_s0 + $0x160] sm:$0xff] }
  0x9b   : > { %2155 = vmatpush1.bf16.msra.mxu1 %v3872_v12  ;;  %2441 = vmatpush1.bf16.msra.mxu0 %v3873_v13  ;;  %v3916_v12 = vld [vmem:[%s4391_s19 + $0x170] ss:$8 sps:$4 sm:$0xff]  }
  0x9c   : > { %2267 = vmatprep.subr.bf16.mxu1 %v3876_v14  ;;  %2553 = vmatprep.subr.bf16.mxu0 %v3879_v15  ;;  %v858_v13 = vld [vmem:[%s4927_s0 + $0x150] sm:$0xff] }
  0x9d   : > { %v862_v14 = vld [vmem:[%s4927_s0 + $0x170] sm:$0xff] }
  0x9e   : > { %2157 = vmatmul.mubr.bf16.vlgmr.msra.gmra.mrb[0].mxu1 %v3257_v3  ;;  %2443 = vmatmul.mubr.bf16.vlgmr.msra.gmra.mrb[0].mxu0 %v3261_v6  ;;  %v3265_v3 = vcombine.low %v824_v16, %v828_v17  ;;  %v3886_v6 = vld [vmem:[%s4391_s19 + $0x120] ss:$8 sps:$4 sm:$0xff]   ;;  %v3919_v15 = vld [vmem:[%s4391_s19 + $0x370] ss:$8 sps:$4 sm:$0xff]   ;;  %v3924_v16 = vld [vmem:[%s4391_s19 + $0x184] ss:$8 sps:$4 sm:$0xff]  }
  0x9f   : > { %2268 = vmatpush1.bf16.msra.mxu1 %v3874_v20  ;;  %2554 = vmatpush1.bf16.msra.mxu0 %v3877_v21  ;;  %v3927_v17 = vld [vmem:[%s4391_s19 + $0x384] ss:$8 sps:$4 sm:$0xff]   ;;  %v3298_v20 = vcombine.high %v856_v10, %v860_v11  ;;  %v3302_v21 = vcombine.high %v858_v13, %v862_v14 }
  0xa0   : > { %2269 = vmatprep.subr.bf16.mxu1 %v3882_v22  ;;  %2166 = vmatprep.mubr.bf16.mxu1 %v3266_v23  ;;  %v3922_v22 = vld [vmem:[%s4391_s19 + $0x180] ss:$8 sps:$4 sm:$0xff]  }
  0xa1   : > { %2452 = vmatprep.mubr.bf16.mxu0 %v3270_v25  ;;  %2555 = vmatprep.subr.bf16.mxu0 %v3885_v26  ;;  %v3925_v23 = vld [vmem:[%s4391_s19 + $0x380] ss:$8 sps:$4 sm:$0xff]   ;;  %v3933_v25 = vld [vmem:[%s4391_s19 + $0x394] ss:$8 sps:$4 sm:$0xff]  }
  0xa2   : > { %v864_v26 = vld [vmem:[%s4927_s0 + $0x180] sm:$0xff] }
  0xa3   : > { %2270 = vmatpush1.bf16.msra.mxu1 %v3880_v24  ;;  %2556 = vmatpush1.bf16.msra.mxu0 %v3883_v27  ;;  %v3930_v24 = vld [vmem:[%s4391_s19 + $0x194] ss:$8 sps:$4 sm:$0xff]   ;;  %v868_v27 = vld [vmem:[%s4927_s0 + $0x1a0] sm:$0xff] }
  0xa4   : > { %2271 = vmatprep.subr.bf16.mxu1 %v3888_v28  ;;  %2557 = vmatprep.subr.bf16.mxu0 %v3891_v29  ;;  %v866_v28 = vld [vmem:[%s4927_s0 + $0x190] sm:$0xff] }
  0xa5   : > { %v870_v29 = vld [vmem:[%s4927_s0 + $0x1b0] sm:$0xff] }
  0xa6   : > { %2167 = vmatmul.mubr.bf16.gmra.mrb[4].mxu1 %v3265_v3  ;;  %2453 = vmatmul.mubr.bf16.gmra.mrb[4].mxu0 %v3269_v5  ;;  %v3297_v3 = vcombine.low %v856_v10, %v860_v11  ;;  %v3301_v5 = vcombine.low %v858_v13, %v862_v14  ;;  %v888_v10 = vld [vmem:[%s4927_s0 + $0x240] sm:$0xff]  ;;  %v894_v13 = vld [vmem:[%s4927_s0 + $0x270] sm:$0xff] }
  0xa7   : > { %2272 = vmatpush1.bf16.msra.mxu1 %v3886_v6  ;;  %2558 = vmatpush1.bf16.msra.mxu0 %v3889_v31  ;;  %v3306_v6 = vcombine.high %v864_v26, %v868_v27  ;;  %v3310_v31 = vcombine.high %v866_v28, %v870_v29  ;;  %v892_v11 = vld [vmem:[%s4927_s0 + $0x260] sm:$0xff]  ;;  %v3964_v14 = vld [vmem:[%s4391_s19 + $0x1f0] ss:$8 sps:$4 sm:$0xff]  }
  0xa8   : > { %2176 = vmatprep.mubr.bf16.mxu1 %v3274_v32  ;;  %2462 = vmatprep.mubr.bf16.mxu0 %v3278_v33  ;;  %v3934_v32 = vld [vmem:[%s4391_s19 + $0x1a0] ss:$8 sps:$4 sm:$0xff]  }
  0xa9   : > { %2273 = vmatprep.subr.bf16.mxu1 %v3894_v34  ;;  %2559 = vmatprep.subr.bf16.mxu0 %v3897_v35  ;;  %v3937_v33 = vld [vmem:[%s4391_s19 + $0x3a0] ss:$8 sps:$4 sm:$0xff]   ;;  %v3942_v34 = vld [vmem:[%s4391_s19 + $0x1b4] ss:$8 sps:$4 sm:$0xff]  }
  0xaa   : > { %v3945_v35 = vld [vmem:[%s4391_s19 + $0x3b4] ss:$8 sps:$4 sm:$0xff]  }
  0xab   : > { %2274 = vmatpush1.bf16.msra.mxu1 %v3892_v36  ;;  %2560 = vmatpush1.bf16.msra.mxu0 %v3895_v37  ;;  %v872_v36 = vld [vmem:[%s4927_s0 + $0x1c0] sm:$0xff] }
  0xac   : > { %2275 = vmatprep.subr.bf16.mxu1 %v3900_v38  ;;  %2561 = vmatprep.subr.bf16.mxu0 %v3903_v42  ;;  %v876_v37 = vld [vmem:[%s4927_s0 + $0x1e0] sm:$0xff]  ;;  %v874_v38 = vld [vmem:[%s4927_s0 + $0x1d0] sm:$0xff] }
  0xad   : > { %v3948_v42 = vld [vmem:[%s4391_s19 + $0x1c4] ss:$8 sps:$4 sm:$0xff]  }
  0xae   : > { %2177 = vmatmul.mubr.bf16.gmra.mrb[8].mxu1 %v3273_v44  ;;  %2463 = vmatmul.mubr.bf16.gmra.mrb[8].mxu0 %v3277_v45  ;;  %v3305_v44 = vcombine.low %v864_v26, %v868_v27  ;;  %v3309_v45 = vcombine.low %v866_v28, %v870_v29  ;;  %v817_v28 = vld [vmem:[%s4927_s0 + $0x8] sm:$0xff] }
  0xaf   : > { %2186 = vmatprep.mubr.bf16.mxu1 %v3282_v47  ;;  %2276 = vmatpush1.bf16.msra.mxu1 %v3898_v46  ;;  %v3314_v46 = vcombine.high %v872_v36, %v876_v37  ;;  %v3318_v47 = vcombine.high %v874_v38, %v878_v39  ;;  %v821_v29 = vld [vmem:[%s4927_s0 + $0x28] sm:$0xff] }
  0xb0   : > { %2472 = vmatprep.mubr.bf16.mxu0 %v3286_v48  ;;  %2562 = vmatpush1.bf16.msra.mxu0 %v3901_v49  ;;  %v3946_v48 = vld [vmem:[%s4391_s19 + $0x1c0] ss:$8 sps:$4 sm:$0xff]  }
  0xb1   : > { %2277 = vmatprep.subr.bf16.mxu1 %v3906_v50  ;;  %2563 = vmatprep.subr.bf16.mxu0 %v3909_v52  ;;  %v3949_v49 = vld [vmem:[%s4391_s19 + $0x3c0] ss:$8 sps:$4 sm:$0xff]   ;;  %v3954_v50 = vld [vmem:[%s4391_s19 + $0x1d4] ss:$8 sps:$4 sm:$0xff]  }
  0xb2   : > { %v880_v52 = vld [vmem:[%s4927_s0 + $0x200] sm:$0xff] }
  0xb3   : > { %2278 = vmatpush1.bf16.msra.mxu1 %v3904_v51  ;;  %v3957_v51 = vld [vmem:[%s4391_s19 + $0x3d4] ss:$8 sps:$4 sm:$0xff]  }
  0xb4   : > { %2564 = vmatpush1.bf16.msra.mxu0 %v3907_v53  ;;  %2279 = vmatprep.subr.bf16.mxu1 %v3912_v58  ;;  %v884_v53 = vld [vmem:[%s4927_s0 + $0x220] sm:$0xff] }
  0xb5   : > { %2565 = vmatprep.subr.bf16.mxu0 %v3915_v59  ;;  %v3960_v58 = vld [vmem:[%s4391_s19 + $0x1e4] ss:$8 sps:$4 sm:$0xff]  }
  0xb6   : > { %2187 = vmatmul.mubr.bf16.gmra.mrb[12].mxu1 %v3281_v60  ;;  %2473 = vmatmul.mubr.bf16.gmra.mrb[12].mxu0 %v3285_v61  ;;  %v3963_v59 = vld [vmem:[%s4391_s19 + $0x3e4] ss:$8 sps:$4 sm:$0xff]   ;;  %v3313_v60 = vcombine.low %v872_v36, %v876_v37  ;;  %v3317_v61 = vcombine.low %v874_v38, %v878_v39 }
  0xb7   : > { %2196 = vmatprep.mubr.bf16.mxu1 %v3290_v62  ;;  %2482 = vmatprep.mubr.bf16.mxu0 %v3294_v63  ;;  %v3322_v62 = vcombine.high %v880_v52, %v884_v53  ;;  %v3326_v63 = vcombine.high %v882_v54, %v886_v55  ;;  %v833_v38 = vld [vmem:[%s4927_s0 + $0x88] sm:$0xff] }
  0xb8   : > { %2280 = vmatpush1.bf16.msra.mxu1 %v3910_v4  ;;  %2566 = vmatpush1.bf16.msra.mxu0 %v3913_v7  ;;  %v3958_v4 = vld [vmem:[%s4391_s19 + $0x1e0] ss:$8 sps:$4 sm:$0xff]  }
  0xb9   : > { %2281 = vmatprep.subr.bf16.mxu1 %v3918_v8  ;;  %2567 = vmatprep.subr.bf16.mxu0 %v3921_v9  ;;  %v3961_v7 = vld [vmem:[%s4391_s19 + $0x3e0] ss:$8 sps:$4 sm:$0xff]   ;;  %v3966_v8 = vld [vmem:[%s4391_s19 + $0x1f4] ss:$8 sps:$4 sm:$0xff]  }
  0xba   : > { %v3969_v9 = vld [vmem:[%s4391_s19 + $0x3f4] ss:$8 sps:$4 sm:$0xff]   ;;  %v837_v39 = vld [vmem:[%s4927_s0 + $0xa8] sm:$0xff] }
  0xbc   : > { %2282 = vmatpush1.bf16.msra.mxu1 %v3916_v12  ;;  %2568 = vmatpush1.bf16.msra.mxu0 %v3919_v15  ;;  %v890_v12 = vld [vmem:[%s4927_s0 + $0x250] sm:$0xff] }
  0xbd   : > { %2283 = vmatprep.subr.bf16.mxu1 %v3924_v16  ;;  %2569 = vmatprep.subr.bf16.mxu0 %v3927_v17  ;;  %v3967_v15 = vld [vmem:[%s4391_s19 + $0x3f0] ss:$8 sps:$4 sm:$0xff]   ;;  %v3321_v16 = vcombine.low %v880_v52, %v884_v53  ;;  %v3325_v17 = vcombine.low %v882_v54, %v886_v55  ;;  %v849_v54 = vld [vmem:[%s4927_s0 + $0x108] sm:$0xff] }
  0xbe   : > { %2197 = vmatmul.mubr.bf16.gmra.mrb[16].mxu1 %v3289_v18  ;;  %2483 = vmatmul.mubr.bf16.gmra.mrb[16].mxu0 %v3293_v19  ;;  %v3330_v18 = vcombine.high %v888_v10, %v892_v11  ;;  %v3334_v19 = vcombine.high %v890_v12, %v894_v13  ;;  %v853_v55 = vld [vmem:[%s4927_s0 + $0x128] sm:$0xff] }
  0xbf   : > { %2206 = vmatprep.mubr.bf16.mxu1 %v3298_v20  ;;  %2492 = vmatprep.mubr.bf16.mxu0 %v3302_v21  ;;  %v896_v20 = vld [vmem:[%s4927_s0 + $0x280] sm:$0xff] }
  0xc0   : > { %2284 = vmatpush1.bf16.msra.mxu1 %v3922_v22  ;;  %2570 = vmatpush1.bf16.msra.mxu0 %v3925_v23  ;;  %v900_v21 = vld [vmem:[%s4927_s0 + $0x2a0] sm:$0xff]  ;;  %v898_v22 = vld [vmem:[%s4927_s0 + $0x290] sm:$0xff] }
  0xc1   : > { %2285 = vmatprep.subr.bf16.mxu1 %v3930_v24  ;;  %2571 = vmatprep.subr.bf16.mxu0 %v3933_v25  ;;  %v902_v23 = vld [vmem:[%s4927_s0 + $0x2b0] sm:$0xff]  ;;  %v3329_v24 = vcombine.low %v888_v10, %v892_v11  ;;  %v3333_v25 = vcombine.low %v890_v12, %v894_v13  ;;  %v3338_v26 = vcombine.high %v896_v20, %v900_v21  ;;  %v865_v12 = vld [vmem:[%s4927_s0 + $0x188] sm:$0xff] }
  0xc2   : > { %v3342_v27 = vcombine.high %v898_v22, %v902_v23  ;;  %v869_v13 = vld [vmem:[%s4927_s0 + $0x1a8] sm:$0xff] }
  0xc4   : > { %2286 = vmatpush1.bf16.msra.mxu1 %v3928_v30  ;;  %2572 = vmatpush1.bf16.msra.mxu0 %v3931_v0  ;;  %v819_v30 = vld [vmem:[%s4927_s0 + $0x18] sm:$0xff] }
  0xc5   : > { %2287 = vmatprep.subr.bf16.mxu1 %v3936_v1  ;;  %2573 = vmatprep.subr.bf16.mxu0 %v3939_v2  ;;  %v823_v0 = vld [vmem:[%s4927_s0 + $0x38] sm:$0xff]  ;;  %v3337_v1 = vcombine.low %v896_v20, %v900_v21  ;;  %v3341_v2 = vcombine.low %v898_v22, %v902_v23  ;;  %v873_v20 = vld [vmem:[%s4927_s0 + $0x1c8] sm:$0xff] }
  0xc6   : > { %2207 = vmatmul.mubr.bf16.gmra.mrb[20].mxu1 %v3297_v3  ;;  %2493 = vmatmul.mubr.bf16.gmra.mrb[20].mxu0 %v3301_v5  ;;  %v3260_v3 = vcombine.high %v817_v28, %v821_v29  ;;  %v3264_v5 = vcombine.high %v819_v30, %v823_v0  ;;  %v877_v21 = vld [vmem:[%s4927_s0 + $0x1e8] sm:$0xff]  ;;  %v875_v22 = vld [vmem:[%s4927_s0 + $0x1d8] sm:$0xff] }
  0xc7   : > { %2216 = vmatprep.mubr.bf16.mxu1 %v3306_v6  ;;  %2502 = vmatprep.mubr.bf16.mxu0 %v3310_v31  ;;  %v825_v6 = vld [vmem:[%s4927_s0 + $0x48] sm:$0xff]  ;;  %v879_v23 = vld [vmem:[%s4927_s0 + $0x1f8] sm:$0xff] }
  0xc8   : > { %2288 = vmatpush1.bf16.msra.mxu1 %v3934_v32  ;;  %2574 = vmatpush1.bf16.msra.mxu0 %v3937_v33  ;;  %v829_v31 = vld [vmem:[%s4927_s0 + $0x68] sm:$0xff]  ;;  %v827_v32 = vld [vmem:[%s4927_s0 + $0x58] sm:$0xff] }
  0xc9   : > { %2289 = vmatprep.subr.bf16.mxu1 %v3942_v34  ;;  %2575 = vmatprep.subr.bf16.mxu0 %v3945_v35  ;;  %v831_v33 = vld [vmem:[%s4927_s0 + $0x78] sm:$0xff]  ;;  %v3259_v34 = vcombine.low %v817_v28, %v821_v29  ;;  %v3263_v35 = vcombine.low %v819_v30, %v823_v0  ;;  %v3268_v36 = vcombine.high %v825_v6, %v829_v31  ;;  %v881_v28 = vld [vmem:[%s4927_s0 + $0x208] sm:$0xff] }
  0xca   : > { %v3272_v37 = vcombine.high %v827_v32, %v831_v33  ;;  %v885_v29 = vld [vmem:[%s4927_s0 + $0x228] sm:$0xff]  ;;  %v883_v30 = vld [vmem:[%s4927_s0 + $0x218] sm:$0xff] }
  0xcb   : > { %v887_v0 = vld [vmem:[%s4927_s0 + $0x238] sm:$0xff] }
  0xcc   : > { %2290 = vmatpush1.bf16.msra.mxu1 %v3940_v40  ;;  %2576 = vmatpush1.bf16.msra.mxu0 %v3943_v41  ;;  %v835_v40 = vld [vmem:[%s4927_s0 + $0x98] sm:$0xff] }
  0xcd   : > { %2291 = vmatprep.subr.bf16.mxu1 %v3948_v42  ;;  %2577 = vmatprep.subr.bf16.mxu0 %v3951_v43  ;;  %v839_v41 = vld [vmem:[%s4927_s0 + $0xb8] sm:$0xff]  ;;  %v3267_v42 = vcombine.low %v825_v6, %v829_v31  ;;  %v3271_v43 = vcombine.low %v827_v32, %v831_v33  ;;  %v889_v6 = vld [vmem:[%s4927_s0 + $0x248] sm:$0xff] }
  0xce   : > { %2217 = vmatmul.mubr.bf16.gmra.mrb[24].mxu1 %v3305_v44  ;;  %2503 = vmatmul.mubr.bf16.gmra.mrb[24].mxu0 %v3309_v45  ;;  %v3276_v44 = vcombine.high %v833_v38, %v837_v39  ;;  %v3280_v45 = vcombine.high %v835_v40, %v839_v41  ;;  %v893_v31 = vld [vmem:[%s4927_s0 + $0x268] sm:$0xff]  ;;  %v891_v32 = vld [vmem:[%s4927_s0 + $0x258] sm:$0xff] }
  0xcf   : > { %2226 = vmatprep.mubr.bf16.mxu1 %v3314_v46  ;;  %2512 = vmatprep.mubr.bf16.mxu0 %v3318_v47  ;;  %v841_v46 = vld [vmem:[%s4927_s0 + $0xc8] sm:$0xff]  ;;  %v895_v33 = vld [vmem:[%s4927_s0 + $0x278] sm:$0xff] }
  0xd0   : > { %2292 = vmatpush1.bf16.msra.mxu1 %v3946_v48  ;;  %2578 = vmatpush1.bf16.msra.mxu0 %v3949_v49  ;;  %v845_v47 = vld [vmem:[%s4927_s0 + $0xe8] sm:$0xff]  ;;  %v843_v48 = vld [vmem:[%s4927_s0 + $0xd8] sm:$0xff] }
  0xd1   : > { %2293 = vmatprep.subr.bf16.mxu1 %v3954_v50  ;;  %2579 = vmatprep.subr.bf16.mxu0 %v3957_v51  ;;  %v847_v49 = vld [vmem:[%s4927_s0 + $0xf8] sm:$0xff]  ;;  %v3275_v50 = vcombine.low %v833_v38, %v837_v39  ;;  %v3279_v51 = vcombine.low %v835_v40, %v839_v41  ;;  %v3284_v52 = vcombine.high %v841_v46, %v845_v47  ;;  %v897_v38 = vld [vmem:[%s4927_s0 + $0x288] sm:$0xff] }
  0xd2   : > { %v3288_v53 = vcombine.high %v843_v48, %v847_v49  ;;  %v901_v39 = vld [vmem:[%s4927_s0 + $0x2a8] sm:$0xff]  ;;  %v899_v40 = vld [vmem:[%s4927_s0 + $0x298] sm:$0xff] }
  0xd3   : > { %v903_v41 = vld [vmem:[%s4927_s0 + $0x2b8] sm:$0xff] }
  0xd4   : > { %2294 = vmatpush1.bf16.msra.mxu1 %v3952_v56  ;;  %2580 = vmatpush1.bf16.msra.mxu0 %v3955_v57  ;;  %v851_v56 = vld [vmem:[%s4927_s0 + $0x118] sm:$0xff] }
  0xd5   : > { %2295 = vmatprep.subr.bf16.mxu1 %v3960_v58  ;;  %2581 = vmatprep.subr.bf16.mxu0 %v3963_v59  ;;  %v855_v57 = vld [vmem:[%s4927_s0 + $0x138] sm:$0xff]  ;;  %v3283_v58 = vcombine.low %v841_v46, %v845_v47  ;;  %v3287_v59 = vcombine.low %v843_v48, %v847_v49  ;;  %v3339_v46 = vcombine.low %v897_v38, %v901_v39  ;;  %v1034_v48 = vlaneseq }
  0xd6   : > { %2227 = vmatmul.mubr.bf16.gmra.mrb[28].mxu1 %v3313_v60  ;;  %2513 = vmatmul.mubr.bf16.gmra.mrb[28].mxu0 %v3317_v61  ;;  %v3292_v60 = vcombine.high %v849_v54, %v853_v55  ;;  %v3296_v61 = vcombine.high %v851_v56, %v855_v57  ;;  %v3343_v47 = vcombine.low %v899_v40, %v903_v41 }
  0xd7   : > { %2236 = vmatprep.mubr.bf16.mxu1 %v3322_v62  ;;  %2522 = vmatprep.mubr.bf16.mxu0 %v3326_v63  ;;  %v857_v62 = vld [vmem:[%s4927_s0 + $0x148] sm:$0xff]  ;;  %v1035_v49 = vshrl.u32 %v1034_v48, 7 }
  0xd8   : > { %2296 = vmatpush1.bf16.msra.mxu1 %v3958_v4  ;;  %2582 = vmatpush1.bf16.msra.mxu0 %v3961_v7  ;;  %v861_v63 = vld [vmem:[%s4927_s0 + $0x168] sm:$0xff]  ;;  %v859_v4 = vld [vmem:[%s4927_s0 + $0x158] sm:$0xff] }
  0xd9   : > { %2297 = vmatprep.subr.bf16.mxu1 %v3966_v8  ;;  %2583 = vmatprep.subr.bf16.mxu0 %v3969_v9  ;;  %v863_v7 = vld [vmem:[%s4927_s0 + $0x178] sm:$0xff]  ;;  %v3291_v8 = vcombine.low %v849_v54, %v853_v55  ;;  %v3295_v9 = vcombine.low %v851_v56, %v855_v57  ;;  %v3300_v10 = vcombine.high %v857_v62, %v861_v63 }
  0xda   : > { %v3304_v11 = vcombine.high %v859_v4, %v863_v7 }
  0xdc   : > { %2298 = vmatpush1.bf16.msra.mxu1 %v3964_v14  ;;  %2584 = vmatpush1.bf16.msra.mxu0 %v3967_v15  ;;  %v867_v14 = vld [vmem:[%s4927_s0 + $0x198] sm:$0xff] }
  0xdd   : > { %v871_v15 = vld [vmem:[%s4927_s0 + $0x1b8] sm:$0xff] }
  0xde   : > { %2237 = vmatmul.mubr.bf16.gmra.mrb[32].mxu1 %v3321_v16  ;;  %2523 = vmatmul.mubr.bf16.gmra.mrb[32].mxu0 %v3325_v17  ;;  %v3299_v16 = vcombine.low %v857_v62, %v861_v63  ;;  %v3303_v17 = vcombine.low %v859_v4, %v863_v7 }
  0xdf   : > { %2246 = vmatprep.mubr.bf16.mxu1 %v3330_v18  ;;  %2532 = vmatprep.mubr.bf16.mxu0 %v3334_v19  ;;  %v3308_v18 = vcombine.high %v865_v12, %v869_v13  ;;  %v3312_v19 = vcombine.high %v867_v14, %v871_v15 }
  0xe6   : > { %2247 = vmatmul.mubr.bf16.gmra.mrb[36].mxu1 %v3329_v24  ;;  %2533 = vmatmul.mubr.bf16.gmra.mrb[36].mxu0 %v3333_v25  ;;  %v3307_v24 = vcombine.low %v865_v12, %v869_v13  ;;  %v3311_v25 = vcombine.low %v867_v14, %v871_v15 }
  0xe7   : > { %2256 = vmatprep.mubr.bf16.mxu1 %v3338_v26  ;;  %2542 = vmatprep.mubr.bf16.mxu0 %v3342_v27  ;;  %v3316_v26 = vcombine.high %v873_v20, %v877_v21  ;;  %v3320_v27 = vcombine.high %v875_v22, %v879_v23 }
  0xee   : > { %2257 = vmatmul.mubr.bf16.gmra.mrb[40].mxu1 %v3337_v1  ;;  %2543 = vmatmul.mubr.bf16.gmra.mrb[40].mxu0 %v3341_v2  ;;  %v3315_v1 = vcombine.low %v873_v20, %v877_v21  ;;  %v3319_v2 = vcombine.low %v875_v22, %v879_v23 }
  0xef   : > { %2299 = vmatprep.mubr.bf16.mxu1 %v3260_v3  ;;  %2585 = vmatprep.mubr.bf16.mxu0 %v3264_v5  ;;  %v3324_v3 = vcombine.high %v881_v28, %v885_v29  ;;  %v3328_v5 = vcombine.high %v883_v30, %v887_v0 }
  0xf6   : > { %2300 = vmatmul.mubr.bf16.vlgmr.msra.gmra.mrb[0].mxu1 %v3259_v34  ;;  %2586 = vmatmul.mubr.bf16.vlgmr.msra.gmra.mrb[0].mxu0 %v3263_v35  ;;  %v3323_v34 = vcombine.low %v881_v28, %v885_v29  ;;  %v3327_v35 = vcombine.low %v883_v30, %v887_v0 }
  0xf7   : > { %2309 = vmatprep.mubr.bf16.mxu1 %v3268_v36  ;;  %2595 = vmatprep.mubr.bf16.mxu0 %v3272_v37  ;;  %v3332_v36 = vcombine.high %v889_v6, %v893_v31  ;;  %v3336_v37 = vcombine.high %v891_v32, %v895_v33 }
  0xfe   : > { %2310 = vmatmul.mubr.bf16.gmra.mrb[4].mxu1 %v3267_v42  ;;  %2596 = vmatmul.mubr.bf16.gmra.mrb[4].mxu0 %v3271_v43  ;;  %v3331_v42 = vcombine.low %v889_v6, %v893_v31  ;;  %v3335_v43 = vcombine.low %v891_v32, %v895_v33 }
  0xff   : > { %2319 = vmatprep.mubr.bf16.mxu1 %v3276_v44  ;;  %2605 = vmatprep.mubr.bf16.mxu0 %v3280_v45  ;;  %v3340_v44 = vcombine.high %v897_v38, %v901_v39  ;;  %v3344_v45 = vcombine.high %v899_v40, %v903_v41 }
 0x106   : > { %2320 = vmatmul.mubr.bf16.gmra.mrb[8].mxu1 %v3275_v50  ;;  %2606 = vmatmul.mubr.bf16.gmra.mrb[8].mxu0 %v3279_v51  ;;  %v1036_v50 = vsub.s32 0, %v1035_v49  ;;  %v1032_v51 = vld [vmem:[%s809_s8] sm:$0x3] }
 0x107   : > { %2329 = vmatprep.mubr.bf16.mxu1 %v3284_v52  ;;  %2615 = vmatprep.mubr.bf16.mxu0 %v3288_v53  ;;  %v1040_v52 = vsub.s32 1, %v1035_v49 }
 0x108   : > { %v4783_v53 = vrot.slane %v1032_v51, %v1036_v50 }
 0x109   : > { %v4785_v54 = vrot.slane %v1032_v51, %v1040_v52 }
 0x10e   : > { %2330 = vmatmul.mubr.bf16.gmra.mrb[12].mxu1 %v3283_v58  ;;  %2616 = vmatmul.mubr.bf16.gmra.mrb[12].mxu0 %v3287_v59 }
 0x10f   : > { %2339 = vmatprep.mubr.bf16.mxu1 %v3292_v60  ;;  %2625 = vmatprep.mubr.bf16.mxu0 %v3296_v61 }
 0x116   : > { %2340 = vmatmul.mubr.bf16.gmra.mrb[16].mxu1 %v3291_v8  ;;  %2626 = vmatmul.mubr.bf16.gmra.mrb[16].mxu0 %v3295_v9 }
 0x117   : > { %2349 = vmatprep.mubr.bf16.mxu1 %v3300_v10  ;;  %2635 = vmatprep.mubr.bf16.mxu0 %v3304_v11 }
 0x11e   : > { %2350 = vmatmul.mubr.bf16.gmra.mrb[20].mxu1 %v3299_v16  ;;  %2636 = vmatmul.mubr.bf16.gmra.mrb[20].mxu0 %v3303_v17 }
 0x11f   : > { %2359 = vmatprep.mubr.bf16.mxu1 %v3308_v18  ;;  %2645 = vmatprep.mubr.bf16.mxu0 %v3312_v19 }
 0x126   : > { %2360 = vmatmul.mubr.bf16.gmra.mrb[24].mxu1 %v3307_v24  ;;  %2646 = vmatmul.mubr.bf16.gmra.mrb[24].mxu0 %v3311_v25 }
 0x127   : > { %2369 = vmatprep.mubr.bf16.mxu1 %v3316_v26  ;;  %2655 = vmatprep.mubr.bf16.mxu0 %v3320_v27 }
 0x12e   : > { %2370 = vmatmul.mubr.bf16.gmra.mrb[28].mxu1 %v3315_v1  ;;  %2656 = vmatmul.mubr.bf16.gmra.mrb[28].mxu0 %v3319_v2 }
 0x12f   : > { %2379 = vmatprep.mubr.bf16.mxu1 %v3324_v3  ;;  %2665 = vmatprep.mubr.bf16.mxu0 %v3328_v5 }
 0x136   : > { %2380 = vmatmul.mubr.bf16.gmra.mrb[32].mxu1 %v3323_v34  ;;  %2666 = vmatmul.mubr.bf16.gmra.mrb[32].mxu0 %v3327_v35 }
 0x137   : > { %2389 = vmatprep.mubr.bf16.mxu1 %v3332_v36  ;;  %2675 = vmatprep.mubr.bf16.mxu0 %v3336_v37 }
 0x13e   : > { %2390 = vmatmul.mubr.bf16.gmra.mrb[36].mxu1 %v3331_v42  ;;  %2676 = vmatmul.mubr.bf16.gmra.mrb[36].mxu0 %v3335_v43 }
 0x13f   : > { %2399 = vmatprep.mubr.bf16.mxu1 %v3340_v44  ;;  %2685 = vmatprep.mubr.bf16.mxu0 %v3344_v45 }
 0x146   : > { %2400 = vmatmul.mubr.bf16.gmra.mrb[40].mxu1 %v3339_v46  ;;  %2686 = vmatmul.mubr.bf16.gmra.mrb[40].mxu0 %v3343_v47 }
 0x1c9   : > { %v2301_v55 = vpop.f32.mrb[0].mxu1  ;;  %v2587_v56 = vpop.f32.mrb[0].mxu0 }
 0x1ca   : > { %v3529_v57 = vadd.f32 %v2301_v55, %v4783_v53  ;;  %v2303_v58 = vpop.f32.mrb[1].mxu1  ;;  %v2589_v59 = vpop.f32.mrb[1].mxu0 }
 0x1cb   : > { %v3531_v60 = vadd.f32 %v2303_v58, %v4785_v54  ;;  %v2305_v61 = vpop.f32.mrb[2].mxu1  ;;  %v2591_v62 = vpop.f32.mrb[2].mxu0 }
 0x1cc   : > { %v3530_v63 = vadd.f32 %v3529_v57, %v2587_v56  ;;  %v3533_v4 = vadd.f32 %v2305_v61, %v4783_v53  ;;  %v2307_v7 = vpop.f32.mrb[3].mxu1  ;;  %v2593_v8 = vpop.f32.mrb[3].mxu0 }
 0x1cd   : > { %v3532_v9 = vadd.f32 %v3531_v60, %v2589_v59  ;;  %v3535_v10 = vadd.f32 %v2307_v7, %v4785_v54 }
 0x1ce   : > { %v2696_v11 = vmax.f32 %v3530_v63, 0.0  ;;  %v3534_v12 = vadd.f32 %v3533_v4, %v2591_v62 }
 0x1cf   : > { %v2697_v13 = vmax.f32 %v3532_v9, 0.0  ;;  %v3536_v14 = vadd.f32 %v3535_v10, %v2593_v8 }
 0x1d0   : > { %v2698_v15 = vmax.f32 %v3534_v12, 0.0 }
 0x1d1   : > { %v3506_v16 = vpack.c.bf16 %v2697_v13, %v2696_v11  ;;  %v2699_v17 = vmax.f32 %v3536_v14, 0.0  ;;  %v2311_v18 = vpop.f32.mrb[4].mxu1  ;;  %v2597_v19 = vpop.f32.mrb[4].mxu0 }
 0x1d2   : > { %v3537_v20 = vadd.f32 %v2311_v18, %v4783_v53  ;;  %v2313_v21 = vpop.f32.mrb[5].mxu1  ;;  %v2599_v22 = vpop.f32.mrb[5].mxu0 }
 0x1d3   : > { %2872 = vst [vmem:[%s4794_s12] sm:$0xff] %v3506_v16  ;;  %v3507_v23 = vpack.c.bf16 %v2699_v17, %v2698_v15  ;;  %v3539_v24 = vadd.f32 %v2313_v21, %v4785_v54  ;;  %v2315_v25 = vpop.f32.mrb[6].mxu1  ;;  %v2601_v26 = vpop.f32.mrb[6].mxu0 }
 0x1d4   : > { %v3538_v27 = vadd.f32 %v3537_v20, %v2597_v19  ;;  %v3541_v28 = vadd.f32 %v2315_v25, %v4783_v53  ;;  %v2317_v29 = vpop.f32.mrb[7].mxu1  ;;  %v2603_v30 = vpop.f32.mrb[7].mxu0 }
 0x1d5   : > { %2873 = vst [vmem:[%s4794_s12 + $0x8] sm:$0xff] %v3507_v23  ;;  %v3540_v0 = vadd.f32 %v3539_v24, %v2599_v22  ;;  %v3543_v1 = vadd.f32 %v2317_v29, %v4785_v54 }
 0x1d6   : > { %v2700_v2 = vmax.f32 %v3538_v27, 0.0  ;;  %v3542_v3 = vadd.f32 %v3541_v28, %v2601_v26 }
 0x1d7   : > { %v2701_v5 = vmax.f32 %v3540_v0, 0.0  ;;  %v3544_v6 = vadd.f32 %v3543_v1, %v2603_v30 }
 0x1d8   : > { %v2702_v31 = vmax.f32 %v3542_v3, 0.0 }
 0x1d9   : > { %v3508_v32 = vpack.c.bf16 %v2701_v5, %v2700_v2  ;;  %v2703_v33 = vmax.f32 %v3544_v6, 0.0  ;;  %v2321_v34 = vpop.f32.mrb[8].mxu1  ;;  %v2607_v35 = vpop.f32.mrb[8].mxu0 }
 0x1da   : > { %v3545_v36 = vadd.f32 %v2321_v34, %v4783_v53  ;;  %v2323_v37 = vpop.f32.mrb[9].mxu1  ;;  %v2609_v38 = vpop.f32.mrb[9].mxu0 }
 0x1db   : > { %2874 = vst [vmem:[%s4794_s12 + $0x10] sm:$0xff] %v3508_v32  ;;  %v3509_v39 = vpack.c.bf16 %v2703_v33, %v2702_v31  ;;  %v3547_v40 = vadd.f32 %v2323_v37, %v4785_v54  ;;  %v2325_v41 = vpop.f32.mrb[10].mxu1  ;;  %v2611_v42 = vpop.f32.mrb[10].mxu0 }
 0x1dc   : > { %v3546_v43 = vadd.f32 %v3545_v36, %v2607_v35  ;;  %v3549_v44 = vadd.f32 %v2325_v41, %v4783_v53  ;;  %v2327_v45 = vpop.f32.mrb[11].mxu1  ;;  %v2613_v46 = vpop.f32.mrb[11].mxu0 }
 0x1dd   : > { %2875 = vst [vmem:[%s4794_s12 + $0x18] sm:$0xff] %v3509_v39  ;;  %v3548_v47 = vadd.f32 %v3547_v40, %v2609_v38  ;;  %v3551_v48 = vadd.f32 %v2327_v45, %v4785_v54 }
 0x1de   : > { %v2704_v49 = vmax.f32 %v3546_v43, 0.0  ;;  %v3550_v50 = vadd.f32 %v3549_v44, %v2611_v42 }
 0x1df   : > { %v2705_v51 = vmax.f32 %v3548_v47, 0.0  ;;  %v3552_v52 = vadd.f32 %v3551_v48, %v2613_v46 }
 0x1e0   : > { %v2706_v55 = vmax.f32 %v3550_v50, 0.0 }
 0x1e1   : > { %v3510_v56 = vpack.c.bf16 %v2705_v51, %v2704_v49  ;;  %v2707_v57 = vmax.f32 %v3552_v52, 0.0  ;;  %v2331_v58 = vpop.f32.mrb[12].mxu1  ;;  %v2617_v59 = vpop.f32.mrb[12].mxu0 }
 0x1e2   : > { %v3553_v60 = vadd.f32 %v2331_v58, %v4783_v53  ;;  %v2333_v61 = vpop.f32.mrb[13].mxu1  ;;  %v2619_v62 = vpop.f32.mrb[13].mxu0 }
 0x1e3   : > { %2876 = vst [vmem:[%s4794_s12 + $0x20] sm:$0xff] %v3510_v56  ;;  %v3511_v63 = vpack.c.bf16 %v2707_v57, %v2706_v55  ;;  %v3555_v4 = vadd.f32 %v2333_v61, %v4785_v54  ;;  %v2335_v7 = vpop.f32.mrb[14].mxu1  ;;  %v2621_v8 = vpop.f32.mrb[14].mxu0 }
 0x1e4   : > { %v3554_v9 = vadd.f32 %v3553_v60, %v2617_v59  ;;  %v3557_v10 = vadd.f32 %v2335_v7, %v4783_v53  ;;  %v2337_v11 = vpop.f32.mrb[15].mxu1  ;;  %v2623_v12 = vpop.f32.mrb[15].mxu0 }
 0x1e5   : > { %2877 = vst [vmem:[%s4794_s12 + $0x28] sm:$0xff] %v3511_v63  ;;  %v3556_v13 = vadd.f32 %v3555_v4, %v2619_v62  ;;  %v3559_v14 = vadd.f32 %v2337_v11, %v4785_v54 }
 0x1e6   : > { %v2708_v15 = vmax.f32 %v3554_v9, 0.0  ;;  %v3558_v16 = vadd.f32 %v3557_v10, %v2621_v8 }
 0x1e7   : > { %v2709_v17 = vmax.f32 %v3556_v13, 0.0  ;;  %v3560_v18 = vadd.f32 %v3559_v14, %v2623_v12 }
 0x1e8   : > { %v2710_v19 = vmax.f32 %v3558_v16, 0.0 }
 0x1e9   : > { %v3512_v20 = vpack.c.bf16 %v2709_v17, %v2708_v15  ;;  %v2711_v21 = vmax.f32 %v3560_v18, 0.0  ;;  %v2341_v22 = vpop.f32.mrb[16].mxu1  ;;  %v2627_v23 = vpop.f32.mrb[16].mxu0 }
 0x1ea   : > { %v3561_v24 = vadd.f32 %v2341_v22, %v4783_v53  ;;  %v2343_v25 = vpop.f32.mrb[17].mxu1  ;;  %v2629_v26 = vpop.f32.mrb[17].mxu0 }
 0x1eb   : > { %2878 = vst [vmem:[%s4794_s12 + $0x30] sm:$0xff] %v3512_v20  ;;  %v3513_v27 = vpack.c.bf16 %v2711_v21, %v2710_v19  ;;  %v3563_v28 = vadd.f32 %v2343_v25, %v4785_v54  ;;  %v2345_v29 = vpop.f32.mrb[18].mxu1  ;;  %v2631_v30 = vpop.f32.mrb[18].mxu0 }
 0x1ec   : > { %v3562_v0 = vadd.f32 %v3561_v24, %v2627_v23  ;;  %v3565_v1 = vadd.f32 %v2345_v29, %v4783_v53  ;;  %v2347_v2 = vpop.f32.mrb[19].mxu1  ;;  %v2633_v3 = vpop.f32.mrb[19].mxu0 }
 0x1ed   : > { %2879 = vst [vmem:[%s4794_s12 + $0x38] sm:$0xff] %v3513_v27  ;;  %v3564_v5 = vadd.f32 %v3563_v28, %v2629_v26  ;;  %v3567_v6 = vadd.f32 %v2347_v2, %v4785_v54 }
 0x1ee   : > { %v2712_v31 = vmax.f32 %v3562_v0, 0.0  ;;  %v3566_v32 = vadd.f32 %v3565_v1, %v2631_v30 }
 0x1ef   : > { %v2713_v33 = vmax.f32 %v3564_v5, 0.0  ;;  %v3568_v34 = vadd.f32 %v3567_v6, %v2633_v3 }
 0x1f0   : > { %v2714_v35 = vmax.f32 %v3566_v32, 0.0 }
 0x1f1   : > { %v3514_v36 = vpack.c.bf16 %v2713_v33, %v2712_v31  ;;  %v2715_v37 = vmax.f32 %v3568_v34, 0.0  ;;  %v2351_v38 = vpop.f32.mrb[20].mxu1  ;;  %v2637_v39 = vpop.f32.mrb[20].mxu0 }
 0x1f2   : > { %v3569_v40 = vadd.f32 %v2351_v38, %v4783_v53  ;;  %v2353_v41 = vpop.f32.mrb[21].mxu1  ;;  %v2639_v42 = vpop.f32.mrb[21].mxu0 }
 0x1f3   : > { %2880 = vst [vmem:[%s4794_s12 + $0x40] sm:$0xff] %v3514_v36  ;;  %v3515_v43 = vpack.c.bf16 %v2715_v37, %v2714_v35  ;;  %v3571_v44 = vadd.f32 %v2353_v41, %v4785_v54  ;;  %v2355_v45 = vpop.f32.mrb[22].mxu1  ;;  %v2641_v46 = vpop.f32.mrb[22].mxu0 }
 0x1f4   : > { %v3570_v47 = vadd.f32 %v3569_v40, %v2637_v39  ;;  %v3573_v48 = vadd.f32 %v2355_v45, %v4783_v53  ;;  %v2357_v49 = vpop.f32.mrb[23].mxu1  ;;  %v2643_v50 = vpop.f32.mrb[23].mxu0 }
 0x1f5   : > { %2881 = vst [vmem:[%s4794_s12 + $0x48] sm:$0xff] %v3515_v43  ;;  %v3572_v51 = vadd.f32 %v3571_v44, %v2639_v42  ;;  %v3575_v52 = vadd.f32 %v2357_v49, %v4785_v54 }
 0x1f6   : > { %v2716_v55 = vmax.f32 %v3570_v47, 0.0  ;;  %v3574_v56 = vadd.f32 %v3573_v48, %v2641_v46 }
 0x1f7   : > { %v2717_v57 = vmax.f32 %v3572_v51, 0.0  ;;  %v3576_v58 = vadd.f32 %v3575_v52, %v2643_v50 }
 0x1f8   : > { %v2718_v59 = vmax.f32 %v3574_v56, 0.0 }
 0x1f9   : > { %v3516_v60 = vpack.c.bf16 %v2717_v57, %v2716_v55  ;;  %v2719_v61 = vmax.f32 %v3576_v58, 0.0  ;;  %v2361_v62 = vpop.f32.mrb[24].mxu1  ;;  %v2647_v63 = vpop.f32.mrb[24].mxu0 }
 0x1fa   : > { %v3577_v4 = vadd.f32 %v2361_v62, %v4783_v53  ;;  %v2363_v7 = vpop.f32.mrb[25].mxu1  ;;  %v2649_v8 = vpop.f32.mrb[25].mxu0 }
 0x1fb   : > { %2882 = vst [vmem:[%s4794_s12 + $0x50] sm:$0xff] %v3516_v60  ;;  %v3517_v9 = vpack.c.bf16 %v2719_v61, %v2718_v59  ;;  %v3579_v10 = vadd.f32 %v2363_v7, %v4785_v54  ;;  %v2365_v11 = vpop.f32.mrb[26].mxu1  ;;  %v2651_v12 = vpop.f32.mrb[26].mxu0 }
 0x1fc   : > { %v3578_v13 = vadd.f32 %v3577_v4, %v2647_v63  ;;  %v3581_v14 = vadd.f32 %v2365_v11, %v4783_v53  ;;  %v2367_v15 = vpop.f32.mrb[27].mxu1  ;;  %v2653_v16 = vpop.f32.mrb[27].mxu0 }
 0x1fd   : > { %2883 = vst [vmem:[%s4794_s12 + $0x58] sm:$0xff] %v3517_v9  ;;  %v3580_v17 = vadd.f32 %v3579_v10, %v2649_v8  ;;  %v3583_v18 = vadd.f32 %v2367_v15, %v4785_v54 }
 0x1fe   : > { %v2720_v19 = vmax.f32 %v3578_v13, 0.0  ;;  %v3582_v20 = vadd.f32 %v3581_v14, %v2651_v12 }
 0x1ff   : > { %v2721_v21 = vmax.f32 %v3580_v17, 0.0  ;;  %v3584_v22 = vadd.f32 %v3583_v18, %v2653_v16 }
 0x200   : > { %v2722_v23 = vmax.f32 %v3582_v20, 0.0 }
 0x201   : > { %v3518_v24 = vpack.c.bf16 %v2721_v21, %v2720_v19  ;;  %v2723_v25 = vmax.f32 %v3584_v22, 0.0  ;;  %v2371_v26 = vpop.f32.mrb[28].mxu1  ;;  %v2657_v27 = vpop.f32.mrb[28].mxu0 }
 0x202   : > { %v3585_v28 = vadd.f32 %v2371_v26, %v4783_v53  ;;  %v2373_v29 = vpop.f32.mrb[29].mxu1  ;;  %v2659_v30 = vpop.f32.mrb[29].mxu0 }
 0x203   : > { %2884 = vst [vmem:[%s4794_s12 + $0x60] sm:$0xff] %v3518_v24  ;;  %v3519_v0 = vpack.c.bf16 %v2723_v25, %v2722_v23  ;;  %v3587_v1 = vadd.f32 %v2373_v29, %v4785_v54  ;;  %v2375_v2 = vpop.f32.mrb[30].mxu1  ;;  %v2661_v3 = vpop.f32.mrb[30].mxu0 }
 0x204   : > { %v3586_v5 = vadd.f32 %v3585_v28, %v2657_v27  ;;  %v3589_v6 = vadd.f32 %v2375_v2, %v4783_v53  ;;  %v2377_v31 = vpop.f32.mrb[31].mxu1  ;;  %v2663_v32 = vpop.f32.mrb[31].mxu0 }
 0x205   : > { %2885 = vst [vmem:[%s4794_s12 + $0x68] sm:$0xff] %v3519_v0  ;;  %v3588_v33 = vadd.f32 %v3587_v1, %v2659_v30  ;;  %v3591_v34 = vadd.f32 %v2377_v31, %v4785_v54 }
 0x206   : > { %v2724_v35 = vmax.f32 %v3586_v5, 0.0  ;;  %v3590_v36 = vadd.f32 %v3589_v6, %v2661_v3 }
 0x207   : > { %v2725_v37 = vmax.f32 %v3588_v33, 0.0  ;;  %v3592_v38 = vadd.f32 %v3591_v34, %v2663_v32 }
 0x208   : > { %v2726_v39 = vmax.f32 %v3590_v36, 0.0 }
 0x209   : > { %v3520_v40 = vpack.c.bf16 %v2725_v37, %v2724_v35  ;;  %v2727_v41 = vmax.f32 %v3592_v38, 0.0  ;;  %v2381_v42 = vpop.f32.mrb[32].mxu1  ;;  %v2667_v43 = vpop.f32.mrb[32].mxu0 }
 0x20a   : > { %v3593_v44 = vadd.f32 %v2381_v42, %v4783_v53  ;;  %v2383_v45 = vpop.f32.mrb[33].mxu1  ;;  %v2669_v46 = vpop.f32.mrb[33].mxu0 }
 0x20b   : > { %2886 = vst [vmem:[%s4794_s12 + $0x70] sm:$0xff] %v3520_v40  ;;  %v3521_v47 = vpack.c.bf16 %v2727_v41, %v2726_v39  ;;  %v3595_v48 = vadd.f32 %v2383_v45, %v4785_v54  ;;  %v2385_v49 = vpop.f32.mrb[34].mxu1  ;;  %v2671_v50 = vpop.f32.mrb[34].mxu0 }
 0x20c   : > { %v3594_v51 = vadd.f32 %v3593_v44, %v2667_v43  ;;  %v3597_v52 = vadd.f32 %v2385_v49, %v4783_v53  ;;  %v2387_v55 = vpop.f32.mrb[35].mxu1  ;;  %v2673_v56 = vpop.f32.mrb[35].mxu0 }
 0x20d   : > { %2887 = vst [vmem:[%s4794_s12 + $0x78] sm:$0xff] %v3521_v47  ;;  %v3596_v57 = vadd.f32 %v3595_v48, %v2669_v46  ;;  %v3599_v58 = vadd.f32 %v2387_v55, %v4785_v54 }
 0x20e   : > { %v2728_v59 = vmax.f32 %v3594_v51, 0.0  ;;  %v3598_v60 = vadd.f32 %v3597_v52, %v2671_v50 }
 0x20f   : > { %v2729_v61 = vmax.f32 %v3596_v57, 0.0  ;;  %v3600_v62 = vadd.f32 %v3599_v58, %v2673_v56 }
 0x210   : > { %v2730_v63 = vmax.f32 %v3598_v60, 0.0 }
 0x211   : > { %v3522_v4 = vpack.c.bf16 %v2729_v61, %v2728_v59  ;;  %v2731_v7 = vmax.f32 %v3600_v62, 0.0  ;;  %v2391_v8 = vpop.f32.mrb[36].mxu1  ;;  %v2677_v9 = vpop.f32.mrb[36].mxu0 }
 0x212   : > { %v3601_v10 = vadd.f32 %v2391_v8, %v4783_v53  ;;  %v2393_v11 = vpop.f32.mrb[37].mxu1  ;;  %v2679_v12 = vpop.f32.mrb[37].mxu0 }
 0x213   : > { %2888 = vst [vmem:[%s4794_s12 + $0x80] sm:$0xff] %v3522_v4  ;;  %v3523_v13 = vpack.c.bf16 %v2731_v7, %v2730_v63  ;;  %v3603_v14 = vadd.f32 %v2393_v11, %v4785_v54  ;;  %v2395_v15 = vpop.f32.mrb[38].mxu1  ;;  %v2681_v16 = vpop.f32.mrb[38].mxu0 }
 0x214   : > { %v3602_v17 = vadd.f32 %v3601_v10, %v2677_v9  ;;  %v3605_v18 = vadd.f32 %v2395_v15, %v4783_v53  ;;  %v2397_v19 = vpop.f32.mrb[39].mxu1  ;;  %v2683_v20 = vpop.f32.mrb[39].mxu0 }
 0x215   : > { %2889 = vst [vmem:[%s4794_s12 + $0x88] sm:$0xff] %v3523_v13  ;;  %v3604_v21 = vadd.f32 %v3603_v14, %v2679_v12  ;;  %v3607_v22 = vadd.f32 %v2397_v19, %v4785_v54 }
 0x216   : > { %v2732_v23 = vmax.f32 %v3602_v17, 0.0  ;;  %v3606_v24 = vadd.f32 %v3605_v18, %v2681_v16 }
 0x217   : > { %v2733_v25 = vmax.f32 %v3604_v21, 0.0  ;;  %v3608_v26 = vadd.f32 %v3607_v22, %v2683_v20 }
 0x218   : > { %v2734_v27 = vmax.f32 %v3606_v24, 0.0 }
 0x219   : > { %v3524_v28 = vpack.c.bf16 %v2733_v25, %v2732_v23  ;;  %v2735_v29 = vmax.f32 %v3608_v26, 0.0  ;;  %v2401_v30 = vpop.f32.mrb[40].mxu1  ;;  %v2687_v0 = vpop.f32.mrb[40].mxu0 }
 0x21a   : > { %v3609_v1 = vadd.f32 %v2401_v30, %v4783_v53  ;;  %v2403_v2 = vpop.f32.mrb[41].mxu1  ;;  %v2689_v3 = vpop.f32.mrb[41].mxu0 }
 0x21b   : > { %2890 = vst [vmem:[%s4794_s12 + $0x90] sm:$0xff] %v3524_v28  ;;  %v3525_v5 = vpack.c.bf16 %v2735_v29, %v2734_v27  ;;  %v3611_v6 = vadd.f32 %v2403_v2, %v4785_v54  ;;  %v2405_v31 = vpop.f32.mrb[42].mxu1  ;;  %v2691_v32 = vpop.f32.mrb[42].mxu0 }
 0x21c   : > { %v3610_v33 = vadd.f32 %v3609_v1, %v2687_v0  ;;  %v2407_v34 = vpop.f32.mrb[43].mxu1  ;;  %v2693_v35 = vpop.f32.mrb[43].mxu0 }
 0x21d   : > { %2891 = vst [vmem:[%s4794_s12 + $0x98] sm:$0xff] %v3525_v5  ;;  %v3612_v36 = vadd.f32 %v3611_v6, %v2689_v3  ;;  %2900 = sbr.rel (!%p4085_p6) target bundleno = 560 (0x230), region = 74 }
 0x21e   : > { %v2736_v37 = vmax.f32 %v3610_v33, 0.0 }
 0x21f   : > { %v2737_v38 = vmax.f32 %v3612_v36, 0.0 }
 0x221   : > { %v3526_v39 = vpack.c.bf16 %v2737_v38, %v2736_v37 }
 0x223   : > { %2892 = vst [vmem:[%s4794_s12 + $0xa0] sm:$0xff] %v3526_v39 }
 0x224 LB: >> { %v3017_v53 = vld [vmem:[%s4794_s12] sm:$0xff]  ;;  %v3019_v54 = vld [vmem:[%s4794_s12 + $0x8] sm:$0xff]  ;;  %v3021_v40 = vld [vmem:[%s4794_s12 + $0x10] sm:$0xff]  ;;  %s3011_s20 = sadd.s32 1, %s4028_s20   ;;  %s4028_s20 = sphi %s4862_s20, %s3011_s20  }
 0x225   : >> { %3018 = vst [vmem:[%s4860_s18] sm:$0xff] %v3017_v53  ;;  %3020 = vst [vmem:[%s4860_s18 + $0x10] sm:$0xff] %v3019_v54  ;;  %v3023_v41 = vld [vmem:[%s4794_s12 + $0x18] sm:$0xff]  ;;  %v3025_v42 = vld [vmem:[%s4794_s12 + $0x20] sm:$0xff]  ;;  %p3010_p12 = scmp.ge.s32.totalorder %s3011_s20, 1 }
 0x226   : >> { %3022 = vst [vmem:[%s4860_s18 + $0x20] sm:$0xff] %v3021_v40  ;;  %v3027_v43 = vld [vmem:[%s4794_s12 + $0x28] sm:$0xff]  ;;  %3024 = vst [vmem:[%s4860_s18 + $0x30] sm:$0xff] %v3023_v41  ;;  %v3029_v44 = vld [vmem:[%s4794_s12 + $0x30] sm:$0xff] }
 0x227   : >> { %3026 = vst [vmem:[%s4860_s18 + $0x40] sm:$0xff] %v3025_v42  ;;  %3028 = vst [vmem:[%s4860_s18 + $0x50] sm:$0xff] %v3027_v43  ;;  %v3031_v45 = vld [vmem:[%s4794_s12 + $0x38] sm:$0xff]  ;;  %v3033_v46 = vld [vmem:[%s4794_s12 + $0x40] sm:$0xff] }
 0x228   : >> { %3030 = vst [vmem:[%s4860_s18 + $0x60] sm:$0xff] %v3029_v44  ;;  %3032 = vst [vmem:[%s4860_s18 + $0x70] sm:$0xff] %v3031_v45  ;;  %v3035_v47 = vld [vmem:[%s4794_s12 + $0x48] sm:$0xff]  ;;  %v3037_v48 = vld [vmem:[%s4794_s12 + $0x50] sm:$0xff] }
 0x229   : >> { %3034 = vst [vmem:[%s4860_s18 + $0x80] sm:$0xff] %v3033_v46  ;;  %v3039_v49 = vld [vmem:[%s4794_s12 + $0x58] sm:$0xff]  ;;  %3036 = vst [vmem:[%s4860_s18 + $0x90] sm:$0xff] %v3035_v47  ;;  %v3041_v50 = vld [vmem:[%s4794_s12 + $0x60] sm:$0xff]  ;;  %3013 = sbr.rel (!%p3010_p12) target bundleno = 548 (0x224), region = 171 }
 0x22a   : >> { %3038 = vst [vmem:[%s4860_s18 + $0xa0] sm:$0xff] %v3037_v48  ;;  %3040 = vst [vmem:[%s4860_s18 + $0xb0] sm:$0xff] %v3039_v49  ;;  %v3043_v51 = vld [vmem:[%s4794_s12 + $0x68] sm:$0xff]  ;;  %v3045_v52 = vld [vmem:[%s4794_s12 + $0x70] sm:$0xff] }
 0x22b   : >> { %3042 = vst [vmem:[%s4860_s18 + $0xc0] sm:$0xff] %v3041_v50  ;;  %3044 = vst [vmem:[%s4860_s18 + $0xd0] sm:$0xff] %v3043_v51  ;;  %v3047_v55 = vld [vmem:[%s4794_s12 + $0x78] sm:$0xff]  ;;  %v3049_v56 = vld [vmem:[%s4794_s12 + $0x80] sm:$0xff] }
 0x22c   : >> { %3046 = vst [vmem:[%s4860_s18 + $0xe0] sm:$0xff] %v3045_v52  ;;  %v3051_v57 = vld [vmem:[%s4794_s12 + $0x88] sm:$0xff]  ;;  %3048 = vst [vmem:[%s4860_s18 + $0xf0] sm:$0xff] %v3047_v55  ;;  %v3053_v58 = vld [vmem:[%s4794_s12 + $0x90] sm:$0xff] }
 0x22d   : >> { %3050 = vst [vmem:[%s4860_s18 + $0x100] sm:$0xff] %v3049_v56  ;;  %3052 = vst [vmem:[%s4860_s18 + $0x110] sm:$0xff] %v3051_v57  ;;  %v3055_v59 = vld [vmem:[%s4794_s12 + $0x98] sm:$0xff]  ;;  %v3057_v60 = vld [vmem:[%s4794_s12 + $0xa0] sm:$0xff] }
 0x22e   : >> { %3054 = vst [vmem:[%s4860_s18 + $0x120] sm:$0xff] %v3053_v58  ;;  %3056 = vst [vmem:[%s4860_s18 + $0x130] sm:$0xff] %v3055_v59 }
 0x22f   : >> { %3058 = vst [vmem:[%s4860_s18 + $0x140] sm:$0xff] %v3057_v60 }
 0x230 PF: > { %s13_s16 = sadd.s32 1, %s4024_s16   ;;  %s4932_s12 = smov %s4012_s13 }
 0x231   : > { %p10_p13 = scmp.ge.s32.totalorder %s13_s16, 4   ;;  %s4933_s13 = smov %s4090_s22 }
 0x232   : > { %s4934_s14 = smov %s4020_s15  ;;  %s4935_s15 = smov %s4937_s17 }
 0x233   :  { %12 = sbr.rel (!%p10_p13) target bundleno = 3 (0x3), region = 193 }

// kernel: deconv_head_forward.5
= control target key start
LH: loop header
LB: loop body
LE: loop exit
PB: predicated region body
PF: predicated region fallthrough
CT: control target
= control target key end

     0   :  { %s5054_s12 = smov 0   ;;  %s5056_s13 = smov 0   ;;  %s6146_s0 = inlined_call_operand.vmem [shape: bf16[578,512], index: 0, kind: input, shape index: {}]   ;;  %s6147_s1 = inlined_call_operand.vmem [shape: bf16[512,512], index: 1, kind: input, shape index: {}]   ;;  %s6148_s2 = inlined_call_operand.vmem [shape: f32[1,512], index: 2, kind: input, shape index: {}]   ;;  %s6149_s3 = inlined_call_operand.vmem [shape: bf16[578,512], index: 3, kind: output, shape index: {}]  }
   0x1   :  { %s5058_s14 = smov 0   ;;  %s5060_s15 = smov 0  }
   0x2   :  { %s5062_s16 = smov 0  }
   0x3 LB: > { %s28_s17 = sadd.s32 1, %s5008_s15  ;;  %s3838_s18 = sadd.s32 4294967295, %s5012_s16   ;;  %s5012_s16 = sphi %s5062_s16, %s13_s16   ;;  %s5008_s15 = sphi %s5060_s15, %s6154_s15   ;;  %s5004_s14 = sphi %s5058_s14, %s6153_s14   ;;  %s5000_s13 = sphi %s5056_s13, %s6152_s13   ;;  %s4996_s12 = sphi %s5054_s12, %s6151_s12  }
   0x4   : > { %p30_p0 = scmp.ge.s32.totalorder %s28_s17, 2  ;;  %p76_p1 = scmp.ne.s32.totalorder %s5000_s13, %s4996_s12 }
   0x5   : > { %p77_p2 = scmp.eq.s32.totalorder %s5012_s16, 0  ;;  %p134_p4 = scmp.eq.s32.totalorder %s3838_s18, 1 }
   0x6   : > { %s6156_s17 = smov (%p30_p0, %s28_s17), 0  ;;  %s69_s20 = sadd.s32 1, %s5000_s13 }
   0x7   : > { %p78_p3 = por %p77_p2, %p76_p1  ;;  %s65_s19 = ssub.s32 %s5008_s15, %s6156_s17 }
   0x8   : > { %p67_p5 = scmp.eq.s32.totalorder %s65_s19, 0  ;;  %p5089_p6 = por %p134_p4, %p76_p1 }
   0x9   : > { %p3842_p7 = scmp.ge.s32.totalorder %s5012_s16, 2 }
   0xa   : > { %s5094_s22 = scalar_select %p67_p5, %s5000_s13, %s69_s20  }
   0xb   : > { %177 = sbr.rel (%p3842_p7) target bundleno = 54 (0x36), region = 20 }
  0x12   : > { %180 = sbr.rel (!%p78_p3) target bundleno = 54 (0x36), region = 24  ;;  %s182_s23 = sand.u32 (%p78_p3), 1, %s5000_s13  }
  0x13   : > { %s4147_s24 = sshll.u32 (%p78_p3), %s5008_s15, 3  ;;  %s3843_s25 = sshll.u32 (%p78_p3), %s182_s23, 9 }
  0x14   : > { %s5102_s28 = scalar_lea.vmem (%p78_p3), %s6147_s1, %s4147_s24  ;;  %s5107_s29 = scalar_lea.vmem (%p78_p3), [#allocation2], %s3843_s25 }
  0x15   : > { %v344_v0 = vld [vmem:[%s5102_s28] sm:$0xff] (%p78_p3)  ;;  %v346_v1 = vld [vmem:[%s5102_s28 + $0x10] sm:$0xff] (%p78_p3) }
  0x16   : > { %v348_v2 = vld [vmem:[%s5102_s28 + $0x20] sm:$0xff] (%p78_p3)  ;;  %345 = vst [vmem:[%s5107_s29] sm:$0xff] (%p78_p3), %v344_v0  ;;  %347 = vst [vmem:[%s5107_s29 + $0x8] sm:$0xff] (%p78_p3), %v346_v1  ;;  %v350_v3 = vld [vmem:[%s5102_s28 + $0x30] sm:$0xff] (%p78_p3) }
  0x17   : > { %349 = vst [vmem:[%s5107_s29 + $0x10] sm:$0xff] (%p78_p3), %v348_v2  ;;  %v352_v4 = vld [vmem:[%s5102_s28 + $0x40] sm:$0xff] (%p78_p3)  ;;  %v354_v5 = vld [vmem:[%s5102_s28 + $0x50] sm:$0xff] (%p78_p3)  ;;  %351 = vst [vmem:[%s5107_s29 + $0x18] sm:$0xff] (%p78_p3), %v350_v3 }
  0x18   : > { %353 = vst [vmem:[%s5107_s29 + $0x20] sm:$0xff] (%p78_p3), %v352_v4  ;;  %355 = vst [vmem:[%s5107_s29 + $0x28] sm:$0xff] (%p78_p3), %v354_v5  ;;  %v356_v6 = vld [vmem:[%s5102_s28 + $0x60] sm:$0xff] (%p78_p3)  ;;  %v358_v7 = vld [vmem:[%s5102_s28 + $0x70] sm:$0xff] (%p78_p3) }
  0x19   : > { %v360_v8 = vld [vmem:[%s5102_s28 + $0x80] sm:$0xff]  ;;  %357 = vst [vmem:[%s5107_s29 + $0x30] sm:$0xff] %v356_v6  ;;  %359 = vst [vmem:[%s5107_s29 + $0x38] sm:$0xff] %v358_v7  ;;  %v362_v9 = vld [vmem:[%s5102_s28 + $0x90] sm:$0xff] }
  0x1a   : > { %361 = vst [vmem:[%s5107_s29 + $0x40] sm:$0xff] %v360_v8  ;;  %v364_v10 = vld [vmem:[%s5102_s28 + $0xa0] sm:$0xff]  ;;  %v366_v11 = vld [vmem:[%s5102_s28 + $0xb0] sm:$0xff]  ;;  %363 = vst [vmem:[%s5107_s29 + $0x48] sm:$0xff] %v362_v9 }
  0x1b   : > { %365 = vst [vmem:[%s5107_s29 + $0x50] sm:$0xff] %v364_v10  ;;  %367 = vst [vmem:[%s5107_s29 + $0x58] sm:$0xff] %v366_v11  ;;  %v368_v12 = vld [vmem:[%s5102_s28 + $0xc0] sm:$0xff]  ;;  %v370_v13 = vld [vmem:[%s5102_s28 + $0xd0] sm:$0xff] }
  0x1c   : > { %v372_v14 = vld [vmem:[%s5102_s28 + $0xe0] sm:$0xff]  ;;  %369 = vst [vmem:[%s5107_s29 + $0x60] sm:$0xff] %v368_v12  ;;  %371 = vst [vmem:[%s5107_s29 + $0x68] sm:$0xff] %v370_v13  ;;  %v374_v15 = vld [vmem:[%s5102_s28 + $0xf0] sm:$0xff] }
  0x1d   : > { %373 = vst [vmem:[%s5107_s29 + $0x70] sm:$0xff] %v372_v14  ;;  %v376_v16 = vld [vmem:[%s5102_s28 + $0x100] sm:$0xff]  ;;  %v378_v17 = vld [vmem:[%s5102_s28 + $0x110] sm:$0xff]  ;;  %375 = vst [vmem:[%s5107_s29 + $0x78] sm:$0xff] %v374_v15 }
  0x1e   : > { %377 = vst [vmem:[%s5107_s29 + $0x80] sm:$0xff] %v376_v16  ;;  %379 = vst [vmem:[%s5107_s29 + $0x88] sm:$0xff] %v378_v17  ;;  %v380_v18 = vld [vmem:[%s5102_s28 + $0x120] sm:$0xff]  ;;  %v382_v19 = vld [vmem:[%s5102_s28 + $0x130] sm:$0xff] }
  0x1f   : > { %v384_v20 = vld [vmem:[%s5102_s28 + $0x140] sm:$0xff]  ;;  %381 = vst [vmem:[%s5107_s29 + $0x90] sm:$0xff] %v380_v18  ;;  %383 = vst [vmem:[%s5107_s29 + $0x98] sm:$0xff] %v382_v19  ;;  %v386_v21 = vld [vmem:[%s5102_s28 + $0x150] sm:$0xff] }
  0x20   : > { %385 = vst [vmem:[%s5107_s29 + $0xa0] sm:$0xff] %v384_v20  ;;  %v388_v22 = vld [vmem:[%s5102_s28 + $0x160] sm:$0xff]  ;;  %v390_v23 = vld [vmem:[%s5102_s28 + $0x170] sm:$0xff]  ;;  %387 = vst [vmem:[%s5107_s29 + $0xa8] sm:$0xff] %v386_v21 }
  0x21   : > { %389 = vst [vmem:[%s5107_s29 + $0xb0] sm:$0xff] %v388_v22  ;;  %391 = vst [vmem:[%s5107_s29 + $0xb8] sm:$0xff] %v390_v23  ;;  %v392_v24 = vld [vmem:[%s5102_s28 + $0x180] sm:$0xff]  ;;  %v394_v25 = vld [vmem:[%s5102_s28 + $0x190] sm:$0xff] }
  0x22   : > { %v396_v26 = vld [vmem:[%s5102_s28 + $0x1a0] sm:$0xff]  ;;  %393 = vst [vmem:[%s5107_s29 + $0xc0] sm:$0xff] %v392_v24  ;;  %395 = vst [vmem:[%s5107_s29 + $0xc8] sm:$0xff] %v394_v25  ;;  %v398_v27 = vld [vmem:[%s5102_s28 + $0x1b0] sm:$0xff] }
  0x23   : > { %397 = vst [vmem:[%s5107_s29 + $0xd0] sm:$0xff] %v396_v26  ;;  %v400_v28 = vld [vmem:[%s5102_s28 + $0x1c0] sm:$0xff]  ;;  %v402_v29 = vld [vmem:[%s5102_s28 + $0x1d0] sm:$0xff]  ;;  %399 = vst [vmem:[%s5107_s29 + $0xd8] sm:$0xff] %v398_v27 }
  0x24   : > { %401 = vst [vmem:[%s5107_s29 + $0xe0] sm:$0xff] %v400_v28  ;;  %403 = vst [vmem:[%s5107_s29 + $0xe8] sm:$0xff] %v402_v29  ;;  %v404_v30 = vld [vmem:[%s5102_s28 + $0x1e0] sm:$0xff]  ;;  %v406_v31 = vld [vmem:[%s5102_s28 + $0x1f0] sm:$0xff] }
  0x25   : > { %v408_v32 = vld [vmem:[%s5102_s28 + $0x200] sm:$0xff]  ;;  %405 = vst [vmem:[%s5107_s29 + $0xf0] sm:$0xff] %v404_v30  ;;  %407 = vst [vmem:[%s5107_s29 + $0xf8] sm:$0xff] %v406_v31  ;;  %v410_v33 = vld [vmem:[%s5102_s28 + $0x210] sm:$0xff] }
  0x26   : > { %409 = vst [vmem:[%s5107_s29 + $0x100] sm:$0xff] %v408_v32  ;;  %v412_v34 = vld [vmem:[%s5102_s28 + $0x220] sm:$0xff]  ;;  %v414_v35 = vld [vmem:[%s5102_s28 + $0x230] sm:$0xff]  ;;  %411 = vst [vmem:[%s5107_s29 + $0x108] sm:$0xff] %v410_v33 }
  0x27   : > { %413 = vst [vmem:[%s5107_s29 + $0x110] sm:$0xff] %v412_v34  ;;  %415 = vst [vmem:[%s5107_s29 + $0x118] sm:$0xff] %v414_v35  ;;  %v416_v36 = vld [vmem:[%s5102_s28 + $0x240] sm:$0xff]  ;;  %v418_v37 = vld [vmem:[%s5102_s28 + $0x250] sm:$0xff] }
  0x28   : > { %v420_v38 = vld [vmem:[%s5102_s28 + $0x260] sm:$0xff]  ;;  %417 = vst [vmem:[%s5107_s29 + $0x120] sm:$0xff] %v416_v36  ;;  %419 = vst [vmem:[%s5107_s29 + $0x128] sm:$0xff] %v418_v37  ;;  %v422_v39 = vld [vmem:[%s5102_s28 + $0x270] sm:$0xff] }
  0x29   : > { %421 = vst [vmem:[%s5107_s29 + $0x130] sm:$0xff] %v420_v38  ;;  %v424_v40 = vld [vmem:[%s5102_s28 + $0x280] sm:$0xff]  ;;  %v426_v41 = vld [vmem:[%s5102_s28 + $0x290] sm:$0xff]  ;;  %423 = vst [vmem:[%s5107_s29 + $0x138] sm:$0xff] %v422_v39 }
  0x2a   : > { %425 = vst [vmem:[%s5107_s29 + $0x140] sm:$0xff] %v424_v40  ;;  %427 = vst [vmem:[%s5107_s29 + $0x148] sm:$0xff] %v426_v41  ;;  %v428_v42 = vld [vmem:[%s5102_s28 + $0x2a0] sm:$0xff]  ;;  %v430_v43 = vld [vmem:[%s5102_s28 + $0x2b0] sm:$0xff] }
  0x2b   : > { %v432_v44 = vld [vmem:[%s5102_s28 + $0x2c0] sm:$0xff]  ;;  %429 = vst [vmem:[%s5107_s29 + $0x150] sm:$0xff] %v428_v42  ;;  %431 = vst [vmem:[%s5107_s29 + $0x158] sm:$0xff] %v430_v43  ;;  %v434_v45 = vld [vmem:[%s5102_s28 + $0x2d0] sm:$0xff] }
  0x2c   : > { %433 = vst [vmem:[%s5107_s29 + $0x160] sm:$0xff] %v432_v44  ;;  %v436_v46 = vld [vmem:[%s5102_s28 + $0x2e0] sm:$0xff]  ;;  %v438_v47 = vld [vmem:[%s5102_s28 + $0x2f0] sm:$0xff]  ;;  %435 = vst [vmem:[%s5107_s29 + $0x168] sm:$0xff] %v434_v45 }
  0x2d   : > { %437 = vst [vmem:[%s5107_s29 + $0x170] sm:$0xff] %v436_v46  ;;  %439 = vst [vmem:[%s5107_s29 + $0x178] sm:$0xff] %v438_v47  ;;  %v440_v48 = vld [vmem:[%s5102_s28 + $0x300] sm:$0xff]  ;;  %v442_v49 = vld [vmem:[%s5102_s28 + $0x310] sm:$0xff] }
  0x2e   : > { %v444_v50 = vld [vmem:[%s5102_s28 + $0x320] sm:$0xff]  ;;  %441 = vst [vmem:[%s5107_s29 + $0x180] sm:$0xff] %v440_v48  ;;  %443 = vst [vmem:[%s5107_s29 + $0x188] sm:$0xff] %v442_v49  ;;  %v446_v51 = vld [vmem:[%s5102_s28 + $0x330] sm:$0xff] }
  0x2f   : > { %445 = vst [vmem:[%s5107_s29 + $0x190] sm:$0xff] %v444_v50  ;;  %v448_v52 = vld [vmem:[%s5102_s28 + $0x340] sm:$0xff]  ;;  %v450_v53 = vld [vmem:[%s5102_s28 + $0x350] sm:$0xff]  ;;  %447 = vst [vmem:[%s5107_s29 + $0x198] sm:$0xff] %v446_v51 }
  0x30   : > { %449 = vst [vmem:[%s5107_s29 + $0x1a0] sm:$0xff] %v448_v52  ;;  %451 = vst [vmem:[%s5107_s29 + $0x1a8] sm:$0xff] %v450_v53  ;;  %v452_v54 = vld [vmem:[%s5102_s28 + $0x360] sm:$0xff]  ;;  %v454_v55 = vld [vmem:[%s5102_s28 + $0x370] sm:$0xff] }
  0x31   : > { %v456_v56 = vld [vmem:[%s5102_s28 + $0x380] sm:$0xff]  ;;  %453 = vst [vmem:[%s5107_s29 + $0x1b0] sm:$0xff] %v452_v54  ;;  %455 = vst [vmem:[%s5107_s29 + $0x1b8] sm:$0xff] %v454_v55  ;;  %v458_v57 = vld [vmem:[%s5102_s28 + $0x390] sm:$0xff] }
  0x32   : > { %457 = vst [vmem:[%s5107_s29 + $0x1c0] sm:$0xff] %v456_v56  ;;  %v460_v58 = vld [vmem:[%s5102_s28 + $0x3a0] sm:$0xff]  ;;  %v462_v59 = vld [vmem:[%s5102_s28 + $0x3b0] sm:$0xff]  ;;  %459 = vst [vmem:[%s5107_s29 + $0x1c8] sm:$0xff] %v458_v57 }
  0x33   : > { %461 = vst [vmem:[%s5107_s29 + $0x1d0] sm:$0xff] %v460_v58  ;;  %463 = vst [vmem:[%s5107_s29 + $0x1d8] sm:$0xff] %v462_v59  ;;  %v464_v60 = vld [vmem:[%s5102_s28 + $0x3c0] sm:$0xff]  ;;  %v466_v61 = vld [vmem:[%s5102_s28 + $0x3d0] sm:$0xff] }
  0x34   : > { %v468_v62 = vld [vmem:[%s5102_s28 + $0x3e0] sm:$0xff]  ;;  %465 = vst [vmem:[%s5107_s29 + $0x1e0] sm:$0xff] %v464_v60  ;;  %467 = vst [vmem:[%s5107_s29 + $0x1e8] sm:$0xff] %v466_v61  ;;  %v470_v63 = vld [vmem:[%s5102_s28 + $0x3f0] sm:$0xff] }
  0x35   : > { %469 = vst [vmem:[%s5107_s29 + $0x1f0] sm:$0xff] %v468_v62  ;;  %471 = vst [vmem:[%s5107_s29 + $0x1f8] sm:$0xff] %v470_v63 }
  0x36 PF: > { %p3846_p8 = scmp.ge.s32.totalorder %s5012_s16, 1  ;;  %p484_p9 = scmp.lt.s32.totalorder %s5012_s16, 3 }
  0x38   : > { %p485_p10 = pnand %p3846_p8, %p484_p9 }
  0x39   : > { %s491_s30 = sand.u32 (!%p485_p10), 1, %s4996_s12   ;;  %v4722_v0 = vld [vmem:[%s6146_s0 + $0x4] ss:$16 sps:$4 sm:$0xff] (!%p485_p10)   ;;  %v4725_v1 = vld [vmem:[%s6146_s0 + $0xc] ss:$16 sps:$4 sm:$0xff] (!%p485_p10)   ;;  %s3848_s18 = sshll.u32 (!%p485_p10), %s5004_s14, 1 }
  0x3a   : > { %488 = sbr.rel (%p485_p10) target bundleno = 680 (0x2a8), region = 66  ;;  %s3847_s4 = sshll.u32 (!%p485_p10), %s491_s30, 9  ;;  %1876 = vmatprep.mubr.bf16.mxu1 (!%p485_p10), %v4722_v0  ;;  %2279 = vmatprep.mubr.bf16.mxu0 (!%p485_p10), %v4725_v1 }
  0x3b   : > { %s5245_s9 = scalar_lea.vmem (!%p485_p10), [#allocation2], %s3847_s4  ;;  %p551_p11 = scmp.lt.s32.totalorder (!%p485_p10), %s3848_s18, 3 }
  0x3c   : > { %v4624_v2 = vld [vmem:[%s5245_s9 + $0x4] ss:$8 sps:$4 sm:$0xff] (!%p485_p10)   ;;  %v4628_v4 = vld [vmem:[%s5245_s9] ss:$8 sps:$4 sm:$0xff] (!%p485_p10)   ;;  %v4630_v6 = vld [vmem:[%s5245_s9 + $0x14] ss:$8 sps:$4 sm:$0xff] (!%p485_p10)  }
  0x3d   : > { %v4626_v3 = vld [vmem:[%s5245_s9 + $0x104] ss:$8 sps:$4 sm:$0xff] (!%p485_p10)   ;;  %1844 = vmatprep.subr.bf16.mxu1 (!%p485_p10), %v4624_v2  ;;  %v4629_v5 = vld [vmem:[%s5245_s9 + $0x100] ss:$8 sps:$4 sm:$0xff] (!%p485_p10)   ;;  %v4632_v7 = vld [vmem:[%s5245_s9 + $0x114] ss:$8 sps:$4 sm:$0xff] (!%p485_p10)  }
  0x3e   : > { %2247 = vmatprep.subr.bf16.mxu0 (!%p485_p10), %v4626_v3  ;;  %1845 = vmatpush1.bf16.msra.mxu1 (!%p485_p10), %v4628_v4  ;;  %v4634_v8 = vld [vmem:[%s5245_s9 + $0x10] ss:$8 sps:$4 sm:$0xff] (!%p485_p10)   ;;  %v4636_v10 = vld [vmem:[%s5245_s9 + $0x24] ss:$8 sps:$4 sm:$0xff] (!%p485_p10)   ;;  %v4640_v12 = vld [vmem:[%s5245_s9 + $0x20] ss:$8 sps:$4 sm:$0xff] (!%p485_p10)  }
  0x3f   : > { %2248 = vmatpush1.bf16.msra.mxu0 (!%p485_p10), %v4629_v5  ;;  %1846 = vmatprep.subr.bf16.mxu1 (!%p485_p10), %v4630_v6  ;;  %v4635_v9 = vld [vmem:[%s5245_s9 + $0x110] ss:$8 sps:$4 sm:$0xff] (!%p485_p10)   ;;  %v4638_v11 = vld [vmem:[%s5245_s9 + $0x124] ss:$8 sps:$4 sm:$0xff] (!%p485_p10)   ;;  %v4641_v13 = vld [vmem:[%s5245_s9 + $0x120] ss:$8 sps:$4 sm:$0xff] (!%p485_p10)  }
  0x40   : > { %2249 = vmatprep.subr.bf16.mxu0 (!%p485_p10), %v4632_v7  ;;  %v4642_v14 = vld [vmem:[%s5245_s9 + $0x34] ss:$8 sps:$4 sm:$0xff] (!%p485_p10)   ;;  %v4646_v16 = vld [vmem:[%s5245_s9 + $0x30] ss:$8 sps:$4 sm:$0xff] (!%p485_p10)   ;;  %v4648_v18 = vld [vmem:[%s5245_s9 + $0x44] ss:$8 sps:$4 sm:$0xff] (!%p485_p10)  }
  0x41   : > { %v4644_v15 = vld [vmem:[%s5245_s9 + $0x134] ss:$8 sps:$4 sm:$0xff]   ;;  %v4647_v17 = vld [vmem:[%s5245_s9 + $0x130] ss:$8 sps:$4 sm:$0xff]   ;;  %v4650_v19 = vld [vmem:[%s5245_s9 + $0x144] ss:$8 sps:$4 sm:$0xff]  }
  0x42   : > { %1847 = vmatpush1.bf16.msra.mxu1 %v4634_v8  ;;  %v4652_v20 = vld [vmem:[%s5245_s9 + $0x40] ss:$8 sps:$4 sm:$0xff]   ;;  %v4654_v22 = vld [vmem:[%s5245_s9 + $0x54] ss:$8 sps:$4 sm:$0xff]   ;;  %v4658_v24 = vld [vmem:[%s5245_s9 + $0x50] ss:$8 sps:$4 sm:$0xff]  }
  0x43   : > { %2250 = vmatpush1.bf16.msra.mxu0 %v4635_v9  ;;  %1848 = vmatprep.subr.bf16.mxu1 %v4636_v10  ;;  %v4653_v21 = vld [vmem:[%s5245_s9 + $0x140] ss:$8 sps:$4 sm:$0xff]   ;;  %v4656_v23 = vld [vmem:[%s5245_s9 + $0x154] ss:$8 sps:$4 sm:$0xff]   ;;  %v4659_v25 = vld [vmem:[%s5245_s9 + $0x150] ss:$8 sps:$4 sm:$0xff]  }
  0x44   : > { %2251 = vmatprep.subr.bf16.mxu0 %v4638_v11  ;;  %v4660_v26 = vld [vmem:[%s5245_s9 + $0x64] ss:$8 sps:$4 sm:$0xff]   ;;  %v4664_v28 = vld [vmem:[%s5245_s9 + $0x60] ss:$8 sps:$4 sm:$0xff]   ;;  %v4666_v30 = vld [vmem:[%s5245_s9 + $0x74] ss:$8 sps:$4 sm:$0xff]  }
  0x45   : > { %v4662_v27 = vld [vmem:[%s5245_s9 + $0x164] ss:$8 sps:$4 sm:$0xff]   ;;  %v4665_v29 = vld [vmem:[%s5245_s9 + $0x160] ss:$8 sps:$4 sm:$0xff]   ;;  %v4668_v31 = vld [vmem:[%s5245_s9 + $0x174] ss:$8 sps:$4 sm:$0xff]  }
  0x46   : > { %1849 = vmatpush1.bf16.msra.mxu1 %v4640_v12  ;;  %v4670_v32 = vld [vmem:[%s5245_s9 + $0x70] ss:$8 sps:$4 sm:$0xff]   ;;  %v4672_v34 = vld [vmem:[%s5245_s9 + $0x84] ss:$8 sps:$4 sm:$0xff]   ;;  %v4676_v36 = vld [vmem:[%s5245_s9 + $0x80] ss:$8 sps:$4 sm:$0xff]  }
  0x47   : > { %2252 = vmatpush1.bf16.msra.mxu0 %v4641_v13  ;;  %1850 = vmatprep.subr.bf16.mxu1 %v4642_v14  ;;  %v4671_v33 = vld [vmem:[%s5245_s9 + $0x170] ss:$8 sps:$4 sm:$0xff]   ;;  %v4674_v35 = vld [vmem:[%s5245_s9 + $0x184] ss:$8 sps:$4 sm:$0xff]   ;;  %v4677_v37 = vld [vmem:[%s5245_s9 + $0x180] ss:$8 sps:$4 sm:$0xff]  }
  0x48   : > { %2253 = vmatprep.subr.bf16.mxu0 %v4644_v15  ;;  %v4678_v38 = vld [vmem:[%s5245_s9 + $0x94] ss:$8 sps:$4 sm:$0xff]   ;;  %v4682_v40 = vld [vmem:[%s5245_s9 + $0x90] ss:$8 sps:$4 sm:$0xff]   ;;  %v4684_v42 = vld [vmem:[%s5245_s9 + $0xa4] ss:$8 sps:$4 sm:$0xff]  }
  0x49   : > { %v4680_v39 = vld [vmem:[%s5245_s9 + $0x194] ss:$8 sps:$4 sm:$0xff]   ;;  %v4683_v41 = vld [vmem:[%s5245_s9 + $0x190] ss:$8 sps:$4 sm:$0xff]   ;;  %v4686_v43 = vld [vmem:[%s5245_s9 + $0x1a4] ss:$8 sps:$4 sm:$0xff]  }
  0x4a   : > { %1851 = vmatpush1.bf16.msra.mxu1 %v4646_v16  ;;  %v4688_v44 = vld [vmem:[%s5245_s9 + $0xa0] ss:$8 sps:$4 sm:$0xff]   ;;  %v4690_v46 = vld [vmem:[%s5245_s9 + $0xb4] ss:$8 sps:$4 sm:$0xff]   ;;  %v4694_v48 = vld [vmem:[%s5245_s9 + $0xb0] ss:$8 sps:$4 sm:$0xff]  }
  0x4b   : > { %2254 = vmatpush1.bf16.msra.mxu0 %v4647_v17  ;;  %1852 = vmatprep.subr.bf16.mxu1 %v4648_v18  ;;  %v4689_v45 = vld [vmem:[%s5245_s9 + $0x1a0] ss:$8 sps:$4 sm:$0xff]   ;;  %v4692_v47 = vld [vmem:[%s5245_s9 + $0x1b4] ss:$8 sps:$4 sm:$0xff]   ;;  %v4695_v49 = vld [vmem:[%s5245_s9 + $0x1b0] ss:$8 sps:$4 sm:$0xff]  }
  0x4c   : > { %2255 = vmatprep.subr.bf16.mxu0 %v4650_v19  ;;  %v4696_v50 = vld [vmem:[%s5245_s9 + $0xc4] ss:$8 sps:$4 sm:$0xff]   ;;  %v4700_v52 = vld [vmem:[%s5245_s9 + $0xc0] ss:$8 sps:$4 sm:$0xff]   ;;  %v4702_v54 = vld [vmem:[%s5245_s9 + $0xd4] ss:$8 sps:$4 sm:$0xff]  }
  0x4d   : > { %v4698_v51 = vld [vmem:[%s5245_s9 + $0x1c4] ss:$8 sps:$4 sm:$0xff]   ;;  %v4701_v53 = vld [vmem:[%s5245_s9 + $0x1c0] ss:$8 sps:$4 sm:$0xff]   ;;  %v4704_v55 = vld [vmem:[%s5245_s9 + $0x1d4] ss:$8 sps:$4 sm:$0xff]  }
  0x4e   : > { %1853 = vmatpush1.bf16.msra.mxu1 %v4652_v20  ;;  %v4706_v56 = vld [vmem:[%s5245_s9 + $0xd0] ss:$8 sps:$4 sm:$0xff]   ;;  %v4708_v58 = vld [vmem:[%s5245_s9 + $0xe4] ss:$8 sps:$4 sm:$0xff]   ;;  %v4712_v60 = vld [vmem:[%s5245_s9 + $0xe0] ss:$8 sps:$4 sm:$0xff]  }
  0x4f   : > { %2256 = vmatpush1.bf16.msra.mxu0 %v4653_v21  ;;  %1854 = vmatprep.subr.bf16.mxu1 %v4654_v22  ;;  %v4707_v57 = vld [vmem:[%s5245_s9 + $0x1d0] ss:$8 sps:$4 sm:$0xff]   ;;  %v4710_v59 = vld [vmem:[%s5245_s9 + $0x1e4] ss:$8 sps:$4 sm:$0xff]   ;;  %v4713_v61 = vld [vmem:[%s5245_s9 + $0x1e0] ss:$8 sps:$4 sm:$0xff]  }
  0x50   : > { %2257 = vmatprep.subr.bf16.mxu0 %v4656_v23  ;;  %v4714_v62 = vld [vmem:[%s5245_s9 + $0xf4] ss:$8 sps:$4 sm:$0xff]   ;;  %v4718_v0 = vld [vmem:[%s5245_s9 + $0xf0] ss:$8 sps:$4 sm:$0xff]   ;;  %s6158_s18 = smov (!%p551_p11, %s3848_s18), 3  ;;  %s4519_s4 = smul.u32 592, %s491_s30 }
  0x51   : > { %v4716_v63 = vld [vmem:[%s5245_s9 + $0x1f4] ss:$8 sps:$4 sm:$0xff]   ;;  %v4719_v1 = vld [vmem:[%s5245_s9 + $0x1f0] ss:$8 sps:$4 sm:$0xff]   ;;  %s553_s5 = scalar_lea.vmem %s6148_s2, %s6158_s18  ;;  %s4222_s23 = sshll.u32 (%p5089_p6), %s5004_s14, 3 }
  0x52   : > { %1855 = vmatpush1.bf16.msra.mxu1 %v4658_v24  ;;  %v4720_v2 = vld [vmem:[%s6146_s0] ss:$16 sps:$4 sm:$0xff]   ;;  %v4723_v3 = vld [vmem:[%s6146_s0 + $0x8] ss:$16 sps:$4 sm:$0xff]   ;;  %v4726_v4 = vld [vmem:[%s6146_s0 + $0x24] ss:$16 sps:$4 sm:$0xff]   ;;  %s5989_s26 = scalar_lea.vmem (%p5089_p6), %s6149_s3, %s4222_s23  }
  0x53   : > { %2258 = vmatpush1.bf16.msra.mxu0 %v4659_v25  ;;  %1856 = vmatprep.subr.bf16.mxu1 %v4660_v26  ;;  %v4728_v5 = vld [vmem:[%s6146_s0 + $0x2c] ss:$16 sps:$4 sm:$0xff]   ;;  %v4730_v6 = vld [vmem:[%s6146_s0 + $0x20] ss:$16 sps:$4 sm:$0xff]   ;;  %v4731_v7 = vld [vmem:[%s6146_s0 + $0x28] ss:$16 sps:$4 sm:$0xff]  }
  0x54   : > { %2259 = vmatprep.subr.bf16.mxu0 %v4662_v27  ;;  %v4732_v8 = vld [vmem:[%s6146_s0 + $0x44] ss:$16 sps:$4 sm:$0xff]   ;;  %v4734_v9 = vld [vmem:[%s6146_s0 + $0x4c] ss:$16 sps:$4 sm:$0xff]   ;;  %v4736_v10 = vld [vmem:[%s6146_s0 + $0x40] ss:$16 sps:$4 sm:$0xff]  }
  0x55   : > { %v4737_v11 = vld [vmem:[%s6146_s0 + $0x48] ss:$16 sps:$4 sm:$0xff]   ;;  %v4738_v12 = vld [vmem:[%s6146_s0 + $0x64] ss:$16 sps:$4 sm:$0xff]   ;;  %v4740_v13 = vld [vmem:[%s6146_s0 + $0x6c] ss:$16 sps:$4 sm:$0xff]  }
  0x56   : > { %1857 = vmatpush1.bf16.msra.mxu1 %v4664_v28  ;;  %v4742_v14 = vld [vmem:[%s6146_s0 + $0x60] ss:$16 sps:$4 sm:$0xff]   ;;  %v4743_v15 = vld [vmem:[%s6146_s0 + $0x68] ss:$16 sps:$4 sm:$0xff]   ;;  %v4744_v16 = vld [vmem:[%s6146_s0 + $0x84] ss:$16 sps:$4 sm:$0xff]  }
  0x57   : > { %2260 = vmatpush1.bf16.msra.mxu0 %v4665_v29  ;;  %1858 = vmatprep.subr.bf16.mxu1 %v4666_v30  ;;  %v4746_v17 = vld [vmem:[%s6146_s0 + $0x8c] ss:$16 sps:$4 sm:$0xff]   ;;  %v4748_v18 = vld [vmem:[%s6146_s0 + $0x80] ss:$16 sps:$4 sm:$0xff]   ;;  %v4749_v19 = vld [vmem:[%s6146_s0 + $0x88] ss:$16 sps:$4 sm:$0xff]  }
  0x58   : > { %2261 = vmatprep.subr.bf16.mxu0 %v4668_v31  ;;  %v4750_v20 = vld [vmem:[%s6146_s0 + $0xa4] ss:$16 sps:$4 sm:$0xff]   ;;  %v4752_v21 = vld [vmem:[%s6146_s0 + $0xac] ss:$16 sps:$4 sm:$0xff]   ;;  %v4754_v22 = vld [vmem:[%s6146_s0 + $0xa0] ss:$16 sps:$4 sm:$0xff]  }
  0x59   : > { %v4755_v23 = vld [vmem:[%s6146_s0 + $0xa8] ss:$16 sps:$4 sm:$0xff]   ;;  %v4756_v24 = vld [vmem:[%s6146_s0 + $0xc4] ss:$16 sps:$4 sm:$0xff]   ;;  %v4758_v25 = vld [vmem:[%s6146_s0 + $0xcc] ss:$16 sps:$4 sm:$0xff]  }
  0x5a   : > { %1859 = vmatpush1.bf16.msra.mxu1 %v4670_v32  ;;  %v4760_v26 = vld [vmem:[%s6146_s0 + $0xc0] ss:$16 sps:$4 sm:$0xff]   ;;  %v4761_v27 = vld [vmem:[%s6146_s0 + $0xc8] ss:$16 sps:$4 sm:$0xff]   ;;  %v4762_v28 = vld [vmem:[%s6146_s0 + $0xe4] ss:$16 sps:$4 sm:$0xff]  }
  0x5b   : > { %2262 = vmatpush1.bf16.msra.mxu0 %v4671_v33  ;;  %1860 = vmatprep.subr.bf16.mxu1 %v4672_v34  ;;  %v4764_v29 = vld [vmem:[%s6146_s0 + $0xec] ss:$16 sps:$4 sm:$0xff]   ;;  %v4766_v30 = vld [vmem:[%s6146_s0 + $0xe0] ss:$16 sps:$4 sm:$0xff]   ;;  %v4767_v31 = vld [vmem:[%s6146_s0 + $0xe8] ss:$16 sps:$4 sm:$0xff]  }
  0x5c   : > { %2263 = vmatprep.subr.bf16.mxu0 %v4674_v35  ;;  %v4768_v32 = vld [vmem:[%s6146_s0 + $0x104] ss:$16 sps:$4 sm:$0xff]   ;;  %v4770_v33 = vld [vmem:[%s6146_s0 + $0x10c] ss:$16 sps:$4 sm:$0xff]   ;;  %v4772_v34 = vld [vmem:[%s6146_s0 + $0x100] ss:$16 sps:$4 sm:$0xff]  }
  0x5d   : > { %v4773_v35 = vld [vmem:[%s6146_s0 + $0x108] ss:$16 sps:$4 sm:$0xff]   ;;  %s5668_s7 = scalar_lea.vmem [#allocation3], %s4519_s4   ;;  %s5991_s27 = smov (%p5089_p6), 0  }
  0x5e   : > { %1861 = vmatpush1.bf16.msra.mxu1 %v4676_v36  ;;  %v4774_v36 = vld [vmem:[%s6146_s0 + $0x124] ss:$16 sps:$4 sm:$0xff]  }
  0x5f   : > { %2264 = vmatpush1.bf16.msra.mxu0 %v4677_v37  ;;  %1862 = vmatprep.subr.bf16.mxu1 %v4678_v38  ;;  %v4776_v37 = vld [vmem:[%s6146_s0 + $0x12c] ss:$16 sps:$4 sm:$0xff]   ;;  %v4778_v38 = vld [vmem:[%s6146_s0 + $0x120] ss:$16 sps:$4 sm:$0xff]  }
  0x60   : > { %2265 = vmatprep.subr.bf16.mxu0 %v4680_v39  ;;  %v4779_v39 = vld [vmem:[%s6146_s0 + $0x128] ss:$16 sps:$4 sm:$0xff]  }
  0x62   : > { %1863 = vmatpush1.bf16.msra.mxu1 %v4682_v40  ;;  %v4780_v40 = vld [vmem:[%s6146_s0 + $0x144] ss:$16 sps:$4 sm:$0xff]  }
  0x63   : > { %2266 = vmatpush1.bf16.msra.mxu0 %v4683_v41  ;;  %1864 = vmatprep.subr.bf16.mxu1 %v4684_v42  ;;  %v4782_v41 = vld [vmem:[%s6146_s0 + $0x14c] ss:$16 sps:$4 sm:$0xff]   ;;  %v4784_v42 = vld [vmem:[%s6146_s0 + $0x140] ss:$16 sps:$4 sm:$0xff]  }
  0x64   : > { %2267 = vmatprep.subr.bf16.mxu0 %v4686_v43  ;;  %v4785_v43 = vld [vmem:[%s6146_s0 + $0x148] ss:$16 sps:$4 sm:$0xff]  }
  0x66   : > { %1865 = vmatpush1.bf16.msra.mxu1 %v4688_v44  ;;  %v4786_v44 = vld [vmem:[%s6146_s0 + $0x164] ss:$16 sps:$4 sm:$0xff]  }
  0x67   : > { %2268 = vmatpush1.bf16.msra.mxu0 %v4689_v45  ;;  %1866 = vmatprep.subr.bf16.mxu1 %v4690_v46  ;;  %v4788_v45 = vld [vmem:[%s6146_s0 + $0x16c] ss:$16 sps:$4 sm:$0xff]   ;;  %v4790_v46 = vld [vmem:[%s6146_s0 + $0x160] ss:$16 sps:$4 sm:$0xff]  }
  0x68   : > { %2269 = vmatprep.subr.bf16.mxu0 %v4692_v47  ;;  %v4791_v47 = vld [vmem:[%s6146_s0 + $0x168] ss:$16 sps:$4 sm:$0xff]  }
  0x6a   : > { %1867 = vmatpush1.bf16.msra.mxu1 %v4694_v48  ;;  %v4792_v48 = vld [vmem:[%s6146_s0 + $0x184] ss:$16 sps:$4 sm:$0xff]  }
  0x6b   : > { %2270 = vmatpush1.bf16.msra.mxu0 %v4695_v49  ;;  %1868 = vmatprep.subr.bf16.mxu1 %v4696_v50  ;;  %v4794_v49 = vld [vmem:[%s6146_s0 + $0x18c] ss:$16 sps:$4 sm:$0xff]   ;;  %v4796_v50 = vld [vmem:[%s6146_s0 + $0x180] ss:$16 sps:$4 sm:$0xff]  }
  0x6c   : > { %2271 = vmatprep.subr.bf16.mxu0 %v4698_v51  ;;  %v4797_v51 = vld [vmem:[%s6146_s0 + $0x188] ss:$16 sps:$4 sm:$0xff]  }
  0x6e   : > { %1869 = vmatpush1.bf16.msra.mxu1 %v4700_v52  ;;  %v4798_v52 = vld [vmem:[%s6146_s0 + $0x1a4] ss:$16 sps:$4 sm:$0xff]  }
  0x6f   : > { %2272 = vmatpush1.bf16.msra.mxu0 %v4701_v53  ;;  %1870 = vmatprep.subr.bf16.mxu1 %v4702_v54  ;;  %v4800_v53 = vld [vmem:[%s6146_s0 + $0x1ac] ss:$16 sps:$4 sm:$0xff]   ;;  %v4802_v54 = vld [vmem:[%s6146_s0 + $0x1a0] ss:$16 sps:$4 sm:$0xff]  }
  0x70   : > { %2273 = vmatprep.subr.bf16.mxu0 %v4704_v55  ;;  %v4803_v55 = vld [vmem:[%s6146_s0 + $0x1a8] ss:$16 sps:$4 sm:$0xff]  }
  0x72   : > { %1871 = vmatpush1.bf16.msra.mxu1 %v4706_v56  ;;  %v4804_v56 = vld [vmem:[%s6146_s0 + $0x1c4] ss:$16 sps:$4 sm:$0xff]  }
  0x73   : > { %2274 = vmatpush1.bf16.msra.mxu0 %v4707_v57  ;;  %1872 = vmatprep.subr.bf16.mxu1 %v4708_v58  ;;  %v4806_v57 = vld [vmem:[%s6146_s0 + $0x1cc] ss:$16 sps:$4 sm:$0xff]   ;;  %v4808_v58 = vld [vmem:[%s6146_s0 + $0x1c0] ss:$16 sps:$4 sm:$0xff]  }
  0x74   : > { %2275 = vmatprep.subr.bf16.mxu0 %v4710_v59  ;;  %v4809_v59 = vld [vmem:[%s6146_s0 + $0x1c8] ss:$16 sps:$4 sm:$0xff]  }
  0x76   : > { %1873 = vmatpush1.bf16.msra.mxu1 %v4712_v60  ;;  %v4810_v60 = vld [vmem:[%s6146_s0 + $0x1e4] ss:$16 sps:$4 sm:$0xff]  }
  0x77   : > { %2276 = vmatpush1.bf16.msra.mxu0 %v4713_v61  ;;  %1874 = vmatprep.subr.bf16.mxu1 %v4714_v62  ;;  %v4812_v61 = vld [vmem:[%s6146_s0 + $0x1ec] ss:$16 sps:$4 sm:$0xff]   ;;  %v4814_v62 = vld [vmem:[%s6146_s0 + $0x1e0] ss:$16 sps:$4 sm:$0xff]  }
  0x78   : > { %2277 = vmatprep.subr.bf16.mxu0 %v4716_v63  ;;  %v4815_v63 = vld [vmem:[%s6146_s0 + $0x1e8] ss:$16 sps:$4 sm:$0xff]  }
  0x7a   : > { %1875 = vmatpush1.bf16.msra.mxu1 %v4718_v0  ;;  %v4816_v0 = vld [vmem:[%s6146_s0 + $0x204] ss:$16 sps:$4 sm:$0xff]  }
  0x7b   : > { %2278 = vmatpush1.bf16.msra.mxu0 %v4719_v1  ;;  %v4818_v1 = vld [vmem:[%s6146_s0 + $0x20c] ss:$16 sps:$4 sm:$0xff]  }
  0x7d   : > { %1877 = vmatmul.mubr.bf16.vlgmr.msra.gmra.mrb[0].mxu1 %v4720_v2  ;;  %v4820_v2 = vld [vmem:[%s6146_s0 + $0x200] ss:$16 sps:$4 sm:$0xff]  }
  0x7e   : > { %2280 = vmatmul.mubr.bf16.vlgmr.msra.gmra.mrb[0].mxu0 %v4723_v3  ;;  %1886 = vmatprep.mubr.bf16.mxu1 %v4726_v4  ;;  %v4821_v3 = vld [vmem:[%s6146_s0 + $0x208] ss:$16 sps:$4 sm:$0xff]   ;;  %v4822_v4 = vld [vmem:[%s6146_s0 + $0x224] ss:$16 sps:$4 sm:$0xff]  }
  0x7f   : > { %2289 = vmatprep.mubr.bf16.mxu0 %v4728_v5  ;;  %v4824_v5 = vld [vmem:[%s6146_s0 + $0x22c] ss:$16 sps:$4 sm:$0xff]  }
  0x85   : > { %1887 = vmatmul.mubr.bf16.gmra.mrb[4].mxu1 %v4730_v6  ;;  %v4826_v6 = vld [vmem:[%s6146_s0 + $0x220] ss:$16 sps:$4 sm:$0xff]  }
  0x86   : > { %2290 = vmatmul.mubr.bf16.gmra.mrb[4].mxu0 %v4731_v7  ;;  %1896 = vmatprep.mubr.bf16.mxu1 %v4732_v8  ;;  %v4827_v7 = vld [vmem:[%s6146_s0 + $0x228] ss:$16 sps:$4 sm:$0xff]   ;;  %v4828_v8 = vld [vmem:[%s6146_s0 + $0x244] ss:$16 sps:$4 sm:$0xff]  }
  0x87   : > { %2299 = vmatprep.mubr.bf16.mxu0 %v4734_v9  ;;  %v4830_v9 = vld [vmem:[%s6146_s0 + $0x24c] ss:$16 sps:$4 sm:$0xff]  }
  0x8d   : > { %1897 = vmatmul.mubr.bf16.gmra.mrb[8].mxu1 %v4736_v10  ;;  %v4832_v10 = vld [vmem:[%s6146_s0 + $0x240] ss:$16 sps:$4 sm:$0xff]  }
  0x8e   : > { %2300 = vmatmul.mubr.bf16.gmra.mrb[8].mxu0 %v4737_v11  ;;  %1906 = vmatprep.mubr.bf16.mxu1 %v4738_v12  ;;  %v4833_v11 = vld [vmem:[%s6146_s0 + $0x248] ss:$16 sps:$4 sm:$0xff]   ;;  %v4834_v12 = vld [vmem:[%s6146_s0 + $0x264] ss:$16 sps:$4 sm:$0xff]  }
  0x8f   : > { %2309 = vmatprep.mubr.bf16.mxu0 %v4740_v13  ;;  %v4836_v13 = vld [vmem:[%s6146_s0 + $0x26c] ss:$16 sps:$4 sm:$0xff]  }
  0x95   : > { %1907 = vmatmul.mubr.bf16.gmra.mrb[12].mxu1 %v4742_v14  ;;  %v4838_v14 = vld [vmem:[%s6146_s0 + $0x260] ss:$16 sps:$4 sm:$0xff]  }
  0x96   : > { %2310 = vmatmul.mubr.bf16.gmra.mrb[12].mxu0 %v4743_v15  ;;  %1916 = vmatprep.mubr.bf16.mxu1 %v4744_v16  ;;  %v4839_v15 = vld [vmem:[%s6146_s0 + $0x268] ss:$16 sps:$4 sm:$0xff]   ;;  %v4840_v16 = vld [vmem:[%s6146_s0 + $0x284] ss:$16 sps:$4 sm:$0xff]  }
  0x97   : > { %2319 = vmatprep.mubr.bf16.mxu0 %v4746_v17  ;;  %v4842_v17 = vld [vmem:[%s6146_s0 + $0x28c] ss:$16 sps:$4 sm:$0xff]  }
  0x9d   : > { %1917 = vmatmul.mubr.bf16.gmra.mrb[16].mxu1 %v4748_v18  ;;  %v4844_v18 = vld [vmem:[%s6146_s0 + $0x280] ss:$16 sps:$4 sm:$0xff]  }
  0x9e   : > { %2320 = vmatmul.mubr.bf16.gmra.mrb[16].mxu0 %v4749_v19  ;;  %1926 = vmatprep.mubr.bf16.mxu1 %v4750_v20  ;;  %v4845_v19 = vld [vmem:[%s6146_s0 + $0x288] ss:$16 sps:$4 sm:$0xff]   ;;  %v4846_v20 = vld [vmem:[%s6146_s0 + $0x2a4] ss:$16 sps:$4 sm:$0xff]  }
  0x9f   : > { %2329 = vmatprep.mubr.bf16.mxu0 %v4752_v21  ;;  %v4848_v21 = vld [vmem:[%s6146_s0 + $0x2ac] ss:$16 sps:$4 sm:$0xff]  }
  0xa5   : > { %1927 = vmatmul.mubr.bf16.gmra.mrb[20].mxu1 %v4754_v22  ;;  %v4850_v22 = vld [vmem:[%s6146_s0 + $0x2a0] ss:$16 sps:$4 sm:$0xff]  }
  0xa6   : > { %2330 = vmatmul.mubr.bf16.gmra.mrb[20].mxu0 %v4755_v23  ;;  %1936 = vmatprep.mubr.bf16.mxu1 %v4756_v24  ;;  %v4851_v23 = vld [vmem:[%s6146_s0 + $0x2a8] ss:$16 sps:$4 sm:$0xff]   ;;  %v4852_v24 = vld [vmem:[%s6146_s0 + $0x2c4] ss:$16 sps:$4 sm:$0xff]  }
  0xa7   : > { %2339 = vmatprep.mubr.bf16.mxu0 %v4758_v25  ;;  %v4854_v25 = vld [vmem:[%s6146_s0 + $0x2cc] ss:$16 sps:$4 sm:$0xff]  }
  0xad   : > { %1937 = vmatmul.mubr.bf16.gmra.mrb[24].mxu1 %v4760_v26  ;;  %v4856_v26 = vld [vmem:[%s6146_s0 + $0x2c0] ss:$16 sps:$4 sm:$0xff]  }
  0xae   : > { %2340 = vmatmul.mubr.bf16.gmra.mrb[24].mxu0 %v4761_v27  ;;  %1946 = vmatprep.mubr.bf16.mxu1 %v4762_v28  ;;  %v4857_v27 = vld [vmem:[%s6146_s0 + $0x2c8] ss:$16 sps:$4 sm:$0xff]   ;;  %v4858_v28 = vld [vmem:[%s6146_s0 + $0x2e4] ss:$16 sps:$4 sm:$0xff]  }
  0xaf   : > { %2349 = vmatprep.mubr.bf16.mxu0 %v4764_v29  ;;  %v4860_v29 = vld [vmem:[%s6146_s0 + $0x2ec] ss:$16 sps:$4 sm:$0xff]  }
  0xb5   : > { %1947 = vmatmul.mubr.bf16.gmra.mrb[28].mxu1 %v4766_v30  ;;  %v4862_v30 = vld [vmem:[%s6146_s0 + $0x2e0] ss:$16 sps:$4 sm:$0xff]  }
  0xb6   : > { %2350 = vmatmul.mubr.bf16.gmra.mrb[28].mxu0 %v4767_v31  ;;  %1956 = vmatprep.mubr.bf16.mxu1 %v4768_v32  ;;  %v4863_v31 = vld [vmem:[%s6146_s0 + $0x2e8] ss:$16 sps:$4 sm:$0xff]   ;;  %v4864_v32 = vld [vmem:[%s6146_s0 + $0x304] ss:$16 sps:$4 sm:$0xff]  }
  0xb7   : > { %2359 = vmatprep.mubr.bf16.mxu0 %v4770_v33  ;;  %v4866_v33 = vld [vmem:[%s6146_s0 + $0x30c] ss:$16 sps:$4 sm:$0xff]  }
  0xbd   : > { %1957 = vmatmul.mubr.bf16.gmra.mrb[32].mxu1 %v4772_v34  ;;  %v4868_v34 = vld [vmem:[%s6146_s0 + $0x300] ss:$16 sps:$4 sm:$0xff]  }
  0xbe   : > { %2360 = vmatmul.mubr.bf16.gmra.mrb[32].mxu0 %v4773_v35  ;;  %1966 = vmatprep.mubr.bf16.mxu1 %v4774_v36  ;;  %v4869_v35 = vld [vmem:[%s6146_s0 + $0x308] ss:$16 sps:$4 sm:$0xff]   ;;  %v4870_v36 = vld [vmem:[%s6146_s0 + $0x324] ss:$16 sps:$4 sm:$0xff]  }
  0xbf   : > { %2369 = vmatprep.mubr.bf16.mxu0 %v4776_v37  ;;  %v4872_v37 = vld [vmem:[%s6146_s0 + $0x32c] ss:$16 sps:$4 sm:$0xff]  }
  0xc5   : > { %1967 = vmatmul.mubr.bf16.gmra.mrb[36].mxu1 %v4778_v38  ;;  %v4874_v38 = vld [vmem:[%s6146_s0 + $0x320] ss:$16 sps:$4 sm:$0xff]  }
  0xc6   : > { %2370 = vmatmul.mubr.bf16.gmra.mrb[36].mxu0 %v4779_v39  ;;  %1976 = vmatprep.mubr.bf16.mxu1 %v4780_v40  ;;  %v4875_v39 = vld [vmem:[%s6146_s0 + $0x328] ss:$16 sps:$4 sm:$0xff]   ;;  %v774_v40 = vlaneseq }
  0xc7   : > { %2379 = vmatprep.mubr.bf16.mxu0 %v4782_v41  ;;  %v4876_v41 = vld [vmem:[%s6146_s0 + $0x344] ss:$16 sps:$4 sm:$0xff]  }
  0xcd   : > { %1977 = vmatmul.mubr.bf16.gmra.mrb[40].mxu1 %v4784_v42  ;;  %v4878_v42 = vld [vmem:[%s6146_s0 + $0x34c] ss:$16 sps:$4 sm:$0xff]  }
  0xce   : > { %2380 = vmatmul.mubr.bf16.gmra.mrb[40].mxu0 %v4785_v43  ;;  %1986 = vmatprep.mubr.bf16.mxu1 %v4786_v44  ;;  %v775_v43 = vshrl.u32 %v774_v40, 7  ;;  %v4880_v44 = vld [vmem:[%s6146_s0 + $0x340] ss:$16 sps:$4 sm:$0xff]  }
  0xcf   : > { %2389 = vmatprep.mubr.bf16.mxu0 %v4788_v45  ;;  %v4881_v45 = vld [vmem:[%s6146_s0 + $0x348] ss:$16 sps:$4 sm:$0xff]  }
  0xd5   : > { %1987 = vmatmul.mubr.bf16.gmra.mrb[44].mxu1 %v4790_v46  ;;  %v772_v46 = vld [vmem:[%s553_s5] sm:$0x3] }
  0xd6   : > { %2390 = vmatmul.mubr.bf16.gmra.mrb[44].mxu0 %v4791_v47  ;;  %1996 = vmatprep.mubr.bf16.mxu1 %v4792_v48  ;;  %v776_v47 = vsub.s32 0, %v775_v43  ;;  %v780_v48 = vsub.s32 1, %v775_v43 }
  0xd7   : > { %2399 = vmatprep.mubr.bf16.mxu0 %v4794_v49  ;;  %v4882_v49 = vld [vmem:[%s6146_s0 + $0x364] ss:$16 sps:$4 sm:$0xff]  }
  0xdd   : > { %1997 = vmatmul.mubr.bf16.gmra.mrb[48].mxu1 %v4796_v50  ;;  %v4884_v50 = vld [vmem:[%s6146_s0 + $0x36c] ss:$16 sps:$4 sm:$0xff]  }
  0xde   : > { %2400 = vmatmul.mubr.bf16.gmra.mrb[48].mxu0 %v4797_v51  ;;  %2006 = vmatprep.mubr.bf16.mxu1 %v4798_v52  ;;  %v5639_v51 = vrot.slane %v772_v46, %v776_v47  ;;  %v5641_v52 = vrot.slane %v772_v46, %v780_v48  ;;  %v4899_v46 = vld [vmem:[%s6146_s0 + $0x3a8] ss:$16 sps:$4 sm:$0xff]  }
  0xdf   : > { %2409 = vmatprep.mubr.bf16.mxu0 %v4800_v53 }
  0xe5   : > { %2007 = vmatmul.mubr.bf16.gmra.mrb[52].mxu1 %v4802_v54 }
  0xe6   : > { %2410 = vmatmul.mubr.bf16.gmra.mrb[52].mxu0 %v4803_v55  ;;  %2016 = vmatprep.mubr.bf16.mxu1 %v4804_v56 }
  0xe7   : > { %2419 = vmatprep.mubr.bf16.mxu0 %v4806_v57 }
  0xed   : > { %2017 = vmatmul.mubr.bf16.gmra.mrb[56].mxu1 %v4808_v58  ;;  %v4886_v58 = vld [vmem:[%s6146_s0 + $0x360] ss:$16 sps:$4 sm:$0xff]  }
  0xee   : > { %2420 = vmatmul.mubr.bf16.gmra.mrb[56].mxu0 %v4809_v59  ;;  %2026 = vmatprep.mubr.bf16.mxu1 %v4810_v60  ;;  %v4887_v59 = vld [vmem:[%s6146_s0 + $0x368] ss:$16 sps:$4 sm:$0xff]  }
  0xef   : > { %2429 = vmatprep.mubr.bf16.mxu0 %v4812_v61 }
  0xf5   : > { %2027 = vmatmul.mubr.bf16.gmra.mrb[60].mxu1 %v4814_v62 }
  0xf6   : > { %2430 = vmatmul.mubr.bf16.gmra.mrb[60].mxu0 %v4815_v63  ;;  %2036 = vmatprep.mubr.bf16.mxu1 %v4816_v0  ;;  %v4888_v63 = vld [vmem:[%s6146_s0 + $0x384] ss:$16 sps:$4 sm:$0xff]   ;;  %v4890_v0 = vld [vmem:[%s6146_s0 + $0x38c] ss:$16 sps:$4 sm:$0xff]  }
  0xf7   : > { %2439 = vmatprep.mubr.bf16.mxu0 %v4818_v1 }
  0xfd   : > { %2037 = vmatmul.mubr.bf16.gmra.mrb[64].mxu1 %v4820_v2 }
  0xfe   : > { %2440 = vmatmul.mubr.bf16.gmra.mrb[64].mxu0 %v4821_v3  ;;  %2046 = vmatprep.mubr.bf16.mxu1 %v4822_v4 }
  0xff   : > { %2449 = vmatprep.mubr.bf16.mxu0 %v4824_v5 }
 0x105   : > { %2047 = vmatmul.mubr.bf16.gmra.mrb[68].mxu1 %v4826_v6 }
 0x106   : > { %2450 = vmatmul.mubr.bf16.gmra.mrb[68].mxu0 %v4827_v7  ;;  %2056 = vmatprep.mubr.bf16.mxu1 %v4828_v8 }
 0x107   : > { %2459 = vmatprep.mubr.bf16.mxu0 %v4830_v9 }
 0x10d   : > { %2057 = vmatmul.mubr.bf16.gmra.mrb[72].mxu1 %v4832_v10 }
 0x10e   : > { %2460 = vmatmul.mubr.bf16.gmra.mrb[72].mxu0 %v4833_v11  ;;  %2066 = vmatprep.mubr.bf16.mxu1 %v4834_v12 }
 0x10f   : > { %2469 = vmatprep.mubr.bf16.mxu0 %v4836_v13 }
 0x115   : > { %2067 = vmatmul.mubr.bf16.gmra.mrb[76].mxu1 %v4838_v14 }
 0x116   : > { %2470 = vmatmul.mubr.bf16.gmra.mrb[76].mxu0 %v4839_v15  ;;  %2076 = vmatprep.mubr.bf16.mxu1 %v4840_v16 }
 0x117   : > { %2479 = vmatprep.mubr.bf16.mxu0 %v4842_v17 }
 0x11d   : > { %2077 = vmatmul.mubr.bf16.gmra.mrb[80].mxu1 %v4844_v18 }
 0x11e   : > { %2480 = vmatmul.mubr.bf16.gmra.mrb[80].mxu0 %v4845_v19  ;;  %2086 = vmatprep.mubr.bf16.mxu1 %v4846_v20  ;;  %v4892_v19 = vld [vmem:[%s6146_s0 + $0x380] ss:$16 sps:$4 sm:$0xff]   ;;  %v4893_v20 = vld [vmem:[%s6146_s0 + $0x388] ss:$16 sps:$4 sm:$0xff]  }
 0x11f   : > { %2489 = vmatprep.mubr.bf16.mxu0 %v4848_v21 }
 0x125   : > { %2087 = vmatmul.mubr.bf16.gmra.mrb[84].mxu1 %v4850_v22 }
 0x126   : > { %2490 = vmatmul.mubr.bf16.gmra.mrb[84].mxu0 %v4851_v23  ;;  %2096 = vmatprep.mubr.bf16.mxu1 %v4852_v24 }
 0x127   : > { %2499 = vmatprep.mubr.bf16.mxu0 %v4854_v25  ;;  %v4894_v25 = vld [vmem:[%s6146_s0 + $0x3a4] ss:$16 sps:$4 sm:$0xff]  }
 0x12d   : > { %2097 = vmatmul.mubr.bf16.gmra.mrb[88].mxu1 %v4856_v26  ;;  %v4896_v26 = vld [vmem:[%s6146_s0 + $0x3ac] ss:$16 sps:$4 sm:$0xff]  }
 0x12e   : > { %2500 = vmatmul.mubr.bf16.gmra.mrb[88].mxu0 %v4857_v27  ;;  %2106 = vmatprep.mubr.bf16.mxu1 %v4858_v28 }
 0x12f   : > { %2509 = vmatprep.mubr.bf16.mxu0 %v4860_v29 }
 0x135   : > { %2107 = vmatmul.mubr.bf16.gmra.mrb[92].mxu1 %v4862_v30 }
 0x136   : > { %2510 = vmatmul.mubr.bf16.gmra.mrb[92].mxu0 %v4863_v31  ;;  %2116 = vmatprep.mubr.bf16.mxu1 %v4864_v32 }
 0x137   : > { %2519 = vmatprep.mubr.bf16.mxu0 %v4866_v33 }
 0x13d   : > { %2117 = vmatmul.mubr.bf16.gmra.mrb[96].mxu1 %v4868_v34 }
 0x13e   : > { %2520 = vmatmul.mubr.bf16.gmra.mrb[96].mxu0 %v4869_v35  ;;  %2126 = vmatprep.mubr.bf16.mxu1 %v4870_v36 }
 0x13f   : > { %2529 = vmatprep.mubr.bf16.mxu0 %v4872_v37 }
 0x145   : > { %2127 = vmatmul.mubr.bf16.gmra.mrb[100].mxu1 %v4874_v38 }
 0x146   : > { %2530 = vmatmul.mubr.bf16.gmra.mrb[100].mxu0 %v4875_v39  ;;  %2136 = vmatprep.mubr.bf16.mxu1 %v4876_v41 }
 0x147   : > { %2539 = vmatprep.mubr.bf16.mxu0 %v4878_v42 }
 0x14d   : > { %2137 = vmatmul.mubr.bf16.gmra.mrb[104].mxu1 %v4880_v44 }
 0x14e   : > { %2540 = vmatmul.mubr.bf16.gmra.mrb[104].mxu0 %v4881_v45  ;;  %2146 = vmatprep.mubr.bf16.mxu1 %v4882_v49  ;;  %v4898_v45 = vld [vmem:[%s6146_s0 + $0x3a0] ss:$16 sps:$4 sm:$0xff]  }
 0x14f   : > { %2549 = vmatprep.mubr.bf16.mxu0 %v4884_v50 }
 0x150   : > { %v1878_v53 = vpop.f32.mrb[0].mxu1 }
 0x151   : > { %v2281_v54 = vpop.f32.mrb[0].mxu0  ;;  %v1879_v55 = vadd.f32 %v1878_v53, %v5639_v51  ;;  %v1880_v56 = vpop.f32.mrb[1].mxu1  ;;  %v4900_v53 = vld [vmem:[%s6146_s0 + $0x3c4] ss:$16 sps:$4 sm:$0xff]  }
 0x152   : > { %v2283_v57 = vpop.f32.mrb[1].mxu0  ;;  %v1881_v60 = vadd.f32 %v1880_v56, %v5641_v52  ;;  %v1882_v61 = vpop.f32.mrb[2].mxu1 }
 0x153   : > { %v2285_v62 = vpop.f32.mrb[2].mxu0  ;;  %v2282_v1 = vadd.f32 %v2281_v54, %v1879_v55  ;;  %v1883_v2 = vadd.f32 %v1882_v61, %v5639_v51  ;;  %v1884_v3 = vpop.f32.mrb[3].mxu1  ;;  %v4902_v54 = vld [vmem:[%s6146_s0 + $0x3cc] ss:$16 sps:$4 sm:$0xff]  }
 0x154   : > { %v2287_v4 = vpop.f32.mrb[3].mxu0  ;;  %v2284_v5 = vadd.f32 %v2283_v57, %v1881_v60  ;;  %v1885_v6 = vadd.f32 %v1884_v3, %v5641_v52 }
 0x155   : > { %v2650_v7 = vmax.f32 %v2282_v1, 0.0  ;;  %v2286_v8 = vadd.f32 %v2285_v62, %v1883_v2  ;;  %2147 = vmatmul.mubr.bf16.gmra.mrb[108].mxu1 %v4886_v58 }
 0x156   : > { %2550 = vmatmul.mubr.bf16.gmra.mrb[108].mxu0 %v4887_v59  ;;  %v2651_v9 = vmax.f32 %v2284_v5, 0.0  ;;  %v2288_v10 = vadd.f32 %v2287_v4, %v1885_v6  ;;  %2156 = vmatprep.mubr.bf16.mxu1 %v4888_v63 }
 0x157   : > { %2559 = vmatprep.mubr.bf16.mxu0 %v4890_v0  ;;  %v2652_v11 = vmax.f32 %v2286_v8, 0.0 }
 0x158   : > { %v4148_v12 = vpack.c.bf16 %v2651_v9, %v2650_v7  ;;  %v2653_v13 = vmax.f32 %v2288_v10, 0.0  ;;  %v1888_v14 = vpop.f32.mrb[4].mxu1  ;;  %v4904_v9 = vld [vmem:[%s6146_s0 + $0x3c0] ss:$16 sps:$4 sm:$0xff]   ;;  %v4905_v10 = vld [vmem:[%s6146_s0 + $0x3c8] ss:$16 sps:$4 sm:$0xff]  }
 0x159   : > { %v2291_v15 = vpop.f32.mrb[4].mxu0  ;;  %v1889_v16 = vadd.f32 %v1888_v14, %v5639_v51  ;;  %v1890_v17 = vpop.f32.mrb[5].mxu1 }
 0x15a   : > { %v2293_v18 = vpop.f32.mrb[5].mxu0  ;;  %3242 = vst [vmem:[%s5668_s7] sm:$0xff] %v4148_v12  ;;  %v4149_v21 = vpack.c.bf16 %v2653_v13, %v2652_v11  ;;  %v1891_v22 = vadd.f32 %v1890_v17, %v5641_v52  ;;  %v1892_v23 = vpop.f32.mrb[6].mxu1 }
 0x15b   : > { %v2295_v24 = vpop.f32.mrb[6].mxu0  ;;  %v2292_v27 = vadd.f32 %v2291_v15, %v1889_v16  ;;  %v1893_v28 = vadd.f32 %v1892_v23, %v5639_v51  ;;  %v1894_v29 = vpop.f32.mrb[7].mxu1  ;;  %v4906_v15 = vld [vmem:[%s6146_s0 + $0x3e4] ss:$16 sps:$4 sm:$0xff]   ;;  %v4908_v16 = vld [vmem:[%s6146_s0 + $0x3ec] ss:$16 sps:$4 sm:$0xff]  }
 0x15c   : > { %v2297_v30 = vpop.f32.mrb[7].mxu0  ;;  %3243 = vst [vmem:[%s5668_s7 + $0x8] sm:$0xff] %v4149_v21  ;;  %v2294_v31 = vadd.f32 %v2293_v18, %v1891_v22  ;;  %v1895_v32 = vadd.f32 %v1894_v29, %v5641_v52 }
 0x15d   : > { %v2654_v33 = vmax.f32 %v2292_v27, 0.0  ;;  %v2296_v34 = vadd.f32 %v2295_v24, %v1893_v28  ;;  %2157 = vmatmul.mubr.bf16.gmra.mrb[112].mxu1 %v4892_v19 }
 0x15e   : > { %2560 = vmatmul.mubr.bf16.gmra.mrb[112].mxu0 %v4893_v20  ;;  %v2655_v35 = vmax.f32 %v2294_v31, 0.0  ;;  %v2298_v36 = vadd.f32 %v2297_v30, %v1895_v32  ;;  %2166 = vmatprep.mubr.bf16.mxu1 %v4894_v25 }
 0x15f   : > { %2569 = vmatprep.mubr.bf16.mxu0 %v4896_v26  ;;  %v2656_v37 = vmax.f32 %v2296_v34, 0.0 }
 0x160   : > { %v4150_v38 = vpack.c.bf16 %v2655_v35, %v2654_v33  ;;  %v2657_v39 = vmax.f32 %v2298_v36, 0.0  ;;  %v1898_v40 = vpop.f32.mrb[8].mxu1  ;;  %v4910_v35 = vld [vmem:[%s6146_s0 + $0x3e0] ss:$16 sps:$4 sm:$0xff]   ;;  %v4911_v36 = vld [vmem:[%s6146_s0 + $0x3e8] ss:$16 sps:$4 sm:$0xff]  }
 0x161   : > { %v2301_v41 = vpop.f32.mrb[8].mxu0  ;;  %v1899_v42 = vadd.f32 %v1898_v40, %v5639_v51  ;;  %v1900_v43 = vpop.f32.mrb[9].mxu1 }
 0x162   : > { %v2303_v44 = vpop.f32.mrb[9].mxu0  ;;  %3244 = vst [vmem:[%s5668_s7 + $0x10] sm:$0xff] %v4150_v38  ;;  %v4151_v47 = vpack.c.bf16 %v2657_v39, %v2656_v37  ;;  %v1901_v48 = vadd.f32 %v1900_v43, %v5641_v52  ;;  %v1902_v49 = vpop.f32.mrb[10].mxu1 }
 0x163   : > { %v2305_v50 = vpop.f32.mrb[10].mxu0  ;;  %v2302_v55 = vadd.f32 %v2301_v41, %v1899_v42  ;;  %v1903_v56 = vadd.f32 %v1902_v49, %v5639_v51  ;;  %v1904_v57 = vpop.f32.mrb[11].mxu1  ;;  %v4912_v41 = vld [vmem:[%s6146_s0 + $0x404] ss:$16 sps:$4 sm:$0xff]   ;;  %v4914_v42 = vld [vmem:[%s6146_s0 + $0x40c] ss:$16 sps:$4 sm:$0xff]  }
 0x164   : > { %v2307_v58 = vpop.f32.mrb[11].mxu0  ;;  %3245 = vst [vmem:[%s5668_s7 + $0x18] sm:$0xff] %v4151_v47  ;;  %v2304_v59 = vadd.f32 %v2303_v44, %v1901_v48  ;;  %v1905_v60 = vadd.f32 %v1904_v57, %v5641_v52 }
 0x165   : > { %v2658_v61 = vmax.f32 %v2302_v55, 0.0  ;;  %v2306_v62 = vadd.f32 %v2305_v50, %v1903_v56  ;;  %2167 = vmatmul.mubr.bf16.gmra.mrb[116].mxu1 %v4898_v45 }
 0x166   : > { %2570 = vmatmul.mubr.bf16.gmra.mrb[116].mxu0 %v4899_v46  ;;  %v2659_v63 = vmax.f32 %v2304_v59, 0.0  ;;  %v2308_v0 = vadd.f32 %v2307_v58, %v1905_v60  ;;  %2176 = vmatprep.mubr.bf16.mxu1 %v4900_v53 }
 0x167   : > { %2579 = vmatprep.mubr.bf16.mxu0 %v4902_v54  ;;  %v2660_v1 = vmax.f32 %v2306_v62, 0.0 }
 0x168   : > { %v4152_v2 = vpack.c.bf16 %v2659_v63, %v2658_v61  ;;  %v2661_v3 = vmax.f32 %v2308_v0, 0.0  ;;  %v1908_v4 = vpop.f32.mrb[12].mxu1  ;;  %v4916_v63 = vld [vmem:[%s6146_s0 + $0x400] ss:$16 sps:$4 sm:$0xff]   ;;  %v4917_v0 = vld [vmem:[%s6146_s0 + $0x408] ss:$16 sps:$4 sm:$0xff]  }
 0x169   : > { %v2311_v5 = vpop.f32.mrb[12].mxu0  ;;  %v1909_v6 = vadd.f32 %v1908_v4, %v5639_v51  ;;  %v1910_v7 = vpop.f32.mrb[13].mxu1 }
 0x16a   : > { %v2313_v8 = vpop.f32.mrb[13].mxu0  ;;  %3246 = vst [vmem:[%s5668_s7 + $0x20] sm:$0xff] %v4152_v2  ;;  %v4153_v11 = vpack.c.bf16 %v2661_v3, %v2660_v1  ;;  %v1911_v12 = vadd.f32 %v1910_v7, %v5641_v52  ;;  %v1912_v13 = vpop.f32.mrb[14].mxu1 }
 0x16b   : > { %v2315_v14 = vpop.f32.mrb[14].mxu0  ;;  %v2312_v17 = vadd.f32 %v2311_v5, %v1909_v6  ;;  %v1913_v18 = vadd.f32 %v1912_v13, %v5639_v51  ;;  %v1914_v19 = vpop.f32.mrb[15].mxu1  ;;  %v4918_v5 = vld [vmem:[%s6146_s0 + $0x424] ss:$16 sps:$4 sm:$0xff]   ;;  %v4920_v6 = vld [vmem:[%s6146_s0 + $0x42c] ss:$16 sps:$4 sm:$0xff]  }
 0x16c   : > { %v2317_v20 = vpop.f32.mrb[15].mxu0  ;;  %3247 = vst [vmem:[%s5668_s7 + $0x28] sm:$0xff] %v4153_v11  ;;  %v2314_v21 = vadd.f32 %v2313_v8, %v1911_v12  ;;  %v1915_v22 = vadd.f32 %v1914_v19, %v5641_v52 }
 0x16d   : > { %v2662_v23 = vmax.f32 %v2312_v17, 0.0  ;;  %v2316_v24 = vadd.f32 %v2315_v14, %v1913_v18  ;;  %2177 = vmatmul.mubr.bf16.gmra.mrb[120].mxu1 %v4904_v9 }
 0x16e   : > { %2580 = vmatmul.mubr.bf16.gmra.mrb[120].mxu0 %v4905_v10  ;;  %v2663_v25 = vmax.f32 %v2314_v21, 0.0  ;;  %v2318_v26 = vadd.f32 %v2317_v20, %v1915_v22  ;;  %2186 = vmatprep.mubr.bf16.mxu1 %v4906_v15 }
 0x16f   : > { %2589 = vmatprep.mubr.bf16.mxu0 %v4908_v16  ;;  %v2664_v27 = vmax.f32 %v2316_v24, 0.0 }
 0x170   : > { %v4154_v28 = vpack.c.bf16 %v2663_v25, %v2662_v23  ;;  %v2665_v29 = vmax.f32 %v2318_v26, 0.0  ;;  %v1918_v30 = vpop.f32.mrb[16].mxu1  ;;  %v4922_v25 = vld [vmem:[%s6146_s0 + $0x420] ss:$16 sps:$4 sm:$0xff]   ;;  %v4923_v26 = vld [vmem:[%s6146_s0 + $0x428] ss:$16 sps:$4 sm:$0xff]  }
 0x171   : > { %v2321_v31 = vpop.f32.mrb[16].mxu0  ;;  %v1919_v32 = vadd.f32 %v1918_v30, %v5639_v51  ;;  %v1920_v33 = vpop.f32.mrb[17].mxu1 }
 0x172   : > { %v2323_v34 = vpop.f32.mrb[17].mxu0  ;;  %3248 = vst [vmem:[%s5668_s7 + $0x30] sm:$0xff] %v4154_v28  ;;  %v4155_v37 = vpack.c.bf16 %v2665_v29, %v2664_v27  ;;  %v1921_v38 = vadd.f32 %v1920_v33, %v5641_v52  ;;  %v1922_v39 = vpop.f32.mrb[18].mxu1 }
 0x173   : > { %v2325_v40 = vpop.f32.mrb[18].mxu0  ;;  %v2322_v43 = vadd.f32 %v2321_v31, %v1919_v32  ;;  %v1923_v44 = vadd.f32 %v1922_v39, %v5639_v51  ;;  %v1924_v45 = vpop.f32.mrb[19].mxu1  ;;  %v4924_v31 = vld [vmem:[%s6146_s0 + $0x444] ss:$16 sps:$4 sm:$0xff]   ;;  %v4926_v32 = vld [vmem:[%s6146_s0 + $0x44c] ss:$16 sps:$4 sm:$0xff]  }
 0x174   : > { %v2327_v46 = vpop.f32.mrb[19].mxu0  ;;  %3249 = vst [vmem:[%s5668_s7 + $0x38] sm:$0xff] %v4155_v37  ;;  %v2324_v47 = vadd.f32 %v2323_v34, %v1921_v38  ;;  %v1925_v48 = vadd.f32 %v1924_v45, %v5641_v52 }
 0x175   : > { %v2666_v49 = vmax.f32 %v2322_v43, 0.0  ;;  %v2326_v50 = vadd.f32 %v2325_v40, %v1923_v44  ;;  %2187 = vmatmul.mubr.bf16.gmra.mrb[124].mxu1 %v4910_v35 }
 0x176   : > { %2590 = vmatmul.mubr.bf16.gmra.mrb[124].mxu0 %v4911_v36  ;;  %v2667_v53 = vmax.f32 %v2324_v47, 0.0  ;;  %v2328_v54 = vadd.f32 %v2327_v46, %v1925_v48  ;;  %2196 = vmatprep.mubr.bf16.mxu1 %v4912_v41 }
 0x177   : > { %2599 = vmatprep.mubr.bf16.mxu0 %v4914_v42  ;;  %v2668_v55 = vmax.f32 %v2326_v50, 0.0 }
 0x178   : > { %v4156_v56 = vpack.c.bf16 %v2667_v53, %v2666_v49  ;;  %v2669_v57 = vmax.f32 %v2328_v54, 0.0  ;;  %v1928_v58 = vpop.f32.mrb[20].mxu1  ;;  %v4928_v53 = vld [vmem:[%s6146_s0 + $0x440] ss:$16 sps:$4 sm:$0xff]   ;;  %v4929_v54 = vld [vmem:[%s6146_s0 + $0x448] ss:$16 sps:$4 sm:$0xff]  }
 0x179   : > { %v2331_v59 = vpop.f32.mrb[20].mxu0  ;;  %v1929_v60 = vadd.f32 %v1928_v58, %v5639_v51  ;;  %v1930_v61 = vpop.f32.mrb[21].mxu1 }
 0x17a   : > { %v2333_v62 = vpop.f32.mrb[21].mxu0  ;;  %3250 = vst [vmem:[%s5668_s7 + $0x40] sm:$0xff] %v4156_v56  ;;  %v4157_v1 = vpack.c.bf16 %v2669_v57, %v2668_v55  ;;  %v1931_v2 = vadd.f32 %v1930_v61, %v5641_v52  ;;  %v1932_v3 = vpop.f32.mrb[22].mxu1 }
 0x17b   : > { %v2335_v4 = vpop.f32.mrb[22].mxu0  ;;  %v2332_v7 = vadd.f32 %v2331_v59, %v1929_v60  ;;  %v1933_v8 = vadd.f32 %v1932_v3, %v5639_v51  ;;  %v1934_v9 = vpop.f32.mrb[23].mxu1  ;;  %v4930_v59 = vld [vmem:[%s6146_s0 + $0x464] ss:$16 sps:$4 sm:$0xff]   ;;  %v4932_v60 = vld [vmem:[%s6146_s0 + $0x46c] ss:$16 sps:$4 sm:$0xff]  }
 0x17c   : > { %v2337_v10 = vpop.f32.mrb[23].mxu0  ;;  %3251 = vst [vmem:[%s5668_s7 + $0x48] sm:$0xff] %v4157_v1  ;;  %v2334_v11 = vadd.f32 %v2333_v62, %v1931_v2  ;;  %v1935_v12 = vadd.f32 %v1934_v9, %v5641_v52 }
 0x17d   : > { %v2670_v13 = vmax.f32 %v2332_v7, 0.0  ;;  %v2336_v14 = vadd.f32 %v2335_v4, %v1933_v8  ;;  %2197 = vmatmul.mubr.bf16.gmra.mrb[128].mxu1 %v4916_v63 }
 0x17e   : > { %2600 = vmatmul.mubr.bf16.gmra.mrb[128].mxu0 %v4917_v0  ;;  %v2671_v15 = vmax.f32 %v2334_v11, 0.0  ;;  %v2338_v16 = vadd.f32 %v2337_v10, %v1935_v12  ;;  %2206 = vmatprep.mubr.bf16.mxu1 %v4918_v5 }
 0x17f   : > { %2609 = vmatprep.mubr.bf16.mxu0 %v4920_v6  ;;  %v2672_v17 = vmax.f32 %v2336_v14, 0.0 }
 0x180   : > { %v4158_v18 = vpack.c.bf16 %v2671_v15, %v2670_v13  ;;  %v2673_v19 = vmax.f32 %v2338_v16, 0.0  ;;  %v1938_v20 = vpop.f32.mrb[24].mxu1  ;;  %v4934_v15 = vld [vmem:[%s6146_s0 + $0x460] ss:$16 sps:$4 sm:$0xff]   ;;  %v4935_v16 = vld [vmem:[%s6146_s0 + $0x468] ss:$16 sps:$4 sm:$0xff]  }
 0x181   : > { %v2341_v21 = vpop.f32.mrb[24].mxu0  ;;  %v1939_v22 = vadd.f32 %v1938_v20, %v5639_v51  ;;  %v1940_v23 = vpop.f32.mrb[25].mxu1 }
 0x182   : > { %v2343_v24 = vpop.f32.mrb[25].mxu0  ;;  %3252 = vst [vmem:[%s5668_s7 + $0x50] sm:$0xff] %v4158_v18  ;;  %v4159_v27 = vpack.c.bf16 %v2673_v19, %v2672_v17  ;;  %v1941_v28 = vadd.f32 %v1940_v23, %v5641_v52  ;;  %v1942_v29 = vpop.f32.mrb[26].mxu1 }
 0x183   : > { %v2345_v30 = vpop.f32.mrb[26].mxu0  ;;  %v2342_v33 = vadd.f32 %v2341_v21, %v1939_v22  ;;  %v1943_v34 = vadd.f32 %v1942_v29, %v5639_v51  ;;  %v1944_v35 = vpop.f32.mrb[27].mxu1  ;;  %v4936_v21 = vld [vmem:[%s6146_s0 + $0x484] ss:$16 sps:$4 sm:$0xff]   ;;  %v4938_v22 = vld [vmem:[%s6146_s0 + $0x48c] ss:$16 sps:$4 sm:$0xff]  }
 0x184   : > { %v2347_v36 = vpop.f32.mrb[27].mxu0  ;;  %3253 = vst [vmem:[%s5668_s7 + $0x58] sm:$0xff] %v4159_v27  ;;  %v2344_v37 = vadd.f32 %v2343_v24, %v1941_v28  ;;  %v1945_v38 = vadd.f32 %v1944_v35, %v5641_v52 }
 0x185   : > { %v2674_v39 = vmax.f32 %v2342_v33, 0.0  ;;  %v2346_v40 = vadd.f32 %v2345_v30, %v1943_v34  ;;  %2207 = vmatmul.mubr.bf16.gmra.mrb[132].mxu1 %v4922_v25 }
 0x186   : > { %2610 = vmatmul.mubr.bf16.gmra.mrb[132].mxu0 %v4923_v26  ;;  %v2675_v41 = vmax.f32 %v2344_v37, 0.0  ;;  %v2348_v42 = vadd.f32 %v2347_v36, %v1945_v38  ;;  %2216 = vmatprep.mubr.bf16.mxu1 %v4924_v31 }
 0x187   : > { %2619 = vmatprep.mubr.bf16.mxu0 %v4926_v32  ;;  %v2676_v43 = vmax.f32 %v2346_v40, 0.0 }
 0x188   : > { %v4160_v44 = vpack.c.bf16 %v2675_v41, %v2674_v39  ;;  %v2677_v45 = vmax.f32 %v2348_v42, 0.0  ;;  %v1948_v46 = vpop.f32.mrb[28].mxu1  ;;  %v4940_v41 = vld [vmem:[%s6146_s0 + $0x480] ss:$16 sps:$4 sm:$0xff]   ;;  %v4941_v42 = vld [vmem:[%s6146_s0 + $0x488] ss:$16 sps:$4 sm:$0xff]  }
 0x189   : > { %v2351_v47 = vpop.f32.mrb[28].mxu0  ;;  %v1949_v48 = vadd.f32 %v1948_v46, %v5639_v51  ;;  %v1950_v49 = vpop.f32.mrb[29].mxu1 }
 0x18a   : > { %v2353_v50 = vpop.f32.mrb[29].mxu0  ;;  %3254 = vst [vmem:[%s5668_s7 + $0x60] sm:$0xff] %v4160_v44  ;;  %v4161_v55 = vpack.c.bf16 %v2677_v45, %v2676_v43  ;;  %v1951_v56 = vadd.f32 %v1950_v49, %v5641_v52  ;;  %v1952_v57 = vpop.f32.mrb[30].mxu1 }
 0x18b   : > { %v2355_v58 = vpop.f32.mrb[30].mxu0  ;;  %v2352_v61 = vadd.f32 %v2351_v47, %v1949_v48  ;;  %v1953_v62 = vadd.f32 %v1952_v57, %v5639_v51  ;;  %v1954_v63 = vpop.f32.mrb[31].mxu1 }
 0x18c   : > { %v2357_v0 = vpop.f32.mrb[31].mxu0  ;;  %3255 = vst [vmem:[%s5668_s7 + $0x68] sm:$0xff] %v4161_v55  ;;  %v2354_v1 = vadd.f32 %v2353_v50, %v1951_v56  ;;  %v1955_v2 = vadd.f32 %v1954_v63, %v5641_v52 }
 0x18d   : > { %v2678_v3 = vmax.f32 %v2352_v61, 0.0  ;;  %v2356_v4 = vadd.f32 %v2355_v58, %v1953_v62  ;;  %2217 = vmatmul.mubr.bf16.gmra.mrb[136].mxu1 %v4928_v53 }
 0x18e   : > { %2620 = vmatmul.mubr.bf16.gmra.mrb[136].mxu0 %v4929_v54  ;;  %v2679_v5 = vmax.f32 %v2354_v1, 0.0  ;;  %v2358_v6 = vadd.f32 %v2357_v0, %v1955_v2  ;;  %2226 = vmatprep.mubr.bf16.mxu1 %v4930_v59 }
 0x18f   : > { %2629 = vmatprep.mubr.bf16.mxu0 %v4932_v60  ;;  %v2680_v7 = vmax.f32 %v2356_v4, 0.0 }
 0x190   : > { %v4162_v8 = vpack.c.bf16 %v2679_v5, %v2678_v3  ;;  %v2681_v9 = vmax.f32 %v2358_v6, 0.0  ;;  %v1958_v10 = vpop.f32.mrb[32].mxu1 }
 0x191   : > { %v2361_v11 = vpop.f32.mrb[32].mxu0  ;;  %v1959_v12 = vadd.f32 %v1958_v10, %v5639_v51  ;;  %v1960_v13 = vpop.f32.mrb[33].mxu1 }
 0x192   : > { %v2363_v14 = vpop.f32.mrb[33].mxu0  ;;  %3256 = vst [vmem:[%s5668_s7 + $0x70] sm:$0xff] %v4162_v8  ;;  %v4163_v17 = vpack.c.bf16 %v2681_v9, %v2680_v7  ;;  %v1961_v18 = vadd.f32 %v1960_v13, %v5641_v52  ;;  %v1962_v19 = vpop.f32.mrb[34].mxu1 }
 0x193   : > { %v2365_v20 = vpop.f32.mrb[34].mxu0  ;;  %v2362_v23 = vadd.f32 %v2361_v11, %v1959_v12  ;;  %v1963_v24 = vadd.f32 %v1962_v19, %v5639_v51  ;;  %v1964_v25 = vpop.f32.mrb[35].mxu1 }
 0x194   : > { %v2367_v26 = vpop.f32.mrb[35].mxu0  ;;  %3257 = vst [vmem:[%s5668_s7 + $0x78] sm:$0xff] %v4163_v17  ;;  %v2364_v27 = vadd.f32 %v2363_v14, %v1961_v18  ;;  %v1965_v28 = vadd.f32 %v1964_v25, %v5641_v52 }
 0x195   : > { %v2682_v29 = vmax.f32 %v2362_v23, 0.0  ;;  %v2366_v30 = vadd.f32 %v2365_v20, %v1963_v24  ;;  %2227 = vmatmul.mubr.bf16.gmra.mrb[140].mxu1 %v4934_v15 }
 0x196   : > { %2630 = vmatmul.mubr.bf16.gmra.mrb[140].mxu0 %v4935_v16  ;;  %v2683_v31 = vmax.f32 %v2364_v27, 0.0  ;;  %v2368_v32 = vadd.f32 %v2367_v26, %v1965_v28  ;;  %2236 = vmatprep.mubr.bf16.mxu1 %v4936_v21 }
 0x197   : > { %2639 = vmatprep.mubr.bf16.mxu0 %v4938_v22  ;;  %v2684_v33 = vmax.f32 %v2366_v30, 0.0 }
 0x198   : > { %v4164_v34 = vpack.c.bf16 %v2683_v31, %v2682_v29  ;;  %v2685_v35 = vmax.f32 %v2368_v32, 0.0  ;;  %v1968_v36 = vpop.f32.mrb[36].mxu1 }
 0x199   : > { %v2371_v37 = vpop.f32.mrb[36].mxu0  ;;  %v1969_v38 = vadd.f32 %v1968_v36, %v5639_v51  ;;  %v1970_v39 = vpop.f32.mrb[37].mxu1 }
 0x19a   : > { %v2373_v40 = vpop.f32.mrb[37].mxu0  ;;  %3258 = vst [vmem:[%s5668_s7 + $0x80] sm:$0xff] %v4164_v34  ;;  %v4165_v43 = vpack.c.bf16 %v2685_v35, %v2684_v33  ;;  %v1971_v44 = vadd.f32 %v1970_v39, %v5641_v52  ;;  %v1972_v45 = vpop.f32.mrb[38].mxu1 }
 0x19b   : > { %v2375_v46 = vpop.f32.mrb[38].mxu0  ;;  %v2372_v47 = vadd.f32 %v2371_v37, %v1969_v38  ;;  %v1973_v48 = vadd.f32 %v1972_v45, %v5639_v51  ;;  %v1974_v49 = vpop.f32.mrb[39].mxu1 }
 0x19c   : > { %v2377_v50 = vpop.f32.mrb[39].mxu0  ;;  %3259 = vst [vmem:[%s5668_s7 + $0x88] sm:$0xff] %v4165_v43  ;;  %v2374_v53 = vadd.f32 %v2373_v40, %v1971_v44  ;;  %v1975_v54 = vadd.f32 %v1974_v49, %v5641_v52 }
 0x19d   : > { %v2686_v55 = vmax.f32 %v2372_v47, 0.0  ;;  %v2376_v56 = vadd.f32 %v2375_v46, %v1973_v48  ;;  %2237 = vmatmul.mubr.bf16.gmra.mrb[144].mxu1 %v4940_v41 }
 0x19e   : > { %2640 = vmatmul.mubr.bf16.gmra.mrb[144].mxu0 %v4941_v42  ;;  %v2687_v57 = vmax.f32 %v2374_v53, 0.0  ;;  %v2378_v58 = vadd.f32 %v2377_v50, %v1975_v54 }
 0x19f   : > { %v2688_v59 = vmax.f32 %v2376_v56, 0.0 }
 0x1a0   : > { %v4166_v60 = vpack.c.bf16 %v2687_v57, %v2686_v55  ;;  %v2689_v61 = vmax.f32 %v2378_v58, 0.0  ;;  %v1978_v62 = vpop.f32.mrb[40].mxu1 }
 0x1a1   : > { %v2381_v63 = vpop.f32.mrb[40].mxu0  ;;  %v1979_v0 = vadd.f32 %v1978_v62, %v5639_v51  ;;  %v1980_v1 = vpop.f32.mrb[41].mxu1 }
 0x1a2   : > { %v2383_v2 = vpop.f32.mrb[41].mxu0  ;;  %3260 = vst [vmem:[%s5668_s7 + $0x90] sm:$0xff] %v4166_v60  ;;  %v4167_v3 = vpack.c.bf16 %v2689_v61, %v2688_v59  ;;  %v1981_v4 = vadd.f32 %v1980_v1, %v5641_v52  ;;  %v1982_v5 = vpop.f32.mrb[42].mxu1 }
 0x1a3   : > { %v2385_v6 = vpop.f32.mrb[42].mxu0  ;;  %v2382_v7 = vadd.f32 %v2381_v63, %v1979_v0  ;;  %v1983_v8 = vadd.f32 %v1982_v5, %v5639_v51  ;;  %v1984_v9 = vpop.f32.mrb[43].mxu1 }
 0x1a4   : > { %v2387_v10 = vpop.f32.mrb[43].mxu0  ;;  %3261 = vst [vmem:[%s5668_s7 + $0x98] sm:$0xff] %v4167_v3  ;;  %v2384_v11 = vadd.f32 %v2383_v2, %v1981_v4  ;;  %v1985_v12 = vadd.f32 %v1984_v9, %v5641_v52 }
 0x1a5   : > { %v2690_v13 = vmax.f32 %v2382_v7, 0.0  ;;  %v2386_v14 = vadd.f32 %v2385_v6, %v1983_v8 }
 0x1a6   : > { %v2691_v15 = vmax.f32 %v2384_v11, 0.0  ;;  %v2388_v16 = vadd.f32 %v2387_v10, %v1985_v12 }
 0x1a7   : > { %v2692_v17 = vmax.f32 %v2386_v14, 0.0 }
 0x1a8   : > { %v4168_v18 = vpack.c.bf16 %v2691_v15, %v2690_v13  ;;  %v2693_v19 = vmax.f32 %v2388_v16, 0.0  ;;  %v1988_v20 = vpop.f32.mrb[44].mxu1 }
 0x1a9   : > { %v2391_v21 = vpop.f32.mrb[44].mxu0  ;;  %v1989_v22 = vadd.f32 %v1988_v20, %v5639_v51  ;;  %v1990_v23 = vpop.f32.mrb[45].mxu1 }
 0x1aa   : > { %v2393_v24 = vpop.f32.mrb[45].mxu0  ;;  %3262 = vst [vmem:[%s5668_s7 + $0xa0] sm:$0xff] %v4168_v18  ;;  %v4169_v25 = vpack.c.bf16 %v2693_v19, %v2692_v17  ;;  %v1991_v26 = vadd.f32 %v1990_v23, %v5641_v52  ;;  %v1992_v27 = vpop.f32.mrb[46].mxu1 }
 0x1ab   : > { %v2395_v28 = vpop.f32.mrb[46].mxu0  ;;  %v2392_v29 = vadd.f32 %v2391_v21, %v1989_v22  ;;  %v1993_v30 = vadd.f32 %v1992_v27, %v5639_v51  ;;  %v1994_v31 = vpop.f32.mrb[47].mxu1 }
 0x1ac   : > { %v2397_v32 = vpop.f32.mrb[47].mxu0  ;;  %3263 = vst [vmem:[%s5668_s7 + $0xa8] sm:$0xff] %v4169_v25  ;;  %v2394_v33 = vadd.f32 %v2393_v24, %v1991_v26  ;;  %v1995_v34 = vadd.f32 %v1994_v31, %v5641_v52 }
 0x1ad   : > { %v2694_v35 = vmax.f32 %v2392_v29, 0.0  ;;  %v2396_v36 = vadd.f32 %v2395_v28, %v1993_v30 }
 0x1ae   : > { %v2695_v37 = vmax.f32 %v2394_v33, 0.0  ;;  %v2398_v38 = vadd.f32 %v2397_v32, %v1995_v34 }
 0x1af   : > { %v2696_v39 = vmax.f32 %v2396_v36, 0.0 }
 0x1b0   : > { %v4170_v40 = vpack.c.bf16 %v2695_v37, %v2694_v35  ;;  %v2697_v41 = vmax.f32 %v2398_v38, 0.0  ;;  %v1998_v42 = vpop.f32.mrb[48].mxu1 }
 0x1b1   : > { %v2401_v43 = vpop.f32.mrb[48].mxu0  ;;  %v1999_v44 = vadd.f32 %v1998_v42, %v5639_v51  ;;  %v2000_v45 = vpop.f32.mrb[49].mxu1 }
 0x1b2   : > { %v2403_v46 = vpop.f32.mrb[49].mxu0  ;;  %3264 = vst [vmem:[%s5668_s7 + $0xb0] sm:$0xff] %v4170_v40  ;;  %v4171_v47 = vpack.c.bf16 %v2697_v41, %v2696_v39  ;;  %v2001_v48 = vadd.f32 %v2000_v45, %v5641_v52  ;;  %v2002_v49 = vpop.f32.mrb[50].mxu1 }
 0x1b3   : > { %v2405_v50 = vpop.f32.mrb[50].mxu0  ;;  %v2402_v53 = vadd.f32 %v2401_v43, %v1999_v44  ;;  %v2003_v54 = vadd.f32 %v2002_v49, %v5639_v51  ;;  %v2004_v55 = vpop.f32.mrb[51].mxu1 }
 0x1b4   : > { %v2407_v56 = vpop.f32.mrb[51].mxu0  ;;  %3265 = vst [vmem:[%s5668_s7 + $0xb8] sm:$0xff] %v4171_v47  ;;  %v2404_v57 = vadd.f32 %v2403_v46, %v2001_v48  ;;  %v2005_v58 = vadd.f32 %v2004_v55, %v5641_v52 }
 0x1b5   : > { %v2698_v59 = vmax.f32 %v2402_v53, 0.0  ;;  %v2406_v60 = vadd.f32 %v2405_v50, %v2003_v54 }
 0x1b6   : > { %v2699_v61 = vmax.f32 %v2404_v57, 0.0  ;;  %v2408_v62 = vadd.f32 %v2407_v56, %v2005_v58 }
 0x1b7   : > { %v2700_v63 = vmax.f32 %v2406_v60, 0.0 }
 0x1b8   : > { %v4172_v0 = vpack.c.bf16 %v2699_v61, %v2698_v59  ;;  %v2701_v1 = vmax.f32 %v2408_v62, 0.0  ;;  %v2008_v2 = vpop.f32.mrb[52].mxu1 }
 0x1b9   : > { %v2411_v3 = vpop.f32.mrb[52].mxu0  ;;  %v2009_v4 = vadd.f32 %v2008_v2, %v5639_v51  ;;  %v2010_v5 = vpop.f32.mrb[53].mxu1 }
 0x1ba   : > { %v2413_v6 = vpop.f32.mrb[53].mxu0  ;;  %3266 = vst [vmem:[%s5668_s7 + $0xc0] sm:$0xff] %v4172_v0  ;;  %v4173_v7 = vpack.c.bf16 %v2701_v1, %v2700_v63  ;;  %v2011_v8 = vadd.f32 %v2010_v5, %v5641_v52  ;;  %v2012_v9 = vpop.f32.mrb[54].mxu1 }
 0x1bb   : > { %v2415_v10 = vpop.f32.mrb[54].mxu0  ;;  %v2412_v11 = vadd.f32 %v2411_v3, %v2009_v4  ;;  %v2013_v12 = vadd.f32 %v2012_v9, %v5639_v51  ;;  %v2014_v13 = vpop.f32.mrb[55].mxu1 }
 0x1bc   : > { %v2417_v14 = vpop.f32.mrb[55].mxu0  ;;  %3267 = vst [vmem:[%s5668_s7 + $0xc8] sm:$0xff] %v4173_v7  ;;  %v2414_v15 = vadd.f32 %v2413_v6, %v2011_v8  ;;  %v2015_v16 = vadd.f32 %v2014_v13, %v5641_v52 }
 0x1bd   : > { %v2702_v17 = vmax.f32 %v2412_v11, 0.0  ;;  %v2416_v18 = vadd.f32 %v2415_v10, %v2013_v12 }
 0x1be   : > { %v2703_v19 = vmax.f32 %v2414_v15, 0.0  ;;  %v2418_v20 = vadd.f32 %v2417_v14, %v2015_v16 }
 0x1bf   : > { %v2704_v21 = vmax.f32 %v2416_v18, 0.0 }
 0x1c0   : > { %v4174_v22 = vpack.c.bf16 %v2703_v19, %v2702_v17  ;;  %v2705_v23 = vmax.f32 %v2418_v20, 0.0  ;;  %v2018_v24 = vpop.f32.mrb[56].mxu1 }
 0x1c1   : > { %v2421_v25 = vpop.f32.mrb[56].mxu0  ;;  %v2019_v26 = vadd.f32 %v2018_v24, %v5639_v51  ;;  %v2020_v27 = vpop.f32.mrb[57].mxu1 }
 0x1c2   : > { %v2423_v28 = vpop.f32.mrb[57].mxu0  ;;  %3268 = vst [vmem:[%s5668_s7 + $0xd0] sm:$0xff] %v4174_v22  ;;  %v4175_v29 = vpack.c.bf16 %v2705_v23, %v2704_v21  ;;  %v2021_v30 = vadd.f32 %v2020_v27, %v5641_v52  ;;  %v2022_v31 = vpop.f32.mrb[58].mxu1 }
 0x1c3   : > { %v2425_v32 = vpop.f32.mrb[58].mxu0  ;;  %v2422_v33 = vadd.f32 %v2421_v25, %v2019_v26  ;;  %v2023_v34 = vadd.f32 %v2022_v31, %v5639_v51  ;;  %v2024_v35 = vpop.f32.mrb[59].mxu1 }
 0x1c4   : > { %v2427_v36 = vpop.f32.mrb[59].mxu0  ;;  %3269 = vst [vmem:[%s5668_s7 + $0xd8] sm:$0xff] %v4175_v29  ;;  %v2424_v37 = vadd.f32 %v2423_v28, %v2021_v30  ;;  %v2025_v38 = vadd.f32 %v2024_v35, %v5641_v52 }
 0x1c5   : > { %v2706_v39 = vmax.f32 %v2422_v33, 0.0  ;;  %v2426_v40 = vadd.f32 %v2425_v32, %v2023_v34 }
 0x1c6   : > { %v2707_v41 = vmax.f32 %v2424_v37, 0.0  ;;  %v2428_v42 = vadd.f32 %v2427_v36, %v2025_v38 }
 0x1c7   : > { %v2708_v43 = vmax.f32 %v2426_v40, 0.0 }
 0x1c8   : > { %v4176_v44 = vpack.c.bf16 %v2707_v41, %v2706_v39  ;;  %v2709_v45 = vmax.f32 %v2428_v42, 0.0  ;;  %v2028_v46 = vpop.f32.mrb[60].mxu1 }
 0x1c9   : > { %v2431_v47 = vpop.f32.mrb[60].mxu0  ;;  %v2029_v48 = vadd.f32 %v2028_v46, %v5639_v51  ;;  %v2030_v49 = vpop.f32.mrb[61].mxu1 }
 0x1ca   : > { %v2433_v50 = vpop.f32.mrb[61].mxu0  ;;  %3270 = vst [vmem:[%s5668_s7 + $0xe0] sm:$0xff] %v4176_v44  ;;  %v4177_v53 = vpack.c.bf16 %v2709_v45, %v2708_v43  ;;  %v2031_v54 = vadd.f32 %v2030_v49, %v5641_v52  ;;  %v2032_v55 = vpop.f32.mrb[62].mxu1 }
 0x1cb   : > { %v2435_v56 = vpop.f32.mrb[62].mxu0  ;;  %v2432_v57 = vadd.f32 %v2431_v47, %v2029_v48  ;;  %v2033_v58 = vadd.f32 %v2032_v55, %v5639_v51  ;;  %v2034_v59 = vpop.f32.mrb[63].mxu1 }
 0x1cc   : > { %v2437_v60 = vpop.f32.mrb[63].mxu0  ;;  %3271 = vst [vmem:[%s5668_s7 + $0xe8] sm:$0xff] %v4177_v53  ;;  %v2434_v61 = vadd.f32 %v2433_v50, %v2031_v54  ;;  %v2035_v62 = vadd.f32 %v2034_v59, %v5641_v52 }
 0x1cd   : > { %v2710_v63 = vmax.f32 %v2432_v57, 0.0  ;;  %v2436_v0 = vadd.f32 %v2435_v56, %v2033_v58 }
 0x1ce   : > { %v2711_v1 = vmax.f32 %v2434_v61, 0.0  ;;  %v2438_v2 = vadd.f32 %v2437_v60, %v2035_v62 }
 0x1cf   : > { %v2712_v3 = vmax.f32 %v2436_v0, 0.0 }
 0x1d0   : > { %v4178_v4 = vpack.c.bf16 %v2711_v1, %v2710_v63  ;;  %v2713_v5 = vmax.f32 %v2438_v2, 0.0  ;;  %v2038_v6 = vpop.f32.mrb[64].mxu1 }
 0x1d1   : > { %v2441_v7 = vpop.f32.mrb[64].mxu0  ;;  %v2039_v8 = vadd.f32 %v2038_v6, %v5639_v51  ;;  %v2040_v9 = vpop.f32.mrb[65].mxu1 }
 0x1d2   : > { %v2443_v10 = vpop.f32.mrb[65].mxu0  ;;  %3272 = vst [vmem:[%s5668_s7 + $0xf0] sm:$0xff] %v4178_v4  ;;  %v4179_v11 = vpack.c.bf16 %v2713_v5, %v2712_v3  ;;  %v2041_v12 = vadd.f32 %v2040_v9, %v5641_v52  ;;  %v2042_v13 = vpop.f32.mrb[66].mxu1 }
 0x1d3   : > { %v2445_v14 = vpop.f32.mrb[66].mxu0  ;;  %v2442_v15 = vadd.f32 %v2441_v7, %v2039_v8  ;;  %v2043_v16 = vadd.f32 %v2042_v13, %v5639_v51  ;;  %v2044_v17 = vpop.f32.mrb[67].mxu1 }
 0x1d4   : > { %v2447_v18 = vpop.f32.mrb[67].mxu0  ;;  %3273 = vst [vmem:[%s5668_s7 + $0xf8] sm:$0xff] %v4179_v11  ;;  %v2444_v19 = vadd.f32 %v2443_v10, %v2041_v12  ;;  %v2045_v20 = vadd.f32 %v2044_v17, %v5641_v52 }
 0x1d5   : > { %v2714_v21 = vmax.f32 %v2442_v15, 0.0  ;;  %v2446_v22 = vadd.f32 %v2445_v14, %v2043_v16 }
 0x1d6   : > { %v2715_v23 = vmax.f32 %v2444_v19, 0.0  ;;  %v2448_v24 = vadd.f32 %v2447_v18, %v2045_v20 }
 0x1d7   : > { %v2716_v25 = vmax.f32 %v2446_v22, 0.0 }
 0x1d8   : > { %v4180_v26 = vpack.c.bf16 %v2715_v23, %v2714_v21  ;;  %v2717_v27 = vmax.f32 %v2448_v24, 0.0  ;;  %v2048_v28 = vpop.f32.mrb[68].mxu1 }
 0x1d9   : > { %v2451_v29 = vpop.f32.mrb[68].mxu0  ;;  %v2049_v30 = vadd.f32 %v2048_v28, %v5639_v51  ;;  %v2050_v31 = vpop.f32.mrb[69].mxu1 }
 0x1da   : > { %v2453_v32 = vpop.f32.mrb[69].mxu0  ;;  %3274 = vst [vmem:[%s5668_s7 + $0x100] sm:$0xff] %v4180_v26  ;;  %v4181_v33 = vpack.c.bf16 %v2717_v27, %v2716_v25  ;;  %v2051_v34 = vadd.f32 %v2050_v31, %v5641_v52  ;;  %v2052_v35 = vpop.f32.mrb[70].mxu1 }
 0x1db   : > { %v2455_v36 = vpop.f32.mrb[70].mxu0  ;;  %v2452_v37 = vadd.f32 %v2451_v29, %v2049_v30  ;;  %v2053_v38 = vadd.f32 %v2052_v35, %v5639_v51  ;;  %v2054_v39 = vpop.f32.mrb[71].mxu1 }
 0x1dc   : > { %v2457_v40 = vpop.f32.mrb[71].mxu0  ;;  %3275 = vst [vmem:[%s5668_s7 + $0x108] sm:$0xff] %v4181_v33  ;;  %v2454_v41 = vadd.f32 %v2453_v32, %v2051_v34  ;;  %v2055_v42 = vadd.f32 %v2054_v39, %v5641_v52 }
 0x1dd   : > { %v2718_v43 = vmax.f32 %v2452_v37, 0.0  ;;  %v2456_v44 = vadd.f32 %v2455_v36, %v2053_v38 }
 0x1de   : > { %v2719_v45 = vmax.f32 %v2454_v41, 0.0  ;;  %v2458_v46 = vadd.f32 %v2457_v40, %v2055_v42 }
 0x1df   : > { %v2720_v47 = vmax.f32 %v2456_v44, 0.0 }
 0x1e0   : > { %v4182_v48 = vpack.c.bf16 %v2719_v45, %v2718_v43  ;;  %v2721_v49 = vmax.f32 %v2458_v46, 0.0  ;;  %v2058_v50 = vpop.f32.mrb[72].mxu1 }
 0x1e1   : > { %v2461_v53 = vpop.f32.mrb[72].mxu0  ;;  %v2059_v54 = vadd.f32 %v2058_v50, %v5639_v51  ;;  %v2060_v55 = vpop.f32.mrb[73].mxu1 }
 0x1e2   : > { %v2463_v56 = vpop.f32.mrb[73].mxu0  ;;  %3276 = vst [vmem:[%s5668_s7 + $0x110] sm:$0xff] %v4182_v48  ;;  %v4183_v57 = vpack.c.bf16 %v2721_v49, %v2720_v47  ;;  %v2061_v58 = vadd.f32 %v2060_v55, %v5641_v52  ;;  %v2062_v59 = vpop.f32.mrb[74].mxu1 }
 0x1e3   : > { %v2465_v60 = vpop.f32.mrb[74].mxu0  ;;  %v2462_v61 = vadd.f32 %v2461_v53, %v2059_v54  ;;  %v2063_v62 = vadd.f32 %v2062_v59, %v5639_v51  ;;  %v2064_v63 = vpop.f32.mrb[75].mxu1 }
 0x1e4   : > { %v2467_v0 = vpop.f32.mrb[75].mxu0  ;;  %3277 = vst [vmem:[%s5668_s7 + $0x118] sm:$0xff] %v4183_v57  ;;  %v2464_v1 = vadd.f32 %v2463_v56, %v2061_v58  ;;  %v2065_v2 = vadd.f32 %v2064_v63, %v5641_v52 }
 0x1e5   : > { %v2722_v3 = vmax.f32 %v2462_v61, 0.0  ;;  %v2466_v4 = vadd.f32 %v2465_v60, %v2063_v62 }
 0x1e6   : > { %v2723_v5 = vmax.f32 %v2464_v1, 0.0  ;;  %v2468_v6 = vadd.f32 %v2467_v0, %v2065_v2 }
 0x1e7   : > { %v2724_v7 = vmax.f32 %v2466_v4, 0.0 }
 0x1e8   : > { %v4184_v8 = vpack.c.bf16 %v2723_v5, %v2722_v3  ;;  %v2725_v9 = vmax.f32 %v2468_v6, 0.0  ;;  %v2068_v10 = vpop.f32.mrb[76].mxu1 }
 0x1e9   : > { %v2471_v11 = vpop.f32.mrb[76].mxu0  ;;  %v2069_v12 = vadd.f32 %v2068_v10, %v5639_v51  ;;  %v2070_v13 = vpop.f32.mrb[77].mxu1 }
 0x1ea   : > { %v2473_v14 = vpop.f32.mrb[77].mxu0  ;;  %3278 = vst [vmem:[%s5668_s7 + $0x120] sm:$0xff] %v4184_v8  ;;  %v4185_v15 = vpack.c.bf16 %v2725_v9, %v2724_v7  ;;  %v2071_v16 = vadd.f32 %v2070_v13, %v5641_v52  ;;  %v2072_v17 = vpop.f32.mrb[78].mxu1 }
 0x1eb   : > { %v2475_v18 = vpop.f32.mrb[78].mxu0  ;;  %v2472_v19 = vadd.f32 %v2471_v11, %v2069_v12  ;;  %v2073_v20 = vadd.f32 %v2072_v17, %v5639_v51  ;;  %v2074_v21 = vpop.f32.mrb[79].mxu1 }
 0x1ec   : > { %v2477_v22 = vpop.f32.mrb[79].mxu0  ;;  %3279 = vst [vmem:[%s5668_s7 + $0x128] sm:$0xff] %v4185_v15  ;;  %v2474_v23 = vadd.f32 %v2473_v14, %v2071_v16  ;;  %v2075_v24 = vadd.f32 %v2074_v21, %v5641_v52 }
 0x1ed   : > { %v2726_v25 = vmax.f32 %v2472_v19, 0.0  ;;  %v2476_v26 = vadd.f32 %v2475_v18, %v2073_v20 }
 0x1ee   : > { %v2727_v27 = vmax.f32 %v2474_v23, 0.0  ;;  %v2478_v28 = vadd.f32 %v2477_v22, %v2075_v24 }
 0x1ef   : > { %v2728_v29 = vmax.f32 %v2476_v26, 0.0 }
 0x1f0   : > { %v4186_v30 = vpack.c.bf16 %v2727_v27, %v2726_v25  ;;  %v2729_v31 = vmax.f32 %v2478_v28, 0.0  ;;  %v2078_v32 = vpop.f32.mrb[80].mxu1 }
 0x1f1   : > { %v2481_v33 = vpop.f32.mrb[80].mxu0  ;;  %v2079_v34 = vadd.f32 %v2078_v32, %v5639_v51  ;;  %v2080_v35 = vpop.f32.mrb[81].mxu1 }
 0x1f2   : > { %v2483_v36 = vpop.f32.mrb[81].mxu0  ;;  %3280 = vst [vmem:[%s5668_s7 + $0x130] sm:$0xff] %v4186_v30  ;;  %v4187_v37 = vpack.c.bf16 %v2729_v31, %v2728_v29  ;;  %v2081_v38 = vadd.f32 %v2080_v35, %v5641_v52  ;;  %v2082_v39 = vpop.f32.mrb[82].mxu1 }
 0x1f3   : > { %v2485_v40 = vpop.f32.mrb[82].mxu0  ;;  %v2482_v41 = vadd.f32 %v2481_v33, %v2079_v34  ;;  %v2083_v42 = vadd.f32 %v2082_v39, %v5639_v51  ;;  %v2084_v43 = vpop.f32.mrb[83].mxu1 }
 0x1f4   : > { %v2487_v44 = vpop.f32.mrb[83].mxu0  ;;  %3281 = vst [vmem:[%s5668_s7 + $0x138] sm:$0xff] %v4187_v37  ;;  %v2484_v45 = vadd.f32 %v2483_v36, %v2081_v38  ;;  %v2085_v46 = vadd.f32 %v2084_v43, %v5641_v52 }
 0x1f5   : > { %v2730_v47 = vmax.f32 %v2482_v41, 0.0  ;;  %v2486_v48 = vadd.f32 %v2485_v40, %v2083_v42 }
 0x1f6   : > { %v2731_v49 = vmax.f32 %v2484_v45, 0.0  ;;  %v2488_v50 = vadd.f32 %v2487_v44, %v2085_v46 }
 0x1f7   : > { %v2732_v53 = vmax.f32 %v2486_v48, 0.0 }
 0x1f8   : > { %v4188_v54 = vpack.c.bf16 %v2731_v49, %v2730_v47  ;;  %v2733_v55 = vmax.f32 %v2488_v50, 0.0  ;;  %v2088_v56 = vpop.f32.mrb[84].mxu1 }
 0x1f9   : > { %v2491_v57 = vpop.f32.mrb[84].mxu0  ;;  %v2089_v58 = vadd.f32 %v2088_v56, %v5639_v51  ;;  %v2090_v59 = vpop.f32.mrb[85].mxu1 }
 0x1fa   : > { %v2493_v60 = vpop.f32.mrb[85].mxu0  ;;  %3282 = vst [vmem:[%s5668_s7 + $0x140] sm:$0xff] %v4188_v54  ;;  %v4189_v61 = vpack.c.bf16 %v2733_v55, %v2732_v53  ;;  %v2091_v62 = vadd.f32 %v2090_v59, %v5641_v52  ;;  %v2092_v63 = vpop.f32.mrb[86].mxu1 }
 0x1fb   : > { %v2495_v0 = vpop.f32.mrb[86].mxu0  ;;  %v2492_v1 = vadd.f32 %v2491_v57, %v2089_v58  ;;  %v2093_v2 = vadd.f32 %v2092_v63, %v5639_v51  ;;  %v2094_v3 = vpop.f32.mrb[87].mxu1 }
 0x1fc   : > { %v2497_v4 = vpop.f32.mrb[87].mxu0  ;;  %3283 = vst [vmem:[%s5668_s7 + $0x148] sm:$0xff] %v4189_v61  ;;  %v2494_v5 = vadd.f32 %v2493_v60, %v2091_v62  ;;  %v2095_v6 = vadd.f32 %v2094_v3, %v5641_v52 }
 0x1fd   : > { %v2734_v7 = vmax.f32 %v2492_v1, 0.0  ;;  %v2496_v8 = vadd.f32 %v2495_v0, %v2093_v2 }
 0x1fe   : > { %v2735_v9 = vmax.f32 %v2494_v5, 0.0  ;;  %v2498_v10 = vadd.f32 %v2497_v4, %v2095_v6 }
 0x1ff   : > { %v2736_v11 = vmax.f32 %v2496_v8, 0.0 }
 0x200   : > { %v4190_v12 = vpack.c.bf16 %v2735_v9, %v2734_v7  ;;  %v2737_v13 = vmax.f32 %v2498_v10, 0.0  ;;  %v2098_v14 = vpop.f32.mrb[88].mxu1 }
 0x201   : > { %v2501_v15 = vpop.f32.mrb[88].mxu0  ;;  %v2099_v16 = vadd.f32 %v2098_v14, %v5639_v51  ;;  %v2100_v17 = vpop.f32.mrb[89].mxu1 }
 0x202   : > { %v2503_v18 = vpop.f32.mrb[89].mxu0  ;;  %3284 = vst [vmem:[%s5668_s7 + $0x150] sm:$0xff] %v4190_v12  ;;  %v4191_v19 = vpack.c.bf16 %v2737_v13, %v2736_v11  ;;  %v2101_v20 = vadd.f32 %v2100_v17, %v5641_v52  ;;  %v2102_v21 = vpop.f32.mrb[90].mxu1 }
 0x203   : > { %v2505_v22 = vpop.f32.mrb[90].mxu0  ;;  %v2502_v23 = vadd.f32 %v2501_v15, %v2099_v16  ;;  %v2103_v24 = vadd.f32 %v2102_v21, %v5639_v51  ;;  %v2104_v25 = vpop.f32.mrb[91].mxu1 }
 0x204   : > { %v2507_v26 = vpop.f32.mrb[91].mxu0  ;;  %3285 = vst [vmem:[%s5668_s7 + $0x158] sm:$0xff] %v4191_v19  ;;  %v2504_v27 = vadd.f32 %v2503_v18, %v2101_v20  ;;  %v2105_v28 = vadd.f32 %v2104_v25, %v5641_v52 }
 0x205   : > { %v2738_v29 = vmax.f32 %v2502_v23, 0.0  ;;  %v2506_v30 = vadd.f32 %v2505_v22, %v2103_v24 }
 0x206   : > { %v2739_v31 = vmax.f32 %v2504_v27, 0.0  ;;  %v2508_v32 = vadd.f32 %v2507_v26, %v2105_v28 }
 0x207   : > { %v2740_v33 = vmax.f32 %v2506_v30, 0.0 }
 0x208   : > { %v4192_v34 = vpack.c.bf16 %v2739_v31, %v2738_v29  ;;  %v2741_v35 = vmax.f32 %v2508_v32, 0.0  ;;  %v2108_v36 = vpop.f32.mrb[92].mxu1 }
 0x209   : > { %v2511_v37 = vpop.f32.mrb[92].mxu0  ;;  %v2109_v38 = vadd.f32 %v2108_v36, %v5639_v51  ;;  %v2110_v39 = vpop.f32.mrb[93].mxu1 }
 0x20a   : > { %v2513_v40 = vpop.f32.mrb[93].mxu0  ;;  %3286 = vst [vmem:[%s5668_s7 + $0x160] sm:$0xff] %v4192_v34  ;;  %v4193_v41 = vpack.c.bf16 %v2741_v35, %v2740_v33  ;;  %v2111_v42 = vadd.f32 %v2110_v39, %v5641_v52  ;;  %v2112_v43 = vpop.f32.mrb[94].mxu1 }
 0x20b   : > { %v2515_v44 = vpop.f32.mrb[94].mxu0  ;;  %v2512_v45 = vadd.f32 %v2511_v37, %v2109_v38  ;;  %v2113_v46 = vadd.f32 %v2112_v43, %v5639_v51  ;;  %v2114_v47 = vpop.f32.mrb[95].mxu1 }
 0x20c   : > { %v2517_v48 = vpop.f32.mrb[95].mxu0  ;;  %3287 = vst [vmem:[%s5668_s7 + $0x168] sm:$0xff] %v4193_v41  ;;  %v2514_v49 = vadd.f32 %v2513_v40, %v2111_v42  ;;  %v2115_v50 = vadd.f32 %v2114_v47, %v5641_v52 }
 0x20d   : > { %v2742_v53 = vmax.f32 %v2512_v45, 0.0  ;;  %v2516_v54 = vadd.f32 %v2515_v44, %v2113_v46 }
 0x20e   : > { %v2743_v55 = vmax.f32 %v2514_v49, 0.0  ;;  %v2518_v56 = vadd.f32 %v2517_v48, %v2115_v50 }
 0x20f   : > { %v2744_v57 = vmax.f32 %v2516_v54, 0.0 }
 0x210   : > { %v4194_v58 = vpack.c.bf16 %v2743_v55, %v2742_v53  ;;  %v2745_v59 = vmax.f32 %v2518_v56, 0.0  ;;  %v2118_v60 = vpop.f32.mrb[96].mxu1 }
 0x211   : > { %v2521_v61 = vpop.f32.mrb[96].mxu0  ;;  %v2119_v62 = vadd.f32 %v2118_v60, %v5639_v51  ;;  %v2120_v63 = vpop.f32.mrb[97].mxu1 }
 0x212   : > { %v2523_v0 = vpop.f32.mrb[97].mxu0  ;;  %3288 = vst [vmem:[%s5668_s7 + $0x170] sm:$0xff] %v4194_v58  ;;  %v4195_v1 = vpack.c.bf16 %v2745_v59, %v2744_v57  ;;  %v2121_v2 = vadd.f32 %v2120_v63, %v5641_v52  ;;  %v2122_v3 = vpop.f32.mrb[98].mxu1 }
 0x213   : > { %v2525_v4 = vpop.f32.mrb[98].mxu0  ;;  %v2522_v5 = vadd.f32 %v2521_v61, %v2119_v62  ;;  %v2123_v6 = vadd.f32 %v2122_v3, %v5639_v51  ;;  %v2124_v7 = vpop.f32.mrb[99].mxu1 }
 0x214   : > { %v2527_v8 = vpop.f32.mrb[99].mxu0  ;;  %3289 = vst [vmem:[%s5668_s7 + $0x178] sm:$0xff] %v4195_v1  ;;  %v2524_v9 = vadd.f32 %v2523_v0, %v2121_v2  ;;  %v2125_v10 = vadd.f32 %v2124_v7, %v5641_v52 }
 0x215   : > { %v2746_v11 = vmax.f32 %v2522_v5, 0.0  ;;  %v2526_v12 = vadd.f32 %v2525_v4, %v2123_v6 }
 0x216   : > { %v2747_v13 = vmax.f32 %v2524_v9, 0.0  ;;  %v2528_v14 = vadd.f32 %v2527_v8, %v2125_v10 }
 0x217   : > { %v2748_v15 = vmax.f32 %v2526_v12, 0.0 }
 0x218   : > { %v4196_v16 = vpack.c.bf16 %v2747_v13, %v2746_v11  ;;  %v2749_v17 = vmax.f32 %v2528_v14, 0.0  ;;  %v2128_v18 = vpop.f32.mrb[100].mxu1 }
 0x219   : > { %v2531_v19 = vpop.f32.mrb[100].mxu0  ;;  %v2129_v20 = vadd.f32 %v2128_v18, %v5639_v51  ;;  %v2130_v21 = vpop.f32.mrb[101].mxu1 }
 0x21a   : > { %v2533_v22 = vpop.f32.mrb[101].mxu0  ;;  %3290 = vst [vmem:[%s5668_s7 + $0x180] sm:$0xff] %v4196_v16  ;;  %v4197_v23 = vpack.c.bf16 %v2749_v17, %v2748_v15  ;;  %v2131_v24 = vadd.f32 %v2130_v21, %v5641_v52  ;;  %v2132_v25 = vpop.f32.mrb[102].mxu1 }
 0x21b   : > { %v2535_v26 = vpop.f32.mrb[102].mxu0  ;;  %v2532_v27 = vadd.f32 %v2531_v19, %v2129_v20  ;;  %v2133_v28 = vadd.f32 %v2132_v25, %v5639_v51  ;;  %v2134_v29 = vpop.f32.mrb[103].mxu1 }
 0x21c   : > { %v2537_v30 = vpop.f32.mrb[103].mxu0  ;;  %3291 = vst [vmem:[%s5668_s7 + $0x188] sm:$0xff] %v4197_v23  ;;  %v2534_v31 = vadd.f32 %v2533_v22, %v2131_v24  ;;  %v2135_v32 = vadd.f32 %v2134_v29, %v5641_v52 }
 0x21d   : > { %v2750_v33 = vmax.f32 %v2532_v27, 0.0  ;;  %v2536_v34 = vadd.f32 %v2535_v26, %v2133_v28 }
 0x21e   : > { %v2751_v35 = vmax.f32 %v2534_v31, 0.0  ;;  %v2538_v36 = vadd.f32 %v2537_v30, %v2135_v32 }
 0x21f   : > { %v2752_v37 = vmax.f32 %v2536_v34, 0.0 }
 0x220   : > { %v4198_v38 = vpack.c.bf16 %v2751_v35, %v2750_v33  ;;  %v2753_v39 = vmax.f32 %v2538_v36, 0.0  ;;  %v2138_v40 = vpop.f32.mrb[104].mxu1 }
 0x221   : > { %v2541_v41 = vpop.f32.mrb[104].mxu0  ;;  %v2139_v42 = vadd.f32 %v2138_v40, %v5639_v51  ;;  %v2140_v43 = vpop.f32.mrb[105].mxu1 }
 0x222   : > { %v2543_v44 = vpop.f32.mrb[105].mxu0  ;;  %3292 = vst [vmem:[%s5668_s7 + $0x190] sm:$0xff] %v4198_v38  ;;  %v4199_v45 = vpack.c.bf16 %v2753_v39, %v2752_v37  ;;  %v2141_v46 = vadd.f32 %v2140_v43, %v5641_v52  ;;  %v2142_v47 = vpop.f32.mrb[106].mxu1 }
 0x223   : > { %v2545_v48 = vpop.f32.mrb[106].mxu0  ;;  %v2542_v49 = vadd.f32 %v2541_v41, %v2139_v42  ;;  %v2143_v50 = vadd.f32 %v2142_v47, %v5639_v51  ;;  %v2144_v53 = vpop.f32.mrb[107].mxu1 }
 0x224   : > { %v2547_v54 = vpop.f32.mrb[107].mxu0  ;;  %3293 = vst [vmem:[%s5668_s7 + $0x198] sm:$0xff] %v4199_v45  ;;  %v2544_v55 = vadd.f32 %v2543_v44, %v2141_v46  ;;  %v2145_v56 = vadd.f32 %v2144_v53, %v5641_v52 }
 0x225   : > { %v2754_v57 = vmax.f32 %v2542_v49, 0.0  ;;  %v2546_v58 = vadd.f32 %v2545_v48, %v2143_v50 }
 0x226   : > { %v2755_v59 = vmax.f32 %v2544_v55, 0.0  ;;  %v2548_v60 = vadd.f32 %v2547_v54, %v2145_v56 }
 0x227   : > { %v2756_v61 = vmax.f32 %v2546_v58, 0.0 }
 0x228   : > { %v4200_v62 = vpack.c.bf16 %v2755_v59, %v2754_v57  ;;  %v2757_v63 = vmax.f32 %v2548_v60, 0.0  ;;  %v2148_v0 = vpop.f32.mrb[108].mxu1 }
 0x229   : > { %v2551_v1 = vpop.f32.mrb[108].mxu0  ;;  %v2149_v2 = vadd.f32 %v2148_v0, %v5639_v51  ;;  %v2150_v3 = vpop.f32.mrb[109].mxu1 }
 0x22a   : > { %v2553_v4 = vpop.f32.mrb[109].mxu0  ;;  %3294 = vst [vmem:[%s5668_s7 + $0x1a0] sm:$0xff] %v4200_v62  ;;  %v4201_v5 = vpack.c.bf16 %v2757_v63, %v2756_v61  ;;  %v2151_v6 = vadd.f32 %v2150_v3, %v5641_v52  ;;  %v2152_v7 = vpop.f32.mrb[110].mxu1 }
 0x22b   : > { %v2555_v8 = vpop.f32.mrb[110].mxu0  ;;  %v2552_v9 = vadd.f32 %v2551_v1, %v2149_v2  ;;  %v2153_v10 = vadd.f32 %v2152_v7, %v5639_v51  ;;  %v2154_v11 = vpop.f32.mrb[111].mxu1 }
 0x22c   : > { %v2557_v12 = vpop.f32.mrb[111].mxu0  ;;  %3295 = vst [vmem:[%s5668_s7 + $0x1a8] sm:$0xff] %v4201_v5  ;;  %v2554_v13 = vadd.f32 %v2553_v4, %v2151_v6  ;;  %v2155_v14 = vadd.f32 %v2154_v11, %v5641_v52 }
 0x22d   : > { %v2758_v15 = vmax.f32 %v2552_v9, 0.0  ;;  %v2556_v16 = vadd.f32 %v2555_v8, %v2153_v10 }
 0x22e   : > { %v2759_v17 = vmax.f32 %v2554_v13, 0.0  ;;  %v2558_v18 = vadd.f32 %v2557_v12, %v2155_v14 }
 0x22f   : > { %v2760_v19 = vmax.f32 %v2556_v16, 0.0 }
 0x230   : > { %v4202_v20 = vpack.c.bf16 %v2759_v17, %v2758_v15  ;;  %v2761_v21 = vmax.f32 %v2558_v18, 0.0  ;;  %v2158_v22 = vpop.f32.mrb[112].mxu1 }
 0x231   : > { %v2561_v23 = vpop.f32.mrb[112].mxu0  ;;  %v2159_v24 = vadd.f32 %v2158_v22, %v5639_v51  ;;  %v2160_v25 = vpop.f32.mrb[113].mxu1 }
 0x232   : > { %v2563_v26 = vpop.f32.mrb[113].mxu0  ;;  %3296 = vst [vmem:[%s5668_s7 + $0x1b0] sm:$0xff] %v4202_v20  ;;  %v4203_v27 = vpack.c.bf16 %v2761_v21, %v2760_v19  ;;  %v2161_v28 = vadd.f32 %v2160_v25, %v5641_v52  ;;  %v2162_v29 = vpop.f32.mrb[114].mxu1 }
 0x233   : > { %v2565_v30 = vpop.f32.mrb[114].mxu0  ;;  %v2562_v31 = vadd.f32 %v2561_v23, %v2159_v24  ;;  %v2163_v32 = vadd.f32 %v2162_v29, %v5639_v51  ;;  %v2164_v33 = vpop.f32.mrb[115].mxu1 }
 0x234   : > { %v2567_v34 = vpop.f32.mrb[115].mxu0  ;;  %3297 = vst [vmem:[%s5668_s7 + $0x1b8] sm:$0xff] %v4203_v27  ;;  %v2564_v35 = vadd.f32 %v2563_v26, %v2161_v28  ;;  %v2165_v36 = vadd.f32 %v2164_v33, %v5641_v52 }
 0x235   : > { %v2762_v37 = vmax.f32 %v2562_v31, 0.0  ;;  %v2566_v38 = vadd.f32 %v2565_v30, %v2163_v32 }
 0x236   : > { %v2763_v39 = vmax.f32 %v2564_v35, 0.0  ;;  %v2568_v40 = vadd.f32 %v2567_v34, %v2165_v36 }
 0x237   : > { %v2764_v41 = vmax.f32 %v2566_v38, 0.0 }
 0x238   : > { %v4204_v42 = vpack.c.bf16 %v2763_v39, %v2762_v37  ;;  %v2765_v43 = vmax.f32 %v2568_v40, 0.0  ;;  %v2168_v44 = vpop.f32.mrb[116].mxu1 }
 0x239   : > { %v2571_v45 = vpop.f32.mrb[116].mxu0  ;;  %v2169_v46 = vadd.f32 %v2168_v44, %v5639_v51  ;;  %v2170_v47 = vpop.f32.mrb[117].mxu1 }
 0x23a   : > { %v2573_v48 = vpop.f32.mrb[117].mxu0  ;;  %3298 = vst [vmem:[%s5668_s7 + $0x1c0] sm:$0xff] %v4204_v42  ;;  %v4205_v49 = vpack.c.bf16 %v2765_v43, %v2764_v41  ;;  %v2171_v50 = vadd.f32 %v2170_v47, %v5641_v52  ;;  %v2172_v53 = vpop.f32.mrb[118].mxu1 }
 0x23b   : > { %v2575_v54 = vpop.f32.mrb[118].mxu0  ;;  %v2572_v55 = vadd.f32 %v2571_v45, %v2169_v46  ;;  %v2173_v56 = vadd.f32 %v2172_v53, %v5639_v51  ;;  %v2174_v57 = vpop.f32.mrb[119].mxu1 }
 0x23c   : > { %v2577_v58 = vpop.f32.mrb[119].mxu0  ;;  %3299 = vst [vmem:[%s5668_s7 + $0x1c8] sm:$0xff] %v4205_v49  ;;  %v2574_v59 = vadd.f32 %v2573_v48, %v2171_v50  ;;  %v2175_v60 = vadd.f32 %v2174_v57, %v5641_v52 }
 0x23d   : > { %v2766_v61 = vmax.f32 %v2572_v55, 0.0  ;;  %v2576_v62 = vadd.f32 %v2575_v54, %v2173_v56 }
 0x23e   : > { %v2767_v63 = vmax.f32 %v2574_v59, 0.0  ;;  %v2578_v0 = vadd.f32 %v2577_v58, %v2175_v60 }
 0x23f   : > { %v2768_v1 = vmax.f32 %v2576_v62, 0.0 }
 0x240   : > { %v4206_v2 = vpack.c.bf16 %v2767_v63, %v2766_v61  ;;  %v2769_v3 = vmax.f32 %v2578_v0, 0.0  ;;  %v2178_v4 = vpop.f32.mrb[120].mxu1 }
 0x241   : > { %v2581_v5 = vpop.f32.mrb[120].mxu0  ;;  %v2179_v6 = vadd.f32 %v2178_v4, %v5639_v51  ;;  %v2180_v7 = vpop.f32.mrb[121].mxu1 }
 0x242   : > { %v2583_v8 = vpop.f32.mrb[121].mxu0  ;;  %3300 = vst [vmem:[%s5668_s7 + $0x1d0] sm:$0xff] %v4206_v2  ;;  %v4207_v9 = vpack.c.bf16 %v2769_v3, %v2768_v1  ;;  %v2181_v10 = vadd.f32 %v2180_v7, %v5641_v52  ;;  %v2182_v11 = vpop.f32.mrb[122].mxu1 }
 0x243   : > { %v2585_v12 = vpop.f32.mrb[122].mxu0  ;;  %v2582_v13 = vadd.f32 %v2581_v5, %v2179_v6  ;;  %v2183_v14 = vadd.f32 %v2182_v11, %v5639_v51  ;;  %v2184_v15 = vpop.f32.mrb[123].mxu1 }
 0x244   : > { %v2587_v16 = vpop.f32.mrb[123].mxu0  ;;  %3301 = vst [vmem:[%s5668_s7 + $0x1d8] sm:$0xff] %v4207_v9  ;;  %v2584_v17 = vadd.f32 %v2583_v8, %v2181_v10  ;;  %v2185_v18 = vadd.f32 %v2184_v15, %v5641_v52 }
 0x245   : > { %v2770_v19 = vmax.f32 %v2582_v13, 0.0  ;;  %v2586_v20 = vadd.f32 %v2585_v12, %v2183_v14 }
 0x246   : > { %v2771_v21 = vmax.f32 %v2584_v17, 0.0  ;;  %v2588_v22 = vadd.f32 %v2587_v16, %v2185_v18 }
 0x247   : > { %v2772_v23 = vmax.f32 %v2586_v20, 0.0 }
 0x248   : > { %v4208_v24 = vpack.c.bf16 %v2771_v21, %v2770_v19  ;;  %v2773_v25 = vmax.f32 %v2588_v22, 0.0  ;;  %v2188_v26 = vpop.f32.mrb[124].mxu1 }
 0x249   : > { %v2591_v27 = vpop.f32.mrb[124].mxu0  ;;  %v2189_v28 = vadd.f32 %v2188_v26, %v5639_v51  ;;  %v2190_v29 = vpop.f32.mrb[125].mxu1 }
 0x24a   : > { %v2593_v30 = vpop.f32.mrb[125].mxu0  ;;  %3302 = vst [vmem:[%s5668_s7 + $0x1e0] sm:$0xff] %v4208_v24  ;;  %v4209_v31 = vpack.c.bf16 %v2773_v25, %v2772_v23  ;;  %v2191_v32 = vadd.f32 %v2190_v29, %v5641_v52  ;;  %v2192_v33 = vpop.f32.mrb[126].mxu1 }
 0x24b   : > { %v2595_v34 = vpop.f32.mrb[126].mxu0  ;;  %v2592_v35 = vadd.f32 %v2591_v27, %v2189_v28  ;;  %v2193_v36 = vadd.f32 %v2192_v33, %v5639_v51  ;;  %v2194_v37 = vpop.f32.mrb[127].mxu1 }
 0x24c   : > { %v2597_v38 = vpop.f32.mrb[127].mxu0  ;;  %3303 = vst [vmem:[%s5668_s7 + $0x1e8] sm:$0xff] %v4209_v31  ;;  %v2594_v39 = vadd.f32 %v2593_v30, %v2191_v32  ;;  %v2195_v40 = vadd.f32 %v2194_v37, %v5641_v52 }
 0x24d   : > { %v2774_v41 = vmax.f32 %v2592_v35, 0.0  ;;  %v2596_v42 = vadd.f32 %v2595_v34, %v2193_v36 }
 0x24e   : > { %v2775_v43 = vmax.f32 %v2594_v39, 0.0  ;;  %v2598_v44 = vadd.f32 %v2597_v38, %v2195_v40 }
 0x24f   : > { %v2776_v45 = vmax.f32 %v2596_v42, 0.0 }
 0x250   : > { %v4210_v46 = vpack.c.bf16 %v2775_v43, %v2774_v41  ;;  %v2777_v47 = vmax.f32 %v2598_v44, 0.0  ;;  %v2198_v48 = vpop.f32.mrb[128].mxu1 }
 0x251   : > { %v2601_v49 = vpop.f32.mrb[128].mxu0  ;;  %v2199_v50 = vadd.f32 %v2198_v48, %v5639_v51  ;;  %v2200_v53 = vpop.f32.mrb[129].mxu1 }
 0x252   : > { %v2603_v54 = vpop.f32.mrb[129].mxu0  ;;  %3304 = vst [vmem:[%s5668_s7 + $0x1f0] sm:$0xff] %v4210_v46  ;;  %v4211_v55 = vpack.c.bf16 %v2777_v47, %v2776_v45  ;;  %v2201_v56 = vadd.f32 %v2200_v53, %v5641_v52  ;;  %v2202_v57 = vpop.f32.mrb[130].mxu1 }
 0x253   : > { %v2605_v58 = vpop.f32.mrb[130].mxu0  ;;  %v2602_v59 = vadd.f32 %v2601_v49, %v2199_v50  ;;  %v2203_v60 = vadd.f32 %v2202_v57, %v5639_v51  ;;  %v2204_v61 = vpop.f32.mrb[131].mxu1 }
 0x254   : > { %v2607_v62 = vpop.f32.mrb[131].mxu0  ;;  %3305 = vst [vmem:[%s5668_s7 + $0x1f8] sm:$0xff] %v4211_v55  ;;  %v2604_v63 = vadd.f32 %v2603_v54, %v2201_v56  ;;  %v2205_v0 = vadd.f32 %v2204_v61, %v5641_v52 }
 0x255   : > { %v2778_v1 = vmax.f32 %v2602_v59, 0.0  ;;  %v2606_v2 = vadd.f32 %v2605_v58, %v2203_v60 }
 0x256   : > { %v2779_v3 = vmax.f32 %v2604_v63, 0.0  ;;  %v2608_v4 = vadd.f32 %v2607_v62, %v2205_v0 }
 0x257   : > { %v2780_v5 = vmax.f32 %v2606_v2, 0.0 }
 0x258   : > { %v4212_v6 = vpack.c.bf16 %v2779_v3, %v2778_v1  ;;  %v2781_v7 = vmax.f32 %v2608_v4, 0.0  ;;  %v2208_v8 = vpop.f32.mrb[132].mxu1 }
 0x259   : > { %v2611_v9 = vpop.f32.mrb[132].mxu0  ;;  %v2209_v10 = vadd.f32 %v2208_v8, %v5639_v51  ;;  %v2210_v11 = vpop.f32.mrb[133].mxu1 }
 0x25a   : > { %v2613_v12 = vpop.f32.mrb[133].mxu0  ;;  %3306 = vst [vmem:[%s5668_s7 + $0x200] sm:$0xff] %v4212_v6  ;;  %v4213_v13 = vpack.c.bf16 %v2781_v7, %v2780_v5  ;;  %v2211_v14 = vadd.f32 %v2210_v11, %v5641_v52  ;;  %v2212_v15 = vpop.f32.mrb[134].mxu1 }
 0x25b   : > { %v2615_v16 = vpop.f32.mrb[134].mxu0  ;;  %v2612_v17 = vadd.f32 %v2611_v9, %v2209_v10  ;;  %v2213_v18 = vadd.f32 %v2212_v15, %v5639_v51  ;;  %v2214_v19 = vpop.f32.mrb[135].mxu1 }
 0x25c   : > { %v2617_v20 = vpop.f32.mrb[135].mxu0  ;;  %3307 = vst [vmem:[%s5668_s7 + $0x208] sm:$0xff] %v4213_v13  ;;  %v2614_v21 = vadd.f32 %v2613_v12, %v2211_v14  ;;  %v2215_v22 = vadd.f32 %v2214_v19, %v5641_v52 }
 0x25d   : > { %v2782_v23 = vmax.f32 %v2612_v17, 0.0  ;;  %v2616_v24 = vadd.f32 %v2615_v16, %v2213_v18 }
 0x25e   : > { %v2783_v25 = vmax.f32 %v2614_v21, 0.0  ;;  %v2618_v26 = vadd.f32 %v2617_v20, %v2215_v22 }
 0x25f   : > { %v2784_v27 = vmax.f32 %v2616_v24, 0.0 }
 0x260   : > { %v4214_v28 = vpack.c.bf16 %v2783_v25, %v2782_v23  ;;  %v2785_v29 = vmax.f32 %v2618_v26, 0.0  ;;  %v2218_v30 = vpop.f32.mrb[136].mxu1 }
 0x261   : > { %v2621_v31 = vpop.f32.mrb[136].mxu0  ;;  %v2219_v32 = vadd.f32 %v2218_v30, %v5639_v51  ;;  %v2220_v33 = vpop.f32.mrb[137].mxu1 }
 0x262   : > { %v2623_v34 = vpop.f32.mrb[137].mxu0  ;;  %3308 = vst [vmem:[%s5668_s7 + $0x210] sm:$0xff] %v4214_v28  ;;  %v4215_v35 = vpack.c.bf16 %v2785_v29, %v2784_v27  ;;  %v2221_v36 = vadd.f32 %v2220_v33, %v5641_v52  ;;  %v2222_v37 = vpop.f32.mrb[138].mxu1 }
 0x263   : > { %v2625_v38 = vpop.f32.mrb[138].mxu0  ;;  %v2622_v39 = vadd.f32 %v2621_v31, %v2219_v32  ;;  %v2223_v40 = vadd.f32 %v2222_v37, %v5639_v51  ;;  %v2224_v41 = vpop.f32.mrb[139].mxu1 }
 0x264   : > { %v2627_v42 = vpop.f32.mrb[139].mxu0  ;;  %3309 = vst [vmem:[%s5668_s7 + $0x218] sm:$0xff] %v4215_v35  ;;  %v2624_v43 = vadd.f32 %v2623_v34, %v2221_v36  ;;  %v2225_v44 = vadd.f32 %v2224_v41, %v5641_v52 }
 0x265   : > { %v2786_v45 = vmax.f32 %v2622_v39, 0.0  ;;  %v2626_v46 = vadd.f32 %v2625_v38, %v2223_v40 }
 0x266   : > { %v2787_v47 = vmax.f32 %v2624_v43, 0.0  ;;  %v2628_v48 = vadd.f32 %v2627_v42, %v2225_v44 }
 0x267   : > { %v2788_v49 = vmax.f32 %v2626_v46, 0.0 }
 0x268   : > { %v4216_v50 = vpack.c.bf16 %v2787_v47, %v2786_v45  ;;  %v2789_v53 = vmax.f32 %v2628_v48, 0.0  ;;  %v2228_v54 = vpop.f32.mrb[140].mxu1 }
 0x269   : > { %v2631_v55 = vpop.f32.mrb[140].mxu0  ;;  %v2229_v56 = vadd.f32 %v2228_v54, %v5639_v51  ;;  %v2230_v57 = vpop.f32.mrb[141].mxu1 }
 0x26a   : > { %v2633_v58 = vpop.f32.mrb[141].mxu0  ;;  %3310 = vst [vmem:[%s5668_s7 + $0x220] sm:$0xff] %v4216_v50  ;;  %v4217_v59 = vpack.c.bf16 %v2789_v53, %v2788_v49  ;;  %v2231_v60 = vadd.f32 %v2230_v57, %v5641_v52  ;;  %v2232_v61 = vpop.f32.mrb[142].mxu1 }
 0x26b   : > { %v2635_v62 = vpop.f32.mrb[142].mxu0  ;;  %v2632_v63 = vadd.f32 %v2631_v55, %v2229_v56  ;;  %v2233_v0 = vadd.f32 %v2232_v61, %v5639_v51  ;;  %v2234_v1 = vpop.f32.mrb[143].mxu1 }
 0x26c   : > { %v2637_v2 = vpop.f32.mrb[143].mxu0  ;;  %3311 = vst [vmem:[%s5668_s7 + $0x228] sm:$0xff] %v4217_v59  ;;  %v2634_v3 = vadd.f32 %v2633_v58, %v2231_v60  ;;  %v2235_v4 = vadd.f32 %v2234_v1, %v5641_v52 }
 0x26d   : > { %v2790_v5 = vmax.f32 %v2632_v63, 0.0  ;;  %v2636_v6 = vadd.f32 %v2635_v62, %v2233_v0 }
 0x26e   : > { %v2791_v7 = vmax.f32 %v2634_v3, 0.0  ;;  %v2638_v8 = vadd.f32 %v2637_v2, %v2235_v4 }
 0x26f   : > { %v2792_v9 = vmax.f32 %v2636_v6, 0.0 }
 0x270   : > { %v4218_v10 = vpack.c.bf16 %v2791_v7, %v2790_v5  ;;  %v2793_v11 = vmax.f32 %v2638_v8, 0.0  ;;  %v2238_v12 = vpop.f32.mrb[144].mxu1 }
 0x271   : > { %v2641_v13 = vpop.f32.mrb[144].mxu0  ;;  %v2239_v14 = vadd.f32 %v2238_v12, %v5639_v51  ;;  %v2240_v15 = vpop.f32.mrb[145].mxu1 }
 0x272   : > { %v2643_v16 = vpop.f32.mrb[145].mxu0  ;;  %3312 = vst [vmem:[%s5668_s7 + $0x230] sm:$0xff] %v4218_v10  ;;  %v4219_v17 = vpack.c.bf16 %v2793_v11, %v2792_v9  ;;  %v2241_v18 = vadd.f32 %v2240_v15, %v5641_v52  ;;  %v2242_v19 = vpop.f32.mrb[146].mxu1 }
 0x273   : > { %v2645_v20 = vpop.f32.mrb[146].mxu0  ;;  %v2642_v21 = vadd.f32 %v2641_v13, %v2239_v14  ;;  %v2243_v22 = vadd.f32 %v2242_v19, %v5639_v51  ;;  %v2244_v23 = vpop.f32.mrb[147].mxu1 }
 0x274   : > { %v2647_v24 = vpop.f32.mrb[147].mxu0  ;;  %3313 = vst [vmem:[%s5668_s7 + $0x238] sm:$0xff] %v4219_v17  ;;  %v2644_v25 = vadd.f32 %v2643_v16, %v2241_v18  ;;  %v2245_v26 = vadd.f32 %v2244_v23, %v5641_v52 }
 0x275   : > { %v2794_v27 = vmax.f32 %v2642_v21, 0.0  ;;  %v2646_v28 = vadd.f32 %v2645_v20, %v2243_v22 }
 0x276   : > { %v2795_v29 = vmax.f32 %v2644_v25, 0.0  ;;  %v2648_v30 = vadd.f32 %v2647_v24, %v2245_v26  ;;  %3322 = sbr.rel (!%p5089_p6) target bundleno = 680 (0x2a8), region = 74 }
 0x277   : > { %v2796_v31 = vmax.f32 %v2646_v28, 0.0 }
 0x278   : > { %v4220_v32 = vpack.c.bf16 %v2795_v29, %v2794_v27  ;;  %v2797_v33 = vmax.f32 %v2648_v30, 0.0 }
 0x27a   : > { %3314 = vst [vmem:[%s5668_s7 + $0x240] sm:$0xff] %v4220_v32  ;;  %v4221_v34 = vpack.c.bf16 %v2797_v33, %v2796_v31 }
 0x27c   : > { %3315 = vst [vmem:[%s5668_s7 + $0x248] sm:$0xff] %v4221_v34 }
 0x27d LB: >> { %v3523_v51 = vld [vmem:[%s5668_s7] sm:$0xff]  ;;  %v3525_v52 = vld [vmem:[%s5668_s7 + $0x8] sm:$0xff]  ;;  %v3527_v35 = vld [vmem:[%s5668_s7 + $0x10] sm:$0xff]  ;;  %s3517_s27 = sadd.s32 1, %s5016_s27   ;;  %s5016_s27 = sphi %s5991_s27, %s3517_s27  }
 0x27e   : >> { %3524 = vst [vmem:[%s5989_s26] sm:$0xff] %v3523_v51  ;;  %3526 = vst [vmem:[%s5989_s26 + $0x10] sm:$0xff] %v3525_v52  ;;  %v3529_v36 = vld [vmem:[%s5668_s7 + $0x18] sm:$0xff]  ;;  %v3531_v37 = vld [vmem:[%s5668_s7 + $0x20] sm:$0xff]  ;;  %p3516_p12 = scmp.ge.s32.totalorder %s3517_s27, 1 }
 0x27f   : >> { %3528 = vst [vmem:[%s5989_s26 + $0x20] sm:$0xff] %v3527_v35  ;;  %v3533_v38 = vld [vmem:[%s5668_s7 + $0x28] sm:$0xff]  ;;  %3530 = vst [vmem:[%s5989_s26 + $0x30] sm:$0xff] %v3529_v36  ;;  %v3535_v39 = vld [vmem:[%s5668_s7 + $0x30] sm:$0xff]  ;;  %s3662_s14 = scalar_lea.vmem (%p3516_p12), %s5668_s7, 512 [#allocation3]   ;;  %s3664_s21 = scalar_lea.vmem (%p3516_p12), %s5989_s26, 1024  }
 0x280   : >> { %3532 = vst [vmem:[%s5989_s26 + $0x40] sm:$0xff] %v3531_v37  ;;  %3534 = vst [vmem:[%s5989_s26 + $0x50] sm:$0xff] %v3533_v38  ;;  %v3537_v40 = vld [vmem:[%s5668_s7 + $0x38] sm:$0xff]  ;;  %v3539_v41 = vld [vmem:[%s5668_s7 + $0x40] sm:$0xff]  ;;  %s5018_s28 = smov (%p3516_p12), %s3664_s21   ;;  %s5022_s29 = smov (%p3516_p12), %s3662_s14  }
 0x281   : >> { %3536 = vst [vmem:[%s5989_s26 + $0x60] sm:$0xff] %v3535_v39  ;;  %3538 = vst [vmem:[%s5989_s26 + $0x70] sm:$0xff] %v3537_v40  ;;  %v3541_v42 = vld [vmem:[%s5668_s7 + $0x48] sm:$0xff]  ;;  %v3543_v43 = vld [vmem:[%s5668_s7 + $0x50] sm:$0xff]  ;;  %s5026_s4 = smov (%p3516_p12), 0   ;;  %s5030_s12 = smov (%p3516_p12), 0  }
 0x282   : >> { %3540 = vst [vmem:[%s5989_s26 + $0x80] sm:$0xff] %v3539_v41  ;;  %v3545_v44 = vld [vmem:[%s5668_s7 + $0x58] sm:$0xff]  ;;  %3542 = vst [vmem:[%s5989_s26 + $0x90] sm:$0xff] %v3541_v42  ;;  %v3547_v45 = vld [vmem:[%s5668_s7 + $0x60] sm:$0xff] }
 0x283   : >> { %3544 = vst [vmem:[%s5989_s26 + $0xa0] sm:$0xff] %v3543_v43  ;;  %3546 = vst [vmem:[%s5989_s26 + $0xb0] sm:$0xff] %v3545_v44  ;;  %v3549_v46 = vld [vmem:[%s5668_s7 + $0x68] sm:$0xff]  ;;  %v3551_v47 = vld [vmem:[%s5668_s7 + $0x70] sm:$0xff] }
 0x284   : >> { %3548 = vst [vmem:[%s5989_s26 + $0xc0] sm:$0xff] %v3547_v45  ;;  %3550 = vst [vmem:[%s5989_s26 + $0xd0] sm:$0xff] %v3549_v46  ;;  %v3553_v48 = vld [vmem:[%s5668_s7 + $0x78] sm:$0xff]  ;;  %v3555_v49 = vld [vmem:[%s5668_s7 + $0x80] sm:$0xff] }
 0x285   : >> { %3552 = vst [vmem:[%s5989_s26 + $0xe0] sm:$0xff] %v3551_v47  ;;  %v3557_v50 = vld [vmem:[%s5668_s7 + $0x88] sm:$0xff]  ;;  %3554 = vst [vmem:[%s5989_s26 + $0xf0] sm:$0xff] %v3553_v48  ;;  %v3559_v53 = vld [vmem:[%s5668_s7 + $0x90] sm:$0xff] }
 0x286   : >> { %3556 = vst [vmem:[%s5989_s26 + $0x100] sm:$0xff] %v3555_v49  ;;  %3558 = vst [vmem:[%s5989_s26 + $0x110] sm:$0xff] %v3557_v50  ;;  %v3561_v54 = vld [vmem:[%s5668_s7 + $0x98] sm:$0xff]  ;;  %v3563_v55 = vld [vmem:[%s5668_s7 + $0xa0] sm:$0xff] }
 0x287   : >> { %3560 = vst [vmem:[%s5989_s26 + $0x120] sm:$0xff] %v3559_v53  ;;  %3562 = vst [vmem:[%s5989_s26 + $0x130] sm:$0xff] %v3561_v54  ;;  %v3565_v56 = vld [vmem:[%s5668_s7 + $0xa8] sm:$0xff]  ;;  %v3567_v57 = vld [vmem:[%s5668_s7 + $0xb0] sm:$0xff] }
 0x288   : >> { %3564 = vst [vmem:[%s5989_s26 + $0x140] sm:$0xff] %v3563_v55  ;;  %v3569_v58 = vld [vmem:[%s5668_s7 + $0xb8] sm:$0xff]  ;;  %3566 = vst [vmem:[%s5989_s26 + $0x150] sm:$0xff] %v3565_v56  ;;  %v3571_v59 = vld [vmem:[%s5668_s7 + $0xc0] sm:$0xff] }
 0x289   : >> { %3568 = vst [vmem:[%s5989_s26 + $0x160] sm:$0xff] %v3567_v57  ;;  %3570 = vst [vmem:[%s5989_s26 + $0x170] sm:$0xff] %v3569_v58  ;;  %v3573_v60 = vld [vmem:[%s5668_s7 + $0xc8] sm:$0xff]  ;;  %v3575_v61 = vld [vmem:[%s5668_s7 + $0xd0] sm:$0xff] }
 0x28a   : >> { %3572 = vst [vmem:[%s5989_s26 + $0x180] sm:$0xff] %v3571_v59  ;;  %3574 = vst [vmem:[%s5989_s26 + $0x190] sm:$0xff] %v3573_v60  ;;  %v3577_v62 = vld [vmem:[%s5668_s7 + $0xd8] sm:$0xff]  ;;  %v3579_v63 = vld [vmem:[%s5668_s7 + $0xe0] sm:$0xff] }
 0x28b   : >> { %3576 = vst [vmem:[%s5989_s26 + $0x1a0] sm:$0xff] %v3575_v61  ;;  %v3581_v0 = vld [vmem:[%s5668_s7 + $0xe8] sm:$0xff]  ;;  %3578 = vst [vmem:[%s5989_s26 + $0x1b0] sm:$0xff] %v3577_v62  ;;  %v3583_v1 = vld [vmem:[%s5668_s7 + $0xf0] sm:$0xff] }
 0x28c   : >> { %3580 = vst [vmem:[%s5989_s26 + $0x1c0] sm:$0xff] %v3579_v63  ;;  %3582 = vst [vmem:[%s5989_s26 + $0x1d0] sm:$0xff] %v3581_v0  ;;  %v3585_v2 = vld [vmem:[%s5668_s7 + $0xf8] sm:$0xff]  ;;  %v3587_v3 = vld [vmem:[%s5668_s7 + $0x100] sm:$0xff] }
 0x28d   : >> { %3584 = vst [vmem:[%s5989_s26 + $0x1e0] sm:$0xff] %v3583_v1  ;;  %3586 = vst [vmem:[%s5989_s26 + $0x1f0] sm:$0xff] %v3585_v2  ;;  %v3589_v4 = vld [vmem:[%s5668_s7 + $0x108] sm:$0xff]  ;;  %v3591_v5 = vld [vmem:[%s5668_s7 + $0x110] sm:$0xff] }
 0x28e   : >> { %3588 = vst [vmem:[%s5989_s26 + $0x200] sm:$0xff] %v3587_v3  ;;  %v3593_v6 = vld [vmem:[%s5668_s7 + $0x118] sm:$0xff]  ;;  %3590 = vst [vmem:[%s5989_s26 + $0x210] sm:$0xff] %v3589_v4  ;;  %v3595_v7 = vld [vmem:[%s5668_s7 + $0x120] sm:$0xff] }
 0x28f   : >> { %3592 = vst [vmem:[%s5989_s26 + $0x220] sm:$0xff] %v3591_v5  ;;  %3594 = vst [vmem:[%s5989_s26 + $0x230] sm:$0xff] %v3593_v6  ;;  %v3597_v8 = vld [vmem:[%s5668_s7 + $0x128] sm:$0xff]  ;;  %v3599_v9 = vld [vmem:[%s5668_s7 + $0x130] sm:$0xff] }
 0x290   : >> { %3596 = vst [vmem:[%s5989_s26 + $0x240] sm:$0xff] %v3595_v7  ;;  %3598 = vst [vmem:[%s5989_s26 + $0x250] sm:$0xff] %v3597_v8  ;;  %v3601_v10 = vld [vmem:[%s5668_s7 + $0x138] sm:$0xff]  ;;  %v3603_v11 = vld [vmem:[%s5668_s7 + $0x140] sm:$0xff] }
 0x291   : >> { %3600 = vst [vmem:[%s5989_s26 + $0x260] sm:$0xff] %v3599_v9  ;;  %v3605_v12 = vld [vmem:[%s5668_s7 + $0x148] sm:$0xff]  ;;  %3602 = vst [vmem:[%s5989_s26 + $0x270] sm:$0xff] %v3601_v10  ;;  %v3607_v13 = vld [vmem:[%s5668_s7 + $0x150] sm:$0xff] }
 0x292   : >> { %3604 = vst [vmem:[%s5989_s26 + $0x280] sm:$0xff] %v3603_v11  ;;  %3606 = vst [vmem:[%s5989_s26 + $0x290] sm:$0xff] %v3605_v12  ;;  %v3609_v14 = vld [vmem:[%s5668_s7 + $0x158] sm:$0xff]  ;;  %v3611_v15 = vld [vmem:[%s5668_s7 + $0x160] sm:$0xff] }
 0x293   : >> { %3608 = vst [vmem:[%s5989_s26 + $0x2a0] sm:$0xff] %v3607_v13  ;;  %3610 = vst [vmem:[%s5989_s26 + $0x2b0] sm:$0xff] %v3609_v14  ;;  %v3613_v16 = vld [vmem:[%s5668_s7 + $0x168] sm:$0xff]  ;;  %v3615_v17 = vld [vmem:[%s5668_s7 + $0x170] sm:$0xff] }
 0x294   : >> { %3612 = vst [vmem:[%s5989_s26 + $0x2c0] sm:$0xff] %v3611_v15  ;;  %v3617_v18 = vld [vmem:[%s5668_s7 + $0x178] sm:$0xff]  ;;  %3614 = vst [vmem:[%s5989_s26 + $0x2d0] sm:$0xff] %v3613_v16  ;;  %v3619_v19 = vld [vmem:[%s5668_s7 + $0x180] sm:$0xff] }
 0x295   : >> { %3616 = vst [vmem:[%s5989_s26 + $0x2e0] sm:$0xff] %v3615_v17  ;;  %3618 = vst [vmem:[%s5989_s26 + $0x2f0] sm:$0xff] %v3617_v18  ;;  %v3621_v20 = vld [vmem:[%s5668_s7 + $0x188] sm:$0xff]  ;;  %v3623_v21 = vld [vmem:[%s5668_s7 + $0x190] sm:$0xff] }
 0x296   : >> { %3620 = vst [vmem:[%s5989_s26 + $0x300] sm:$0xff] %v3619_v19  ;;  %3622 = vst [vmem:[%s5989_s26 + $0x310] sm:$0xff] %v3621_v20  ;;  %v3625_v22 = vld [vmem:[%s5668_s7 + $0x198] sm:$0xff]  ;;  %v3627_v23 = vld [vmem:[%s5668_s7 + $0x1a0] sm:$0xff] }
 0x297   : >> { %3624 = vst [vmem:[%s5989_s26 + $0x320] sm:$0xff] %v3623_v21  ;;  %v3629_v24 = vld [vmem:[%s5668_s7 + $0x1a8] sm:$0xff]  ;;  %3626 = vst [vmem:[%s5989_s26 + $0x330] sm:$0xff] %v3625_v22  ;;  %v3631_v25 = vld [vmem:[%s5668_s7 + $0x1b0] sm:$0xff]  ;;  %3519 = sbr.rel (!%p3516_p12) target bundleno = 637 (0x27d), region = 171 }
 0x298   : >> { %3628 = vst [vmem:[%s5989_s26 + $0x340] sm:$0xff] %v3627_v23  ;;  %3630 = vst [vmem:[%s5989_s26 + $0x350] sm:$0xff] %v3629_v24  ;;  %v3633_v26 = vld [vmem:[%s5668_s7 + $0x1b8] sm:$0xff]  ;;  %v3635_v27 = vld [vmem:[%s5668_s7 + $0x1c0] sm:$0xff] }
 0x299   : >> { %3632 = vst [vmem:[%s5989_s26 + $0x360] sm:$0xff] %v3631_v25  ;;  %3634 = vst [vmem:[%s5989_s26 + $0x370] sm:$0xff] %v3633_v26  ;;  %v3637_v28 = vld [vmem:[%s5668_s7 + $0x1c8] sm:$0xff]  ;;  %v3639_v29 = vld [vmem:[%s5668_s7 + $0x1d0] sm:$0xff] }
 0x29a   : >> { %3636 = vst [vmem:[%s5989_s26 + $0x380] sm:$0xff] %v3635_v27  ;;  %v3641_v30 = vld [vmem:[%s5668_s7 + $0x1d8] sm:$0xff]  ;;  %3638 = vst [vmem:[%s5989_s26 + $0x390] sm:$0xff] %v3637_v28  ;;  %v3643_v31 = vld [vmem:[%s5668_s7 + $0x1e0] sm:$0xff] }
 0x29b   : >> { %3640 = vst [vmem:[%s5989_s26 + $0x3a0] sm:$0xff] %v3639_v29  ;;  %3642 = vst [vmem:[%s5989_s26 + $0x3b0] sm:$0xff] %v3641_v30  ;;  %v3645_v32 = vld [vmem:[%s5668_s7 + $0x1e8] sm:$0xff]  ;;  %v3647_v33 = vld [vmem:[%s5668_s7 + $0x1f0] sm:$0xff] }
 0x29c   : >> { %3644 = vst [vmem:[%s5989_s26 + $0x3c0] sm:$0xff] %v3643_v31  ;;  %3646 = vst [vmem:[%s5989_s26 + $0x3d0] sm:$0xff] %v3645_v32  ;;  %v3649_v34 = vld [vmem:[%s5668_s7 + $0x1f8] sm:$0xff] }
 0x29d   : >> { %3648 = vst [vmem:[%s5989_s26 + $0x3e0] sm:$0xff] %v3647_v33  ;;  %3650 = vst [vmem:[%s5989_s26 + $0x3f0] sm:$0xff] %v3649_v34 }
 0x29e LB: >> { %v3674_v51 = vld [vmem:[%s5024_s29] sm:$0xff]  ;;  %s3676_s30 = sadd.s32 1, %s5028_s4  ;;  %s3668_s12 = sadd.s32 1, %s5032_s12   ;;  %s5032_s12 = sphi %s5030_s12, %s3668_s12   ;;  %s5028_s4 = sphi %s5026_s4, %s5027_s4   ;;  %s5024_s29 = sphi %s5022_s29, %s4142_s29   ;;  %s5020_s28 = sphi %s5018_s28, %s4144_s28  }
 0x29f   : >> { %3675 = vst [vmem:[%s5020_s28] sm:$0xff] %v3674_v51  ;;  %p3677_p13 = scmp.ge.s32.totalorder %s3676_s30, 9  ;;  %p3667_p0 = scmp.ge.s32.totalorder %s3668_s12, 9 }
 0x2a1   : >> { %s6160_s30 = smov (%p3677_p13, %s3676_s30), 0  ;;  %3670 = sbr.rel (!%p3667_p0) target bundleno = 670 (0x29e), region = 182 }
 0x2a2   : >> { %s4139_s5 = sshll.u32 %s6160_s30, 3  ;;  %s4140_s6 = sshll.u32 %s6160_s30, 4 }
 0x2a3   : >> { %s4141_s8 = scalar_lea.vmem %s5668_s7, %s4139_s5 [#allocation3]  ;;  %s4143_s9 = scalar_lea.vmem %s5989_s26, %s4140_s6 }
 0x2a4   : >> { %s4142_s29 = scalar_lea.vmem %s4141_s8, 512 [#allocation3]   ;;  %s4144_s28 = scalar_lea.vmem %s4143_s9, 1024  }
 0x2a5   : >> { %s5027_s4 = smov %s6160_s30  }
 0x2a8 PF: > { %s13_s16 = sadd.s32 1, %s5012_s16   ;;  %s6151_s12 = smov %s5000_s13 }
 0x2a9   : > { %p10_p1 = scmp.ge.s32.totalorder %s13_s16, 4   ;;  %s6152_s13 = smov %s5094_s22 }
 0x2aa   : > { %s6153_s14 = smov %s5008_s15  ;;  %s6154_s15 = smov %s6156_s17 }
 0x2ab   :  { %12 = sbr.rel (!%p10_p1) target bundleno = 3 (0x3), region = 193 }

// kernel: deconv_head_forward.6
= control target key start
LH: loop header
LB: loop body
LE: loop exit
PB: predicated region body
PF: predicated region fallthrough
CT: control target
= control target key end

     0   :  { %s8306_s12 = smov 0   ;;  %s8308_s13 = smov 0   ;;  %s9708_s0 = inlined_call_operand.vmem [shape: bf16[2178,512], index: 0, kind: input, shape index: {}]   ;;  %s9709_s1 = inlined_call_operand.vmem [shape: bf16[512,512], index: 1, kind: input, shape index: {}]   ;;  %s9710_s2 = inlined_call_operand.vmem [shape: f32[1,512], index: 2, kind: input, shape index: {}]   ;;  %s9711_s3 = inlined_call_operand.vmem [shape: bf16[2178,512], index: 3, kind: output, shape index: {}]  }
   0x1   :  { %s8310_s14 = smov 0   ;;  %s8312_s15 = smov 0  }
   0x2   :  { %s8314_s16 = smov 0  }
   0x3 LB: > { %s6160_s17 = sadd.s32 4294967295, %s8252_s16   ;;  %s32_s18 = sadd.s32 1, %s8248_s15  ;;  %s8252_s16 = sphi %s8314_s16, %s13_s16   ;;  %s8248_s15 = sphi %s8312_s15, %s9721_s15   ;;  %s8244_s14 = sphi %s8310_s14, %s9720_s14   ;;  %s8240_s13 = sphi %s8308_s13, %s9719_s13   ;;  %s8236_s12 = sphi %s8306_s12, %s9718_s12  }
   0x4   : > { %p34_p0 = scmp.ge.s32.totalorder %s32_s18, 3  ;;  %s123_s19 = sadd.s32 1, %s8240_s13 }
   0x5   : > { %p133_p1 = scmp.ne.s32.totalorder %s8240_s13, %s8236_s12  ;;  %p134_p2 = scmp.eq.s32.totalorder %s6160_s17, 2 }
   0x6   : > { %s9723_s18 = smov (%p34_p0, %s32_s18), 0  ;;  %p6166_p4 = scmp.ge.s32.totalorder %s8252_s16, 1 }
   0x7   : > { %p8338_p3 = por %p134_p2, %p133_p1  ;;  %s118_s21 = ssub.s32 %s8248_s15, %s9723_s18 }
   0x8   : > { %p206_p5 = scmp.lt.s32.totalorder %s8252_s16, 4  ;;  %p121_p6 = scmp.eq.s32.totalorder %s118_s21, 0 }
   0xa   : > { %p207_p7 = pnand %p6166_p4, %p206_p5 }
   0xb   : > { %s8347_s22 = scalar_select %p121_p6, %s8240_s13, %s123_s19  }
   0xc   : > { %210 = sbr.rel (%p207_p7) target bundleno = 1099 (0x44b), region = 32  ;;  %v7714_v0 = vld [vmem:[%s9709_s1 + $0x4] ss:$16 sps:$4 sm:$0xff] (!%p207_p7)   ;;  %v7716_v1 = vld [vmem:[%s9709_s1 + $0xc] ss:$16 sps:$4 sm:$0xff] (!%p207_p7)   ;;  %s250_s21 = sand.u32 (!%p207_p7), 1, %s8236_s12  }
   0xd   : > { %2193 = vmatprep.subr.bf16.mxu0 (!%p207_p7), %v7714_v0  ;;  %v7718_v2 = vld [vmem:[%s9709_s1] ss:$16 sps:$4 sm:$0xff] (!%p207_p7)   ;;  %v7719_v3 = vld [vmem:[%s9709_s1 + $0x8] ss:$16 sps:$4 sm:$0xff] (!%p207_p7)   ;;  %3179 = vmatprep.subr.bf16.mxu1 (!%p207_p7), %v7716_v1  ;;  %v7720_v4 = vld [vmem:[%s9709_s1 + $0x24] ss:$16 sps:$4 sm:$0xff] (!%p207_p7)  }
   0xe   : > { %2194 = vmatpush1.bf16.msra.mxu0 (!%p207_p7), %v7718_v2  ;;  %3180 = vmatpush1.bf16.msra.mxu1 (!%p207_p7), %v7719_v3  ;;  %v7722_v5 = vld [vmem:[%s9709_s1 + $0x2c] ss:$16 sps:$4 sm:$0xff] (!%p207_p7)   ;;  %v7724_v6 = vld [vmem:[%s9709_s1 + $0x20] ss:$16 sps:$4 sm:$0xff] (!%p207_p7)   ;;  %v7725_v7 = vld [vmem:[%s9709_s1 + $0x28] ss:$16 sps:$4 sm:$0xff] (!%p207_p7)  }
   0xf   : > { %2195 = vmatprep.subr.bf16.mxu0 (!%p207_p7), %v7720_v4  ;;  %3181 = vmatprep.subr.bf16.mxu1 (!%p207_p7), %v7722_v5  ;;  %v7726_v8 = vld [vmem:[%s9709_s1 + $0x44] ss:$16 sps:$4 sm:$0xff] (!%p207_p7)   ;;  %v7728_v9 = vld [vmem:[%s9709_s1 + $0x4c] ss:$16 sps:$4 sm:$0xff] (!%p207_p7)   ;;  %v7730_v10 = vld [vmem:[%s9709_s1 + $0x40] ss:$16 sps:$4 sm:$0xff] (!%p207_p7)  }
  0x10   : > { %v7731_v11 = vld [vmem:[%s9709_s1 + $0x48] ss:$16 sps:$4 sm:$0xff] (!%p207_p7)   ;;  %v7732_v12 = vld [vmem:[%s9709_s1 + $0x64] ss:$16 sps:$4 sm:$0xff] (!%p207_p7)   ;;  %v7734_v13 = vld [vmem:[%s9709_s1 + $0x6c] ss:$16 sps:$4 sm:$0xff] (!%p207_p7)  }
  0x11   : > { %v7736_v14 = vld [vmem:[%s9709_s1 + $0x60] ss:$16 sps:$4 sm:$0xff] (!%p207_p7)   ;;  %v7737_v15 = vld [vmem:[%s9709_s1 + $0x68] ss:$16 sps:$4 sm:$0xff] (!%p207_p7)   ;;  %v7738_v16 = vld [vmem:[%s9709_s1 + $0x84] ss:$16 sps:$4 sm:$0xff] (!%p207_p7)  }
  0x12   : > { %2196 = vmatpush1.bf16.msra.mxu0 (!%p207_p7), %v7724_v6  ;;  %3182 = vmatpush1.bf16.msra.mxu1 (!%p207_p7), %v7725_v7  ;;  %v7740_v17 = vld [vmem:[%s9709_s1 + $0x8c] ss:$16 sps:$4 sm:$0xff] (!%p207_p7)   ;;  %v7742_v18 = vld [vmem:[%s9709_s1 + $0x80] ss:$16 sps:$4 sm:$0xff] (!%p207_p7)   ;;  %v7743_v19 = vld [vmem:[%s9709_s1 + $0x88] ss:$16 sps:$4 sm:$0xff] (!%p207_p7)  }
  0x13   : > { %2197 = vmatprep.subr.bf16.mxu0 %v7726_v8  ;;  %3183 = vmatprep.subr.bf16.mxu1 %v7728_v9  ;;  %v7744_v20 = vld [vmem:[%s9709_s1 + $0xa4] ss:$16 sps:$4 sm:$0xff]   ;;  %v7746_v21 = vld [vmem:[%s9709_s1 + $0xac] ss:$16 sps:$4 sm:$0xff]   ;;  %v7748_v22 = vld [vmem:[%s9709_s1 + $0xa0] ss:$16 sps:$4 sm:$0xff]  }
  0x14   : > { %v7749_v23 = vld [vmem:[%s9709_s1 + $0xa8] ss:$16 sps:$4 sm:$0xff]   ;;  %v7750_v24 = vld [vmem:[%s9709_s1 + $0xc4] ss:$16 sps:$4 sm:$0xff]   ;;  %v7752_v25 = vld [vmem:[%s9709_s1 + $0xcc] ss:$16 sps:$4 sm:$0xff]  }
  0x15   : > { %v7754_v26 = vld [vmem:[%s9709_s1 + $0xc0] ss:$16 sps:$4 sm:$0xff]   ;;  %v7755_v27 = vld [vmem:[%s9709_s1 + $0xc8] ss:$16 sps:$4 sm:$0xff]   ;;  %v7756_v28 = vld [vmem:[%s9709_s1 + $0xe4] ss:$16 sps:$4 sm:$0xff]  }
  0x16   : > { %2198 = vmatpush1.bf16.msra.mxu0 %v7730_v10  ;;  %3184 = vmatpush1.bf16.msra.mxu1 %v7731_v11  ;;  %v7758_v29 = vld [vmem:[%s9709_s1 + $0xec] ss:$16 sps:$4 sm:$0xff]   ;;  %s8440_s26 = smul.u32 92, %s8244_s14  ;;  %v7760_v30 = vld [vmem:[%s9709_s1 + $0xe0] ss:$16 sps:$4 sm:$0xff]  }
  0x17   : > { %2199 = vmatprep.subr.bf16.mxu0 %v7732_v12  ;;  %3185 = vmatprep.subr.bf16.mxu1 %v7734_v13  ;;  %v7761_v31 = vld [vmem:[%s9709_s1 + $0xe8] ss:$16 sps:$4 sm:$0xff]   ;;  %v7762_v32 = vld [vmem:[%s9709_s1 + $0x104] ss:$16 sps:$4 sm:$0xff]   ;;  %v7764_v33 = vld [vmem:[%s9709_s1 + $0x10c] ss:$16 sps:$4 sm:$0xff]  }
  0x18   : > { %p260_p8 = scmp.lt.s32.totalorder %s8440_s26, 272  ;;  %v7766_v34 = vld [vmem:[%s9709_s1 + $0x100] ss:$16 sps:$4 sm:$0xff]   ;;  %v7767_v35 = vld [vmem:[%s9709_s1 + $0x108] ss:$16 sps:$4 sm:$0xff]   ;;  %s7609_s23 = smul.u32 1472, %s250_s21 }
  0x19   : > { %v7768_v36 = vld [vmem:[%s9709_s1 + $0x124] ss:$16 sps:$4 sm:$0xff]   ;;  %v7770_v37 = vld [vmem:[%s9709_s1 + $0x12c] ss:$16 sps:$4 sm:$0xff]   ;;  %v7772_v38 = vld [vmem:[%s9709_s1 + $0x120] ss:$16 sps:$4 sm:$0xff]  }
  0x1a   : > { %2200 = vmatpush1.bf16.msra.mxu0 %v7736_v14  ;;  %3186 = vmatpush1.bf16.msra.mxu1 %v7737_v15  ;;  %s261_s24 = scalar_select %p260_p8, %s8440_s26, 272  ;;  %v7773_v39 = vld [vmem:[%s9709_s1 + $0x128] ss:$16 sps:$4 sm:$0xff]   ;;  %v7774_v40 = vld [vmem:[%s9709_s1 + $0x144] ss:$16 sps:$4 sm:$0xff]  }
  0x1b   : > { %2201 = vmatprep.subr.bf16.mxu0 %v7738_v16  ;;  %3187 = vmatprep.subr.bf16.mxu1 %v7740_v17  ;;  %v7776_v41 = vld [vmem:[%s9709_s1 + $0x14c] ss:$16 sps:$4 sm:$0xff]   ;;  %v7778_v42 = vld [vmem:[%s9709_s1 + $0x140] ss:$16 sps:$4 sm:$0xff]   ;;  %v7779_v43 = vld [vmem:[%s9709_s1 + $0x148] ss:$16 sps:$4 sm:$0xff]  }
  0x1c   : > { %s6682_s7 = sshll.u32 %s261_s24, 4  ;;  %v7780_v44 = vld [vmem:[%s9709_s1 + $0x164] ss:$16 sps:$4 sm:$0xff]   ;;  %v7782_v45 = vld [vmem:[%s9709_s1 + $0x16c] ss:$16 sps:$4 sm:$0xff]   ;;  %s8912_s12 = scalar_lea.vmem [#allocation2], %s7609_s23  }
  0x1d   : > { %s8492_s25 = scalar_lea.vmem %s9708_s0, %s6682_s7  ;;  %v7784_v46 = vld [vmem:[%s9709_s1 + $0x160] ss:$16 sps:$4 sm:$0xff]   ;;  %v7785_v47 = vld [vmem:[%s9709_s1 + $0x168] ss:$16 sps:$4 sm:$0xff]   ;;  %v7786_v49 = vld [vmem:[%s9709_s1 + $0x184] ss:$16 sps:$4 sm:$0xff]  }
  0x1e   : > { %2202 = vmatpush1.bf16.msra.mxu0 %v7742_v18  ;;  %3188 = vmatpush1.bf16.msra.mxu1 %v7743_v19  ;;  %v7812_v48 = vld [vmem:[%s8492_s25 + $0x4] ss:$16 sps:$4 sm:$0xff]   ;;  %v7788_v50 = vld [vmem:[%s9709_s1 + $0x18c] ss:$16 sps:$4 sm:$0xff]   ;;  %v7790_v51 = vld [vmem:[%s9709_s1 + $0x180] ss:$16 sps:$4 sm:$0xff]  }
  0x1f   : > { %2203 = vmatprep.subr.bf16.mxu0 %v7744_v20  ;;  %3189 = vmatprep.subr.bf16.mxu1 %v7746_v21  ;;  %v7791_v52 = vld [vmem:[%s9709_s1 + $0x188] ss:$16 sps:$4 sm:$0xff]   ;;  %v7792_v53 = vld [vmem:[%s9709_s1 + $0x1a4] ss:$16 sps:$4 sm:$0xff]   ;;  %v7794_v54 = vld [vmem:[%s9709_s1 + $0x1ac] ss:$16 sps:$4 sm:$0xff]  }
  0x20   : > { %2225 = vmatprep.mubr.bf16.mxu0 %v7812_v48  ;;  %3211 = vmatprep.mubr.bf16.mxu1 %v7812_v48  ;;  %v7796_v55 = vld [vmem:[%s9709_s1 + $0x1a0] ss:$16 sps:$4 sm:$0xff]   ;;  %v7797_v56 = vld [vmem:[%s9709_s1 + $0x1a8] ss:$16 sps:$4 sm:$0xff]   ;;  %v7798_v57 = vld [vmem:[%s9709_s1 + $0x1c4] ss:$16 sps:$4 sm:$0xff]  }
  0x21   : > { %v7800_v58 = vld [vmem:[%s9709_s1 + $0x1cc] ss:$16 sps:$4 sm:$0xff]   ;;  %v7802_v59 = vld [vmem:[%s9709_s1 + $0x1c0] ss:$16 sps:$4 sm:$0xff]   ;;  %v7803_v60 = vld [vmem:[%s9709_s1 + $0x1c8] ss:$16 sps:$4 sm:$0xff]  }
  0x22   : > { %2204 = vmatpush1.bf16.msra.mxu0 %v7748_v22  ;;  %3190 = vmatpush1.bf16.msra.mxu1 %v7749_v23  ;;  %v7804_v61 = vld [vmem:[%s9709_s1 + $0x1e4] ss:$16 sps:$4 sm:$0xff]   ;;  %v7806_v62 = vld [vmem:[%s9709_s1 + $0x1ec] ss:$16 sps:$4 sm:$0xff]   ;;  %v7808_v63 = vld [vmem:[%s9709_s1 + $0x1e0] ss:$16 sps:$4 sm:$0xff]  }
  0x23   : > { %2205 = vmatprep.subr.bf16.mxu0 %v7750_v24  ;;  %3191 = vmatprep.subr.bf16.mxu1 %v7752_v25  ;;  %v7809_v0 = vld [vmem:[%s9709_s1 + $0x1e8] ss:$16 sps:$4 sm:$0xff]   ;;  %v7815_v1 = vld [vmem:[%s9709_s1 + $0x204] ss:$16 sps:$4 sm:$0xff]   ;;  %v7818_v2 = vld [vmem:[%s9709_s1 + $0x20c] ss:$16 sps:$4 sm:$0xff]  }
  0x24   : > { %v7810_v3 = vld [vmem:[%s8492_s25] ss:$16 sps:$4 sm:$0xff]   ;;  %v7816_v5 = vld [vmem:[%s9709_s1 + $0x208] ss:$16 sps:$4 sm:$0xff]   ;;  %v7819_v6 = vld [vmem:[%s8492_s25 + $0x24] ss:$16 sps:$4 sm:$0xff]  }
  0x25   : > { %v7813_v4 = vld [vmem:[%s9709_s1 + $0x200] ss:$16 sps:$4 sm:$0xff]   ;;  %v7829_v7 = vld [vmem:[%s9709_s1 + $0x224] ss:$16 sps:$4 sm:$0xff]   ;;  %v7832_v8 = vld [vmem:[%s9709_s1 + $0x22c] ss:$16 sps:$4 sm:$0xff]  }
  0x26   : > { %2206 = vmatpush1.bf16.msra.mxu0 %v7754_v26  ;;  %3192 = vmatpush1.bf16.msra.mxu1 %v7755_v27  ;;  %v7827_v9 = vld [vmem:[%s9709_s1 + $0x220] ss:$16 sps:$4 sm:$0xff]   ;;  %v7830_v10 = vld [vmem:[%s9709_s1 + $0x228] ss:$16 sps:$4 sm:$0xff]   ;;  %v7842_v11 = vld [vmem:[%s9709_s1 + $0x244] ss:$16 sps:$4 sm:$0xff]  }
  0x27   : > { %2207 = vmatprep.subr.bf16.mxu0 %v7756_v28  ;;  %3193 = vmatprep.subr.bf16.mxu1 %v7758_v29  ;;  %v7845_v12 = vld [vmem:[%s9709_s1 + $0x24c] ss:$16 sps:$4 sm:$0xff]   ;;  %v7821_v13 = vld [vmem:[%s8492_s25 + $0x20] ss:$16 sps:$4 sm:$0xff]   ;;  %v7822_v14 = vld [vmem:[%s8492_s25 + $0x44] ss:$16 sps:$4 sm:$0xff]  }
  0x28   : > { %v7840_v15 = vld [vmem:[%s9709_s1 + $0x240] ss:$16 sps:$4 sm:$0xff]   ;;  %v7843_v16 = vld [vmem:[%s9709_s1 + $0x248] ss:$16 sps:$4 sm:$0xff]   ;;  %v7857_v17 = vld [vmem:[%s9709_s1 + $0x264] ss:$16 sps:$4 sm:$0xff]  }
  0x29   : > { %v7860_v18 = vld [vmem:[%s9709_s1 + $0x26c] ss:$16 sps:$4 sm:$0xff]   ;;  %v7855_v19 = vld [vmem:[%s9709_s1 + $0x260] ss:$16 sps:$4 sm:$0xff]   ;;  %v7858_v20 = vld [vmem:[%s9709_s1 + $0x268] ss:$16 sps:$4 sm:$0xff]  }
  0x2a   : > { %2208 = vmatpush1.bf16.msra.mxu0 %v7760_v30  ;;  %3194 = vmatpush1.bf16.msra.mxu1 %v7761_v31  ;;  %v7872_v21 = vld [vmem:[%s9709_s1 + $0x284] ss:$16 sps:$4 sm:$0xff]   ;;  %v7875_v22 = vld [vmem:[%s9709_s1 + $0x28c] ss:$16 sps:$4 sm:$0xff]   ;;  %v7824_v23 = vld [vmem:[%s8492_s25 + $0x40] ss:$16 sps:$4 sm:$0xff]  }
  0x2b   : > { %2209 = vmatprep.subr.bf16.mxu0 %v7762_v32  ;;  %3195 = vmatprep.subr.bf16.mxu1 %v7764_v33  ;;  %v7825_v24 = vld [vmem:[%s8492_s25 + $0x64] ss:$16 sps:$4 sm:$0xff]   ;;  %v7870_v25 = vld [vmem:[%s9709_s1 + $0x280] ss:$16 sps:$4 sm:$0xff]   ;;  %v7873_v26 = vld [vmem:[%s9709_s1 + $0x288] ss:$16 sps:$4 sm:$0xff]  }
  0x2c   : > { %v7887_v27 = vld [vmem:[%s9709_s1 + $0x2a4] ss:$16 sps:$4 sm:$0xff]   ;;  %v7890_v28 = vld [vmem:[%s9709_s1 + $0x2ac] ss:$16 sps:$4 sm:$0xff]   ;;  %v7885_v29 = vld [vmem:[%s9709_s1 + $0x2a0] ss:$16 sps:$4 sm:$0xff]  }
  0x2d   : > { %v7833_v30 = vld [vmem:[%s8492_s25 + $0x60] ss:$16 sps:$4 sm:$0xff]   ;;  %v7888_v31 = vld [vmem:[%s9709_s1 + $0x2a8] ss:$16 sps:$4 sm:$0xff]   ;;  %v7834_v32 = vld [vmem:[%s8492_s25 + $0x84] ss:$16 sps:$4 sm:$0xff]  }
  0x2e   : > { %2210 = vmatpush1.bf16.msra.mxu0 %v7766_v34  ;;  %3196 = vmatpush1.bf16.msra.mxu1 %v7767_v35  ;;  %v7902_v33 = vld [vmem:[%s9709_s1 + $0x2c4] ss:$16 sps:$4 sm:$0xff]   ;;  %v7905_v34 = vld [vmem:[%s9709_s1 + $0x2cc] ss:$16 sps:$4 sm:$0xff]   ;;  %v7900_v35 = vld [vmem:[%s9709_s1 + $0x2c0] ss:$16 sps:$4 sm:$0xff]  }
  0x2f   : > { %2211 = vmatprep.subr.bf16.mxu0 %v7768_v36  ;;  %3197 = vmatprep.subr.bf16.mxu1 %v7770_v37  ;;  %v7903_v36 = vld [vmem:[%s9709_s1 + $0x2c8] ss:$16 sps:$4 sm:$0xff]   ;;  %v7836_v37 = vld [vmem:[%s8492_s25 + $0x80] ss:$16 sps:$4 sm:$0xff]   ;;  %v7852_v48 = vld [vmem:[%s8492_s25 + $0x104] ss:$16 sps:$4 sm:$0xff]  }
  0x30   : > { %s6872_s24 = smul.u32 (%p8338_p3), 1472, %s8244_s14 }
  0x32   : > { %2212 = vmatpush1.bf16.msra.mxu0 %v7772_v38  ;;  %3198 = vmatpush1.bf16.msra.mxu1 %v7773_v39  ;;  %v7837_v38 = vld [vmem:[%s8492_s25 + $0xa4] ss:$16 sps:$4 sm:$0xff]   ;;  %v7915_v39 = vld [vmem:[%s9709_s1 + $0x2e0] ss:$16 sps:$4 sm:$0xff]   ;;  %s9500_s29 = scalar_lea.vmem (%p8338_p3), %s9711_s3, %s6872_s24  }
  0x33   : > { %2213 = vmatprep.subr.bf16.mxu0 %v7774_v40  ;;  %3199 = vmatprep.subr.bf16.mxu1 %v7776_v41  ;;  %v7917_v40 = vld [vmem:[%s9709_s1 + $0x2e4] ss:$16 sps:$4 sm:$0xff]   ;;  %v7918_v41 = vld [vmem:[%s9709_s1 + $0x2e8] ss:$16 sps:$4 sm:$0xff]  }
  0x36   : > { %2214 = vmatpush1.bf16.msra.mxu0 %v7778_v42  ;;  %3200 = vmatpush1.bf16.msra.mxu1 %v7779_v43  ;;  %v7920_v42 = vld [vmem:[%s9709_s1 + $0x2ec] ss:$16 sps:$4 sm:$0xff]   ;;  %v7839_v43 = vld [vmem:[%s8492_s25 + $0xa0] ss:$16 sps:$4 sm:$0xff]  }
  0x37   : > { %2215 = vmatprep.subr.bf16.mxu0 %v7780_v44  ;;  %3201 = vmatprep.subr.bf16.mxu1 %v7782_v45  ;;  %v7846_v44 = vld [vmem:[%s8492_s25 + $0xc4] ss:$16 sps:$4 sm:$0xff]   ;;  %v7848_v45 = vld [vmem:[%s8492_s25 + $0xc0] ss:$16 sps:$4 sm:$0xff]  }
  0x3a   : > { %2216 = vmatpush1.bf16.msra.mxu0 %v7784_v46  ;;  %3202 = vmatpush1.bf16.msra.mxu1 %v7785_v47  ;;  %v7849_v46 = vld [vmem:[%s8492_s25 + $0xe4] ss:$16 sps:$4 sm:$0xff]   ;;  %v7851_v47 = vld [vmem:[%s8492_s25 + $0xe0] ss:$16 sps:$4 sm:$0xff]  }
  0x3b   : > { %2217 = vmatprep.subr.bf16.mxu0 %v7786_v49  ;;  %3203 = vmatprep.subr.bf16.mxu1 %v7788_v50  ;;  %v7930_v49 = vld [vmem:[%s9709_s1 + $0x300] ss:$16 sps:$4 sm:$0xff]   ;;  %v7932_v50 = vld [vmem:[%s9709_s1 + $0x304] ss:$16 sps:$4 sm:$0xff]  }
  0x3e   : > { %2218 = vmatpush1.bf16.msra.mxu0 %v7790_v51  ;;  %3204 = vmatpush1.bf16.msra.mxu1 %v7791_v52  ;;  %v7933_v51 = vld [vmem:[%s9709_s1 + $0x308] ss:$16 sps:$4 sm:$0xff]   ;;  %v7935_v52 = vld [vmem:[%s9709_s1 + $0x30c] ss:$16 sps:$4 sm:$0xff]  }
  0x3f   : > { %2219 = vmatprep.subr.bf16.mxu0 %v7792_v53  ;;  %3205 = vmatprep.subr.bf16.mxu1 %v7794_v54  ;;  %v7854_v53 = vld [vmem:[%s8492_s25 + $0x100] ss:$16 sps:$4 sm:$0xff]   ;;  %v7861_v54 = vld [vmem:[%s8492_s25 + $0x124] ss:$16 sps:$4 sm:$0xff]  }
  0x42   : > { %2220 = vmatpush1.bf16.msra.mxu0 %v7796_v55  ;;  %3206 = vmatpush1.bf16.msra.mxu1 %v7797_v56  ;;  %v7863_v55 = vld [vmem:[%s8492_s25 + $0x120] ss:$16 sps:$4 sm:$0xff]   ;;  %v7864_v56 = vld [vmem:[%s8492_s25 + $0x144] ss:$16 sps:$4 sm:$0xff]  }
  0x43   : > { %2221 = vmatprep.subr.bf16.mxu0 %v7798_v57  ;;  %3207 = vmatprep.subr.bf16.mxu1 %v7800_v58  ;;  %v7944_v57 = vld [vmem:[%s9709_s1 + $0x320] ss:$16 sps:$4 sm:$0xff]   ;;  %v7946_v58 = vld [vmem:[%s9709_s1 + $0x324] ss:$16 sps:$4 sm:$0xff]  }
  0x46   : > { %2222 = vmatpush1.bf16.msra.mxu0 %v7802_v59  ;;  %3208 = vmatpush1.bf16.msra.mxu1 %v7803_v60  ;;  %v7947_v59 = vld [vmem:[%s9709_s1 + $0x328] ss:$16 sps:$4 sm:$0xff]   ;;  %v7866_v60 = vld [vmem:[%s8492_s25 + $0x140] ss:$16 sps:$4 sm:$0xff]  }
  0x47   : > { %2223 = vmatprep.subr.bf16.mxu0 %v7804_v61  ;;  %3209 = vmatprep.subr.bf16.mxu1 %v7806_v62  ;;  %v7949_v61 = vld [vmem:[%s9709_s1 + $0x32c] ss:$16 sps:$4 sm:$0xff]   ;;  %v7867_v62 = vld [vmem:[%s8492_s25 + $0x164] ss:$16 sps:$4 sm:$0xff]  }
  0x4a   : > { %2224 = vmatpush1.bf16.msra.mxu0 %v7808_v63  ;;  %3210 = vmatpush1.bf16.msra.mxu1 %v7809_v0  ;;  %v7869_v63 = vld [vmem:[%s8492_s25 + $0x160] ss:$16 sps:$4 sm:$0xff]   ;;  %v7876_v0 = vld [vmem:[%s8492_s25 + $0x184] ss:$16 sps:$4 sm:$0xff]  }
  0x4b   : > { %2686 = vmatprep.subr.bf16.mxu0 %v7815_v1  ;;  %3672 = vmatprep.subr.bf16.mxu1 %v7818_v2  ;;  %v7878_v1 = vld [vmem:[%s8492_s25 + $0x180] ss:$16 sps:$4 sm:$0xff]   ;;  %v7879_v2 = vld [vmem:[%s8492_s25 + $0x1a4] ss:$16 sps:$4 sm:$0xff]  }
  0x4d   : > { %2226 = vmatmul.mubr.bf16.vlgmr.msra.gmra.mrb[0].mxu0 %v7810_v3  ;;  %3212 = vmatmul.mubr.bf16.vlgmr.msra.gmra.mrb[0].mxu1 %v7810_v3  ;;  %v7957_v3 = vld [vmem:[%s9709_s1 + $0x340] ss:$16 sps:$4 sm:$0xff]  }
  0x4e   : > { %2687 = vmatpush1.bf16.msra.mxu0 %v7813_v4  ;;  %3673 = vmatpush1.bf16.msra.mxu1 %v7816_v5  ;;  %v7959_v4 = vld [vmem:[%s9709_s1 + $0x344] ss:$16 sps:$4 sm:$0xff]   ;;  %v7960_v5 = vld [vmem:[%s9709_s1 + $0x348] ss:$16 sps:$4 sm:$0xff]  }
  0x4f   : > { %2235 = vmatprep.mubr.bf16.mxu0 %v7819_v6  ;;  %3221 = vmatprep.mubr.bf16.mxu1 %v7819_v6  ;;  %v7962_v6 = vld [vmem:[%s9709_s1 + $0x34c] ss:$16 sps:$4 sm:$0xff]  }
  0x50   : > { %2688 = vmatprep.subr.bf16.mxu0 %v7829_v7  ;;  %3674 = vmatprep.subr.bf16.mxu1 %v7832_v8  ;;  %v7881_v7 = vld [vmem:[%s8492_s25 + $0x1a0] ss:$16 sps:$4 sm:$0xff]   ;;  %v7882_v8 = vld [vmem:[%s8492_s25 + $0x1c4] ss:$16 sps:$4 sm:$0xff]  }
  0x52   : > { %2689 = vmatpush1.bf16.msra.mxu0 %v7827_v9  ;;  %3675 = vmatpush1.bf16.msra.mxu1 %v7830_v10  ;;  %v7884_v9 = vld [vmem:[%s8492_s25 + $0x1c0] ss:$16 sps:$4 sm:$0xff]   ;;  %v7891_v10 = vld [vmem:[%s8492_s25 + $0x1e4] ss:$16 sps:$4 sm:$0xff]  }
  0x53   : > { %2690 = vmatprep.subr.bf16.mxu0 %v7842_v11  ;;  %3676 = vmatprep.subr.bf16.mxu1 %v7845_v12  ;;  %v7893_v11 = vld [vmem:[%s8492_s25 + $0x1e0] ss:$16 sps:$4 sm:$0xff]   ;;  %v7894_v12 = vld [vmem:[%s8492_s25 + $0x204] ss:$16 sps:$4 sm:$0xff]  }
  0x55   : > { %2236 = vmatmul.mubr.bf16.gmra.mrb[4].mxu0 %v7821_v13  ;;  %3222 = vmatmul.mubr.bf16.gmra.mrb[4].mxu1 %v7821_v13  ;;  %v7972_v13 = vld [vmem:[%s9709_s1 + $0x360] ss:$16 sps:$4 sm:$0xff]  }
  0x56   : > { %2245 = vmatprep.mubr.bf16.mxu0 %v7822_v14  ;;  %3231 = vmatprep.mubr.bf16.mxu1 %v7822_v14  ;;  %v7974_v14 = vld [vmem:[%s9709_s1 + $0x364] ss:$16 sps:$4 sm:$0xff]  }
  0x57   : > { %2691 = vmatpush1.bf16.msra.mxu0 %v7840_v15  ;;  %3677 = vmatpush1.bf16.msra.mxu1 %v7843_v16  ;;  %v7975_v15 = vld [vmem:[%s9709_s1 + $0x368] ss:$16 sps:$4 sm:$0xff]   ;;  %v7977_v16 = vld [vmem:[%s9709_s1 + $0x36c] ss:$16 sps:$4 sm:$0xff]  }
  0x58   : > { %2692 = vmatprep.subr.bf16.mxu0 %v7857_v17  ;;  %3678 = vmatprep.subr.bf16.mxu1 %v7860_v18  ;;  %v7896_v17 = vld [vmem:[%s8492_s25 + $0x200] ss:$16 sps:$4 sm:$0xff]   ;;  %v7897_v18 = vld [vmem:[%s8492_s25 + $0x224] ss:$16 sps:$4 sm:$0xff]  }
  0x5b   : > { %2693 = vmatpush1.bf16.msra.mxu0 %v7855_v19  ;;  %3679 = vmatpush1.bf16.msra.mxu1 %v7858_v20  ;;  %v7899_v19 = vld [vmem:[%s8492_s25 + $0x220] ss:$16 sps:$4 sm:$0xff]   ;;  %v7906_v20 = vld [vmem:[%s8492_s25 + $0x244] ss:$16 sps:$4 sm:$0xff]  }
  0x5c   : > { %2694 = vmatprep.subr.bf16.mxu0 %v7872_v21  ;;  %3680 = vmatprep.subr.bf16.mxu1 %v7875_v22  ;;  %v7908_v21 = vld [vmem:[%s8492_s25 + $0x240] ss:$16 sps:$4 sm:$0xff]   ;;  %v7909_v22 = vld [vmem:[%s8492_s25 + $0x264] ss:$16 sps:$4 sm:$0xff]  }
  0x5d   : > { %2246 = vmatmul.mubr.bf16.gmra.mrb[8].mxu0 %v7824_v23  ;;  %3232 = vmatmul.mubr.bf16.gmra.mrb[8].mxu1 %v7824_v23  ;;  %v7987_v23 = vld [vmem:[%s9709_s1 + $0x380] ss:$16 sps:$4 sm:$0xff]  }
  0x5e   : > { %2255 = vmatprep.mubr.bf16.mxu0 %v7825_v24  ;;  %3241 = vmatprep.mubr.bf16.mxu1 %v7825_v24  ;;  %v7989_v24 = vld [vmem:[%s9709_s1 + $0x384] ss:$16 sps:$4 sm:$0xff]  }
  0x5f   : > { %2695 = vmatpush1.bf16.msra.mxu0 %v7870_v25  ;;  %3681 = vmatpush1.bf16.msra.mxu1 %v7873_v26  ;;  %v7990_v25 = vld [vmem:[%s9709_s1 + $0x388] ss:$16 sps:$4 sm:$0xff]   ;;  %v7992_v26 = vld [vmem:[%s9709_s1 + $0x38c] ss:$16 sps:$4 sm:$0xff]  }
  0x60   : > { %2696 = vmatprep.subr.bf16.mxu0 %v7887_v27  ;;  %3682 = vmatprep.subr.bf16.mxu1 %v7890_v28  ;;  %v7911_v27 = vld [vmem:[%s8492_s25 + $0x260] ss:$16 sps:$4 sm:$0xff]   ;;  %v7912_v28 = vld [vmem:[%s8492_s25 + $0x284] ss:$16 sps:$4 sm:$0xff]  }
  0x63   : > { %2697 = vmatpush1.bf16.msra.mxu0 %v7885_v29  ;;  %3683 = vmatpush1.bf16.msra.mxu1 %v7888_v31  ;;  %v7914_v29 = vld [vmem:[%s8492_s25 + $0x280] ss:$16 sps:$4 sm:$0xff]  }
  0x64   : > { %2698 = vmatprep.subr.bf16.mxu0 %v7902_v33  ;;  %3684 = vmatprep.subr.bf16.mxu1 %v7905_v34  ;;  %v7923_v31 = vld [vmem:[%s8492_s25 + $0x2a0] ss:$16 sps:$4 sm:$0xff]   ;;  %v8004_v34 = vld [vmem:[%s9709_s1 + $0x3a4] ss:$16 sps:$4 sm:$0xff]  }
  0x65   : > { %2256 = vmatmul.mubr.bf16.gmra.mrb[12].mxu0 %v7833_v30  ;;  %3242 = vmatmul.mubr.bf16.gmra.mrb[12].mxu1 %v7833_v30  ;;  %v7921_v30 = vld [vmem:[%s8492_s25 + $0x2a4] ss:$16 sps:$4 sm:$0xff]   ;;  %v8002_v33 = vld [vmem:[%s9709_s1 + $0x3a0] ss:$16 sps:$4 sm:$0xff]  }
  0x66   : > { %2265 = vmatprep.mubr.bf16.mxu0 %v7834_v32  ;;  %3251 = vmatprep.mubr.bf16.mxu1 %v7834_v32  ;;  %v7924_v32 = vld [vmem:[%s8492_s25 + $0x2c4] ss:$16 sps:$4 sm:$0xff]  }
  0x67   : > { %2699 = vmatpush1.bf16.msra.mxu0 %v7900_v35  ;;  %3685 = vmatpush1.bf16.msra.mxu1 %v7903_v36  ;;  %v8005_v35 = vld [vmem:[%s9709_s1 + $0x3a8] ss:$16 sps:$4 sm:$0xff]   ;;  %v8007_v36 = vld [vmem:[%s9709_s1 + $0x3ac] ss:$16 sps:$4 sm:$0xff]  }
  0x68   : > { %2700 = vmatprep.subr.bf16.mxu0 %v7917_v40  ;;  %3686 = vmatprep.subr.bf16.mxu1 %v7920_v42  ;;  %v7936_v40 = vld [vmem:[%s8492_s25 + $0x304] ss:$16 sps:$4 sm:$0xff]  }
  0x69   : > { %v7939_v42 = vld [vmem:[%s8492_s25 + $0x324] ss:$16 sps:$4 sm:$0xff]  }
  0x6b   : > { %2701 = vmatpush1.bf16.msra.mxu0 %v7915_v39  ;;  %3687 = vmatpush1.bf16.msra.mxu1 %v7918_v41  ;;  %v7929_v39 = vld [vmem:[%s8492_s25 + $0x2e0] ss:$16 sps:$4 sm:$0xff]  }
  0x6c   : > { %2702 = vmatprep.subr.bf16.mxu0 %v7932_v50  ;;  %3688 = vmatprep.subr.bf16.mxu1 %v7935_v52  ;;  %v7938_v41 = vld [vmem:[%s8492_s25 + $0x300] ss:$16 sps:$4 sm:$0xff]   ;;  %v7951_v50 = vld [vmem:[%s8492_s25 + $0x364] ss:$16 sps:$4 sm:$0xff]  }
  0x6d   : > { %2266 = vmatmul.mubr.bf16.gmra.mrb[16].mxu0 %v7836_v37  ;;  %3252 = vmatmul.mubr.bf16.gmra.mrb[16].mxu1 %v7836_v37  ;;  %v7926_v37 = vld [vmem:[%s8492_s25 + $0x2c0] ss:$16 sps:$4 sm:$0xff]   ;;  %v7954_v52 = vld [vmem:[%s8492_s25 + $0x384] ss:$16 sps:$4 sm:$0xff]  }
  0x6e   : > { %2275 = vmatprep.mubr.bf16.mxu0 %v7837_v38  ;;  %3261 = vmatprep.mubr.bf16.mxu1 %v7837_v38  ;;  %v7927_v38 = vld [vmem:[%s8492_s25 + $0x2e4] ss:$16 sps:$4 sm:$0xff]  }
  0x6f   : > { %2703 = vmatpush1.bf16.msra.mxu0 %v7930_v49  ;;  %3689 = vmatpush1.bf16.msra.mxu1 %v7933_v51  ;;  %v7950_v49 = vld [vmem:[%s8492_s25 + $0x340] ss:$16 sps:$4 sm:$0xff]  }
  0x70   : > { %2704 = vmatprep.subr.bf16.mxu0 %v7946_v58  ;;  %3690 = vmatprep.subr.bf16.mxu1 %v7949_v61  ;;  %v7953_v51 = vld [vmem:[%s8492_s25 + $0x360] ss:$16 sps:$4 sm:$0xff]   ;;  %v7963_v58 = vld [vmem:[%s8492_s25 + $0x3a4] ss:$16 sps:$4 sm:$0xff]  }
  0x71   : > { %v7968_v61 = vld [vmem:[%s8492_s25 + $0x3c0] ss:$16 sps:$4 sm:$0xff]  }
  0x73   : > { %2705 = vmatpush1.bf16.msra.mxu0 %v7944_v57  ;;  %3691 = vmatpush1.bf16.msra.mxu1 %v7947_v59  ;;  %v7956_v57 = vld [vmem:[%s8492_s25 + $0x380] ss:$16 sps:$4 sm:$0xff]  }
  0x74   : > { %2706 = vmatprep.subr.bf16.mxu0 %v7959_v4  ;;  %3692 = vmatprep.subr.bf16.mxu1 %v7962_v6  ;;  %v7965_v59 = vld [vmem:[%s8492_s25 + $0x3a0] ss:$16 sps:$4 sm:$0xff]   ;;  %v7984_v4 = vld [vmem:[%s8492_s25 + $0x444] ss:$16 sps:$4 sm:$0xff]  }
  0x75   : > { %2276 = vmatmul.mubr.bf16.gmra.mrb[20].mxu0 %v7839_v43  ;;  %3262 = vmatmul.mubr.bf16.gmra.mrb[20].mxu1 %v7839_v43  ;;  %v8017_v43 = vld [vmem:[%s9709_s1 + $0x3c0] ss:$16 sps:$4 sm:$0xff]   ;;  %v7993_v6 = vld [vmem:[%s8492_s25 + $0x464] ss:$16 sps:$4 sm:$0xff]  }
  0x76   : > { %2285 = vmatprep.mubr.bf16.mxu0 %v7846_v44  ;;  %3271 = vmatprep.mubr.bf16.mxu1 %v7846_v44  ;;  %v8019_v44 = vld [vmem:[%s9709_s1 + $0x3c4] ss:$16 sps:$4 sm:$0xff]  }
  0x77   : > { %2707 = vmatpush1.bf16.msra.mxu0 %v7957_v3  ;;  %3693 = vmatpush1.bf16.msra.mxu1 %v7960_v5  ;;  %v7983_v3 = vld [vmem:[%s8492_s25 + $0x420] ss:$16 sps:$4 sm:$0xff]  }
  0x78   : > { %2708 = vmatprep.subr.bf16.mxu0 %v7974_v14  ;;  %3694 = vmatprep.subr.bf16.mxu1 %v7977_v16  ;;  %v7986_v5 = vld [vmem:[%s8492_s25 + $0x440] ss:$16 sps:$4 sm:$0xff]   ;;  %v8011_v14 = vld [vmem:[%s8492_s25 + $0x4e4] ss:$16 sps:$4 sm:$0xff]  }
  0x79   : > { %v8014_v16 = vld [vmem:[%s8492_s25 + $0x504] ss:$16 sps:$4 sm:$0xff]  }
  0x7b   : > { %2709 = vmatpush1.bf16.msra.mxu0 %v7972_v13  ;;  %3695 = vmatpush1.bf16.msra.mxu1 %v7975_v15  ;;  %v8010_v13 = vld [vmem:[%s8492_s25 + $0x4c0] ss:$16 sps:$4 sm:$0xff]  }
  0x7c   : > { %2710 = vmatprep.subr.bf16.mxu0 %v7989_v24  ;;  %3696 = vmatprep.subr.bf16.mxu1 %v7992_v26  ;;  %v8013_v15 = vld [vmem:[%s8492_s25 + $0x4e0] ss:$16 sps:$4 sm:$0xff]   ;;  %v8038_v24 = vld [vmem:[%s8492_s25 + $0x584] ss:$16 sps:$4 sm:$0xff]  }
  0x7d   : > { %2286 = vmatmul.mubr.bf16.gmra.mrb[24].mxu0 %v7848_v45  ;;  %3272 = vmatmul.mubr.bf16.gmra.mrb[24].mxu1 %v7848_v45  ;;  %v8020_v45 = vld [vmem:[%s9709_s1 + $0x3c8] ss:$16 sps:$4 sm:$0xff]   ;;  %v8041_v26 = vld [vmem:[%s8492_s25 + $0x5a4] ss:$16 sps:$4 sm:$0xff]  }
  0x7e   : > { %2295 = vmatprep.mubr.bf16.mxu0 %v7849_v46  ;;  %3281 = vmatprep.mubr.bf16.mxu1 %v7849_v46  ;;  %v8022_v46 = vld [vmem:[%s9709_s1 + $0x3cc] ss:$16 sps:$4 sm:$0xff]  }
  0x7f   : > { %2711 = vmatpush1.bf16.msra.mxu0 %v7987_v23  ;;  %3697 = vmatpush1.bf16.msra.mxu1 %v7990_v25  ;;  %v8031_v23 = vld [vmem:[%s8492_s25 + $0x560] ss:$16 sps:$4 sm:$0xff]  }
  0x80   : > { %2712 = vmatprep.subr.bf16.mxu0 %v8004_v34  ;;  %3698 = vmatprep.subr.bf16.mxu1 %v8007_v36  ;;  %v8040_v25 = vld [vmem:[%s8492_s25 + $0x580] ss:$16 sps:$4 sm:$0xff]   ;;  %v8053_v34 = vld [vmem:[%s8492_s25 + $0x6c] ss:$16 sps:$4 sm:$0xff]  }
  0x81   : > { %v8056_v36 = vld [vmem:[%s8492_s25 + $0x8c] ss:$16 sps:$4 sm:$0xff]  }
  0x83   : > { %2713 = vmatpush1.bf16.msra.mxu0 %v8002_v33  ;;  %3699 = vmatpush1.bf16.msra.mxu1 %v8005_v35  ;;  %v8052_v33 = vld [vmem:[%s8492_s25 + $0x48] ss:$16 sps:$4 sm:$0xff]  }
  0x84   : > { %2714 = vmatprep.subr.bf16.mxu0 %v8019_v44  ;;  %3700 = vmatprep.subr.bf16.mxu1 %v8022_v46  ;;  %v8055_v35 = vld [vmem:[%s8492_s25 + $0x68] ss:$16 sps:$4 sm:$0xff]   ;;  %v8068_v44 = vld [vmem:[%s8492_s25 + $0x10c] ss:$16 sps:$4 sm:$0xff]  }
  0x85   : > { %2296 = vmatmul.mubr.bf16.gmra.mrb[28].mxu0 %v7851_v47  ;;  %3282 = vmatmul.mubr.bf16.gmra.mrb[28].mxu1 %v7851_v47  ;;  %v7941_v47 = vld [vmem:[%s8492_s25 + $0x320] ss:$16 sps:$4 sm:$0xff]   ;;  %v8071_v46 = vld [vmem:[%s8492_s25 + $0x12c] ss:$16 sps:$4 sm:$0xff]  }
  0x86   : > { %2305 = vmatprep.mubr.bf16.mxu0 %v7852_v48  ;;  %3291 = vmatprep.mubr.bf16.mxu1 %v7852_v48  ;;  %v7942_v48 = vld [vmem:[%s8492_s25 + $0x344] ss:$16 sps:$4 sm:$0xff]  }
  0x87   : > { %2715 = vmatpush1.bf16.msra.mxu0 %v8017_v43  ;;  %3701 = vmatpush1.bf16.msra.mxu1 %v8020_v45  ;;  %v8067_v43 = vld [vmem:[%s8492_s25 + $0xe8] ss:$16 sps:$4 sm:$0xff]  }
  0x88   : > { %v8070_v45 = vld [vmem:[%s8492_s25 + $0x108] ss:$16 sps:$4 sm:$0xff]  }
  0x8d   : > { %2306 = vmatmul.mubr.bf16.gmra.mrb[32].mxu0 %v7854_v53  ;;  %3292 = vmatmul.mubr.bf16.gmra.mrb[32].mxu1 %v7854_v53  ;;  %v8032_v53 = vld [vmem:[%s9709_s1 + $0x3e0] ss:$16 sps:$4 sm:$0xff]  }
  0x8e   : > { %2315 = vmatprep.mubr.bf16.mxu0 %v7861_v54  ;;  %3301 = vmatprep.mubr.bf16.mxu1 %v7861_v54  ;;  %v8034_v54 = vld [vmem:[%s9709_s1 + $0x3e4] ss:$16 sps:$4 sm:$0xff]  }
  0x8f   : > { %2716 = vmatprep.subr.bf16.mxu0 %v8034_v54  ;;  %v8083_v54 = vld [vmem:[%s8492_s25 + $0x1ac] ss:$16 sps:$4 sm:$0xff]  }
  0x90   : > { %2717 = vmatpush1.bf16.msra.mxu0 %v8032_v53  ;;  %v8082_v53 = vld [vmem:[%s8492_s25 + $0x188] ss:$16 sps:$4 sm:$0xff]  }
  0x95   : > { %2316 = vmatmul.mubr.bf16.gmra.mrb[36].mxu0 %v7863_v55  ;;  %3302 = vmatmul.mubr.bf16.gmra.mrb[36].mxu1 %v7863_v55  ;;  %v8035_v55 = vld [vmem:[%s9709_s1 + $0x3e8] ss:$16 sps:$4 sm:$0xff]  }
  0x96   : > { %2325 = vmatprep.mubr.bf16.mxu0 %v7864_v56  ;;  %3311 = vmatprep.mubr.bf16.mxu1 %v7864_v56  ;;  %v8037_v56 = vld [vmem:[%s9709_s1 + $0x3ec] ss:$16 sps:$4 sm:$0xff]  }
  0x97   : > { %3702 = vmatprep.subr.bf16.mxu1 %v8037_v56  ;;  %v8086_v56 = vld [vmem:[%s8492_s25 + $0x1cc] ss:$16 sps:$4 sm:$0xff]  }
  0x98   : > { %3703 = vmatpush1.bf16.msra.mxu1 %v8035_v55  ;;  %v8085_v55 = vld [vmem:[%s8492_s25 + $0x1a8] ss:$16 sps:$4 sm:$0xff]  }
  0x9d   : > { %2326 = vmatmul.mubr.bf16.gmra.mrb[40].mxu0 %v7866_v60  ;;  %3312 = vmatmul.mubr.bf16.gmra.mrb[40].mxu1 %v7866_v60  ;;  %v7966_v60 = vld [vmem:[%s8492_s25 + $0x3c4] ss:$16 sps:$4 sm:$0xff]  }
  0x9e   : > { %2335 = vmatprep.mubr.bf16.mxu0 %v7867_v62  ;;  %3321 = vmatprep.mubr.bf16.mxu1 %v7867_v62  ;;  %v7969_v62 = vld [vmem:[%s8492_s25 + $0x3e4] ss:$16 sps:$4 sm:$0xff]  }
  0xa5   : > { %2336 = vmatmul.mubr.bf16.gmra.mrb[44].mxu0 %v7869_v63  ;;  %3322 = vmatmul.mubr.bf16.gmra.mrb[44].mxu1 %v7869_v63  ;;  %v7971_v63 = vld [vmem:[%s8492_s25 + $0x3e0] ss:$16 sps:$4 sm:$0xff]  }
  0xa6   : > { %2345 = vmatprep.mubr.bf16.mxu0 %v7876_v0  ;;  %3331 = vmatprep.mubr.bf16.mxu1 %v7876_v0  ;;  %v7978_v0 = vld [vmem:[%s8492_s25 + $0x404] ss:$16 sps:$4 sm:$0xff]  }
  0xad   : > { %2346 = vmatmul.mubr.bf16.gmra.mrb[48].mxu0 %v7878_v1  ;;  %3332 = vmatmul.mubr.bf16.gmra.mrb[48].mxu1 %v7878_v1  ;;  %v7980_v1 = vld [vmem:[%s8492_s25 + $0x400] ss:$16 sps:$4 sm:$0xff]  }
  0xae   : > { %2355 = vmatprep.mubr.bf16.mxu0 %v7879_v2  ;;  %3341 = vmatprep.mubr.bf16.mxu1 %v7879_v2  ;;  %v7981_v2 = vld [vmem:[%s8492_s25 + $0x424] ss:$16 sps:$4 sm:$0xff]  }
  0xb5   : > { %2356 = vmatmul.mubr.bf16.gmra.mrb[52].mxu0 %v7881_v7  ;;  %3342 = vmatmul.mubr.bf16.gmra.mrb[52].mxu1 %v7881_v7  ;;  %v7995_v7 = vld [vmem:[%s8492_s25 + $0x460] ss:$16 sps:$4 sm:$0xff]  }
  0xb6   : > { %2365 = vmatprep.mubr.bf16.mxu0 %v7882_v8  ;;  %3351 = vmatprep.mubr.bf16.mxu1 %v7882_v8  ;;  %v7996_v8 = vld [vmem:[%s8492_s25 + $0x484] ss:$16 sps:$4 sm:$0xff]  }
  0xbd   : > { %2366 = vmatmul.mubr.bf16.gmra.mrb[56].mxu0 %v7884_v9  ;;  %3352 = vmatmul.mubr.bf16.gmra.mrb[56].mxu1 %v7884_v9  ;;  %v7998_v9 = vld [vmem:[%s8492_s25 + $0x480] ss:$16 sps:$4 sm:$0xff]  }
  0xbe   : > { %2375 = vmatprep.mubr.bf16.mxu0 %v7891_v10  ;;  %3361 = vmatprep.mubr.bf16.mxu1 %v7891_v10  ;;  %v7999_v10 = vld [vmem:[%s8492_s25 + $0x4a4] ss:$16 sps:$4 sm:$0xff]  }
  0xc5   : > { %2376 = vmatmul.mubr.bf16.gmra.mrb[60].mxu0 %v7893_v11  ;;  %3362 = vmatmul.mubr.bf16.gmra.mrb[60].mxu1 %v7893_v11  ;;  %v8001_v11 = vld [vmem:[%s8492_s25 + $0x4a0] ss:$16 sps:$4 sm:$0xff]  }
  0xc6   : > { %2385 = vmatprep.mubr.bf16.mxu0 %v7894_v12  ;;  %3371 = vmatprep.mubr.bf16.mxu1 %v7894_v12  ;;  %v8008_v12 = vld [vmem:[%s8492_s25 + $0x4c4] ss:$16 sps:$4 sm:$0xff]  }
  0xcd   : > { %2386 = vmatmul.mubr.bf16.gmra.mrb[64].mxu0 %v7896_v17  ;;  %3372 = vmatmul.mubr.bf16.gmra.mrb[64].mxu1 %v7896_v17  ;;  %v8016_v17 = vld [vmem:[%s8492_s25 + $0x500] ss:$16 sps:$4 sm:$0xff]  }
  0xce   : > { %2395 = vmatprep.mubr.bf16.mxu0 %v7897_v18  ;;  %3381 = vmatprep.mubr.bf16.mxu1 %v7897_v18  ;;  %v8023_v18 = vld [vmem:[%s8492_s25 + $0x524] ss:$16 sps:$4 sm:$0xff]  }
  0xd5   : > { %2396 = vmatmul.mubr.bf16.gmra.mrb[68].mxu0 %v7899_v19  ;;  %3382 = vmatmul.mubr.bf16.gmra.mrb[68].mxu1 %v7899_v19  ;;  %v8025_v19 = vld [vmem:[%s8492_s25 + $0x520] ss:$16 sps:$4 sm:$0xff]  }
  0xd6   : > { %2405 = vmatprep.mubr.bf16.mxu0 %v7906_v20  ;;  %3391 = vmatprep.mubr.bf16.mxu1 %v7906_v20  ;;  %v8026_v20 = vld [vmem:[%s8492_s25 + $0x544] ss:$16 sps:$4 sm:$0xff]  }
  0xdd   : > { %2406 = vmatmul.mubr.bf16.gmra.mrb[72].mxu0 %v7908_v21  ;;  %3392 = vmatmul.mubr.bf16.gmra.mrb[72].mxu1 %v7908_v21  ;;  %v8028_v21 = vld [vmem:[%s8492_s25 + $0x540] ss:$16 sps:$4 sm:$0xff]  }
  0xde   : > { %2415 = vmatprep.mubr.bf16.mxu0 %v7909_v22  ;;  %3401 = vmatprep.mubr.bf16.mxu1 %v7909_v22  ;;  %v8029_v22 = vld [vmem:[%s8492_s25 + $0x564] ss:$16 sps:$4 sm:$0xff]  }
  0xe5   : > { %2416 = vmatmul.mubr.bf16.gmra.mrb[76].mxu0 %v7911_v27  ;;  %3402 = vmatmul.mubr.bf16.gmra.mrb[76].mxu1 %v7911_v27  ;;  %v8043_v27 = vld [vmem:[%s8492_s25 + $0x5a0] ss:$16 sps:$4 sm:$0xff]  }
  0xe6   : > { %2425 = vmatprep.mubr.bf16.mxu0 %v7912_v28  ;;  %3411 = vmatprep.mubr.bf16.mxu1 %v7912_v28  ;;  %v8046_v28 = vld [vmem:[%s8492_s25 + $0xc] ss:$16 sps:$4 sm:$0xff]  }
  0xed   : > { %2426 = vmatmul.mubr.bf16.gmra.mrb[80].mxu0 %v7914_v29  ;;  %3412 = vmatmul.mubr.bf16.gmra.mrb[80].mxu1 %v7914_v29  ;;  %v8044_v29 = vld [vmem:[%s8492_s25 + $0x8] ss:$16 sps:$4 sm:$0xff]  }
  0xee   : > { %2435 = vmatprep.mubr.bf16.mxu0 %v7921_v30  ;;  %3421 = vmatprep.mubr.bf16.mxu1 %v7921_v30  ;;  %v8047_v30 = vld [vmem:[%s8492_s25 + $0x2c] ss:$16 sps:$4 sm:$0xff]  }
  0xf5   : > { %2436 = vmatmul.mubr.bf16.gmra.mrb[84].mxu0 %v7923_v31  ;;  %3422 = vmatmul.mubr.bf16.gmra.mrb[84].mxu1 %v7923_v31  ;;  %v8049_v31 = vld [vmem:[%s8492_s25 + $0x28] ss:$16 sps:$4 sm:$0xff]  }
  0xf6   : > { %2445 = vmatprep.mubr.bf16.mxu0 %v7924_v32  ;;  %3431 = vmatprep.mubr.bf16.mxu1 %v7924_v32  ;;  %v8050_v32 = vld [vmem:[%s8492_s25 + $0x4c] ss:$16 sps:$4 sm:$0xff]  }
  0xfd   : > { %2446 = vmatmul.mubr.bf16.gmra.mrb[88].mxu0 %v7926_v37  ;;  %3432 = vmatmul.mubr.bf16.gmra.mrb[88].mxu1 %v7926_v37  ;;  %v8058_v37 = vld [vmem:[%s8492_s25 + $0x88] ss:$16 sps:$4 sm:$0xff]  }
  0xfe   : > { %2455 = vmatprep.mubr.bf16.mxu0 %v7927_v38  ;;  %3441 = vmatprep.mubr.bf16.mxu1 %v7927_v38  ;;  %v8059_v38 = vld [vmem:[%s8492_s25 + $0xac] ss:$16 sps:$4 sm:$0xff]  }
 0x105   : > { %2456 = vmatmul.mubr.bf16.gmra.mrb[92].mxu0 %v7929_v39  ;;  %3442 = vmatmul.mubr.bf16.gmra.mrb[92].mxu1 %v7929_v39  ;;  %v8061_v39 = vld [vmem:[%s8492_s25 + $0xa8] ss:$16 sps:$4 sm:$0xff]  }
 0x106   : > { %2465 = vmatprep.mubr.bf16.mxu0 %v7936_v40  ;;  %3451 = vmatprep.mubr.bf16.mxu1 %v7936_v40  ;;  %v8062_v40 = vld [vmem:[%s8492_s25 + $0xcc] ss:$16 sps:$4 sm:$0xff]  }
 0x10d   : > { %2466 = vmatmul.mubr.bf16.gmra.mrb[96].mxu0 %v7938_v41  ;;  %3452 = vmatmul.mubr.bf16.gmra.mrb[96].mxu1 %v7938_v41  ;;  %v8064_v41 = vld [vmem:[%s8492_s25 + $0xc8] ss:$16 sps:$4 sm:$0xff]  }
 0x10e   : > { %2475 = vmatprep.mubr.bf16.mxu0 %v7939_v42  ;;  %3461 = vmatprep.mubr.bf16.mxu1 %v7939_v42  ;;  %v8065_v42 = vld [vmem:[%s8492_s25 + $0xec] ss:$16 sps:$4 sm:$0xff]  }
 0x115   : > { %2476 = vmatmul.mubr.bf16.gmra.mrb[100].mxu0 %v7941_v47  ;;  %3462 = vmatmul.mubr.bf16.gmra.mrb[100].mxu1 %v7941_v47  ;;  %v8073_v47 = vld [vmem:[%s8492_s25 + $0x128] ss:$16 sps:$4 sm:$0xff]  }
 0x116   : > { %2485 = vmatprep.mubr.bf16.mxu0 %v7942_v48  ;;  %3471 = vmatprep.mubr.bf16.mxu1 %v7942_v48  ;;  %v8074_v48 = vld [vmem:[%s8492_s25 + $0x14c] ss:$16 sps:$4 sm:$0xff]  }
 0x11d   : > { %2486 = vmatmul.mubr.bf16.gmra.mrb[104].mxu0 %v7950_v49  ;;  %3472 = vmatmul.mubr.bf16.gmra.mrb[104].mxu1 %v7950_v49  ;;  %v8076_v49 = vld [vmem:[%s8492_s25 + $0x148] ss:$16 sps:$4 sm:$0xff]  }
 0x11e   : > { %2495 = vmatprep.mubr.bf16.mxu0 %v7951_v50  ;;  %3481 = vmatprep.mubr.bf16.mxu1 %v7951_v50  ;;  %v8077_v50 = vld [vmem:[%s8492_s25 + $0x16c] ss:$16 sps:$4 sm:$0xff]  }
 0x125   : > { %2496 = vmatmul.mubr.bf16.gmra.mrb[108].mxu0 %v7953_v51  ;;  %3482 = vmatmul.mubr.bf16.gmra.mrb[108].mxu1 %v7953_v51  ;;  %v8079_v51 = vld [vmem:[%s8492_s25 + $0x168] ss:$16 sps:$4 sm:$0xff]  }
 0x126   : > { %2505 = vmatprep.mubr.bf16.mxu0 %v7954_v52  ;;  %3491 = vmatprep.mubr.bf16.mxu1 %v7954_v52  ;;  %v8080_v52 = vld [vmem:[%s8492_s25 + $0x18c] ss:$16 sps:$4 sm:$0xff]  }
 0x12d   : > { %2506 = vmatmul.mubr.bf16.gmra.mrb[112].mxu0 %v7956_v57  ;;  %3492 = vmatmul.mubr.bf16.gmra.mrb[112].mxu1 %v7956_v57  ;;  %v8088_v57 = vld [vmem:[%s8492_s25 + $0x1c8] ss:$16 sps:$4 sm:$0xff]  }
 0x12e   : > { %2515 = vmatprep.mubr.bf16.mxu0 %v7963_v58  ;;  %3501 = vmatprep.mubr.bf16.mxu1 %v7963_v58  ;;  %v8089_v58 = vld [vmem:[%s8492_s25 + $0x1ec] ss:$16 sps:$4 sm:$0xff]  }
 0x135   : > { %2516 = vmatmul.mubr.bf16.gmra.mrb[116].mxu0 %v7965_v59  ;;  %3502 = vmatmul.mubr.bf16.gmra.mrb[116].mxu1 %v7965_v59  ;;  %v8091_v59 = vld [vmem:[%s8492_s25 + $0x1e8] ss:$16 sps:$4 sm:$0xff]  }
 0x136   : > { %2525 = vmatprep.mubr.bf16.mxu0 %v7966_v60  ;;  %3511 = vmatprep.mubr.bf16.mxu1 %v7966_v60  ;;  %v8092_v60 = vld [vmem:[%s8492_s25 + $0x20c] ss:$16 sps:$4 sm:$0xff]  }
 0x13d   : > { %2526 = vmatmul.mubr.bf16.gmra.mrb[120].mxu0 %v7968_v61  ;;  %3512 = vmatmul.mubr.bf16.gmra.mrb[120].mxu1 %v7968_v61  ;;  %v8094_v61 = vld [vmem:[%s8492_s25 + $0x208] ss:$16 sps:$4 sm:$0xff]  }
 0x13e   : > { %2535 = vmatprep.mubr.bf16.mxu0 %v7969_v62  ;;  %3521 = vmatprep.mubr.bf16.mxu1 %v7969_v62  ;;  %v8095_v62 = vld [vmem:[%s8492_s25 + $0x22c] ss:$16 sps:$4 sm:$0xff]  }
 0x145   : > { %2536 = vmatmul.mubr.bf16.gmra.mrb[124].mxu0 %v7971_v63  ;;  %3522 = vmatmul.mubr.bf16.gmra.mrb[124].mxu1 %v7971_v63  ;;  %v8097_v63 = vld [vmem:[%s8492_s25 + $0x228] ss:$16 sps:$4 sm:$0xff]  }
 0x146   : > { %2545 = vmatprep.mubr.bf16.mxu0 %v7978_v0  ;;  %3531 = vmatprep.mubr.bf16.mxu1 %v7978_v0  ;;  %v8098_v0 = vld [vmem:[%s8492_s25 + $0x24c] ss:$16 sps:$4 sm:$0xff]  }
 0x14d   : > { %2546 = vmatmul.mubr.bf16.gmra.mrb[128].mxu0 %v7980_v1  ;;  %3532 = vmatmul.mubr.bf16.gmra.mrb[128].mxu1 %v7980_v1  ;;  %v8100_v1 = vld [vmem:[%s8492_s25 + $0x248] ss:$16 sps:$4 sm:$0xff]  }
 0x14e   : > { %2555 = vmatprep.mubr.bf16.mxu0 %v7981_v2  ;;  %3541 = vmatprep.mubr.bf16.mxu1 %v7981_v2  ;;  %v8101_v2 = vld [vmem:[%s8492_s25 + $0x26c] ss:$16 sps:$4 sm:$0xff]  }
 0x155   : > { %2556 = vmatmul.mubr.bf16.gmra.mrb[132].mxu0 %v7983_v3  ;;  %3542 = vmatmul.mubr.bf16.gmra.mrb[132].mxu1 %v7983_v3  ;;  %v8103_v3 = vld [vmem:[%s8492_s25 + $0x268] ss:$16 sps:$4 sm:$0xff]  }
 0x156   : > { %2565 = vmatprep.mubr.bf16.mxu0 %v7984_v4  ;;  %3551 = vmatprep.mubr.bf16.mxu1 %v7984_v4  ;;  %v8104_v4 = vld [vmem:[%s8492_s25 + $0x28c] ss:$16 sps:$4 sm:$0xff]  }
 0x15d   : > { %2566 = vmatmul.mubr.bf16.gmra.mrb[136].mxu0 %v7986_v5  ;;  %3552 = vmatmul.mubr.bf16.gmra.mrb[136].mxu1 %v7986_v5  ;;  %v8106_v5 = vld [vmem:[%s8492_s25 + $0x288] ss:$16 sps:$4 sm:$0xff]  }
 0x15e   : > { %2575 = vmatprep.mubr.bf16.mxu0 %v7993_v6  ;;  %3561 = vmatprep.mubr.bf16.mxu1 %v7993_v6  ;;  %v8107_v6 = vld [vmem:[%s8492_s25 + $0x2ac] ss:$16 sps:$4 sm:$0xff]  }
 0x165   : > { %2576 = vmatmul.mubr.bf16.gmra.mrb[140].mxu0 %v7995_v7  ;;  %3562 = vmatmul.mubr.bf16.gmra.mrb[140].mxu1 %v7995_v7  ;;  %v8109_v7 = vld [vmem:[%s8492_s25 + $0x2a8] ss:$16 sps:$4 sm:$0xff]  }
 0x166   : > { %2585 = vmatprep.mubr.bf16.mxu0 %v7996_v8  ;;  %3571 = vmatprep.mubr.bf16.mxu1 %v7996_v8  ;;  %v8110_v8 = vld [vmem:[%s8492_s25 + $0x2cc] ss:$16 sps:$4 sm:$0xff]  }
 0x16d   : > { %2586 = vmatmul.mubr.bf16.gmra.mrb[144].mxu0 %v7998_v9  ;;  %3572 = vmatmul.mubr.bf16.gmra.mrb[144].mxu1 %v7998_v9  ;;  %v8112_v9 = vld [vmem:[%s8492_s25 + $0x2c8] ss:$16 sps:$4 sm:$0xff]  }
 0x16e   : > { %2595 = vmatprep.mubr.bf16.mxu0 %v7999_v10  ;;  %3581 = vmatprep.mubr.bf16.mxu1 %v7999_v10  ;;  %v8113_v10 = vld [vmem:[%s8492_s25 + $0x2ec] ss:$16 sps:$4 sm:$0xff]  }
 0x175   : > { %2596 = vmatmul.mubr.bf16.gmra.mrb[148].mxu0 %v8001_v11  ;;  %3582 = vmatmul.mubr.bf16.gmra.mrb[148].mxu1 %v8001_v11  ;;  %v8115_v11 = vld [vmem:[%s8492_s25 + $0x2e8] ss:$16 sps:$4 sm:$0xff]  }
 0x176   : > { %2605 = vmatprep.mubr.bf16.mxu0 %v8008_v12  ;;  %3591 = vmatprep.mubr.bf16.mxu1 %v8008_v12  ;;  %v8116_v12 = vld [vmem:[%s8492_s25 + $0x30c] ss:$16 sps:$4 sm:$0xff]  }
 0x17d   : > { %2606 = vmatmul.mubr.bf16.gmra.mrb[152].mxu0 %v8010_v13  ;;  %3592 = vmatmul.mubr.bf16.gmra.mrb[152].mxu1 %v8010_v13  ;;  %v8118_v13 = vld [vmem:[%s8492_s25 + $0x308] ss:$16 sps:$4 sm:$0xff]  }
 0x17e   : > { %2615 = vmatprep.mubr.bf16.mxu0 %v8011_v14  ;;  %3601 = vmatprep.mubr.bf16.mxu1 %v8011_v14  ;;  %v8119_v14 = vld [vmem:[%s8492_s25 + $0x32c] ss:$16 sps:$4 sm:$0xff]  }
 0x185   : > { %2616 = vmatmul.mubr.bf16.gmra.mrb[156].mxu0 %v8013_v15  ;;  %3602 = vmatmul.mubr.bf16.gmra.mrb[156].mxu1 %v8013_v15  ;;  %v8121_v15 = vld [vmem:[%s8492_s25 + $0x328] ss:$16 sps:$4 sm:$0xff]  }
 0x186   : > { %2625 = vmatprep.mubr.bf16.mxu0 %v8014_v16  ;;  %3611 = vmatprep.mubr.bf16.mxu1 %v8014_v16  ;;  %v613_v16 = vlaneseq }
 0x18d   : > { %2626 = vmatmul.mubr.bf16.gmra.mrb[160].mxu0 %v8016_v17  ;;  %3612 = vmatmul.mubr.bf16.gmra.mrb[160].mxu1 %v8016_v17  ;;  %v8122_v17 = vld [vmem:[%s8492_s25 + $0x34c] ss:$16 sps:$4 sm:$0xff]  }
 0x18e   : > { %2635 = vmatprep.mubr.bf16.mxu0 %v8023_v18  ;;  %3621 = vmatprep.mubr.bf16.mxu1 %v8023_v18  ;;  %v614_v18 = vshrl.u32 %v613_v16, 7 }
 0x195   : > { %2636 = vmatmul.mubr.bf16.gmra.mrb[164].mxu0 %v8025_v19  ;;  %3622 = vmatmul.mubr.bf16.gmra.mrb[164].mxu1 %v8025_v19  ;;  %v8124_v19 = vld [vmem:[%s8492_s25 + $0x348] ss:$16 sps:$4 sm:$0xff]  }
 0x196   : > { %2645 = vmatprep.mubr.bf16.mxu0 %v8026_v20  ;;  %3631 = vmatprep.mubr.bf16.mxu1 %v8026_v20  ;;  %v615_v20 = vsub.s32 0, %v614_v18 }
 0x19d   : > { %2646 = vmatmul.mubr.bf16.gmra.mrb[168].mxu0 %v8028_v21  ;;  %3632 = vmatmul.mubr.bf16.gmra.mrb[168].mxu1 %v8028_v21  ;;  %v623_v21 = vsub.s32 2, %v614_v18 }
 0x19e   : > { %2655 = vmatprep.mubr.bf16.mxu0 %v8029_v22  ;;  %3641 = vmatprep.mubr.bf16.mxu1 %v8029_v22  ;;  %v611_v22 = vld [vmem:[%s9710_s2] sm:$0xf] }
 0x1a5   : > { %2656 = vmatmul.mubr.bf16.gmra.mrb[172].mxu0 %v8031_v23  ;;  %3642 = vmatmul.mubr.bf16.gmra.mrb[172].mxu1 %v8031_v23  ;;  %v619_v23 = vsub.s32 1, %v614_v18 }
 0x1a6   : > { %2665 = vmatprep.mubr.bf16.mxu0 %v8038_v24  ;;  %3651 = vmatprep.mubr.bf16.mxu1 %v8038_v24  ;;  %v627_v24 = vsub.s32 3, %v614_v18 }
 0x1ad   : > { %2666 = vmatmul.mubr.bf16.gmra.mrb[176].mxu0 %v8040_v25  ;;  %3652 = vmatmul.mubr.bf16.gmra.mrb[176].mxu1 %v8040_v25  ;;  %v8125_v25 = vld [vmem:[%s8492_s25 + $0x36c] ss:$16 sps:$4 sm:$0xff]  }
 0x1ae   : > { %2675 = vmatprep.mubr.bf16.mxu0 %v8041_v26  ;;  %3661 = vmatprep.mubr.bf16.mxu1 %v8041_v26  ;;  %v8893_v26 = vrot.slane %v611_v22, %v615_v20 }
 0x1b5   : > { %2676 = vmatmul.mubr.bf16.gmra.mrb[180].mxu0 %v8043_v27  ;;  %3662 = vmatmul.mubr.bf16.gmra.mrb[180].mxu1 %v8043_v27  ;;  %v8895_v27 = vrot.slane %v611_v22, %v623_v21 }
 0x1b6   : > { %2718 = vmatprep.mubr.bf16.mxu0 %v8046_v28  ;;  %3704 = vmatprep.mubr.bf16.mxu1 %v8046_v28  ;;  %v8898_v28 = vrot.slane %v611_v22, %v619_v23 }
 0x1bd   : > { %2719 = vmatmul.mubr.bf16.vlgmr.msra.gmra.mrb[0].mxu0 %v8044_v29  ;;  %3705 = vmatmul.mubr.bf16.vlgmr.msra.gmra.mrb[0].mxu1 %v8044_v29  ;;  %v8900_v29 = vrot.slane %v611_v22, %v627_v24 }
 0x1be   : > { %2728 = vmatprep.mubr.bf16.mxu0 %v8047_v30  ;;  %3714 = vmatprep.mubr.bf16.mxu1 %v8047_v30 }
 0x1c5   : > { %2729 = vmatmul.mubr.bf16.gmra.mrb[4].mxu0 %v8049_v31  ;;  %3715 = vmatmul.mubr.bf16.gmra.mrb[4].mxu1 %v8049_v31 }
 0x1c6   : > { %2738 = vmatprep.mubr.bf16.mxu0 %v8050_v32  ;;  %3724 = vmatprep.mubr.bf16.mxu1 %v8050_v32 }
 0x1cd   : > { %2739 = vmatmul.mubr.bf16.gmra.mrb[8].mxu0 %v8052_v33  ;;  %3725 = vmatmul.mubr.bf16.gmra.mrb[8].mxu1 %v8052_v33 }
 0x1ce   : > { %2748 = vmatprep.mubr.bf16.mxu0 %v8053_v34  ;;  %3734 = vmatprep.mubr.bf16.mxu1 %v8053_v34 }
 0x1d5   : > { %2749 = vmatmul.mubr.bf16.gmra.mrb[12].mxu0 %v8055_v35  ;;  %3735 = vmatmul.mubr.bf16.gmra.mrb[12].mxu1 %v8055_v35 }
 0x1d6   : > { %2758 = vmatprep.mubr.bf16.mxu0 %v8056_v36  ;;  %3744 = vmatprep.mubr.bf16.mxu1 %v8056_v36  ;;  %v8127_v36 = vld [vmem:[%s8492_s25 + $0x368] ss:$16 sps:$4 sm:$0xff]  }
 0x1dd   : > { %2759 = vmatmul.mubr.bf16.gmra.mrb[16].mxu0 %v8058_v37  ;;  %3745 = vmatmul.mubr.bf16.gmra.mrb[16].mxu1 %v8058_v37 }
 0x1de   : > { %2768 = vmatprep.mubr.bf16.mxu0 %v8059_v38  ;;  %3754 = vmatprep.mubr.bf16.mxu1 %v8059_v38 }
 0x1e5   : > { %2769 = vmatmul.mubr.bf16.gmra.mrb[20].mxu0 %v8061_v39  ;;  %3755 = vmatmul.mubr.bf16.gmra.mrb[20].mxu1 %v8061_v39 }
 0x1e6   : > { %2778 = vmatprep.mubr.bf16.mxu0 %v8062_v40  ;;  %3764 = vmatprep.mubr.bf16.mxu1 %v8062_v40 }
 0x1ed   : > { %2779 = vmatmul.mubr.bf16.gmra.mrb[24].mxu0 %v8064_v41  ;;  %3765 = vmatmul.mubr.bf16.gmra.mrb[24].mxu1 %v8064_v41  ;;  %v8128_v41 = vld [vmem:[%s8492_s25 + $0x38c] ss:$16 sps:$4 sm:$0xff]  }
 0x1ee   : > { %2788 = vmatprep.mubr.bf16.mxu0 %v8065_v42  ;;  %3774 = vmatprep.mubr.bf16.mxu1 %v8065_v42 }
 0x1f5   : > { %2789 = vmatmul.mubr.bf16.gmra.mrb[28].mxu0 %v8067_v43  ;;  %3775 = vmatmul.mubr.bf16.gmra.mrb[28].mxu1 %v8067_v43 }
 0x1f6   : > { %2798 = vmatprep.mubr.bf16.mxu0 %v8068_v44  ;;  %3784 = vmatprep.mubr.bf16.mxu1 %v8068_v44 }
 0x1fd   : > { %2799 = vmatmul.mubr.bf16.gmra.mrb[32].mxu0 %v8070_v45  ;;  %3785 = vmatmul.mubr.bf16.gmra.mrb[32].mxu1 %v8070_v45 }
 0x1fe   : > { %2808 = vmatprep.mubr.bf16.mxu0 %v8071_v46  ;;  %3794 = vmatprep.mubr.bf16.mxu1 %v8071_v46 }
 0x205   : > { %2809 = vmatmul.mubr.bf16.gmra.mrb[36].mxu0 %v8073_v47  ;;  %3795 = vmatmul.mubr.bf16.gmra.mrb[36].mxu1 %v8073_v47 }
 0x206   : > { %2818 = vmatprep.mubr.bf16.mxu0 %v8074_v48  ;;  %3804 = vmatprep.mubr.bf16.mxu1 %v8074_v48 }
 0x20d   : > { %2819 = vmatmul.mubr.bf16.gmra.mrb[40].mxu0 %v8076_v49  ;;  %3805 = vmatmul.mubr.bf16.gmra.mrb[40].mxu1 %v8076_v49 }
 0x20e   : > { %2828 = vmatprep.mubr.bf16.mxu0 %v8077_v50  ;;  %3814 = vmatprep.mubr.bf16.mxu1 %v8077_v50 }
 0x215   : > { %2829 = vmatmul.mubr.bf16.gmra.mrb[44].mxu0 %v8079_v51  ;;  %3815 = vmatmul.mubr.bf16.gmra.mrb[44].mxu1 %v8079_v51 }
 0x216   : > { %2838 = vmatprep.mubr.bf16.mxu0 %v8080_v52  ;;  %3824 = vmatprep.mubr.bf16.mxu1 %v8080_v52 }
 0x21d   : > { %2839 = vmatmul.mubr.bf16.gmra.mrb[48].mxu0 %v8082_v53  ;;  %3825 = vmatmul.mubr.bf16.gmra.mrb[48].mxu1 %v8082_v53 }
 0x21e   : > { %2848 = vmatprep.mubr.bf16.mxu0 %v8083_v54  ;;  %3834 = vmatprep.mubr.bf16.mxu1 %v8083_v54 }
 0x225   : > { %2849 = vmatmul.mubr.bf16.gmra.mrb[52].mxu0 %v8085_v55  ;;  %3835 = vmatmul.mubr.bf16.gmra.mrb[52].mxu1 %v8085_v55 }
 0x226   : > { %2858 = vmatprep.mubr.bf16.mxu0 %v8086_v56  ;;  %3844 = vmatprep.mubr.bf16.mxu1 %v8086_v56 }
 0x22d   : > { %2859 = vmatmul.mubr.bf16.gmra.mrb[56].mxu0 %v8088_v57  ;;  %3845 = vmatmul.mubr.bf16.gmra.mrb[56].mxu1 %v8088_v57 }
 0x22e   : > { %2868 = vmatprep.mubr.bf16.mxu0 %v8089_v58  ;;  %3854 = vmatprep.mubr.bf16.mxu1 %v8089_v58 }
 0x235   : > { %2869 = vmatmul.mubr.bf16.gmra.mrb[60].mxu0 %v8091_v59  ;;  %3855 = vmatmul.mubr.bf16.gmra.mrb[60].mxu1 %v8091_v59 }
 0x236   : > { %2878 = vmatprep.mubr.bf16.mxu0 %v8092_v60  ;;  %3864 = vmatprep.mubr.bf16.mxu1 %v8092_v60 }
 0x23d   : > { %2879 = vmatmul.mubr.bf16.gmra.mrb[64].mxu0 %v8094_v61  ;;  %3865 = vmatmul.mubr.bf16.gmra.mrb[64].mxu1 %v8094_v61 }
 0x23e   : > { %2888 = vmatprep.mubr.bf16.mxu0 %v8095_v62  ;;  %3874 = vmatprep.mubr.bf16.mxu1 %v8095_v62 }
 0x245   : > { %2889 = vmatmul.mubr.bf16.gmra.mrb[68].mxu0 %v8097_v63  ;;  %3875 = vmatmul.mubr.bf16.gmra.mrb[68].mxu1 %v8097_v63 }
 0x246   : > { %2898 = vmatprep.mubr.bf16.mxu0 %v8098_v0  ;;  %3884 = vmatprep.mubr.bf16.mxu1 %v8098_v0 }
 0x24d   : > { %2899 = vmatmul.mubr.bf16.gmra.mrb[72].mxu0 %v8100_v1  ;;  %3885 = vmatmul.mubr.bf16.gmra.mrb[72].mxu1 %v8100_v1 }
 0x24e   : > { %2908 = vmatprep.mubr.bf16.mxu0 %v8101_v2  ;;  %3894 = vmatprep.mubr.bf16.mxu1 %v8101_v2  ;;  %v8130_v2 = vld [vmem:[%s8492_s25 + $0x388] ss:$16 sps:$4 sm:$0xff]  }
 0x255   : > { %2909 = vmatmul.mubr.bf16.gmra.mrb[76].mxu0 %v8103_v3  ;;  %3895 = vmatmul.mubr.bf16.gmra.mrb[76].mxu1 %v8103_v3 }
 0x256   : > { %2918 = vmatprep.mubr.bf16.mxu0 %v8104_v4  ;;  %3904 = vmatprep.mubr.bf16.mxu1 %v8104_v4 }
 0x25d   : > { %2919 = vmatmul.mubr.bf16.gmra.mrb[80].mxu0 %v8106_v5  ;;  %3905 = vmatmul.mubr.bf16.gmra.mrb[80].mxu1 %v8106_v5 }
 0x25e   : > { %2928 = vmatprep.mubr.bf16.mxu0 %v8107_v6  ;;  %3914 = vmatprep.mubr.bf16.mxu1 %v8107_v6 }
 0x265   : > { %2929 = vmatmul.mubr.bf16.gmra.mrb[84].mxu0 %v8109_v7  ;;  %3915 = vmatmul.mubr.bf16.gmra.mrb[84].mxu1 %v8109_v7  ;;  %v8131_v7 = vld [vmem:[%s8492_s25 + $0x3ac] ss:$16 sps:$4 sm:$0xff]  }
 0x266   : > { %2938 = vmatprep.mubr.bf16.mxu0 %v8110_v8  ;;  %3924 = vmatprep.mubr.bf16.mxu1 %v8110_v8 }
 0x26d   : > { %2939 = vmatmul.mubr.bf16.gmra.mrb[88].mxu0 %v8112_v9  ;;  %3925 = vmatmul.mubr.bf16.gmra.mrb[88].mxu1 %v8112_v9 }
 0x26e   : > { %2948 = vmatprep.mubr.bf16.mxu0 %v8113_v10  ;;  %3934 = vmatprep.mubr.bf16.mxu1 %v8113_v10 }
 0x275   : > { %2949 = vmatmul.mubr.bf16.gmra.mrb[92].mxu0 %v8115_v11  ;;  %3935 = vmatmul.mubr.bf16.gmra.mrb[92].mxu1 %v8115_v11 }
 0x276   : > { %2958 = vmatprep.mubr.bf16.mxu0 %v8116_v12  ;;  %3944 = vmatprep.mubr.bf16.mxu1 %v8116_v12 }
 0x27d   : > { %2959 = vmatmul.mubr.bf16.gmra.mrb[96].mxu0 %v8118_v13  ;;  %3945 = vmatmul.mubr.bf16.gmra.mrb[96].mxu1 %v8118_v13 }
 0x27e   : > { %2968 = vmatprep.mubr.bf16.mxu0 %v8119_v14  ;;  %3954 = vmatprep.mubr.bf16.mxu1 %v8119_v14 }
 0x285   : > { %2969 = vmatmul.mubr.bf16.gmra.mrb[100].mxu0 %v8121_v15  ;;  %3955 = vmatmul.mubr.bf16.gmra.mrb[100].mxu1 %v8121_v15 }
 0x286   : > { %2978 = vmatprep.mubr.bf16.mxu0 %v8122_v17  ;;  %3964 = vmatprep.mubr.bf16.mxu1 %v8122_v17 }
 0x28d   : > { %2979 = vmatmul.mubr.bf16.gmra.mrb[104].mxu0 %v8124_v19  ;;  %3965 = vmatmul.mubr.bf16.gmra.mrb[104].mxu1 %v8124_v19 }
 0x28e   : > { %2988 = vmatprep.mubr.bf16.mxu0 %v8125_v25  ;;  %3974 = vmatprep.mubr.bf16.mxu1 %v8125_v25 }
 0x290   : > { %v2720_v30 = vpop.f32.mrb[0].mxu0  ;;  %v3706_v31 = vpop.f32.mrb[0].mxu1 }
 0x291   : > { %v6873_v32 = vadd.f32 %v2720_v30, %v8893_v26  ;;  %v7057_v33 = vadd.f32 %v3706_v31, %v8895_v27  ;;  %v2722_v34 = vpop.f32.mrb[1].mxu0  ;;  %v3708_v35 = vpop.f32.mrb[1].mxu1 }
 0x292   : > { %v6874_v37 = vadd.f32 %v2722_v34, %v8898_v28  ;;  %v7058_v38 = vadd.f32 %v3708_v35, %v8900_v29  ;;  %v2724_v39 = vpop.f32.mrb[2].mxu0  ;;  %v3710_v40 = vpop.f32.mrb[2].mxu1 }
 0x293   : > { %v4165_v42 = vmax.f32 %v6873_v32, 0.0  ;;  %v4167_v43 = vmax.f32 %v7057_v33, 0.0  ;;  %v6875_v44 = vadd.f32 %v2724_v39, %v8893_v26  ;;  %v7059_v45 = vadd.f32 %v3710_v40, %v8895_v27  ;;  %v2726_v46 = vpop.f32.mrb[3].mxu0  ;;  %v3712_v47 = vpop.f32.mrb[3].mxu1 }
 0x294   : > { %v4166_v48 = vmax.f32 %v6874_v37, 0.0  ;;  %v4168_v49 = vmax.f32 %v7058_v38, 0.0  ;;  %v6876_v50 = vadd.f32 %v2726_v46, %v8898_v28  ;;  %v7060_v51 = vadd.f32 %v3712_v47, %v8900_v29 }
 0x295   : > { %v4169_v52 = vmax.f32 %v6875_v44, 0.0  ;;  %v4171_v53 = vmax.f32 %v7059_v45, 0.0  ;;  %2989 = vmatmul.mubr.bf16.gmra.mrb[108].mxu0 %v8127_v36  ;;  %3975 = vmatmul.mubr.bf16.gmra.mrb[108].mxu1 %v8127_v36  ;;  %v8133_v36 = vld [vmem:[%s8492_s25 + $0x3a8] ss:$16 sps:$4 sm:$0xff]  }
 0x296   : > { %v6683_v54 = vpack.c.bf16 %v4166_v48, %v4165_v42  ;;  %v6684_v55 = vpack.c.bf16 %v4168_v49, %v4167_v43  ;;  %v4170_v56 = vmax.f32 %v6876_v50, 0.0  ;;  %v4172_v57 = vmax.f32 %v7060_v51, 0.0  ;;  %2998 = vmatprep.mubr.bf16.mxu0 %v8128_v41  ;;  %3984 = vmatprep.mubr.bf16.mxu1 %v8128_v41  ;;  %v8134_v41 = vld [vmem:[%s8492_s25 + $0x3cc] ss:$16 sps:$4 sm:$0xff]  }
 0x298   : > { %5637 = vst [vmem:[%s8912_s12] sm:$0xff] %v6683_v54  ;;  %5638 = vst [vmem:[%s8912_s12 + $0x8] sm:$0xff] %v6684_v55  ;;  %v6685_v58 = vpack.c.bf16 %v4170_v56, %v4169_v52  ;;  %v6686_v59 = vpack.c.bf16 %v4172_v57, %v4171_v53  ;;  %v2730_v60 = vpop.f32.mrb[4].mxu0  ;;  %v3716_v61 = vpop.f32.mrb[4].mxu1 }
 0x299   : > { %v6877_v62 = vadd.f32 %v2730_v60, %v8893_v26  ;;  %v7061_v63 = vadd.f32 %v3716_v61, %v8895_v27  ;;  %v2732_v0 = vpop.f32.mrb[5].mxu0  ;;  %v3718_v1 = vpop.f32.mrb[5].mxu1 }
 0x29a   : > { %5639 = vst [vmem:[%s8912_s12 + $0x10] sm:$0xff] %v6685_v58  ;;  %5640 = vst [vmem:[%s8912_s12 + $0x18] sm:$0xff] %v6686_v59  ;;  %v6878_v3 = vadd.f32 %v2732_v0, %v8898_v28  ;;  %v7062_v4 = vadd.f32 %v3718_v1, %v8900_v29  ;;  %v2734_v5 = vpop.f32.mrb[6].mxu0  ;;  %v3720_v6 = vpop.f32.mrb[6].mxu1 }
 0x29b   : > { %v4173_v8 = vmax.f32 %v6877_v62, 0.0  ;;  %v4175_v9 = vmax.f32 %v7061_v63, 0.0  ;;  %v6879_v10 = vadd.f32 %v2734_v5, %v8893_v26  ;;  %v7063_v11 = vadd.f32 %v3720_v6, %v8895_v27  ;;  %v2736_v12 = vpop.f32.mrb[7].mxu0  ;;  %v3722_v13 = vpop.f32.mrb[7].mxu1 }
 0x29c   : > { %v4174_v14 = vmax.f32 %v6878_v3, 0.0  ;;  %v4176_v15 = vmax.f32 %v7062_v4, 0.0  ;;  %v6880_v16 = vadd.f32 %v2736_v12, %v8898_v28  ;;  %v7064_v17 = vadd.f32 %v3722_v13, %v8900_v29 }
 0x29d   : > { %v4177_v18 = vmax.f32 %v6879_v10, 0.0  ;;  %v4179_v19 = vmax.f32 %v7063_v11, 0.0  ;;  %2999 = vmatmul.mubr.bf16.gmra.mrb[112].mxu0 %v8130_v2  ;;  %3985 = vmatmul.mubr.bf16.gmra.mrb[112].mxu1 %v8130_v2  ;;  %v8136_v2 = vld [vmem:[%s8492_s25 + $0x3c8] ss:$16 sps:$4 sm:$0xff]  }
 0x29e   : > { %v6687_v20 = vpack.c.bf16 %v4174_v14, %v4173_v8  ;;  %v6688_v21 = vpack.c.bf16 %v4176_v15, %v4175_v9  ;;  %v4178_v22 = vmax.f32 %v6880_v16, 0.0  ;;  %v4180_v23 = vmax.f32 %v7064_v17, 0.0  ;;  %3008 = vmatprep.mubr.bf16.mxu0 %v8131_v7  ;;  %3994 = vmatprep.mubr.bf16.mxu1 %v8131_v7  ;;  %v8137_v7 = vld [vmem:[%s8492_s25 + $0x3ec] ss:$16 sps:$4 sm:$0xff]  }
 0x2a0   : > { %5641 = vst [vmem:[%s8912_s12 + $0x20] sm:$0xff] %v6687_v20  ;;  %5642 = vst [vmem:[%s8912_s12 + $0x28] sm:$0xff] %v6688_v21  ;;  %v6689_v24 = vpack.c.bf16 %v4178_v22, %v4177_v18  ;;  %v6690_v25 = vpack.c.bf16 %v4180_v23, %v4179_v19  ;;  %v2740_v30 = vpop.f32.mrb[8].mxu0  ;;  %v3726_v31 = vpop.f32.mrb[8].mxu1 }
 0x2a1   : > { %v6881_v32 = vadd.f32 %v2740_v30, %v8893_v26  ;;  %v7065_v33 = vadd.f32 %v3726_v31, %v8895_v27  ;;  %v2742_v34 = vpop.f32.mrb[9].mxu0  ;;  %v3728_v35 = vpop.f32.mrb[9].mxu1 }
 0x2a2   : > { %5643 = vst [vmem:[%s8912_s12 + $0x30] sm:$0xff] %v6689_v24  ;;  %5644 = vst [vmem:[%s8912_s12 + $0x38] sm:$0xff] %v6690_v25  ;;  %v6882_v37 = vadd.f32 %v2742_v34, %v8898_v28  ;;  %v7066_v38 = vadd.f32 %v3728_v35, %v8900_v29  ;;  %v2744_v39 = vpop.f32.mrb[10].mxu0  ;;  %v3730_v40 = vpop.f32.mrb[10].mxu1 }
 0x2a3   : > { %v4181_v42 = vmax.f32 %v6881_v32, 0.0  ;;  %v4183_v43 = vmax.f32 %v7065_v33, 0.0  ;;  %v6883_v44 = vadd.f32 %v2744_v39, %v8893_v26  ;;  %v7067_v45 = vadd.f32 %v3730_v40, %v8895_v27  ;;  %v2746_v46 = vpop.f32.mrb[11].mxu0  ;;  %v3732_v47 = vpop.f32.mrb[11].mxu1 }
 0x2a4   : > { %v4182_v48 = vmax.f32 %v6882_v37, 0.0  ;;  %v4184_v49 = vmax.f32 %v7066_v38, 0.0  ;;  %v6884_v50 = vadd.f32 %v2746_v46, %v8898_v28  ;;  %v7068_v51 = vadd.f32 %v3732_v47, %v8900_v29 }
 0x2a5   : > { %v4185_v52 = vmax.f32 %v6883_v44, 0.0  ;;  %v4187_v53 = vmax.f32 %v7067_v45, 0.0  ;;  %3009 = vmatmul.mubr.bf16.gmra.mrb[116].mxu0 %v8133_v36  ;;  %3995 = vmatmul.mubr.bf16.gmra.mrb[116].mxu1 %v8133_v36  ;;  %v8139_v36 = vld [vmem:[%s8492_s25 + $0x3e8] ss:$16 sps:$4 sm:$0xff]  }
 0x2a6   : > { %v6691_v54 = vpack.c.bf16 %v4182_v48, %v4181_v42  ;;  %v6692_v55 = vpack.c.bf16 %v4184_v49, %v4183_v43  ;;  %v4186_v56 = vmax.f32 %v6884_v50, 0.0  ;;  %v4188_v57 = vmax.f32 %v7068_v51, 0.0  ;;  %3018 = vmatprep.mubr.bf16.mxu0 %v8134_v41  ;;  %4004 = vmatprep.mubr.bf16.mxu1 %v8134_v41  ;;  %v8140_v41 = vld [vmem:[%s8492_s25 + $0x40c] ss:$16 sps:$4 sm:$0xff]  }
 0x2a8   : > { %5645 = vst [vmem:[%s8912_s12 + $0x40] sm:$0xff] %v6691_v54  ;;  %5646 = vst [vmem:[%s8912_s12 + $0x48] sm:$0xff] %v6692_v55  ;;  %v6693_v58 = vpack.c.bf16 %v4186_v56, %v4185_v52  ;;  %v6694_v59 = vpack.c.bf16 %v4188_v57, %v4187_v53  ;;  %v2750_v60 = vpop.f32.mrb[12].mxu0  ;;  %v3736_v61 = vpop.f32.mrb[12].mxu1 }
 0x2a9   : > { %v6885_v62 = vadd.f32 %v2750_v60, %v8893_v26  ;;  %v7069_v63 = vadd.f32 %v3736_v61, %v8895_v27  ;;  %v2752_v0 = vpop.f32.mrb[13].mxu0  ;;  %v3738_v1 = vpop.f32.mrb[13].mxu1 }
 0x2aa   : > { %5647 = vst [vmem:[%s8912_s12 + $0x50] sm:$0xff] %v6693_v58  ;;  %5648 = vst [vmem:[%s8912_s12 + $0x58] sm:$0xff] %v6694_v59  ;;  %v6886_v3 = vadd.f32 %v2752_v0, %v8898_v28  ;;  %v7070_v4 = vadd.f32 %v3738_v1, %v8900_v29  ;;  %v2754_v5 = vpop.f32.mrb[14].mxu0  ;;  %v3740_v6 = vpop.f32.mrb[14].mxu1 }
 0x2ab   : > { %v4189_v8 = vmax.f32 %v6885_v62, 0.0  ;;  %v4191_v9 = vmax.f32 %v7069_v63, 0.0  ;;  %v6887_v10 = vadd.f32 %v2754_v5, %v8893_v26  ;;  %v7071_v11 = vadd.f32 %v3740_v6, %v8895_v27  ;;  %v2756_v12 = vpop.f32.mrb[15].mxu0  ;;  %v3742_v13 = vpop.f32.mrb[15].mxu1 }
 0x2ac   : > { %v4190_v14 = vmax.f32 %v6886_v3, 0.0  ;;  %v4192_v15 = vmax.f32 %v7070_v4, 0.0  ;;  %v6888_v16 = vadd.f32 %v2756_v12, %v8898_v28  ;;  %v7072_v17 = vadd.f32 %v3742_v13, %v8900_v29 }
 0x2ad   : > { %v4193_v18 = vmax.f32 %v6887_v10, 0.0  ;;  %v4195_v19 = vmax.f32 %v7071_v11, 0.0  ;;  %3019 = vmatmul.mubr.bf16.gmra.mrb[120].mxu0 %v8136_v2  ;;  %4005 = vmatmul.mubr.bf16.gmra.mrb[120].mxu1 %v8136_v2  ;;  %v8142_v2 = vld [vmem:[%s8492_s25 + $0x408] ss:$16 sps:$4 sm:$0xff]  }
 0x2ae   : > { %v6695_v20 = vpack.c.bf16 %v4190_v14, %v4189_v8  ;;  %v6696_v21 = vpack.c.bf16 %v4192_v15, %v4191_v9  ;;  %v4194_v22 = vmax.f32 %v6888_v16, 0.0  ;;  %v4196_v23 = vmax.f32 %v7072_v17, 0.0  ;;  %3028 = vmatprep.mubr.bf16.mxu0 %v8137_v7  ;;  %4014 = vmatprep.mubr.bf16.mxu1 %v8137_v7  ;;  %v8143_v7 = vld [vmem:[%s8492_s25 + $0x42c] ss:$16 sps:$4 sm:$0xff]  }
 0x2b0   : > { %5649 = vst [vmem:[%s8912_s12 + $0x60] sm:$0xff] %v6695_v20  ;;  %5650 = vst [vmem:[%s8912_s12 + $0x68] sm:$0xff] %v6696_v21  ;;  %v6697_v24 = vpack.c.bf16 %v4194_v22, %v4193_v18  ;;  %v6698_v25 = vpack.c.bf16 %v4196_v23, %v4195_v19  ;;  %v2760_v30 = vpop.f32.mrb[16].mxu0  ;;  %v3746_v31 = vpop.f32.mrb[16].mxu1 }
 0x2b1   : > { %v6889_v32 = vadd.f32 %v2760_v30, %v8893_v26  ;;  %v7073_v33 = vadd.f32 %v3746_v31, %v8895_v27  ;;  %v2762_v34 = vpop.f32.mrb[17].mxu0  ;;  %v3748_v35 = vpop.f32.mrb[17].mxu1 }
 0x2b2   : > { %5651 = vst [vmem:[%s8912_s12 + $0x70] sm:$0xff] %v6697_v24  ;;  %5652 = vst [vmem:[%s8912_s12 + $0x78] sm:$0xff] %v6698_v25  ;;  %v6890_v37 = vadd.f32 %v2762_v34, %v8898_v28  ;;  %v7074_v38 = vadd.f32 %v3748_v35, %v8900_v29  ;;  %v2764_v39 = vpop.f32.mrb[18].mxu0  ;;  %v3750_v40 = vpop.f32.mrb[18].mxu1 }
 0x2b3   : > { %v4197_v42 = vmax.f32 %v6889_v32, 0.0  ;;  %v4199_v43 = vmax.f32 %v7073_v33, 0.0  ;;  %v6891_v44 = vadd.f32 %v2764_v39, %v8893_v26  ;;  %v7075_v45 = vadd.f32 %v3750_v40, %v8895_v27  ;;  %v2766_v46 = vpop.f32.mrb[19].mxu0  ;;  %v3752_v47 = vpop.f32.mrb[19].mxu1 }
 0x2b4   : > { %v4198_v48 = vmax.f32 %v6890_v37, 0.0  ;;  %v4200_v49 = vmax.f32 %v7074_v38, 0.0  ;;  %v6892_v50 = vadd.f32 %v2766_v46, %v8898_v28  ;;  %v7076_v51 = vadd.f32 %v3752_v47, %v8900_v29 }
 0x2b5   : > { %v4201_v52 = vmax.f32 %v6891_v44, 0.0  ;;  %v4203_v53 = vmax.f32 %v7075_v45, 0.0  ;;  %3029 = vmatmul.mubr.bf16.gmra.mrb[124].mxu0 %v8139_v36  ;;  %4015 = vmatmul.mubr.bf16.gmra.mrb[124].mxu1 %v8139_v36  ;;  %v8145_v36 = vld [vmem:[%s8492_s25 + $0x428] ss:$16 sps:$4 sm:$0xff]  }
 0x2b6   : > { %v6699_v54 = vpack.c.bf16 %v4198_v48, %v4197_v42  ;;  %v6700_v55 = vpack.c.bf16 %v4200_v49, %v4199_v43  ;;  %v4202_v56 = vmax.f32 %v6892_v50, 0.0  ;;  %v4204_v57 = vmax.f32 %v7076_v51, 0.0  ;;  %3038 = vmatprep.mubr.bf16.mxu0 %v8140_v41  ;;  %4024 = vmatprep.mubr.bf16.mxu1 %v8140_v41  ;;  %v8146_v41 = vld [vmem:[%s8492_s25 + $0x44c] ss:$16 sps:$4 sm:$0xff]  }
 0x2b8   : > { %5653 = vst [vmem:[%s8912_s12 + $0x80] sm:$0xff] %v6699_v54  ;;  %5654 = vst [vmem:[%s8912_s12 + $0x88] sm:$0xff] %v6700_v55  ;;  %v6701_v58 = vpack.c.bf16 %v4202_v56, %v4201_v52  ;;  %v6702_v59 = vpack.c.bf16 %v4204_v57, %v4203_v53  ;;  %v2770_v60 = vpop.f32.mrb[20].mxu0  ;;  %v3756_v61 = vpop.f32.mrb[20].mxu1 }
 0x2b9   : > { %v6893_v62 = vadd.f32 %v2770_v60, %v8893_v26  ;;  %v7077_v63 = vadd.f32 %v3756_v61, %v8895_v27  ;;  %v2772_v0 = vpop.f32.mrb[21].mxu0  ;;  %v3758_v1 = vpop.f32.mrb[21].mxu1 }
 0x2ba   : > { %5655 = vst [vmem:[%s8912_s12 + $0x90] sm:$0xff] %v6701_v58  ;;  %5656 = vst [vmem:[%s8912_s12 + $0x98] sm:$0xff] %v6702_v59  ;;  %v6894_v3 = vadd.f32 %v2772_v0, %v8898_v28  ;;  %v7078_v4 = vadd.f32 %v3758_v1, %v8900_v29  ;;  %v2774_v5 = vpop.f32.mrb[22].mxu0  ;;  %v3760_v6 = vpop.f32.mrb[22].mxu1 }
 0x2bb   : > { %v4205_v8 = vmax.f32 %v6893_v62, 0.0  ;;  %v4207_v9 = vmax.f32 %v7077_v63, 0.0  ;;  %v6895_v10 = vadd.f32 %v2774_v5, %v8893_v26  ;;  %v7079_v11 = vadd.f32 %v3760_v6, %v8895_v27  ;;  %v2776_v12 = vpop.f32.mrb[23].mxu0  ;;  %v3762_v13 = vpop.f32.mrb[23].mxu1 }
 0x2bc   : > { %v4206_v14 = vmax.f32 %v6894_v3, 0.0  ;;  %v4208_v15 = vmax.f32 %v7078_v4, 0.0  ;;  %v6896_v16 = vadd.f32 %v2776_v12, %v8898_v28  ;;  %v7080_v17 = vadd.f32 %v3762_v13, %v8900_v29 }
 0x2bd   : > { %v4209_v18 = vmax.f32 %v6895_v10, 0.0  ;;  %v4211_v19 = vmax.f32 %v7079_v11, 0.0  ;;  %3039 = vmatmul.mubr.bf16.gmra.mrb[128].mxu0 %v8142_v2  ;;  %4025 = vmatmul.mubr.bf16.gmra.mrb[128].mxu1 %v8142_v2  ;;  %v8148_v2 = vld [vmem:[%s8492_s25 + $0x448] ss:$16 sps:$4 sm:$0xff]  }
 0x2be   : > { %v6703_v20 = vpack.c.bf16 %v4206_v14, %v4205_v8  ;;  %v6704_v21 = vpack.c.bf16 %v4208_v15, %v4207_v9  ;;  %v4210_v22 = vmax.f32 %v6896_v16, 0.0  ;;  %v4212_v23 = vmax.f32 %v7080_v17, 0.0  ;;  %3048 = vmatprep.mubr.bf16.mxu0 %v8143_v7  ;;  %4034 = vmatprep.mubr.bf16.mxu1 %v8143_v7  ;;  %v8149_v7 = vld [vmem:[%s8492_s25 + $0x46c] ss:$16 sps:$4 sm:$0xff]  }
 0x2c0   : > { %5657 = vst [vmem:[%s8912_s12 + $0xa0] sm:$0xff] %v6703_v20  ;;  %5658 = vst [vmem:[%s8912_s12 + $0xa8] sm:$0xff] %v6704_v21  ;;  %v6705_v24 = vpack.c.bf16 %v4210_v22, %v4209_v18  ;;  %v6706_v25 = vpack.c.bf16 %v4212_v23, %v4211_v19  ;;  %v2780_v30 = vpop.f32.mrb[24].mxu0  ;;  %v3766_v31 = vpop.f32.mrb[24].mxu1 }
 0x2c1   : > { %v6897_v32 = vadd.f32 %v2780_v30, %v8893_v26  ;;  %v7081_v33 = vadd.f32 %v3766_v31, %v8895_v27  ;;  %v2782_v34 = vpop.f32.mrb[25].mxu0  ;;  %v3768_v35 = vpop.f32.mrb[25].mxu1 }
 0x2c2   : > { %5659 = vst [vmem:[%s8912_s12 + $0xb0] sm:$0xff] %v6705_v24  ;;  %5660 = vst [vmem:[%s8912_s12 + $0xb8] sm:$0xff] %v6706_v25  ;;  %v6898_v37 = vadd.f32 %v2782_v34, %v8898_v28  ;;  %v7082_v38 = vadd.f32 %v3768_v35, %v8900_v29  ;;  %v2784_v39 = vpop.f32.mrb[26].mxu0  ;;  %v3770_v40 = vpop.f32.mrb[26].mxu1 }
 0x2c3   : > { %v4213_v42 = vmax.f32 %v6897_v32, 0.0  ;;  %v4215_v43 = vmax.f32 %v7081_v33, 0.0  ;;  %v6899_v44 = vadd.f32 %v2784_v39, %v8893_v26  ;;  %v7083_v45 = vadd.f32 %v3770_v40, %v8895_v27  ;;  %v2786_v46 = vpop.f32.mrb[27].mxu0  ;;  %v3772_v47 = vpop.f32.mrb[27].mxu1 }
 0x2c4   : > { %v4214_v48 = vmax.f32 %v6898_v37, 0.0  ;;  %v4216_v49 = vmax.f32 %v7082_v38, 0.0  ;;  %v6900_v50 = vadd.f32 %v2786_v46, %v8898_v28  ;;  %v7084_v51 = vadd.f32 %v3772_v47, %v8900_v29 }
 0x2c5   : > { %v4217_v52 = vmax.f32 %v6899_v44, 0.0  ;;  %v4219_v53 = vmax.f32 %v7083_v45, 0.0  ;;  %3049 = vmatmul.mubr.bf16.gmra.mrb[132].mxu0 %v8145_v36  ;;  %4035 = vmatmul.mubr.bf16.gmra.mrb[132].mxu1 %v8145_v36  ;;  %v8151_v36 = vld [vmem:[%s8492_s25 + $0x468] ss:$16 sps:$4 sm:$0xff]  }
 0x2c6   : > { %v6707_v54 = vpack.c.bf16 %v4214_v48, %v4213_v42  ;;  %v6708_v55 = vpack.c.bf16 %v4216_v49, %v4215_v43  ;;  %v4218_v56 = vmax.f32 %v6900_v50, 0.0  ;;  %v4220_v57 = vmax.f32 %v7084_v51, 0.0  ;;  %3058 = vmatprep.mubr.bf16.mxu0 %v8146_v41  ;;  %4044 = vmatprep.mubr.bf16.mxu1 %v8146_v41  ;;  %v8152_v41 = vld [vmem:[%s8492_s25 + $0x48c] ss:$16 sps:$4 sm:$0xff]  }
 0x2c8   : > { %5661 = vst [vmem:[%s8912_s12 + $0xc0] sm:$0xff] %v6707_v54  ;;  %5662 = vst [vmem:[%s8912_s12 + $0xc8] sm:$0xff] %v6708_v55  ;;  %v6709_v58 = vpack.c.bf16 %v4218_v56, %v4217_v52  ;;  %v6710_v59 = vpack.c.bf16 %v4220_v57, %v4219_v53  ;;  %v2790_v60 = vpop.f32.mrb[28].mxu0  ;;  %v3776_v61 = vpop.f32.mrb[28].mxu1 }
 0x2c9   : > { %v6901_v62 = vadd.f32 %v2790_v60, %v8893_v26  ;;  %v7085_v63 = vadd.f32 %v3776_v61, %v8895_v27  ;;  %v2792_v0 = vpop.f32.mrb[29].mxu0  ;;  %v3778_v1 = vpop.f32.mrb[29].mxu1 }
 0x2ca   : > { %5663 = vst [vmem:[%s8912_s12 + $0xd0] sm:$0xff] %v6709_v58  ;;  %5664 = vst [vmem:[%s8912_s12 + $0xd8] sm:$0xff] %v6710_v59  ;;  %v6902_v3 = vadd.f32 %v2792_v0, %v8898_v28  ;;  %v7086_v4 = vadd.f32 %v3778_v1, %v8900_v29  ;;  %v2794_v5 = vpop.f32.mrb[30].mxu0  ;;  %v3780_v6 = vpop.f32.mrb[30].mxu1 }
 0x2cb   : > { %v4221_v8 = vmax.f32 %v6901_v62, 0.0  ;;  %v4223_v9 = vmax.f32 %v7085_v63, 0.0  ;;  %v6903_v10 = vadd.f32 %v2794_v5, %v8893_v26  ;;  %v7087_v11 = vadd.f32 %v3780_v6, %v8895_v27  ;;  %v2796_v12 = vpop.f32.mrb[31].mxu0  ;;  %v3782_v13 = vpop.f32.mrb[31].mxu1 }
 0x2cc   : > { %v4222_v14 = vmax.f32 %v6902_v3, 0.0  ;;  %v4224_v15 = vmax.f32 %v7086_v4, 0.0  ;;  %v6904_v16 = vadd.f32 %v2796_v12, %v8898_v28  ;;  %v7088_v17 = vadd.f32 %v3782_v13, %v8900_v29 }
 0x2cd   : > { %v4225_v18 = vmax.f32 %v6903_v10, 0.0  ;;  %v4227_v19 = vmax.f32 %v7087_v11, 0.0  ;;  %3059 = vmatmul.mubr.bf16.gmra.mrb[136].mxu0 %v8148_v2  ;;  %4045 = vmatmul.mubr.bf16.gmra.mrb[136].mxu1 %v8148_v2  ;;  %v8154_v2 = vld [vmem:[%s8492_s25 + $0x488] ss:$16 sps:$4 sm:$0xff]  }
 0x2ce   : > { %v6711_v20 = vpack.c.bf16 %v4222_v14, %v4221_v8  ;;  %v6712_v21 = vpack.c.bf16 %v4224_v15, %v4223_v9  ;;  %v4226_v22 = vmax.f32 %v6904_v16, 0.0  ;;  %v4228_v23 = vmax.f32 %v7088_v17, 0.0  ;;  %3068 = vmatprep.mubr.bf16.mxu0 %v8149_v7  ;;  %4054 = vmatprep.mubr.bf16.mxu1 %v8149_v7  ;;  %v8155_v7 = vld [vmem:[%s8492_s25 + $0x4ac] ss:$16 sps:$4 sm:$0xff]  }
 0x2d0   : > { %5665 = vst [vmem:[%s8912_s12 + $0xe0] sm:$0xff] %v6711_v20  ;;  %5666 = vst [vmem:[%s8912_s12 + $0xe8] sm:$0xff] %v6712_v21  ;;  %v6713_v24 = vpack.c.bf16 %v4226_v22, %v4225_v18  ;;  %v6714_v25 = vpack.c.bf16 %v4228_v23, %v4227_v19  ;;  %v2800_v30 = vpop.f32.mrb[32].mxu0  ;;  %v3786_v31 = vpop.f32.mrb[32].mxu1 }
 0x2d1   : > { %v6905_v32 = vadd.f32 %v2800_v30, %v8893_v26  ;;  %v7089_v33 = vadd.f32 %v3786_v31, %v8895_v27  ;;  %v2802_v34 = vpop.f32.mrb[33].mxu0  ;;  %v3788_v35 = vpop.f32.mrb[33].mxu1 }
 0x2d2   : > { %5667 = vst [vmem:[%s8912_s12 + $0xf0] sm:$0xff] %v6713_v24  ;;  %5668 = vst [vmem:[%s8912_s12 + $0xf8] sm:$0xff] %v6714_v25  ;;  %v6906_v37 = vadd.f32 %v2802_v34, %v8898_v28  ;;  %v7090_v38 = vadd.f32 %v3788_v35, %v8900_v29  ;;  %v2804_v39 = vpop.f32.mrb[34].mxu0  ;;  %v3790_v40 = vpop.f32.mrb[34].mxu1 }
 0x2d3   : > { %v4229_v42 = vmax.f32 %v6905_v32, 0.0  ;;  %v4231_v43 = vmax.f32 %v7089_v33, 0.0  ;;  %v6907_v44 = vadd.f32 %v2804_v39, %v8893_v26  ;;  %v7091_v45 = vadd.f32 %v3790_v40, %v8895_v27  ;;  %v2806_v46 = vpop.f32.mrb[35].mxu0  ;;  %v3792_v47 = vpop.f32.mrb[35].mxu1 }
 0x2d4   : > { %v4230_v48 = vmax.f32 %v6906_v37, 0.0  ;;  %v4232_v49 = vmax.f32 %v7090_v38, 0.0  ;;  %v6908_v50 = vadd.f32 %v2806_v46, %v8898_v28  ;;  %v7092_v51 = vadd.f32 %v3792_v47, %v8900_v29 }
 0x2d5   : > { %v4233_v52 = vmax.f32 %v6907_v44, 0.0  ;;  %v4235_v53 = vmax.f32 %v7091_v45, 0.0  ;;  %3069 = vmatmul.mubr.bf16.gmra.mrb[140].mxu0 %v8151_v36  ;;  %4055 = vmatmul.mubr.bf16.gmra.mrb[140].mxu1 %v8151_v36  ;;  %v8157_v36 = vld [vmem:[%s8492_s25 + $0x4a8] ss:$16 sps:$4 sm:$0xff]  }
 0x2d6   : > { %v6715_v54 = vpack.c.bf16 %v4230_v48, %v4229_v42  ;;  %v6716_v55 = vpack.c.bf16 %v4232_v49, %v4231_v43  ;;  %v4234_v56 = vmax.f32 %v6908_v50, 0.0  ;;  %v4236_v57 = vmax.f32 %v7092_v51, 0.0  ;;  %3078 = vmatprep.mubr.bf16.mxu0 %v8152_v41  ;;  %4064 = vmatprep.mubr.bf16.mxu1 %v8152_v41  ;;  %v8158_v41 = vld [vmem:[%s8492_s25 + $0x4cc] ss:$16 sps:$4 sm:$0xff]  }
 0x2d8   : > { %5669 = vst [vmem:[%s8912_s12 + $0x100] sm:$0xff] %v6715_v54  ;;  %5670 = vst [vmem:[%s8912_s12 + $0x108] sm:$0xff] %v6716_v55  ;;  %v6717_v58 = vpack.c.bf16 %v4234_v56, %v4233_v52  ;;  %v6718_v59 = vpack.c.bf16 %v4236_v57, %v4235_v53  ;;  %v2810_v60 = vpop.f32.mrb[36].mxu0  ;;  %v3796_v61 = vpop.f32.mrb[36].mxu1 }
 0x2d9   : > { %v6909_v62 = vadd.f32 %v2810_v60, %v8893_v26  ;;  %v7093_v63 = vadd.f32 %v3796_v61, %v8895_v27  ;;  %v2812_v0 = vpop.f32.mrb[37].mxu0  ;;  %v3798_v1 = vpop.f32.mrb[37].mxu1 }
 0x2da   : > { %5671 = vst [vmem:[%s8912_s12 + $0x110] sm:$0xff] %v6717_v58  ;;  %5672 = vst [vmem:[%s8912_s12 + $0x118] sm:$0xff] %v6718_v59  ;;  %v6910_v3 = vadd.f32 %v2812_v0, %v8898_v28  ;;  %v7094_v4 = vadd.f32 %v3798_v1, %v8900_v29  ;;  %v2814_v5 = vpop.f32.mrb[38].mxu0  ;;  %v3800_v6 = vpop.f32.mrb[38].mxu1 }
 0x2db   : > { %v4237_v8 = vmax.f32 %v6909_v62, 0.0  ;;  %v4239_v9 = vmax.f32 %v7093_v63, 0.0  ;;  %v6911_v10 = vadd.f32 %v2814_v5, %v8893_v26  ;;  %v7095_v11 = vadd.f32 %v3800_v6, %v8895_v27  ;;  %v2816_v12 = vpop.f32.mrb[39].mxu0  ;;  %v3802_v13 = vpop.f32.mrb[39].mxu1 }
 0x2dc   : > { %v4238_v14 = vmax.f32 %v6910_v3, 0.0  ;;  %v4240_v15 = vmax.f32 %v7094_v4, 0.0  ;;  %v6912_v16 = vadd.f32 %v2816_v12, %v8898_v28  ;;  %v7096_v17 = vadd.f32 %v3802_v13, %v8900_v29 }
 0x2dd   : > { %v4241_v18 = vmax.f32 %v6911_v10, 0.0  ;;  %v4243_v19 = vmax.f32 %v7095_v11, 0.0  ;;  %3079 = vmatmul.mubr.bf16.gmra.mrb[144].mxu0 %v8154_v2  ;;  %4065 = vmatmul.mubr.bf16.gmra.mrb[144].mxu1 %v8154_v2  ;;  %v8160_v2 = vld [vmem:[%s8492_s25 + $0x4c8] ss:$16 sps:$4 sm:$0xff]  }
 0x2de   : > { %v6719_v20 = vpack.c.bf16 %v4238_v14, %v4237_v8  ;;  %v6720_v21 = vpack.c.bf16 %v4240_v15, %v4239_v9  ;;  %v4242_v22 = vmax.f32 %v6912_v16, 0.0  ;;  %v4244_v23 = vmax.f32 %v7096_v17, 0.0  ;;  %3088 = vmatprep.mubr.bf16.mxu0 %v8155_v7  ;;  %4074 = vmatprep.mubr.bf16.mxu1 %v8155_v7  ;;  %v8161_v7 = vld [vmem:[%s8492_s25 + $0x4ec] ss:$16 sps:$4 sm:$0xff]  }
 0x2e0   : > { %5673 = vst [vmem:[%s8912_s12 + $0x120] sm:$0xff] %v6719_v20  ;;  %5674 = vst [vmem:[%s8912_s12 + $0x128] sm:$0xff] %v6720_v21  ;;  %v6721_v24 = vpack.c.bf16 %v4242_v22, %v4241_v18  ;;  %v6722_v25 = vpack.c.bf16 %v4244_v23, %v4243_v19  ;;  %v2820_v30 = vpop.f32.mrb[40].mxu0  ;;  %v3806_v31 = vpop.f32.mrb[40].mxu1 }
 0x2e1   : > { %v6913_v32 = vadd.f32 %v2820_v30, %v8893_v26  ;;  %v7097_v33 = vadd.f32 %v3806_v31, %v8895_v27  ;;  %v2822_v34 = vpop.f32.mrb[41].mxu0  ;;  %v3808_v35 = vpop.f32.mrb[41].mxu1 }
 0x2e2   : > { %5675 = vst [vmem:[%s8912_s12 + $0x130] sm:$0xff] %v6721_v24  ;;  %5676 = vst [vmem:[%s8912_s12 + $0x138] sm:$0xff] %v6722_v25  ;;  %v6914_v37 = vadd.f32 %v2822_v34, %v8898_v28  ;;  %v7098_v38 = vadd.f32 %v3808_v35, %v8900_v29  ;;  %v2824_v39 = vpop.f32.mrb[42].mxu0  ;;  %v3810_v40 = vpop.f32.mrb[42].mxu1 }
 0x2e3   : > { %v4245_v42 = vmax.f32 %v6913_v32, 0.0  ;;  %v4247_v43 = vmax.f32 %v7097_v33, 0.0  ;;  %v6915_v44 = vadd.f32 %v2824_v39, %v8893_v26  ;;  %v7099_v45 = vadd.f32 %v3810_v40, %v8895_v27  ;;  %v2826_v46 = vpop.f32.mrb[43].mxu0  ;;  %v3812_v47 = vpop.f32.mrb[43].mxu1 }
 0x2e4   : > { %v4246_v48 = vmax.f32 %v6914_v37, 0.0  ;;  %v4248_v49 = vmax.f32 %v7098_v38, 0.0  ;;  %v6916_v50 = vadd.f32 %v2826_v46, %v8898_v28  ;;  %v7100_v51 = vadd.f32 %v3812_v47, %v8900_v29 }
 0x2e5   : > { %v4249_v52 = vmax.f32 %v6915_v44, 0.0  ;;  %v4251_v53 = vmax.f32 %v7099_v45, 0.0  ;;  %3089 = vmatmul.mubr.bf16.gmra.mrb[148].mxu0 %v8157_v36  ;;  %4075 = vmatmul.mubr.bf16.gmra.mrb[148].mxu1 %v8157_v36  ;;  %v8163_v36 = vld [vmem:[%s8492_s25 + $0x4e8] ss:$16 sps:$4 sm:$0xff]  }
 0x2e6   : > { %v6723_v54 = vpack.c.bf16 %v4246_v48, %v4245_v42  ;;  %v6724_v55 = vpack.c.bf16 %v4248_v49, %v4247_v43  ;;  %v4250_v56 = vmax.f32 %v6916_v50, 0.0  ;;  %v4252_v57 = vmax.f32 %v7100_v51, 0.0  ;;  %3098 = vmatprep.mubr.bf16.mxu0 %v8158_v41  ;;  %4084 = vmatprep.mubr.bf16.mxu1 %v8158_v41  ;;  %v8164_v41 = vld [vmem:[%s8492_s25 + $0x50c] ss:$16 sps:$4 sm:$0xff]  }
 0x2e8   : > { %5677 = vst [vmem:[%s8912_s12 + $0x140] sm:$0xff] %v6723_v54  ;;  %5678 = vst [vmem:[%s8912_s12 + $0x148] sm:$0xff] %v6724_v55  ;;  %v6725_v58 = vpack.c.bf16 %v4250_v56, %v4249_v52  ;;  %v6726_v59 = vpack.c.bf16 %v4252_v57, %v4251_v53  ;;  %v2830_v60 = vpop.f32.mrb[44].mxu0  ;;  %v3816_v61 = vpop.f32.mrb[44].mxu1 }
 0x2e9   : > { %v6917_v62 = vadd.f32 %v2830_v60, %v8893_v26  ;;  %v7101_v63 = vadd.f32 %v3816_v61, %v8895_v27  ;;  %v2832_v0 = vpop.f32.mrb[45].mxu0  ;;  %v3818_v1 = vpop.f32.mrb[45].mxu1 }
 0x2ea   : > { %5679 = vst [vmem:[%s8912_s12 + $0x150] sm:$0xff] %v6725_v58  ;;  %5680 = vst [vmem:[%s8912_s12 + $0x158] sm:$0xff] %v6726_v59  ;;  %v6918_v3 = vadd.f32 %v2832_v0, %v8898_v28  ;;  %v7102_v4 = vadd.f32 %v3818_v1, %v8900_v29  ;;  %v2834_v5 = vpop.f32.mrb[46].mxu0  ;;  %v3820_v6 = vpop.f32.mrb[46].mxu1 }
 0x2eb   : > { %v4253_v8 = vmax.f32 %v6917_v62, 0.0  ;;  %v4255_v9 = vmax.f32 %v7101_v63, 0.0  ;;  %v6919_v10 = vadd.f32 %v2834_v5, %v8893_v26  ;;  %v7103_v11 = vadd.f32 %v3820_v6, %v8895_v27  ;;  %v2836_v12 = vpop.f32.mrb[47].mxu0  ;;  %v3822_v13 = vpop.f32.mrb[47].mxu1 }
 0x2ec   : > { %v4254_v14 = vmax.f32 %v6918_v3, 0.0  ;;  %v4256_v15 = vmax.f32 %v7102_v4, 0.0  ;;  %v6920_v16 = vadd.f32 %v2836_v12, %v8898_v28  ;;  %v7104_v17 = vadd.f32 %v3822_v13, %v8900_v29 }
 0x2ed   : > { %v4257_v18 = vmax.f32 %v6919_v10, 0.0  ;;  %v4259_v19 = vmax.f32 %v7103_v11, 0.0  ;;  %3099 = vmatmul.mubr.bf16.gmra.mrb[152].mxu0 %v8160_v2  ;;  %4085 = vmatmul.mubr.bf16.gmra.mrb[152].mxu1 %v8160_v2  ;;  %v8166_v2 = vld [vmem:[%s8492_s25 + $0x508] ss:$16 sps:$4 sm:$0xff]  }
 0x2ee   : > { %v6727_v20 = vpack.c.bf16 %v4254_v14, %v4253_v8  ;;  %v6728_v21 = vpack.c.bf16 %v4256_v15, %v4255_v9  ;;  %v4258_v22 = vmax.f32 %v6920_v16, 0.0  ;;  %v4260_v23 = vmax.f32 %v7104_v17, 0.0  ;;  %3108 = vmatprep.mubr.bf16.mxu0 %v8161_v7  ;;  %4094 = vmatprep.mubr.bf16.mxu1 %v8161_v7  ;;  %v8167_v7 = vld [vmem:[%s8492_s25 + $0x52c] ss:$16 sps:$4 sm:$0xff]  }
 0x2f0   : > { %5681 = vst [vmem:[%s8912_s12 + $0x160] sm:$0xff] %v6727_v20  ;;  %5682 = vst [vmem:[%s8912_s12 + $0x168] sm:$0xff] %v6728_v21  ;;  %v6729_v24 = vpack.c.bf16 %v4258_v22, %v4257_v18  ;;  %v6730_v25 = vpack.c.bf16 %v4260_v23, %v4259_v19  ;;  %v2840_v30 = vpop.f32.mrb[48].mxu0  ;;  %v3826_v31 = vpop.f32.mrb[48].mxu1 }
 0x2f1   : > { %v6921_v32 = vadd.f32 %v2840_v30, %v8893_v26  ;;  %v7105_v33 = vadd.f32 %v3826_v31, %v8895_v27  ;;  %v2842_v34 = vpop.f32.mrb[49].mxu0  ;;  %v3828_v35 = vpop.f32.mrb[49].mxu1 }
 0x2f2   : > { %5683 = vst [vmem:[%s8912_s12 + $0x170] sm:$0xff] %v6729_v24  ;;  %5684 = vst [vmem:[%s8912_s12 + $0x178] sm:$0xff] %v6730_v25  ;;  %v6922_v37 = vadd.f32 %v2842_v34, %v8898_v28  ;;  %v7106_v38 = vadd.f32 %v3828_v35, %v8900_v29  ;;  %v2844_v39 = vpop.f32.mrb[50].mxu0  ;;  %v3830_v40 = vpop.f32.mrb[50].mxu1 }
 0x2f3   : > { %v4261_v42 = vmax.f32 %v6921_v32, 0.0  ;;  %v4263_v43 = vmax.f32 %v7105_v33, 0.0  ;;  %v6923_v44 = vadd.f32 %v2844_v39, %v8893_v26  ;;  %v7107_v45 = vadd.f32 %v3830_v40, %v8895_v27  ;;  %v2846_v46 = vpop.f32.mrb[51].mxu0  ;;  %v3832_v47 = vpop.f32.mrb[51].mxu1 }
 0x2f4   : > { %v4262_v48 = vmax.f32 %v6922_v37, 0.0  ;;  %v4264_v49 = vmax.f32 %v7106_v38, 0.0  ;;  %v6924_v50 = vadd.f32 %v2846_v46, %v8898_v28  ;;  %v7108_v51 = vadd.f32 %v3832_v47, %v8900_v29 }
 0x2f5   : > { %v4265_v52 = vmax.f32 %v6923_v44, 0.0  ;;  %v4267_v53 = vmax.f32 %v7107_v45, 0.0  ;;  %3109 = vmatmul.mubr.bf16.gmra.mrb[156].mxu0 %v8163_v36  ;;  %4095 = vmatmul.mubr.bf16.gmra.mrb[156].mxu1 %v8163_v36  ;;  %v8169_v36 = vld [vmem:[%s8492_s25 + $0x528] ss:$16 sps:$4 sm:$0xff]  }
 0x2f6   : > { %v6731_v54 = vpack.c.bf16 %v4262_v48, %v4261_v42  ;;  %v6732_v55 = vpack.c.bf16 %v4264_v49, %v4263_v43  ;;  %v4266_v56 = vmax.f32 %v6924_v50, 0.0  ;;  %v4268_v57 = vmax.f32 %v7108_v51, 0.0  ;;  %3118 = vmatprep.mubr.bf16.mxu0 %v8164_v41  ;;  %4104 = vmatprep.mubr.bf16.mxu1 %v8164_v41  ;;  %v8170_v41 = vld [vmem:[%s8492_s25 + $0x54c] ss:$16 sps:$4 sm:$0xff]  }
 0x2f8   : > { %5685 = vst [vmem:[%s8912_s12 + $0x180] sm:$0xff] %v6731_v54  ;;  %5686 = vst [vmem:[%s8912_s12 + $0x188] sm:$0xff] %v6732_v55  ;;  %v6733_v58 = vpack.c.bf16 %v4266_v56, %v4265_v52  ;;  %v6734_v59 = vpack.c.bf16 %v4268_v57, %v4267_v53  ;;  %v2850_v60 = vpop.f32.mrb[52].mxu0  ;;  %v3836_v61 = vpop.f32.mrb[52].mxu1 }
 0x2f9   : > { %v6925_v62 = vadd.f32 %v2850_v60, %v8893_v26  ;;  %v7109_v63 = vadd.f32 %v3836_v61, %v8895_v27  ;;  %v2852_v0 = vpop.f32.mrb[53].mxu0  ;;  %v3838_v1 = vpop.f32.mrb[53].mxu1 }
 0x2fa   : > { %5687 = vst [vmem:[%s8912_s12 + $0x190] sm:$0xff] %v6733_v58  ;;  %5688 = vst [vmem:[%s8912_s12 + $0x198] sm:$0xff] %v6734_v59  ;;  %v6926_v3 = vadd.f32 %v2852_v0, %v8898_v28  ;;  %v7110_v4 = vadd.f32 %v3838_v1, %v8900_v29  ;;  %v2854_v5 = vpop.f32.mrb[54].mxu0  ;;  %v3840_v6 = vpop.f32.mrb[54].mxu1 }
 0x2fb   : > { %v4269_v8 = vmax.f32 %v6925_v62, 0.0  ;;  %v4271_v9 = vmax.f32 %v7109_v63, 0.0  ;;  %v6927_v10 = vadd.f32 %v2854_v5, %v8893_v26  ;;  %v7111_v11 = vadd.f32 %v3840_v6, %v8895_v27  ;;  %v2856_v12 = vpop.f32.mrb[55].mxu0  ;;  %v3842_v13 = vpop.f32.mrb[55].mxu1 }
 0x2fc   : > { %v4270_v14 = vmax.f32 %v6926_v3, 0.0  ;;  %v4272_v15 = vmax.f32 %v7110_v4, 0.0  ;;  %v6928_v16 = vadd.f32 %v2856_v12, %v8898_v28  ;;  %v7112_v17 = vadd.f32 %v3842_v13, %v8900_v29 }
 0x2fd   : > { %v4273_v18 = vmax.f32 %v6927_v10, 0.0  ;;  %v4275_v19 = vmax.f32 %v7111_v11, 0.0  ;;  %3119 = vmatmul.mubr.bf16.gmra.mrb[160].mxu0 %v8166_v2  ;;  %4105 = vmatmul.mubr.bf16.gmra.mrb[160].mxu1 %v8166_v2  ;;  %v8172_v2 = vld [vmem:[%s8492_s25 + $0x548] ss:$16 sps:$4 sm:$0xff]  }
 0x2fe   : > { %v6735_v20 = vpack.c.bf16 %v4270_v14, %v4269_v8  ;;  %v6736_v21 = vpack.c.bf16 %v4272_v15, %v4271_v9  ;;  %v4274_v22 = vmax.f32 %v6928_v16, 0.0  ;;  %v4276_v23 = vmax.f32 %v7112_v17, 0.0  ;;  %3128 = vmatprep.mubr.bf16.mxu0 %v8167_v7  ;;  %4114 = vmatprep.mubr.bf16.mxu1 %v8167_v7  ;;  %v8173_v7 = vld [vmem:[%s8492_s25 + $0x56c] ss:$16 sps:$4 sm:$0xff]  }
 0x300   : > { %5689 = vst [vmem:[%s8912_s12 + $0x1a0] sm:$0xff] %v6735_v20  ;;  %5690 = vst [vmem:[%s8912_s12 + $0x1a8] sm:$0xff] %v6736_v21  ;;  %v6737_v24 = vpack.c.bf16 %v4274_v22, %v4273_v18  ;;  %v6738_v25 = vpack.c.bf16 %v4276_v23, %v4275_v19  ;;  %v2860_v30 = vpop.f32.mrb[56].mxu0  ;;  %v3846_v31 = vpop.f32.mrb[56].mxu1 }
 0x301   : > { %v6929_v32 = vadd.f32 %v2860_v30, %v8893_v26  ;;  %v7113_v33 = vadd.f32 %v3846_v31, %v8895_v27  ;;  %v2862_v34 = vpop.f32.mrb[57].mxu0  ;;  %v3848_v35 = vpop.f32.mrb[57].mxu1 }
 0x302   : > { %5691 = vst [vmem:[%s8912_s12 + $0x1b0] sm:$0xff] %v6737_v24  ;;  %5692 = vst [vmem:[%s8912_s12 + $0x1b8] sm:$0xff] %v6738_v25  ;;  %v6930_v37 = vadd.f32 %v2862_v34, %v8898_v28  ;;  %v7114_v38 = vadd.f32 %v3848_v35, %v8900_v29  ;;  %v2864_v39 = vpop.f32.mrb[58].mxu0  ;;  %v3850_v40 = vpop.f32.mrb[58].mxu1 }
 0x303   : > { %v4277_v42 = vmax.f32 %v6929_v32, 0.0  ;;  %v4279_v43 = vmax.f32 %v7113_v33, 0.0  ;;  %v6931_v44 = vadd.f32 %v2864_v39, %v8893_v26  ;;  %v7115_v45 = vadd.f32 %v3850_v40, %v8895_v27  ;;  %v2866_v46 = vpop.f32.mrb[59].mxu0  ;;  %v3852_v47 = vpop.f32.mrb[59].mxu1 }
 0x304   : > { %v4278_v48 = vmax.f32 %v6930_v37, 0.0  ;;  %v4280_v49 = vmax.f32 %v7114_v38, 0.0  ;;  %v6932_v50 = vadd.f32 %v2866_v46, %v8898_v28  ;;  %v7116_v51 = vadd.f32 %v3852_v47, %v8900_v29 }
 0x305   : > { %v4281_v52 = vmax.f32 %v6931_v44, 0.0  ;;  %v4283_v53 = vmax.f32 %v7115_v45, 0.0  ;;  %3129 = vmatmul.mubr.bf16.gmra.mrb[164].mxu0 %v8169_v36  ;;  %4115 = vmatmul.mubr.bf16.gmra.mrb[164].mxu1 %v8169_v36  ;;  %v8175_v36 = vld [vmem:[%s8492_s25 + $0x568] ss:$16 sps:$4 sm:$0xff]  }
 0x306   : > { %v6739_v54 = vpack.c.bf16 %v4278_v48, %v4277_v42  ;;  %v6740_v55 = vpack.c.bf16 %v4280_v49, %v4279_v43  ;;  %v4282_v56 = vmax.f32 %v6932_v50, 0.0  ;;  %v4284_v57 = vmax.f32 %v7116_v51, 0.0  ;;  %3138 = vmatprep.mubr.bf16.mxu0 %v8170_v41  ;;  %4124 = vmatprep.mubr.bf16.mxu1 %v8170_v41  ;;  %v8176_v41 = vld [vmem:[%s8492_s25 + $0x58c] ss:$16 sps:$4 sm:$0xff]  }
 0x308   : > { %5693 = vst [vmem:[%s8912_s12 + $0x1c0] sm:$0xff] %v6739_v54  ;;  %5694 = vst [vmem:[%s8912_s12 + $0x1c8] sm:$0xff] %v6740_v55  ;;  %v6741_v58 = vpack.c.bf16 %v4282_v56, %v4281_v52  ;;  %v6742_v59 = vpack.c.bf16 %v4284_v57, %v4283_v53  ;;  %v2870_v60 = vpop.f32.mrb[60].mxu0  ;;  %v3856_v61 = vpop.f32.mrb[60].mxu1 }
 0x309   : > { %v6933_v62 = vadd.f32 %v2870_v60, %v8893_v26  ;;  %v7117_v63 = vadd.f32 %v3856_v61, %v8895_v27  ;;  %v2872_v0 = vpop.f32.mrb[61].mxu0  ;;  %v3858_v1 = vpop.f32.mrb[61].mxu1 }
 0x30a   : > { %5695 = vst [vmem:[%s8912_s12 + $0x1d0] sm:$0xff] %v6741_v58  ;;  %5696 = vst [vmem:[%s8912_s12 + $0x1d8] sm:$0xff] %v6742_v59  ;;  %v6934_v3 = vadd.f32 %v2872_v0, %v8898_v28  ;;  %v7118_v4 = vadd.f32 %v3858_v1, %v8900_v29  ;;  %v2874_v5 = vpop.f32.mrb[62].mxu0  ;;  %v3860_v6 = vpop.f32.mrb[62].mxu1 }
 0x30b   : > { %v4285_v8 = vmax.f32 %v6933_v62, 0.0  ;;  %v4287_v9 = vmax.f32 %v7117_v63, 0.0  ;;  %v6935_v10 = vadd.f32 %v2874_v5, %v8893_v26  ;;  %v7119_v11 = vadd.f32 %v3860_v6, %v8895_v27  ;;  %v2876_v12 = vpop.f32.mrb[63].mxu0  ;;  %v3862_v13 = vpop.f32.mrb[63].mxu1 }
 0x30c   : > { %v4286_v14 = vmax.f32 %v6934_v3, 0.0  ;;  %v4288_v15 = vmax.f32 %v7118_v4, 0.0  ;;  %v6936_v16 = vadd.f32 %v2876_v12, %v8898_v28  ;;  %v7120_v17 = vadd.f32 %v3862_v13, %v8900_v29 }
 0x30d   : > { %v4289_v18 = vmax.f32 %v6935_v10, 0.0  ;;  %v4291_v19 = vmax.f32 %v7119_v11, 0.0  ;;  %3139 = vmatmul.mubr.bf16.gmra.mrb[168].mxu0 %v8172_v2  ;;  %4125 = vmatmul.mubr.bf16.gmra.mrb[168].mxu1 %v8172_v2  ;;  %v8178_v2 = vld [vmem:[%s8492_s25 + $0x588] ss:$16 sps:$4 sm:$0xff]  }
 0x30e   : > { %v6743_v20 = vpack.c.bf16 %v4286_v14, %v4285_v8  ;;  %v6744_v21 = vpack.c.bf16 %v4288_v15, %v4287_v9  ;;  %v4290_v22 = vmax.f32 %v6936_v16, 0.0  ;;  %v4292_v23 = vmax.f32 %v7120_v17, 0.0  ;;  %3148 = vmatprep.mubr.bf16.mxu0 %v8173_v7  ;;  %4134 = vmatprep.mubr.bf16.mxu1 %v8173_v7  ;;  %v8179_v7 = vld [vmem:[%s8492_s25 + $0x5ac] ss:$16 sps:$4 sm:$0xff]  }
 0x310   : > { %5697 = vst [vmem:[%s8912_s12 + $0x1e0] sm:$0xff] %v6743_v20  ;;  %5698 = vst [vmem:[%s8912_s12 + $0x1e8] sm:$0xff] %v6744_v21  ;;  %v6745_v24 = vpack.c.bf16 %v4290_v22, %v4289_v18  ;;  %v6746_v25 = vpack.c.bf16 %v4292_v23, %v4291_v19  ;;  %v2880_v30 = vpop.f32.mrb[64].mxu0  ;;  %v3866_v31 = vpop.f32.mrb[64].mxu1 }
 0x311   : > { %v6937_v32 = vadd.f32 %v2880_v30, %v8893_v26  ;;  %v7121_v33 = vadd.f32 %v3866_v31, %v8895_v27  ;;  %v2882_v34 = vpop.f32.mrb[65].mxu0  ;;  %v3868_v35 = vpop.f32.mrb[65].mxu1 }
 0x312   : > { %5699 = vst [vmem:[%s8912_s12 + $0x1f0] sm:$0xff] %v6745_v24  ;;  %5700 = vst [vmem:[%s8912_s12 + $0x1f8] sm:$0xff] %v6746_v25  ;;  %v6938_v37 = vadd.f32 %v2882_v34, %v8898_v28  ;;  %v7122_v38 = vadd.f32 %v3868_v35, %v8900_v29  ;;  %v2884_v39 = vpop.f32.mrb[66].mxu0  ;;  %v3870_v40 = vpop.f32.mrb[66].mxu1 }
 0x313   : > { %v4293_v42 = vmax.f32 %v6937_v32, 0.0  ;;  %v4295_v43 = vmax.f32 %v7121_v33, 0.0  ;;  %v6939_v44 = vadd.f32 %v2884_v39, %v8893_v26  ;;  %v7123_v45 = vadd.f32 %v3870_v40, %v8895_v27  ;;  %v2886_v46 = vpop.f32.mrb[67].mxu0  ;;  %v3872_v47 = vpop.f32.mrb[67].mxu1 }
 0x314   : > { %v4294_v48 = vmax.f32 %v6938_v37, 0.0  ;;  %v4296_v49 = vmax.f32 %v7122_v38, 0.0  ;;  %v6940_v50 = vadd.f32 %v2886_v46, %v8898_v28  ;;  %v7124_v51 = vadd.f32 %v3872_v47, %v8900_v29 }
 0x315   : > { %v4297_v52 = vmax.f32 %v6939_v44, 0.0  ;;  %v4299_v53 = vmax.f32 %v7123_v45, 0.0  ;;  %3149 = vmatmul.mubr.bf16.gmra.mrb[172].mxu0 %v8175_v36  ;;  %4135 = vmatmul.mubr.bf16.gmra.mrb[172].mxu1 %v8175_v36  ;;  %v8181_v36 = vld [vmem:[%s8492_s25 + $0x5a8] ss:$16 sps:$4 sm:$0xff]   ;;  %s5830_s25 = ssub.s32 (%p8338_p3), 273, %s8440_s26 }
 0x316   : > { %v6747_v54 = vpack.c.bf16 %v4294_v48, %v4293_v42  ;;  %v6748_v55 = vpack.c.bf16 %v4296_v49, %v4295_v43  ;;  %v4298_v56 = vmax.f32 %v6940_v50, 0.0  ;;  %v4300_v57 = vmax.f32 %v7124_v51, 0.0  ;;  %3158 = vmatprep.mubr.bf16.mxu0 %v8176_v41  ;;  %4144 = vmatprep.mubr.bf16.mxu1 %v8176_v41  ;;  %p5831_p9 = scmp.lt.s32.totalorder (%p8338_p3), %s5830_s25, 92 }
 0x318   : > { %5701 = vst [vmem:[%s8912_s12 + $0x200] sm:$0xff] %v6747_v54  ;;  %5702 = vst [vmem:[%s8912_s12 + $0x208] sm:$0xff] %v6748_v55  ;;  %v6749_v58 = vpack.c.bf16 %v4298_v56, %v4297_v52  ;;  %v6750_v59 = vpack.c.bf16 %v4300_v57, %v4299_v53  ;;  %v2890_v60 = vpop.f32.mrb[68].mxu0  ;;  %v3876_v61 = vpop.f32.mrb[68].mxu1 }
 0x319   : > { %v6941_v62 = vadd.f32 %v2890_v60, %v8893_v26  ;;  %v7125_v63 = vadd.f32 %v3876_v61, %v8895_v27  ;;  %v2892_v0 = vpop.f32.mrb[69].mxu0  ;;  %v3878_v1 = vpop.f32.mrb[69].mxu1 }
 0x31a   : > { %5703 = vst [vmem:[%s8912_s12 + $0x210] sm:$0xff] %v6749_v58  ;;  %5704 = vst [vmem:[%s8912_s12 + $0x218] sm:$0xff] %v6750_v59  ;;  %v6942_v3 = vadd.f32 %v2892_v0, %v8898_v28  ;;  %v7126_v4 = vadd.f32 %v3878_v1, %v8900_v29  ;;  %v2894_v5 = vpop.f32.mrb[70].mxu0  ;;  %v3880_v6 = vpop.f32.mrb[70].mxu1 }
 0x31b   : > { %v4301_v8 = vmax.f32 %v6941_v62, 0.0  ;;  %v4303_v9 = vmax.f32 %v7125_v63, 0.0  ;;  %v6943_v10 = vadd.f32 %v2894_v5, %v8893_v26  ;;  %v7127_v11 = vadd.f32 %v3880_v6, %v8895_v27  ;;  %v2896_v12 = vpop.f32.mrb[71].mxu0  ;;  %v3882_v13 = vpop.f32.mrb[71].mxu1 }
 0x31c   : > { %v4302_v14 = vmax.f32 %v6942_v3, 0.0  ;;  %v4304_v15 = vmax.f32 %v7126_v4, 0.0  ;;  %v6944_v16 = vadd.f32 %v2896_v12, %v8898_v28  ;;  %v7128_v17 = vadd.f32 %v3882_v13, %v8900_v29 }
 0x31d   : > { %v4305_v18 = vmax.f32 %v6943_v10, 0.0  ;;  %v4307_v19 = vmax.f32 %v7127_v11, 0.0  ;;  %3159 = vmatmul.mubr.bf16.gmra.mrb[176].mxu0 %v8178_v2  ;;  %4145 = vmatmul.mubr.bf16.gmra.mrb[176].mxu1 %v8178_v2 }
 0x31e   : > { %v6751_v20 = vpack.c.bf16 %v4302_v14, %v4301_v8  ;;  %v6752_v21 = vpack.c.bf16 %v4304_v15, %v4303_v9  ;;  %v4306_v22 = vmax.f32 %v6944_v16, 0.0  ;;  %v4308_v23 = vmax.f32 %v7128_v17, 0.0  ;;  %3168 = vmatprep.mubr.bf16.mxu0 %v8179_v7  ;;  %4154 = vmatprep.mubr.bf16.mxu1 %v8179_v7 }
 0x320   : > { %5705 = vst [vmem:[%s8912_s12 + $0x220] sm:$0xff] %v6751_v20  ;;  %5706 = vst [vmem:[%s8912_s12 + $0x228] sm:$0xff] %v6752_v21  ;;  %v6753_v24 = vpack.c.bf16 %v4306_v22, %v4305_v18  ;;  %v6754_v25 = vpack.c.bf16 %v4308_v23, %v4307_v19  ;;  %v2900_v30 = vpop.f32.mrb[72].mxu0  ;;  %v3886_v31 = vpop.f32.mrb[72].mxu1 }
 0x321   : > { %v6945_v32 = vadd.f32 %v2900_v30, %v8893_v26  ;;  %v7129_v33 = vadd.f32 %v3886_v31, %v8895_v27  ;;  %v2902_v34 = vpop.f32.mrb[73].mxu0  ;;  %v3888_v35 = vpop.f32.mrb[73].mxu1 }
 0x322   : > { %5707 = vst [vmem:[%s8912_s12 + $0x230] sm:$0xff] %v6753_v24  ;;  %5708 = vst [vmem:[%s8912_s12 + $0x238] sm:$0xff] %v6754_v25  ;;  %v6946_v37 = vadd.f32 %v2902_v34, %v8898_v28  ;;  %v7130_v38 = vadd.f32 %v3888_v35, %v8900_v29  ;;  %v2904_v39 = vpop.f32.mrb[74].mxu0  ;;  %v3890_v40 = vpop.f32.mrb[74].mxu1 }
 0x323   : > { %v4309_v41 = vmax.f32 %v6945_v32, 0.0  ;;  %v4311_v42 = vmax.f32 %v7129_v33, 0.0  ;;  %v6947_v43 = vadd.f32 %v2904_v39, %v8893_v26  ;;  %v7131_v44 = vadd.f32 %v3890_v40, %v8895_v27  ;;  %v2906_v45 = vpop.f32.mrb[75].mxu0  ;;  %v3892_v46 = vpop.f32.mrb[75].mxu1 }
 0x324   : > { %v4310_v47 = vmax.f32 %v6946_v37, 0.0  ;;  %v4312_v48 = vmax.f32 %v7130_v38, 0.0  ;;  %v6948_v49 = vadd.f32 %v2906_v45, %v8898_v28  ;;  %v7132_v50 = vadd.f32 %v3892_v46, %v8900_v29 }
 0x325   : > { %v4313_v51 = vmax.f32 %v6947_v43, 0.0  ;;  %v4315_v52 = vmax.f32 %v7131_v44, 0.0  ;;  %3169 = vmatmul.mubr.bf16.gmra.mrb[180].mxu0 %v8181_v36  ;;  %4155 = vmatmul.mubr.bf16.gmra.mrb[180].mxu1 %v8181_v36 }
 0x326   : > { %v6755_v53 = vpack.c.bf16 %v4310_v47, %v4309_v41  ;;  %v6756_v54 = vpack.c.bf16 %v4312_v48, %v4311_v42  ;;  %v4314_v55 = vmax.f32 %v6948_v49, 0.0  ;;  %v4316_v56 = vmax.f32 %v7132_v50, 0.0 }
 0x328   : > { %5709 = vst [vmem:[%s8912_s12 + $0x240] sm:$0xff] %v6755_v53  ;;  %5710 = vst [vmem:[%s8912_s12 + $0x248] sm:$0xff] %v6756_v54  ;;  %v6757_v57 = vpack.c.bf16 %v4314_v55, %v4313_v51  ;;  %v6758_v58 = vpack.c.bf16 %v4316_v56, %v4315_v52  ;;  %v2910_v59 = vpop.f32.mrb[76].mxu0  ;;  %v3896_v60 = vpop.f32.mrb[76].mxu1 }
 0x329   : > { %v6949_v61 = vadd.f32 %v2910_v59, %v8893_v26  ;;  %v7133_v62 = vadd.f32 %v3896_v60, %v8895_v27  ;;  %v2912_v63 = vpop.f32.mrb[77].mxu0  ;;  %v3898_v0 = vpop.f32.mrb[77].mxu1 }
 0x32a   : > { %5711 = vst [vmem:[%s8912_s12 + $0x250] sm:$0xff] %v6757_v57  ;;  %5712 = vst [vmem:[%s8912_s12 + $0x258] sm:$0xff] %v6758_v58  ;;  %v6950_v1 = vadd.f32 %v2912_v63, %v8898_v28  ;;  %v7134_v2 = vadd.f32 %v3898_v0, %v8900_v29  ;;  %v2914_v3 = vpop.f32.mrb[78].mxu0  ;;  %v3900_v4 = vpop.f32.mrb[78].mxu1 }
 0x32b   : > { %v4317_v5 = vmax.f32 %v6949_v61, 0.0  ;;  %v4319_v6 = vmax.f32 %v7133_v62, 0.0  ;;  %v6951_v7 = vadd.f32 %v2914_v3, %v8893_v26  ;;  %v7135_v8 = vadd.f32 %v3900_v4, %v8895_v27  ;;  %v2916_v9 = vpop.f32.mrb[79].mxu0  ;;  %v3902_v10 = vpop.f32.mrb[79].mxu1 }
 0x32c   : > { %v4318_v11 = vmax.f32 %v6950_v1, 0.0  ;;  %v4320_v12 = vmax.f32 %v7134_v2, 0.0  ;;  %v6952_v13 = vadd.f32 %v2916_v9, %v8898_v28  ;;  %v7136_v14 = vadd.f32 %v3902_v10, %v8900_v29 }
 0x32d   : > { %v4321_v15 = vmax.f32 %v6951_v7, 0.0  ;;  %v4323_v16 = vmax.f32 %v7135_v8, 0.0 }
 0x32e   : > { %v6759_v17 = vpack.c.bf16 %v4318_v11, %v4317_v5  ;;  %v6760_v18 = vpack.c.bf16 %v4320_v12, %v4319_v6  ;;  %v4322_v19 = vmax.f32 %v6952_v13, 0.0  ;;  %v4324_v20 = vmax.f32 %v7136_v14, 0.0 }
 0x330   : > { %5713 = vst [vmem:[%s8912_s12 + $0x260] sm:$0xff] %v6759_v17  ;;  %5714 = vst [vmem:[%s8912_s12 + $0x268] sm:$0xff] %v6760_v18  ;;  %v6761_v21 = vpack.c.bf16 %v4322_v19, %v4321_v15  ;;  %v6762_v22 = vpack.c.bf16 %v4324_v20, %v4323_v16  ;;  %v2920_v23 = vpop.f32.mrb[80].mxu0  ;;  %v3906_v24 = vpop.f32.mrb[80].mxu1 }
 0x331   : > { %v6953_v25 = vadd.f32 %v2920_v23, %v8893_v26  ;;  %v7137_v30 = vadd.f32 %v3906_v24, %v8895_v27  ;;  %v2922_v31 = vpop.f32.mrb[81].mxu0  ;;  %v3908_v32 = vpop.f32.mrb[81].mxu1 }
 0x332   : > { %5715 = vst [vmem:[%s8912_s12 + $0x270] sm:$0xff] %v6761_v21  ;;  %5716 = vst [vmem:[%s8912_s12 + $0x278] sm:$0xff] %v6762_v22  ;;  %v6954_v33 = vadd.f32 %v2922_v31, %v8898_v28  ;;  %v7138_v34 = vadd.f32 %v3908_v32, %v8900_v29  ;;  %v2924_v35 = vpop.f32.mrb[82].mxu0  ;;  %v3910_v36 = vpop.f32.mrb[82].mxu1 }
 0x333   : > { %v4325_v37 = vmax.f32 %v6953_v25, 0.0  ;;  %v4327_v38 = vmax.f32 %v7137_v30, 0.0  ;;  %v6955_v39 = vadd.f32 %v2924_v35, %v8893_v26  ;;  %v7139_v40 = vadd.f32 %v3910_v36, %v8895_v27  ;;  %v2926_v41 = vpop.f32.mrb[83].mxu0  ;;  %v3912_v42 = vpop.f32.mrb[83].mxu1 }
 0x334   : > { %v4326_v43 = vmax.f32 %v6954_v33, 0.0  ;;  %v4328_v44 = vmax.f32 %v7138_v34, 0.0  ;;  %v6956_v45 = vadd.f32 %v2926_v41, %v8898_v28  ;;  %v7140_v46 = vadd.f32 %v3912_v42, %v8900_v29 }
 0x335   : > { %v4329_v47 = vmax.f32 %v6955_v39, 0.0  ;;  %v4331_v48 = vmax.f32 %v7139_v40, 0.0 }
 0x336   : > { %v6763_v49 = vpack.c.bf16 %v4326_v43, %v4325_v37  ;;  %v6764_v50 = vpack.c.bf16 %v4328_v44, %v4327_v38  ;;  %v4330_v51 = vmax.f32 %v6956_v45, 0.0  ;;  %v4332_v52 = vmax.f32 %v7140_v46, 0.0 }
 0x338   : > { %5717 = vst [vmem:[%s8912_s12 + $0x280] sm:$0xff] %v6763_v49  ;;  %5718 = vst [vmem:[%s8912_s12 + $0x288] sm:$0xff] %v6764_v50  ;;  %v6765_v53 = vpack.c.bf16 %v4330_v51, %v4329_v47  ;;  %v6766_v54 = vpack.c.bf16 %v4332_v52, %v4331_v48  ;;  %v2930_v55 = vpop.f32.mrb[84].mxu0  ;;  %v3916_v56 = vpop.f32.mrb[84].mxu1 }
 0x339   : > { %v6957_v57 = vadd.f32 %v2930_v55, %v8893_v26  ;;  %v7141_v58 = vadd.f32 %v3916_v56, %v8895_v27  ;;  %v2932_v59 = vpop.f32.mrb[85].mxu0  ;;  %v3918_v60 = vpop.f32.mrb[85].mxu1 }
 0x33a   : > { %5719 = vst [vmem:[%s8912_s12 + $0x290] sm:$0xff] %v6765_v53  ;;  %5720 = vst [vmem:[%s8912_s12 + $0x298] sm:$0xff] %v6766_v54  ;;  %v6958_v61 = vadd.f32 %v2932_v59, %v8898_v28  ;;  %v7142_v62 = vadd.f32 %v3918_v60, %v8900_v29  ;;  %v2934_v63 = vpop.f32.mrb[86].mxu0  ;;  %v3920_v0 = vpop.f32.mrb[86].mxu1 }
 0x33b   : > { %v4333_v1 = vmax.f32 %v6957_v57, 0.0  ;;  %v4335_v2 = vmax.f32 %v7141_v58, 0.0  ;;  %v6959_v3 = vadd.f32 %v2934_v63, %v8893_v26  ;;  %v7143_v4 = vadd.f32 %v3920_v0, %v8895_v27  ;;  %v2936_v5 = vpop.f32.mrb[87].mxu0  ;;  %v3922_v6 = vpop.f32.mrb[87].mxu1 }
 0x33c   : > { %v4334_v7 = vmax.f32 %v6958_v61, 0.0  ;;  %v4336_v8 = vmax.f32 %v7142_v62, 0.0  ;;  %v6960_v9 = vadd.f32 %v2936_v5, %v8898_v28  ;;  %v7144_v10 = vadd.f32 %v3922_v6, %v8900_v29 }
 0x33d   : > { %v4337_v11 = vmax.f32 %v6959_v3, 0.0  ;;  %v4339_v12 = vmax.f32 %v7143_v4, 0.0 }
 0x33e   : > { %v6767_v13 = vpack.c.bf16 %v4334_v7, %v4333_v1  ;;  %v6768_v14 = vpack.c.bf16 %v4336_v8, %v4335_v2  ;;  %v4338_v15 = vmax.f32 %v6960_v9, 0.0  ;;  %v4340_v16 = vmax.f32 %v7144_v10, 0.0 }
 0x340   : > { %5721 = vst [vmem:[%s8912_s12 + $0x2a0] sm:$0xff] %v6767_v13  ;;  %5722 = vst [vmem:[%s8912_s12 + $0x2a8] sm:$0xff] %v6768_v14  ;;  %v6769_v17 = vpack.c.bf16 %v4338_v15, %v4337_v11  ;;  %v6770_v18 = vpack.c.bf16 %v4340_v16, %v4339_v12  ;;  %v2940_v19 = vpop.f32.mrb[88].mxu0  ;;  %v3926_v20 = vpop.f32.mrb[88].mxu1 }
 0x341   : > { %v6961_v21 = vadd.f32 %v2940_v19, %v8893_v26  ;;  %v7145_v22 = vadd.f32 %v3926_v20, %v8895_v27  ;;  %v2942_v23 = vpop.f32.mrb[89].mxu0  ;;  %v3928_v24 = vpop.f32.mrb[89].mxu1 }
 0x342   : > { %5723 = vst [vmem:[%s8912_s12 + $0x2b0] sm:$0xff] %v6769_v17  ;;  %5724 = vst [vmem:[%s8912_s12 + $0x2b8] sm:$0xff] %v6770_v18  ;;  %v6962_v25 = vadd.f32 %v2942_v23, %v8898_v28  ;;  %v7146_v30 = vadd.f32 %v3928_v24, %v8900_v29  ;;  %v2944_v31 = vpop.f32.mrb[90].mxu0  ;;  %v3930_v32 = vpop.f32.mrb[90].mxu1 }
 0x343   : > { %v4341_v33 = vmax.f32 %v6961_v21, 0.0  ;;  %v4343_v34 = vmax.f32 %v7145_v22, 0.0  ;;  %v6963_v35 = vadd.f32 %v2944_v31, %v8893_v26  ;;  %v7147_v36 = vadd.f32 %v3930_v32, %v8895_v27  ;;  %v2946_v37 = vpop.f32.mrb[91].mxu0  ;;  %v3932_v38 = vpop.f32.mrb[91].mxu1 }
 0x344   : > { %v4342_v39 = vmax.f32 %v6962_v25, 0.0  ;;  %v4344_v40 = vmax.f32 %v7146_v30, 0.0  ;;  %v6964_v41 = vadd.f32 %v2946_v37, %v8898_v28  ;;  %v7148_v42 = vadd.f32 %v3932_v38, %v8900_v29 }
 0x345   : > { %v4345_v43 = vmax.f32 %v6963_v35, 0.0  ;;  %v4347_v44 = vmax.f32 %v7147_v36, 0.0 }
 0x346   : > { %v6771_v45 = vpack.c.bf16 %v4342_v39, %v4341_v33  ;;  %v6772_v46 = vpack.c.bf16 %v4344_v40, %v4343_v34  ;;  %v4346_v47 = vmax.f32 %v6964_v41, 0.0  ;;  %v4348_v48 = vmax.f32 %v7148_v42, 0.0 }
 0x348   : > { %5725 = vst [vmem:[%s8912_s12 + $0x2c0] sm:$0xff] %v6771_v45  ;;  %5726 = vst [vmem:[%s8912_s12 + $0x2c8] sm:$0xff] %v6772_v46  ;;  %v6773_v49 = vpack.c.bf16 %v4346_v47, %v4345_v43  ;;  %v6774_v50 = vpack.c.bf16 %v4348_v48, %v4347_v44  ;;  %v2950_v51 = vpop.f32.mrb[92].mxu0  ;;  %v3936_v52 = vpop.f32.mrb[92].mxu1 }
 0x349   : > { %v6965_v53 = vadd.f32 %v2950_v51, %v8893_v26  ;;  %v7149_v54 = vadd.f32 %v3936_v52, %v8895_v27  ;;  %v2952_v55 = vpop.f32.mrb[93].mxu0  ;;  %v3938_v56 = vpop.f32.mrb[93].mxu1 }
 0x34a   : > { %5727 = vst [vmem:[%s8912_s12 + $0x2d0] sm:$0xff] %v6773_v49  ;;  %5728 = vst [vmem:[%s8912_s12 + $0x2d8] sm:$0xff] %v6774_v50  ;;  %v6966_v57 = vadd.f32 %v2952_v55, %v8898_v28  ;;  %v7150_v58 = vadd.f32 %v3938_v56, %v8900_v29  ;;  %v2954_v59 = vpop.f32.mrb[94].mxu0  ;;  %v3940_v60 = vpop.f32.mrb[94].mxu1 }
 0x34b   : > { %v4349_v61 = vmax.f32 %v6965_v53, 0.0  ;;  %v4351_v62 = vmax.f32 %v7149_v54, 0.0  ;;  %v6967_v63 = vadd.f32 %v2954_v59, %v8893_v26  ;;  %v7151_v0 = vadd.f32 %v3940_v60, %v8895_v27  ;;  %v2956_v1 = vpop.f32.mrb[95].mxu0  ;;  %v3942_v2 = vpop.f32.mrb[95].mxu1 }
 0x34c   : > { %v4350_v3 = vmax.f32 %v6966_v57, 0.0  ;;  %v4352_v4 = vmax.f32 %v7150_v58, 0.0  ;;  %v6968_v5 = vadd.f32 %v2956_v1, %v8898_v28  ;;  %v7152_v6 = vadd.f32 %v3942_v2, %v8900_v29 }
 0x34d   : > { %v4353_v7 = vmax.f32 %v6967_v63, 0.0  ;;  %v4355_v8 = vmax.f32 %v7151_v0, 0.0 }
 0x34e   : > { %v6775_v9 = vpack.c.bf16 %v4350_v3, %v4349_v61  ;;  %v6776_v10 = vpack.c.bf16 %v4352_v4, %v4351_v62  ;;  %v4354_v11 = vmax.f32 %v6968_v5, 0.0  ;;  %v4356_v12 = vmax.f32 %v7152_v6, 0.0 }
 0x350   : > { %5729 = vst [vmem:[%s8912_s12 + $0x2e0] sm:$0xff] %v6775_v9  ;;  %5730 = vst [vmem:[%s8912_s12 + $0x2e8] sm:$0xff] %v6776_v10  ;;  %v6777_v13 = vpack.c.bf16 %v4354_v11, %v4353_v7  ;;  %v6778_v14 = vpack.c.bf16 %v4356_v12, %v4355_v8  ;;  %v2960_v15 = vpop.f32.mrb[96].mxu0  ;;  %v3946_v16 = vpop.f32.mrb[96].mxu1 }
 0x351   : > { %v6969_v17 = vadd.f32 %v2960_v15, %v8893_v26  ;;  %v7153_v18 = vadd.f32 %v3946_v16, %v8895_v27  ;;  %v2962_v19 = vpop.f32.mrb[97].mxu0  ;;  %v3948_v20 = vpop.f32.mrb[97].mxu1 }
 0x352   : > { %5731 = vst [vmem:[%s8912_s12 + $0x2f0] sm:$0xff] %v6777_v13  ;;  %5732 = vst [vmem:[%s8912_s12 + $0x2f8] sm:$0xff] %v6778_v14  ;;  %v6970_v21 = vadd.f32 %v2962_v19, %v8898_v28  ;;  %v7154_v22 = vadd.f32 %v3948_v20, %v8900_v29  ;;  %v2964_v23 = vpop.f32.mrb[98].mxu0  ;;  %v3950_v24 = vpop.f32.mrb[98].mxu1 }
 0x353   : > { %v4357_v25 = vmax.f32 %v6969_v17, 0.0  ;;  %v4359_v30 = vmax.f32 %v7153_v18, 0.0  ;;  %v6971_v31 = vadd.f32 %v2964_v23, %v8893_v26  ;;  %v7155_v32 = vadd.f32 %v3950_v24, %v8895_v27  ;;  %v2966_v33 = vpop.f32.mrb[99].mxu0  ;;  %v3952_v34 = vpop.f32.mrb[99].mxu1 }
 0x354   : > { %v4358_v35 = vmax.f32 %v6970_v21, 0.0  ;;  %v4360_v36 = vmax.f32 %v7154_v22, 0.0  ;;  %v6972_v37 = vadd.f32 %v2966_v33, %v8898_v28  ;;  %v7156_v38 = vadd.f32 %v3952_v34, %v8900_v29 }
 0x355   : > { %v4361_v39 = vmax.f32 %v6971_v31, 0.0  ;;  %v4363_v40 = vmax.f32 %v7155_v32, 0.0 }
 0x356   : > { %v6779_v41 = vpack.c.bf16 %v4358_v35, %v4357_v25  ;;  %v6780_v42 = vpack.c.bf16 %v4360_v36, %v4359_v30  ;;  %v4362_v43 = vmax.f32 %v6972_v37, 0.0  ;;  %v4364_v44 = vmax.f32 %v7156_v38, 0.0 }
 0x358   : > { %5733 = vst [vmem:[%s8912_s12 + $0x300] sm:$0xff] %v6779_v41  ;;  %5734 = vst [vmem:[%s8912_s12 + $0x308] sm:$0xff] %v6780_v42  ;;  %v6781_v45 = vpack.c.bf16 %v4362_v43, %v4361_v39  ;;  %v6782_v46 = vpack.c.bf16 %v4364_v44, %v4363_v40  ;;  %v2970_v47 = vpop.f32.mrb[100].mxu0  ;;  %v3956_v48 = vpop.f32.mrb[100].mxu1 }
 0x359   : > { %v6973_v49 = vadd.f32 %v2970_v47, %v8893_v26  ;;  %v7157_v50 = vadd.f32 %v3956_v48, %v8895_v27  ;;  %v2972_v51 = vpop.f32.mrb[101].mxu0  ;;  %v3958_v52 = vpop.f32.mrb[101].mxu1 }
 0x35a   : > { %5735 = vst [vmem:[%s8912_s12 + $0x310] sm:$0xff] %v6781_v45  ;;  %5736 = vst [vmem:[%s8912_s12 + $0x318] sm:$0xff] %v6782_v46  ;;  %v6974_v53 = vadd.f32 %v2972_v51, %v8898_v28  ;;  %v7158_v54 = vadd.f32 %v3958_v52, %v8900_v29  ;;  %v2974_v55 = vpop.f32.mrb[102].mxu0  ;;  %v3960_v56 = vpop.f32.mrb[102].mxu1 }
 0x35b   : > { %v4365_v57 = vmax.f32 %v6973_v49, 0.0  ;;  %v4367_v58 = vmax.f32 %v7157_v50, 0.0  ;;  %v6975_v59 = vadd.f32 %v2974_v55, %v8893_v26  ;;  %v7159_v60 = vadd.f32 %v3960_v56, %v8895_v27  ;;  %v2976_v61 = vpop.f32.mrb[103].mxu0  ;;  %v3962_v62 = vpop.f32.mrb[103].mxu1 }
 0x35c   : > { %v4366_v63 = vmax.f32 %v6974_v53, 0.0  ;;  %v4368_v0 = vmax.f32 %v7158_v54, 0.0  ;;  %v6976_v1 = vadd.f32 %v2976_v61, %v8898_v28  ;;  %v7160_v2 = vadd.f32 %v3962_v62, %v8900_v29 }
 0x35d   : > { %v4369_v3 = vmax.f32 %v6975_v59, 0.0  ;;  %v4371_v4 = vmax.f32 %v7159_v60, 0.0 }
 0x35e   : > { %v6783_v5 = vpack.c.bf16 %v4366_v63, %v4365_v57  ;;  %v6784_v6 = vpack.c.bf16 %v4368_v0, %v4367_v58  ;;  %v4370_v7 = vmax.f32 %v6976_v1, 0.0  ;;  %v4372_v8 = vmax.f32 %v7160_v2, 0.0 }
 0x360   : > { %5737 = vst [vmem:[%s8912_s12 + $0x320] sm:$0xff] %v6783_v5  ;;  %5738 = vst [vmem:[%s8912_s12 + $0x328] sm:$0xff] %v6784_v6  ;;  %v6785_v9 = vpack.c.bf16 %v4370_v7, %v4369_v3  ;;  %v6786_v10 = vpack.c.bf16 %v4372_v8, %v4371_v4  ;;  %v2980_v11 = vpop.f32.mrb[104].mxu0  ;;  %v3966_v12 = vpop.f32.mrb[104].mxu1 }
 0x361   : > { %v6977_v13 = vadd.f32 %v2980_v11, %v8893_v26  ;;  %v7161_v14 = vadd.f32 %v3966_v12, %v8895_v27  ;;  %v2982_v15 = vpop.f32.mrb[105].mxu0  ;;  %v3968_v16 = vpop.f32.mrb[105].mxu1 }
 0x362   : > { %5739 = vst [vmem:[%s8912_s12 + $0x330] sm:$0xff] %v6785_v9  ;;  %5740 = vst [vmem:[%s8912_s12 + $0x338] sm:$0xff] %v6786_v10  ;;  %v6978_v17 = vadd.f32 %v2982_v15, %v8898_v28  ;;  %v7162_v18 = vadd.f32 %v3968_v16, %v8900_v29  ;;  %v2984_v19 = vpop.f32.mrb[106].mxu0  ;;  %v3970_v20 = vpop.f32.mrb[106].mxu1 }
 0x363   : > { %v4373_v21 = vmax.f32 %v6977_v13, 0.0  ;;  %v4375_v22 = vmax.f32 %v7161_v14, 0.0  ;;  %v6979_v23 = vadd.f32 %v2984_v19, %v8893_v26  ;;  %v7163_v24 = vadd.f32 %v3970_v20, %v8895_v27  ;;  %v2986_v25 = vpop.f32.mrb[107].mxu0  ;;  %v3972_v30 = vpop.f32.mrb[107].mxu1 }
 0x364   : > { %v4374_v31 = vmax.f32 %v6978_v17, 0.0  ;;  %v4376_v32 = vmax.f32 %v7162_v18, 0.0  ;;  %v6980_v33 = vadd.f32 %v2986_v25, %v8898_v28  ;;  %v7164_v34 = vadd.f32 %v3972_v30, %v8900_v29 }
 0x365   : > { %v4377_v35 = vmax.f32 %v6979_v23, 0.0  ;;  %v4379_v36 = vmax.f32 %v7163_v24, 0.0 }
 0x366   : > { %v6787_v37 = vpack.c.bf16 %v4374_v31, %v4373_v21  ;;  %v6788_v38 = vpack.c.bf16 %v4376_v32, %v4375_v22  ;;  %v4378_v39 = vmax.f32 %v6980_v33, 0.0  ;;  %v4380_v40 = vmax.f32 %v7164_v34, 0.0 }
 0x368   : > { %5741 = vst [vmem:[%s8912_s12 + $0x340] sm:$0xff] %v6787_v37  ;;  %5742 = vst [vmem:[%s8912_s12 + $0x348] sm:$0xff] %v6788_v38  ;;  %v6789_v41 = vpack.c.bf16 %v4378_v39, %v4377_v35  ;;  %v6790_v42 = vpack.c.bf16 %v4380_v40, %v4379_v36  ;;  %v2990_v43 = vpop.f32.mrb[108].mxu0  ;;  %v3976_v44 = vpop.f32.mrb[108].mxu1 }
 0x369   : > { %v6981_v45 = vadd.f32 %v2990_v43, %v8893_v26  ;;  %v7165_v46 = vadd.f32 %v3976_v44, %v8895_v27  ;;  %v2992_v47 = vpop.f32.mrb[109].mxu0  ;;  %v3978_v48 = vpop.f32.mrb[109].mxu1 }
 0x36a   : > { %5743 = vst [vmem:[%s8912_s12 + $0x350] sm:$0xff] %v6789_v41  ;;  %5744 = vst [vmem:[%s8912_s12 + $0x358] sm:$0xff] %v6790_v42  ;;  %v6982_v49 = vadd.f32 %v2992_v47, %v8898_v28  ;;  %v7166_v50 = vadd.f32 %v3978_v48, %v8900_v29  ;;  %v2994_v51 = vpop.f32.mrb[110].mxu0  ;;  %v3980_v52 = vpop.f32.mrb[110].mxu1 }
 0x36b   : > { %v4381_v53 = vmax.f32 %v6981_v45, 0.0  ;;  %v4383_v54 = vmax.f32 %v7165_v46, 0.0  ;;  %v6983_v55 = vadd.f32 %v2994_v51, %v8893_v26  ;;  %v7167_v56 = vadd.f32 %v3980_v52, %v8895_v27  ;;  %v2996_v57 = vpop.f32.mrb[111].mxu0  ;;  %v3982_v58 = vpop.f32.mrb[111].mxu1 }
 0x36c   : > { %v4382_v59 = vmax.f32 %v6982_v49, 0.0  ;;  %v4384_v60 = vmax.f32 %v7166_v50, 0.0  ;;  %v6984_v61 = vadd.f32 %v2996_v57, %v8898_v28  ;;  %v7168_v62 = vadd.f32 %v3982_v58, %v8900_v29 }
 0x36d   : > { %v4385_v63 = vmax.f32 %v6983_v55, 0.0  ;;  %v4387_v0 = vmax.f32 %v7167_v56, 0.0 }
 0x36e   : > { %v6791_v1 = vpack.c.bf16 %v4382_v59, %v4381_v53  ;;  %v6792_v2 = vpack.c.bf16 %v4384_v60, %v4383_v54  ;;  %v4386_v3 = vmax.f32 %v6984_v61, 0.0  ;;  %v4388_v4 = vmax.f32 %v7168_v62, 0.0 }
 0x370   : > { %5745 = vst [vmem:[%s8912_s12 + $0x360] sm:$0xff] %v6791_v1  ;;  %5746 = vst [vmem:[%s8912_s12 + $0x368] sm:$0xff] %v6792_v2  ;;  %v6793_v5 = vpack.c.bf16 %v4386_v3, %v4385_v63  ;;  %v6794_v6 = vpack.c.bf16 %v4388_v4, %v4387_v0  ;;  %v3000_v7 = vpop.f32.mrb[112].mxu0  ;;  %v3986_v8 = vpop.f32.mrb[112].mxu1 }
 0x371   : > { %v6985_v9 = vadd.f32 %v3000_v7, %v8893_v26  ;;  %v7169_v10 = vadd.f32 %v3986_v8, %v8895_v27  ;;  %v3002_v11 = vpop.f32.mrb[113].mxu0  ;;  %v3988_v12 = vpop.f32.mrb[113].mxu1 }
 0x372   : > { %5747 = vst [vmem:[%s8912_s12 + $0x370] sm:$0xff] %v6793_v5  ;;  %5748 = vst [vmem:[%s8912_s12 + $0x378] sm:$0xff] %v6794_v6  ;;  %v6986_v13 = vadd.f32 %v3002_v11, %v8898_v28  ;;  %v7170_v14 = vadd.f32 %v3988_v12, %v8900_v29  ;;  %v3004_v15 = vpop.f32.mrb[114].mxu0  ;;  %v3990_v16 = vpop.f32.mrb[114].mxu1 }
 0x373   : > { %v4389_v17 = vmax.f32 %v6985_v9, 0.0  ;;  %v4391_v18 = vmax.f32 %v7169_v10, 0.0  ;;  %v6987_v19 = vadd.f32 %v3004_v15, %v8893_v26  ;;  %v7171_v20 = vadd.f32 %v3990_v16, %v8895_v27  ;;  %v3006_v21 = vpop.f32.mrb[115].mxu0  ;;  %v3992_v22 = vpop.f32.mrb[115].mxu1 }
 0x374   : > { %v4390_v23 = vmax.f32 %v6986_v13, 0.0  ;;  %v4392_v24 = vmax.f32 %v7170_v14, 0.0  ;;  %v6988_v25 = vadd.f32 %v3006_v21, %v8898_v28  ;;  %v7172_v30 = vadd.f32 %v3992_v22, %v8900_v29 }
 0x375   : > { %v4393_v31 = vmax.f32 %v6987_v19, 0.0  ;;  %v4395_v32 = vmax.f32 %v7171_v20, 0.0 }
 0x376   : > { %v6795_v33 = vpack.c.bf16 %v4390_v23, %v4389_v17  ;;  %v6796_v34 = vpack.c.bf16 %v4392_v24, %v4391_v18  ;;  %v4394_v35 = vmax.f32 %v6988_v25, 0.0  ;;  %v4396_v36 = vmax.f32 %v7172_v30, 0.0 }
 0x378   : > { %5749 = vst [vmem:[%s8912_s12 + $0x380] sm:$0xff] %v6795_v33  ;;  %5750 = vst [vmem:[%s8912_s12 + $0x388] sm:$0xff] %v6796_v34  ;;  %v6797_v37 = vpack.c.bf16 %v4394_v35, %v4393_v31  ;;  %v6798_v38 = vpack.c.bf16 %v4396_v36, %v4395_v32  ;;  %v3010_v39 = vpop.f32.mrb[116].mxu0  ;;  %v3996_v40 = vpop.f32.mrb[116].mxu1 }
 0x379   : > { %v6989_v41 = vadd.f32 %v3010_v39, %v8893_v26  ;;  %v7173_v42 = vadd.f32 %v3996_v40, %v8895_v27  ;;  %v3012_v43 = vpop.f32.mrb[117].mxu0  ;;  %v3998_v44 = vpop.f32.mrb[117].mxu1 }
 0x37a   : > { %5751 = vst [vmem:[%s8912_s12 + $0x390] sm:$0xff] %v6797_v37  ;;  %5752 = vst [vmem:[%s8912_s12 + $0x398] sm:$0xff] %v6798_v38  ;;  %v6990_v45 = vadd.f32 %v3012_v43, %v8898_v28  ;;  %v7174_v46 = vadd.f32 %v3998_v44, %v8900_v29  ;;  %v3014_v47 = vpop.f32.mrb[118].mxu0  ;;  %v4000_v48 = vpop.f32.mrb[118].mxu1 }
 0x37b   : > { %v4397_v49 = vmax.f32 %v6989_v41, 0.0  ;;  %v4399_v50 = vmax.f32 %v7173_v42, 0.0  ;;  %v6991_v51 = vadd.f32 %v3014_v47, %v8893_v26  ;;  %v7175_v52 = vadd.f32 %v4000_v48, %v8895_v27  ;;  %v3016_v53 = vpop.f32.mrb[119].mxu0  ;;  %v4002_v54 = vpop.f32.mrb[119].mxu1 }
 0x37c   : > { %v4398_v55 = vmax.f32 %v6990_v45, 0.0  ;;  %v4400_v56 = vmax.f32 %v7174_v46, 0.0  ;;  %v6992_v57 = vadd.f32 %v3016_v53, %v8898_v28  ;;  %v7176_v58 = vadd.f32 %v4002_v54, %v8900_v29 }
 0x37d   : > { %v4401_v59 = vmax.f32 %v6991_v51, 0.0  ;;  %v4403_v60 = vmax.f32 %v7175_v52, 0.0 }
 0x37e   : > { %v6799_v61 = vpack.c.bf16 %v4398_v55, %v4397_v49  ;;  %v6800_v62 = vpack.c.bf16 %v4400_v56, %v4399_v50  ;;  %v4402_v63 = vmax.f32 %v6992_v57, 0.0  ;;  %v4404_v0 = vmax.f32 %v7176_v58, 0.0 }
 0x380   : > { %5753 = vst [vmem:[%s8912_s12 + $0x3a0] sm:$0xff] %v6799_v61  ;;  %5754 = vst [vmem:[%s8912_s12 + $0x3a8] sm:$0xff] %v6800_v62  ;;  %v6801_v1 = vpack.c.bf16 %v4402_v63, %v4401_v59  ;;  %v6802_v2 = vpack.c.bf16 %v4404_v0, %v4403_v60  ;;  %v3020_v3 = vpop.f32.mrb[120].mxu0  ;;  %v4006_v4 = vpop.f32.mrb[120].mxu1 }
 0x381   : > { %v6993_v5 = vadd.f32 %v3020_v3, %v8893_v26  ;;  %v7177_v6 = vadd.f32 %v4006_v4, %v8895_v27  ;;  %v3022_v7 = vpop.f32.mrb[121].mxu0  ;;  %v4008_v8 = vpop.f32.mrb[121].mxu1 }
 0x382   : > { %5755 = vst [vmem:[%s8912_s12 + $0x3b0] sm:$0xff] %v6801_v1  ;;  %5756 = vst [vmem:[%s8912_s12 + $0x3b8] sm:$0xff] %v6802_v2  ;;  %v6994_v9 = vadd.f32 %v3022_v7, %v8898_v28  ;;  %v7178_v10 = vadd.f32 %v4008_v8, %v8900_v29  ;;  %v3024_v11 = vpop.f32.mrb[122].mxu0  ;;  %v4010_v12 = vpop.f32.mrb[122].mxu1 }
 0x383   : > { %v4405_v13 = vmax.f32 %v6993_v5, 0.0  ;;  %v4407_v14 = vmax.f32 %v7177_v6, 0.0  ;;  %v6995_v15 = vadd.f32 %v3024_v11, %v8893_v26  ;;  %v7179_v16 = vadd.f32 %v4010_v12, %v8895_v27  ;;  %v3026_v17 = vpop.f32.mrb[123].mxu0  ;;  %v4012_v18 = vpop.f32.mrb[123].mxu1 }
 0x384   : > { %v4406_v19 = vmax.f32 %v6994_v9, 0.0  ;;  %v4408_v20 = vmax.f32 %v7178_v10, 0.0  ;;  %v6996_v21 = vadd.f32 %v3026_v17, %v8898_v28  ;;  %v7180_v22 = vadd.f32 %v4012_v18, %v8900_v29 }
 0x385   : > { %v4409_v23 = vmax.f32 %v6995_v15, 0.0  ;;  %v4411_v24 = vmax.f32 %v7179_v16, 0.0 }
 0x386   : > { %v6803_v25 = vpack.c.bf16 %v4406_v19, %v4405_v13  ;;  %v6804_v30 = vpack.c.bf16 %v4408_v20, %v4407_v14  ;;  %v4410_v31 = vmax.f32 %v6996_v21, 0.0  ;;  %v4412_v32 = vmax.f32 %v7180_v22, 0.0 }
 0x388   : > { %5757 = vst [vmem:[%s8912_s12 + $0x3c0] sm:$0xff] %v6803_v25  ;;  %5758 = vst [vmem:[%s8912_s12 + $0x3c8] sm:$0xff] %v6804_v30  ;;  %v6805_v33 = vpack.c.bf16 %v4410_v31, %v4409_v23  ;;  %v6806_v34 = vpack.c.bf16 %v4412_v32, %v4411_v24  ;;  %v3030_v35 = vpop.f32.mrb[124].mxu0  ;;  %v4016_v36 = vpop.f32.mrb[124].mxu1 }
 0x389   : > { %v6997_v37 = vadd.f32 %v3030_v35, %v8893_v26  ;;  %v7181_v38 = vadd.f32 %v4016_v36, %v8895_v27  ;;  %v3032_v39 = vpop.f32.mrb[125].mxu0  ;;  %v4018_v40 = vpop.f32.mrb[125].mxu1 }
 0x38a   : > { %5759 = vst [vmem:[%s8912_s12 + $0x3d0] sm:$0xff] %v6805_v33  ;;  %5760 = vst [vmem:[%s8912_s12 + $0x3d8] sm:$0xff] %v6806_v34  ;;  %v6998_v41 = vadd.f32 %v3032_v39, %v8898_v28  ;;  %v7182_v42 = vadd.f32 %v4018_v40, %v8900_v29  ;;  %v3034_v43 = vpop.f32.mrb[126].mxu0  ;;  %v4020_v44 = vpop.f32.mrb[126].mxu1 }
 0x38b   : > { %v4413_v45 = vmax.f32 %v6997_v37, 0.0  ;;  %v4415_v46 = vmax.f32 %v7181_v38, 0.0  ;;  %v6999_v47 = vadd.f32 %v3034_v43, %v8893_v26  ;;  %v7183_v48 = vadd.f32 %v4020_v44, %v8895_v27  ;;  %v3036_v49 = vpop.f32.mrb[127].mxu0  ;;  %v4022_v50 = vpop.f32.mrb[127].mxu1 }
 0x38c   : > { %v4414_v51 = vmax.f32 %v6998_v41, 0.0  ;;  %v4416_v52 = vmax.f32 %v7182_v42, 0.0  ;;  %v7000_v53 = vadd.f32 %v3036_v49, %v8898_v28  ;;  %v7184_v54 = vadd.f32 %v4022_v50, %v8900_v29 }
 0x38d   : > { %v4417_v55 = vmax.f32 %v6999_v47, 0.0  ;;  %v4419_v56 = vmax.f32 %v7183_v48, 0.0 }
 0x38e   : > { %v6807_v57 = vpack.c.bf16 %v4414_v51, %v4413_v45  ;;  %v6808_v58 = vpack.c.bf16 %v4416_v52, %v4415_v46  ;;  %v4418_v59 = vmax.f32 %v7000_v53, 0.0  ;;  %v4420_v60 = vmax.f32 %v7184_v54, 0.0 }
 0x390   : > { %5761 = vst [vmem:[%s8912_s12 + $0x3e0] sm:$0xff] %v6807_v57  ;;  %5762 = vst [vmem:[%s8912_s12 + $0x3e8] sm:$0xff] %v6808_v58  ;;  %v6809_v61 = vpack.c.bf16 %v4418_v59, %v4417_v55  ;;  %v6810_v62 = vpack.c.bf16 %v4420_v60, %v4419_v56  ;;  %v3040_v63 = vpop.f32.mrb[128].mxu0  ;;  %v4026_v0 = vpop.f32.mrb[128].mxu1 }
 0x391   : > { %v7001_v1 = vadd.f32 %v3040_v63, %v8893_v26  ;;  %v7185_v2 = vadd.f32 %v4026_v0, %v8895_v27  ;;  %v3042_v3 = vpop.f32.mrb[129].mxu0  ;;  %v4028_v4 = vpop.f32.mrb[129].mxu1 }
 0x392   : > { %5763 = vst [vmem:[%s8912_s12 + $0x3f0] sm:$0xff] %v6809_v61  ;;  %5764 = vst [vmem:[%s8912_s12 + $0x3f8] sm:$0xff] %v6810_v62  ;;  %v7002_v5 = vadd.f32 %v3042_v3, %v8898_v28  ;;  %v7186_v6 = vadd.f32 %v4028_v4, %v8900_v29  ;;  %v3044_v7 = vpop.f32.mrb[130].mxu0  ;;  %v4030_v8 = vpop.f32.mrb[130].mxu1 }
 0x393   : > { %v4421_v9 = vmax.f32 %v7001_v1, 0.0  ;;  %v4423_v10 = vmax.f32 %v7185_v2, 0.0  ;;  %v7003_v11 = vadd.f32 %v3044_v7, %v8893_v26  ;;  %v7187_v12 = vadd.f32 %v4030_v8, %v8895_v27  ;;  %v3046_v13 = vpop.f32.mrb[131].mxu0  ;;  %v4032_v14 = vpop.f32.mrb[131].mxu1 }
 0x394   : > { %v4422_v15 = vmax.f32 %v7002_v5, 0.0  ;;  %v4424_v16 = vmax.f32 %v7186_v6, 0.0  ;;  %v7004_v17 = vadd.f32 %v3046_v13, %v8898_v28  ;;  %v7188_v18 = vadd.f32 %v4032_v14, %v8900_v29 }
 0x395   : > { %v4425_v19 = vmax.f32 %v7003_v11, 0.0  ;;  %v4427_v20 = vmax.f32 %v7187_v12, 0.0 }
 0x396   : > { %v6811_v21 = vpack.c.bf16 %v4422_v15, %v4421_v9  ;;  %v6812_v22 = vpack.c.bf16 %v4424_v16, %v4423_v10  ;;  %v4426_v23 = vmax.f32 %v7004_v17, 0.0  ;;  %v4428_v24 = vmax.f32 %v7188_v18, 0.0 }
 0x398   : > { %5765 = vst [vmem:[%s8912_s12 + $0x400] sm:$0xff] %v6811_v21  ;;  %5766 = vst [vmem:[%s8912_s12 + $0x408] sm:$0xff] %v6812_v22  ;;  %v6813_v25 = vpack.c.bf16 %v4426_v23, %v4425_v19  ;;  %v6814_v30 = vpack.c.bf16 %v4428_v24, %v4427_v20  ;;  %v3050_v31 = vpop.f32.mrb[132].mxu0  ;;  %v4036_v32 = vpop.f32.mrb[132].mxu1 }
 0x399   : > { %v7005_v33 = vadd.f32 %v3050_v31, %v8893_v26  ;;  %v7189_v34 = vadd.f32 %v4036_v32, %v8895_v27  ;;  %v3052_v35 = vpop.f32.mrb[133].mxu0  ;;  %v4038_v36 = vpop.f32.mrb[133].mxu1 }
 0x39a   : > { %5767 = vst [vmem:[%s8912_s12 + $0x410] sm:$0xff] %v6813_v25  ;;  %5768 = vst [vmem:[%s8912_s12 + $0x418] sm:$0xff] %v6814_v30  ;;  %v7006_v37 = vadd.f32 %v3052_v35, %v8898_v28  ;;  %v7190_v38 = vadd.f32 %v4038_v36, %v8900_v29  ;;  %v3054_v39 = vpop.f32.mrb[134].mxu0  ;;  %v4040_v40 = vpop.f32.mrb[134].mxu1 }
 0x39b   : > { %v4429_v41 = vmax.f32 %v7005_v33, 0.0  ;;  %v4431_v42 = vmax.f32 %v7189_v34, 0.0  ;;  %v7007_v43 = vadd.f32 %v3054_v39, %v8893_v26  ;;  %v7191_v44 = vadd.f32 %v4040_v40, %v8895_v27  ;;  %v3056_v45 = vpop.f32.mrb[135].mxu0  ;;  %v4042_v46 = vpop.f32.mrb[135].mxu1 }
 0x39c   : > { %v4430_v47 = vmax.f32 %v7006_v37, 0.0  ;;  %v4432_v48 = vmax.f32 %v7190_v38, 0.0  ;;  %v7008_v49 = vadd.f32 %v3056_v45, %v8898_v28  ;;  %v7192_v50 = vadd.f32 %v4042_v46, %v8900_v29 }
 0x39d   : > { %v4433_v51 = vmax.f32 %v7007_v43, 0.0  ;;  %v4435_v52 = vmax.f32 %v7191_v44, 0.0 }
 0x39e   : > { %v6815_v53 = vpack.c.bf16 %v4430_v47, %v4429_v41  ;;  %v6816_v54 = vpack.c.bf16 %v4432_v48, %v4431_v42  ;;  %v4434_v55 = vmax.f32 %v7008_v49, 0.0  ;;  %v4436_v56 = vmax.f32 %v7192_v50, 0.0 }
 0x3a0   : > { %5769 = vst [vmem:[%s8912_s12 + $0x420] sm:$0xff] %v6815_v53  ;;  %5770 = vst [vmem:[%s8912_s12 + $0x428] sm:$0xff] %v6816_v54  ;;  %v6817_v57 = vpack.c.bf16 %v4434_v55, %v4433_v51  ;;  %v6818_v58 = vpack.c.bf16 %v4436_v56, %v4435_v52  ;;  %v3060_v59 = vpop.f32.mrb[136].mxu0  ;;  %v4046_v60 = vpop.f32.mrb[136].mxu1 }
 0x3a1   : > { %v7009_v61 = vadd.f32 %v3060_v59, %v8893_v26  ;;  %v7193_v62 = vadd.f32 %v4046_v60, %v8895_v27  ;;  %v3062_v63 = vpop.f32.mrb[137].mxu0  ;;  %v4048_v0 = vpop.f32.mrb[137].mxu1 }
 0x3a2   : > { %5771 = vst [vmem:[%s8912_s12 + $0x430] sm:$0xff] %v6817_v57  ;;  %5772 = vst [vmem:[%s8912_s12 + $0x438] sm:$0xff] %v6818_v58  ;;  %v7010_v1 = vadd.f32 %v3062_v63, %v8898_v28  ;;  %v7194_v2 = vadd.f32 %v4048_v0, %v8900_v29  ;;  %v3064_v3 = vpop.f32.mrb[138].mxu0  ;;  %v4050_v4 = vpop.f32.mrb[138].mxu1 }
 0x3a3   : > { %v4437_v5 = vmax.f32 %v7009_v61, 0.0  ;;  %v4439_v6 = vmax.f32 %v7193_v62, 0.0  ;;  %v7011_v7 = vadd.f32 %v3064_v3, %v8893_v26  ;;  %v7195_v8 = vadd.f32 %v4050_v4, %v8895_v27  ;;  %v3066_v9 = vpop.f32.mrb[139].mxu0  ;;  %v4052_v10 = vpop.f32.mrb[139].mxu1 }
 0x3a4   : > { %v4438_v11 = vmax.f32 %v7010_v1, 0.0  ;;  %v4440_v12 = vmax.f32 %v7194_v2, 0.0  ;;  %v7012_v13 = vadd.f32 %v3066_v9, %v8898_v28  ;;  %v7196_v14 = vadd.f32 %v4052_v10, %v8900_v29 }
 0x3a5   : > { %v4441_v15 = vmax.f32 %v7011_v7, 0.0  ;;  %v4443_v16 = vmax.f32 %v7195_v8, 0.0 }
 0x3a6   : > { %v6819_v17 = vpack.c.bf16 %v4438_v11, %v4437_v5  ;;  %v6820_v18 = vpack.c.bf16 %v4440_v12, %v4439_v6  ;;  %v4442_v19 = vmax.f32 %v7012_v13, 0.0  ;;  %v4444_v20 = vmax.f32 %v7196_v14, 0.0 }
 0x3a8   : > { %5773 = vst [vmem:[%s8912_s12 + $0x440] sm:$0xff] %v6819_v17  ;;  %5774 = vst [vmem:[%s8912_s12 + $0x448] sm:$0xff] %v6820_v18  ;;  %v6821_v21 = vpack.c.bf16 %v4442_v19, %v4441_v15  ;;  %v6822_v22 = vpack.c.bf16 %v4444_v20, %v4443_v16  ;;  %v3070_v23 = vpop.f32.mrb[140].mxu0  ;;  %v4056_v24 = vpop.f32.mrb[140].mxu1 }
 0x3a9   : > { %v7013_v25 = vadd.f32 %v3070_v23, %v8893_v26  ;;  %v7197_v30 = vadd.f32 %v4056_v24, %v8895_v27  ;;  %v3072_v31 = vpop.f32.mrb[141].mxu0  ;;  %v4058_v32 = vpop.f32.mrb[141].mxu1 }
 0x3aa   : > { %5775 = vst [vmem:[%s8912_s12 + $0x450] sm:$0xff] %v6821_v21  ;;  %5776 = vst [vmem:[%s8912_s12 + $0x458] sm:$0xff] %v6822_v22  ;;  %v7014_v33 = vadd.f32 %v3072_v31, %v8898_v28  ;;  %v7198_v34 = vadd.f32 %v4058_v32, %v8900_v29  ;;  %v3074_v35 = vpop.f32.mrb[142].mxu0  ;;  %v4060_v36 = vpop.f32.mrb[142].mxu1 }
 0x3ab   : > { %v4445_v37 = vmax.f32 %v7013_v25, 0.0  ;;  %v4447_v38 = vmax.f32 %v7197_v30, 0.0  ;;  %v7015_v39 = vadd.f32 %v3074_v35, %v8893_v26  ;;  %v7199_v40 = vadd.f32 %v4060_v36, %v8895_v27  ;;  %v3076_v41 = vpop.f32.mrb[143].mxu0  ;;  %v4062_v42 = vpop.f32.mrb[143].mxu1 }
 0x3ac   : > { %v4446_v43 = vmax.f32 %v7014_v33, 0.0  ;;  %v4448_v44 = vmax.f32 %v7198_v34, 0.0  ;;  %v7016_v45 = vadd.f32 %v3076_v41, %v8898_v28  ;;  %v7200_v46 = vadd.f32 %v4062_v42, %v8900_v29 }
 0x3ad   : > { %v4449_v47 = vmax.f32 %v7015_v39, 0.0  ;;  %v4451_v48 = vmax.f32 %v7199_v40, 0.0 }
 0x3ae   : > { %v6823_v49 = vpack.c.bf16 %v4446_v43, %v4445_v37  ;;  %v6824_v50 = vpack.c.bf16 %v4448_v44, %v4447_v38  ;;  %v4450_v51 = vmax.f32 %v7016_v45, 0.0  ;;  %v4452_v52 = vmax.f32 %v7200_v46, 0.0 }
 0x3b0   : > { %5777 = vst [vmem:[%s8912_s12 + $0x460] sm:$0xff] %v6823_v49  ;;  %5778 = vst [vmem:[%s8912_s12 + $0x468] sm:$0xff] %v6824_v50  ;;  %v6825_v53 = vpack.c.bf16 %v4450_v51, %v4449_v47  ;;  %v6826_v54 = vpack.c.bf16 %v4452_v52, %v4451_v48  ;;  %v3080_v55 = vpop.f32.mrb[144].mxu0  ;;  %v4066_v56 = vpop.f32.mrb[144].mxu1 }
 0x3b1   : > { %v7017_v57 = vadd.f32 %v3080_v55, %v8893_v26  ;;  %v7201_v58 = vadd.f32 %v4066_v56, %v8895_v27  ;;  %v3082_v59 = vpop.f32.mrb[145].mxu0  ;;  %v4068_v60 = vpop.f32.mrb[145].mxu1 }
 0x3b2   : > { %5779 = vst [vmem:[%s8912_s12 + $0x470] sm:$0xff] %v6825_v53  ;;  %5780 = vst [vmem:[%s8912_s12 + $0x478] sm:$0xff] %v6826_v54  ;;  %v7018_v61 = vadd.f32 %v3082_v59, %v8898_v28  ;;  %v7202_v62 = vadd.f32 %v4068_v60, %v8900_v29  ;;  %v3084_v63 = vpop.f32.mrb[146].mxu0  ;;  %v4070_v0 = vpop.f32.mrb[146].mxu1 }
 0x3b3   : > { %v4453_v1 = vmax.f32 %v7017_v57, 0.0  ;;  %v4455_v2 = vmax.f32 %v7201_v58, 0.0  ;;  %v7019_v3 = vadd.f32 %v3084_v63, %v8893_v26  ;;  %v7203_v4 = vadd.f32 %v4070_v0, %v8895_v27  ;;  %v3086_v5 = vpop.f32.mrb[147].mxu0  ;;  %v4072_v6 = vpop.f32.mrb[147].mxu1 }
 0x3b4   : > { %v4454_v7 = vmax.f32 %v7018_v61, 0.0  ;;  %v4456_v8 = vmax.f32 %v7202_v62, 0.0  ;;  %v7020_v9 = vadd.f32 %v3086_v5, %v8898_v28  ;;  %v7204_v10 = vadd.f32 %v4072_v6, %v8900_v29 }
 0x3b5   : > { %v4457_v11 = vmax.f32 %v7019_v3, 0.0  ;;  %v4459_v12 = vmax.f32 %v7203_v4, 0.0 }
 0x3b6   : > { %v6827_v13 = vpack.c.bf16 %v4454_v7, %v4453_v1  ;;  %v6828_v14 = vpack.c.bf16 %v4456_v8, %v4455_v2  ;;  %v4458_v15 = vmax.f32 %v7020_v9, 0.0  ;;  %v4460_v16 = vmax.f32 %v7204_v10, 0.0 }
 0x3b8   : > { %5781 = vst [vmem:[%s8912_s12 + $0x480] sm:$0xff] %v6827_v13  ;;  %5782 = vst [vmem:[%s8912_s12 + $0x488] sm:$0xff] %v6828_v14  ;;  %v6829_v17 = vpack.c.bf16 %v4458_v15, %v4457_v11  ;;  %v6830_v18 = vpack.c.bf16 %v4460_v16, %v4459_v12  ;;  %v3090_v19 = vpop.f32.mrb[148].mxu0  ;;  %v4076_v20 = vpop.f32.mrb[148].mxu1 }
 0x3b9   : > { %v7021_v21 = vadd.f32 %v3090_v19, %v8893_v26  ;;  %v7205_v22 = vadd.f32 %v4076_v20, %v8895_v27  ;;  %v3092_v23 = vpop.f32.mrb[149].mxu0  ;;  %v4078_v24 = vpop.f32.mrb[149].mxu1 }
 0x3ba   : > { %5783 = vst [vmem:[%s8912_s12 + $0x490] sm:$0xff] %v6829_v17  ;;  %5784 = vst [vmem:[%s8912_s12 + $0x498] sm:$0xff] %v6830_v18  ;;  %v7022_v25 = vadd.f32 %v3092_v23, %v8898_v28  ;;  %v7206_v30 = vadd.f32 %v4078_v24, %v8900_v29  ;;  %v3094_v31 = vpop.f32.mrb[150].mxu0  ;;  %v4080_v32 = vpop.f32.mrb[150].mxu1 }
 0x3bb   : > { %v4461_v33 = vmax.f32 %v7021_v21, 0.0  ;;  %v4463_v34 = vmax.f32 %v7205_v22, 0.0  ;;  %v7023_v35 = vadd.f32 %v3094_v31, %v8893_v26  ;;  %v7207_v36 = vadd.f32 %v4080_v32, %v8895_v27  ;;  %v3096_v37 = vpop.f32.mrb[151].mxu0  ;;  %v4082_v38 = vpop.f32.mrb[151].mxu1 }
 0x3bc   : > { %v4462_v39 = vmax.f32 %v7022_v25, 0.0  ;;  %v4464_v40 = vmax.f32 %v7206_v30, 0.0  ;;  %v7024_v41 = vadd.f32 %v3096_v37, %v8898_v28  ;;  %v7208_v42 = vadd.f32 %v4082_v38, %v8900_v29 }
 0x3bd   : > { %v4465_v43 = vmax.f32 %v7023_v35, 0.0  ;;  %v4467_v44 = vmax.f32 %v7207_v36, 0.0 }
 0x3be   : > { %v6831_v45 = vpack.c.bf16 %v4462_v39, %v4461_v33  ;;  %v6832_v46 = vpack.c.bf16 %v4464_v40, %v4463_v34  ;;  %v4466_v47 = vmax.f32 %v7024_v41, 0.0  ;;  %v4468_v48 = vmax.f32 %v7208_v42, 0.0 }
 0x3c0   : > { %5785 = vst [vmem:[%s8912_s12 + $0x4a0] sm:$0xff] %v6831_v45  ;;  %5786 = vst [vmem:[%s8912_s12 + $0x4a8] sm:$0xff] %v6832_v46  ;;  %v6833_v49 = vpack.c.bf16 %v4466_v47, %v4465_v43  ;;  %v6834_v50 = vpack.c.bf16 %v4468_v48, %v4467_v44  ;;  %v3100_v51 = vpop.f32.mrb[152].mxu0  ;;  %v4086_v52 = vpop.f32.mrb[152].mxu1 }
 0x3c1   : > { %v7025_v53 = vadd.f32 %v3100_v51, %v8893_v26  ;;  %v7209_v54 = vadd.f32 %v4086_v52, %v8895_v27  ;;  %v3102_v55 = vpop.f32.mrb[153].mxu0  ;;  %v4088_v56 = vpop.f32.mrb[153].mxu1 }
 0x3c2   : > { %5787 = vst [vmem:[%s8912_s12 + $0x4b0] sm:$0xff] %v6833_v49  ;;  %5788 = vst [vmem:[%s8912_s12 + $0x4b8] sm:$0xff] %v6834_v50  ;;  %v7026_v57 = vadd.f32 %v3102_v55, %v8898_v28  ;;  %v7210_v58 = vadd.f32 %v4088_v56, %v8900_v29  ;;  %v3104_v59 = vpop.f32.mrb[154].mxu0  ;;  %v4090_v60 = vpop.f32.mrb[154].mxu1 }
 0x3c3   : > { %v4469_v61 = vmax.f32 %v7025_v53, 0.0  ;;  %v4471_v62 = vmax.f32 %v7209_v54, 0.0  ;;  %v7027_v63 = vadd.f32 %v3104_v59, %v8893_v26  ;;  %v7211_v0 = vadd.f32 %v4090_v60, %v8895_v27  ;;  %v3106_v1 = vpop.f32.mrb[155].mxu0  ;;  %v4092_v2 = vpop.f32.mrb[155].mxu1 }
 0x3c4   : > { %v4470_v3 = vmax.f32 %v7026_v57, 0.0  ;;  %v4472_v4 = vmax.f32 %v7210_v58, 0.0  ;;  %v7028_v5 = vadd.f32 %v3106_v1, %v8898_v28  ;;  %v7212_v6 = vadd.f32 %v4092_v2, %v8900_v29 }
 0x3c5   : > { %v4473_v7 = vmax.f32 %v7027_v63, 0.0  ;;  %v4475_v8 = vmax.f32 %v7211_v0, 0.0 }
 0x3c6   : > { %v6835_v9 = vpack.c.bf16 %v4470_v3, %v4469_v61  ;;  %v6836_v10 = vpack.c.bf16 %v4472_v4, %v4471_v62  ;;  %v4474_v11 = vmax.f32 %v7028_v5, 0.0  ;;  %v4476_v12 = vmax.f32 %v7212_v6, 0.0 }
 0x3c8   : > { %5789 = vst [vmem:[%s8912_s12 + $0x4c0] sm:$0xff] %v6835_v9  ;;  %5790 = vst [vmem:[%s8912_s12 + $0x4c8] sm:$0xff] %v6836_v10  ;;  %v6837_v13 = vpack.c.bf16 %v4474_v11, %v4473_v7  ;;  %v6838_v14 = vpack.c.bf16 %v4476_v12, %v4475_v8  ;;  %v3110_v15 = vpop.f32.mrb[156].mxu0  ;;  %v4096_v16 = vpop.f32.mrb[156].mxu1 }
 0x3c9   : > { %v7029_v17 = vadd.f32 %v3110_v15, %v8893_v26  ;;  %v7213_v18 = vadd.f32 %v4096_v16, %v8895_v27  ;;  %v3112_v19 = vpop.f32.mrb[157].mxu0  ;;  %v4098_v20 = vpop.f32.mrb[157].mxu1 }
 0x3ca   : > { %5791 = vst [vmem:[%s8912_s12 + $0x4d0] sm:$0xff] %v6837_v13  ;;  %5792 = vst [vmem:[%s8912_s12 + $0x4d8] sm:$0xff] %v6838_v14  ;;  %v7030_v21 = vadd.f32 %v3112_v19, %v8898_v28  ;;  %v7214_v22 = vadd.f32 %v4098_v20, %v8900_v29  ;;  %v3114_v23 = vpop.f32.mrb[158].mxu0  ;;  %v4100_v24 = vpop.f32.mrb[158].mxu1 }
 0x3cb   : > { %v4477_v25 = vmax.f32 %v7029_v17, 0.0  ;;  %v4479_v30 = vmax.f32 %v7213_v18, 0.0  ;;  %v7031_v31 = vadd.f32 %v3114_v23, %v8893_v26  ;;  %v7215_v32 = vadd.f32 %v4100_v24, %v8895_v27  ;;  %v3116_v33 = vpop.f32.mrb[159].mxu0  ;;  %v4102_v34 = vpop.f32.mrb[159].mxu1 }
 0x3cc   : > { %v4478_v35 = vmax.f32 %v7030_v21, 0.0  ;;  %v4480_v36 = vmax.f32 %v7214_v22, 0.0  ;;  %v7032_v37 = vadd.f32 %v3116_v33, %v8898_v28  ;;  %v7216_v38 = vadd.f32 %v4102_v34, %v8900_v29 }
 0x3cd   : > { %v4481_v39 = vmax.f32 %v7031_v31, 0.0  ;;  %v4483_v40 = vmax.f32 %v7215_v32, 0.0 }
 0x3ce   : > { %v6839_v41 = vpack.c.bf16 %v4478_v35, %v4477_v25  ;;  %v6840_v42 = vpack.c.bf16 %v4480_v36, %v4479_v30  ;;  %v4482_v43 = vmax.f32 %v7032_v37, 0.0  ;;  %v4484_v44 = vmax.f32 %v7216_v38, 0.0 }
 0x3d0   : > { %5793 = vst [vmem:[%s8912_s12 + $0x4e0] sm:$0xff] %v6839_v41  ;;  %5794 = vst [vmem:[%s8912_s12 + $0x4e8] sm:$0xff] %v6840_v42  ;;  %v6841_v45 = vpack.c.bf16 %v4482_v43, %v4481_v39  ;;  %v6842_v46 = vpack.c.bf16 %v4484_v44, %v4483_v40  ;;  %v3120_v47 = vpop.f32.mrb[160].mxu0  ;;  %v4106_v48 = vpop.f32.mrb[160].mxu1 }
 0x3d1   : > { %v7033_v49 = vadd.f32 %v3120_v47, %v8893_v26  ;;  %v7217_v50 = vadd.f32 %v4106_v48, %v8895_v27  ;;  %v3122_v51 = vpop.f32.mrb[161].mxu0  ;;  %v4108_v52 = vpop.f32.mrb[161].mxu1 }
 0x3d2   : > { %5795 = vst [vmem:[%s8912_s12 + $0x4f0] sm:$0xff] %v6841_v45  ;;  %5796 = vst [vmem:[%s8912_s12 + $0x4f8] sm:$0xff] %v6842_v46  ;;  %v7034_v53 = vadd.f32 %v3122_v51, %v8898_v28  ;;  %v7218_v54 = vadd.f32 %v4108_v52, %v8900_v29  ;;  %v3124_v55 = vpop.f32.mrb[162].mxu0  ;;  %v4110_v56 = vpop.f32.mrb[162].mxu1 }
 0x3d3   : > { %v4485_v57 = vmax.f32 %v7033_v49, 0.0  ;;  %v4487_v58 = vmax.f32 %v7217_v50, 0.0  ;;  %v7035_v59 = vadd.f32 %v3124_v55, %v8893_v26  ;;  %v7219_v60 = vadd.f32 %v4110_v56, %v8895_v27  ;;  %v3126_v61 = vpop.f32.mrb[163].mxu0  ;;  %v4112_v62 = vpop.f32.mrb[163].mxu1 }
 0x3d4   : > { %v4486_v63 = vmax.f32 %v7034_v53, 0.0  ;;  %v4488_v0 = vmax.f32 %v7218_v54, 0.0  ;;  %v7036_v1 = vadd.f32 %v3126_v61, %v8898_v28  ;;  %v7220_v2 = vadd.f32 %v4112_v62, %v8900_v29 }
 0x3d5   : > { %v4489_v3 = vmax.f32 %v7035_v59, 0.0  ;;  %v4491_v4 = vmax.f32 %v7219_v60, 0.0 }
 0x3d6   : > { %v6843_v5 = vpack.c.bf16 %v4486_v63, %v4485_v57  ;;  %v6844_v6 = vpack.c.bf16 %v4488_v0, %v4487_v58  ;;  %v4490_v7 = vmax.f32 %v7036_v1, 0.0  ;;  %v4492_v8 = vmax.f32 %v7220_v2, 0.0 }
 0x3d8   : > { %5797 = vst [vmem:[%s8912_s12 + $0x500] sm:$0xff] %v6843_v5  ;;  %5798 = vst [vmem:[%s8912_s12 + $0x508] sm:$0xff] %v6844_v6  ;;  %v6845_v9 = vpack.c.bf16 %v4490_v7, %v4489_v3  ;;  %v6846_v10 = vpack.c.bf16 %v4492_v8, %v4491_v4  ;;  %v3130_v11 = vpop.f32.mrb[164].mxu0  ;;  %v4116_v12 = vpop.f32.mrb[164].mxu1 }
 0x3d9   : > { %v7037_v13 = vadd.f32 %v3130_v11, %v8893_v26  ;;  %v7221_v14 = vadd.f32 %v4116_v12, %v8895_v27  ;;  %v3132_v15 = vpop.f32.mrb[165].mxu0  ;;  %v4118_v16 = vpop.f32.mrb[165].mxu1 }
 0x3da   : > { %5799 = vst [vmem:[%s8912_s12 + $0x510] sm:$0xff] %v6845_v9  ;;  %5800 = vst [vmem:[%s8912_s12 + $0x518] sm:$0xff] %v6846_v10  ;;  %v7038_v17 = vadd.f32 %v3132_v15, %v8898_v28  ;;  %v7222_v18 = vadd.f32 %v4118_v16, %v8900_v29  ;;  %v3134_v19 = vpop.f32.mrb[166].mxu0  ;;  %v4120_v20 = vpop.f32.mrb[166].mxu1 }
 0x3db   : > { %v4493_v21 = vmax.f32 %v7037_v13, 0.0  ;;  %v4495_v22 = vmax.f32 %v7221_v14, 0.0  ;;  %v7039_v23 = vadd.f32 %v3134_v19, %v8893_v26  ;;  %v7223_v24 = vadd.f32 %v4120_v20, %v8895_v27  ;;  %v3136_v25 = vpop.f32.mrb[167].mxu0  ;;  %v4122_v30 = vpop.f32.mrb[167].mxu1 }
 0x3dc   : > { %v4494_v31 = vmax.f32 %v7038_v17, 0.0  ;;  %v4496_v32 = vmax.f32 %v7222_v18, 0.0  ;;  %v7040_v33 = vadd.f32 %v3136_v25, %v8898_v28  ;;  %v7224_v34 = vadd.f32 %v4122_v30, %v8900_v29 }
 0x3dd   : > { %v4497_v35 = vmax.f32 %v7039_v23, 0.0  ;;  %v4499_v36 = vmax.f32 %v7223_v24, 0.0 }
 0x3de   : > { %v6847_v37 = vpack.c.bf16 %v4494_v31, %v4493_v21  ;;  %v6848_v38 = vpack.c.bf16 %v4496_v32, %v4495_v22  ;;  %v4498_v39 = vmax.f32 %v7040_v33, 0.0  ;;  %v4500_v40 = vmax.f32 %v7224_v34, 0.0 }
 0x3e0   : > { %5801 = vst [vmem:[%s8912_s12 + $0x520] sm:$0xff] %v6847_v37  ;;  %5802 = vst [vmem:[%s8912_s12 + $0x528] sm:$0xff] %v6848_v38  ;;  %v6849_v41 = vpack.c.bf16 %v4498_v39, %v4497_v35  ;;  %v6850_v42 = vpack.c.bf16 %v4500_v40, %v4499_v36  ;;  %v3140_v43 = vpop.f32.mrb[168].mxu0  ;;  %v4126_v44 = vpop.f32.mrb[168].mxu1 }
 0x3e1   : > { %v7041_v45 = vadd.f32 %v3140_v43, %v8893_v26  ;;  %v7225_v46 = vadd.f32 %v4126_v44, %v8895_v27  ;;  %v3142_v47 = vpop.f32.mrb[169].mxu0  ;;  %v4128_v48 = vpop.f32.mrb[169].mxu1 }
 0x3e2   : > { %5803 = vst [vmem:[%s8912_s12 + $0x530] sm:$0xff] %v6849_v41  ;;  %5804 = vst [vmem:[%s8912_s12 + $0x538] sm:$0xff] %v6850_v42  ;;  %v7042_v49 = vadd.f32 %v3142_v47, %v8898_v28  ;;  %v7226_v50 = vadd.f32 %v4128_v48, %v8900_v29  ;;  %v3144_v51 = vpop.f32.mrb[170].mxu0  ;;  %v4130_v52 = vpop.f32.mrb[170].mxu1 }
 0x3e3   : > { %v4501_v53 = vmax.f32 %v7041_v45, 0.0  ;;  %v4503_v54 = vmax.f32 %v7225_v46, 0.0  ;;  %v7043_v55 = vadd.f32 %v3144_v51, %v8893_v26  ;;  %v7227_v56 = vadd.f32 %v4130_v52, %v8895_v27  ;;  %v3146_v57 = vpop.f32.mrb[171].mxu0  ;;  %v4132_v58 = vpop.f32.mrb[171].mxu1 }
 0x3e4   : > { %v4502_v59 = vmax.f32 %v7042_v49, 0.0  ;;  %v4504_v60 = vmax.f32 %v7226_v50, 0.0  ;;  %v7044_v61 = vadd.f32 %v3146_v57, %v8898_v28  ;;  %v7228_v62 = vadd.f32 %v4132_v58, %v8900_v29 }
 0x3e5   : > { %v4505_v63 = vmax.f32 %v7043_v55, 0.0  ;;  %v4507_v0 = vmax.f32 %v7227_v56, 0.0 }
 0x3e6   : > { %v6851_v1 = vpack.c.bf16 %v4502_v59, %v4501_v53  ;;  %v6852_v2 = vpack.c.bf16 %v4504_v60, %v4503_v54  ;;  %v4506_v3 = vmax.f32 %v7044_v61, 0.0  ;;  %v4508_v4 = vmax.f32 %v7228_v62, 0.0 }
 0x3e8   : > { %5805 = vst [vmem:[%s8912_s12 + $0x540] sm:$0xff] %v6851_v1  ;;  %5806 = vst [vmem:[%s8912_s12 + $0x548] sm:$0xff] %v6852_v2  ;;  %v6853_v5 = vpack.c.bf16 %v4506_v3, %v4505_v63  ;;  %v6854_v6 = vpack.c.bf16 %v4508_v4, %v4507_v0  ;;  %v3150_v7 = vpop.f32.mrb[172].mxu0  ;;  %v4136_v8 = vpop.f32.mrb[172].mxu1 }
 0x3e9   : > { %v7045_v9 = vadd.f32 %v3150_v7, %v8893_v26  ;;  %v7229_v10 = vadd.f32 %v4136_v8, %v8895_v27  ;;  %v3152_v11 = vpop.f32.mrb[173].mxu0  ;;  %v4138_v12 = vpop.f32.mrb[173].mxu1 }
 0x3ea   : > { %5807 = vst [vmem:[%s8912_s12 + $0x550] sm:$0xff] %v6853_v5  ;;  %5808 = vst [vmem:[%s8912_s12 + $0x558] sm:$0xff] %v6854_v6  ;;  %v7046_v13 = vadd.f32 %v3152_v11, %v8898_v28  ;;  %v7230_v14 = vadd.f32 %v4138_v12, %v8900_v29  ;;  %v3154_v15 = vpop.f32.mrb[174].mxu0  ;;  %v4140_v16 = vpop.f32.mrb[174].mxu1 }
 0x3eb   : > { %v4509_v17 = vmax.f32 %v7045_v9, 0.0  ;;  %v4511_v18 = vmax.f32 %v7229_v10, 0.0  ;;  %v7047_v19 = vadd.f32 %v3154_v15, %v8893_v26  ;;  %v7231_v20 = vadd.f32 %v4140_v16, %v8895_v27  ;;  %v3156_v21 = vpop.f32.mrb[175].mxu0  ;;  %v4142_v22 = vpop.f32.mrb[175].mxu1 }
 0x3ec   : > { %v4510_v23 = vmax.f32 %v7046_v13, 0.0  ;;  %v4512_v24 = vmax.f32 %v7230_v14, 0.0  ;;  %v7048_v25 = vadd.f32 %v3156_v21, %v8898_v28  ;;  %v7232_v30 = vadd.f32 %v4142_v22, %v8900_v29 }
 0x3ed   : > { %v4513_v31 = vmax.f32 %v7047_v19, 0.0  ;;  %v4515_v32 = vmax.f32 %v7231_v20, 0.0 }
 0x3ee   : > { %v6855_v33 = vpack.c.bf16 %v4510_v23, %v4509_v17  ;;  %v6856_v34 = vpack.c.bf16 %v4512_v24, %v4511_v18  ;;  %v4514_v35 = vmax.f32 %v7048_v25, 0.0  ;;  %v4516_v36 = vmax.f32 %v7232_v30, 0.0 }
 0x3f0   : > { %5809 = vst [vmem:[%s8912_s12 + $0x560] sm:$0xff] %v6855_v33  ;;  %5810 = vst [vmem:[%s8912_s12 + $0x568] sm:$0xff] %v6856_v34  ;;  %v6857_v37 = vpack.c.bf16 %v4514_v35, %v4513_v31  ;;  %v6858_v38 = vpack.c.bf16 %v4516_v36, %v4515_v32  ;;  %v3160_v39 = vpop.f32.mrb[176].mxu0  ;;  %v4146_v40 = vpop.f32.mrb[176].mxu1 }
 0x3f1   : > { %v7049_v41 = vadd.f32 %v3160_v39, %v8893_v26  ;;  %v7233_v42 = vadd.f32 %v4146_v40, %v8895_v27  ;;  %v3162_v43 = vpop.f32.mrb[177].mxu0  ;;  %v4148_v44 = vpop.f32.mrb[177].mxu1 }
 0x3f2   : > { %5811 = vst [vmem:[%s8912_s12 + $0x570] sm:$0xff] %v6857_v37  ;;  %5812 = vst [vmem:[%s8912_s12 + $0x578] sm:$0xff] %v6858_v38  ;;  %v7050_v45 = vadd.f32 %v3162_v43, %v8898_v28  ;;  %v7234_v46 = vadd.f32 %v4148_v44, %v8900_v29  ;;  %v3164_v47 = vpop.f32.mrb[178].mxu0  ;;  %v4150_v48 = vpop.f32.mrb[178].mxu1 }
 0x3f3   : > { %v4517_v49 = vmax.f32 %v7049_v41, 0.0  ;;  %v4519_v50 = vmax.f32 %v7233_v42, 0.0  ;;  %v7051_v51 = vadd.f32 %v3164_v47, %v8893_v26  ;;  %v7235_v52 = vadd.f32 %v4150_v48, %v8895_v27  ;;  %v3166_v53 = vpop.f32.mrb[179].mxu0  ;;  %v4152_v54 = vpop.f32.mrb[179].mxu1 }
 0x3f4   : > { %v4518_v55 = vmax.f32 %v7050_v45, 0.0  ;;  %v4520_v56 = vmax.f32 %v7234_v46, 0.0  ;;  %v7052_v57 = vadd.f32 %v3166_v53, %v8898_v28  ;;  %v7236_v58 = vadd.f32 %v4152_v54, %v8900_v29 }
 0x3f5   : > { %v4521_v59 = vmax.f32 %v7051_v51, 0.0  ;;  %v4523_v60 = vmax.f32 %v7235_v52, 0.0 }
 0x3f6   : > { %v6859_v61 = vpack.c.bf16 %v4518_v55, %v4517_v49  ;;  %v6860_v62 = vpack.c.bf16 %v4520_v56, %v4519_v50  ;;  %v4522_v63 = vmax.f32 %v7052_v57, 0.0  ;;  %v4524_v0 = vmax.f32 %v7236_v58, 0.0 }
 0x3f8   : > { %5813 = vst [vmem:[%s8912_s12 + $0x580] sm:$0xff] %v6859_v61  ;;  %5814 = vst [vmem:[%s8912_s12 + $0x588] sm:$0xff] %v6860_v62  ;;  %v6861_v1 = vpack.c.bf16 %v4522_v63, %v4521_v59  ;;  %v6862_v2 = vpack.c.bf16 %v4524_v0, %v4523_v60  ;;  %v3170_v3 = vpop.f32.mrb[180].mxu0  ;;  %v4156_v4 = vpop.f32.mrb[180].mxu1 }
 0x3f9   : > { %v7053_v5 = vadd.f32 %v3170_v3, %v8893_v26  ;;  %v7237_v6 = vadd.f32 %v4156_v4, %v8895_v27  ;;  %v3172_v7 = vpop.f32.mrb[181].mxu0  ;;  %v4158_v8 = vpop.f32.mrb[181].mxu1 }
 0x3fa   : > { %5815 = vst [vmem:[%s8912_s12 + $0x590] sm:$0xff] %v6861_v1  ;;  %5816 = vst [vmem:[%s8912_s12 + $0x598] sm:$0xff] %v6862_v2  ;;  %v7054_v9 = vadd.f32 %v3172_v7, %v8898_v28  ;;  %v7238_v10 = vadd.f32 %v4158_v8, %v8900_v29  ;;  %v3174_v11 = vpop.f32.mrb[182].mxu0  ;;  %v4160_v12 = vpop.f32.mrb[182].mxu1 }
 0x3fb   : > { %v4525_v13 = vmax.f32 %v7053_v5, 0.0  ;;  %v4527_v14 = vmax.f32 %v7237_v6, 0.0  ;;  %v7055_v15 = vadd.f32 %v3174_v11, %v8893_v26  ;;  %v7239_v16 = vadd.f32 %v4160_v12, %v8895_v27  ;;  %v3176_v17 = vpop.f32.mrb[183].mxu0  ;;  %v4162_v18 = vpop.f32.mrb[183].mxu1 }
 0x3fc   : > { %v4526_v19 = vmax.f32 %v7054_v9, 0.0  ;;  %v4528_v20 = vmax.f32 %v7238_v10, 0.0  ;;  %v7056_v21 = vadd.f32 %v3176_v17, %v8898_v28  ;;  %v7240_v22 = vadd.f32 %v4162_v18, %v8900_v29  ;;  %5827 = sbr.rel (!%p8338_p3) target bundleno = 1099 (0x44b), region = 36 }
 0x3fd   : > { %v4529_v23 = vmax.f32 %v7055_v15, 0.0  ;;  %v4531_v24 = vmax.f32 %v7239_v16, 0.0 }
 0x3fe   : > { %v6863_v25 = vpack.c.bf16 %v4526_v19, %v4525_v13  ;;  %v6864_v30 = vpack.c.bf16 %v4528_v20, %v4527_v14  ;;  %v4530_v31 = vmax.f32 %v7056_v21, 0.0  ;;  %v4532_v32 = vmax.f32 %v7240_v22, 0.0 }
 0x400   : > { %5817 = vst [vmem:[%s8912_s12 + $0x5a0] sm:$0xff] %v6863_v25  ;;  %5818 = vst [vmem:[%s8912_s12 + $0x5a8] sm:$0xff] %v6864_v30  ;;  %v6865_v26 = vpack.c.bf16 %v4530_v31, %v4529_v23  ;;  %v6866_v27 = vpack.c.bf16 %v4532_v32, %v4531_v24 }
 0x402   : > { %5819 = vst [vmem:[%s8912_s12 + $0x5b0] sm:$0xff] %v6865_v26  ;;  %5820 = vst [vmem:[%s8912_s12 + $0x5b8] sm:$0xff] %v6866_v27 }
 0x403   : > { %s9725_s25 = smov (!%p5831_p9, %s5830_s25), 92 }
 0x404   : > { %s6867_s30 = sshll.u32 %s9725_s25, 8 }
 0x405   : > { %p6670_p10 = scmp.eq.s32.totalorder %s6867_s30, 0 }
 0x406   : > { %s9506_s4 = sshrl.u32 (!%p6670_p10), %s9725_s25, 5 }
 0x407   : > { %5842 = sbr.rel (%p6670_p10) target bundleno = 1099 (0x44b), region = 40  ;;  %p6671_p11 = scmp.le.s32.totalorder (!%p6670_p10), %s9506_s4, 0 }
 0x40e   : > { %6087 = sbr.rel (%p6671_p11) target bundleno = 1078 (0x436), region = 94  ;;  %s9713_s14 = smov (!%p6671_p11), %s9500_s29 }
 0x40f   : > { %s9714_s20 = smov (!%p6671_p11), %s8912_s12  ;;  %s9515_s26 = smov (!%p6671_p11), 0  }
 0x410   : > { %s9517_s5 = smov (!%p6671_p11), 0  }
 0x415 LB: >> { %v5855_v28 = vld [vmem:[%s8260_s20] sm:$0xff]  ;;  %v5857_v29 = vld [vmem:[%s8260_s20 + $0x10] sm:$0xff]  ;;  %s5983_s6 = sadd.s32 1, %s8264_s26  ;;  %v5919_v63 = vld [vmem:[%s8260_s20 + $0x8] sm:$0xff]  ;;  %s5849_s5 = sadd.s32 1, %s8268_s5   ;;  %s8268_s5 = sphi %s9517_s5, %s5849_s5   ;;  %s8264_s26 = sphi %s9515_s26, %s9717_s26   ;;  %s8260_s20 = sphi %s9714_s20, %s9716_s20   ;;  %s8256_s14 = sphi %s9713_s14, %s9715_s14  }
 0x416   : >> { %v5859_v33 = vld [vmem:[%s8260_s20 + $0x20] sm:$0xff]  ;;  %5856 = vst [vmem:[%s8256_s14] sm:$0xff] %v5855_v28  ;;  %5858 = vst [vmem:[%s8256_s14 + $0x10] sm:$0xff] %v5857_v29  ;;  %v5861_v34 = vld [vmem:[%s8260_s20 + $0x30] sm:$0xff]  ;;  %p5984_p12 = scmp.ge.s32.totalorder %s5983_s6, %s9506_s4  ;;  %p5848_p13 = scmp.ge.s32.totalorder %s5849_s5, %s9506_s4 }
 0x417   : >> { %5860 = vst [vmem:[%s8256_s14 + $0x20] sm:$0xff] %v5859_v33  ;;  %v5863_v35 = vld [vmem:[%s8260_s20 + $0x40] sm:$0xff]  ;;  %v5865_v36 = vld [vmem:[%s8260_s20 + $0x50] sm:$0xff]  ;;  %5862 = vst [vmem:[%s8256_s14 + $0x30] sm:$0xff] %v5861_v34 }
 0x418   : >> { %5864 = vst [vmem:[%s8256_s14 + $0x40] sm:$0xff] %v5863_v35  ;;  %5866 = vst [vmem:[%s8256_s14 + $0x50] sm:$0xff] %v5865_v36  ;;  %v5867_v37 = vld [vmem:[%s8260_s20 + $0x60] sm:$0xff]  ;;  %v5869_v38 = vld [vmem:[%s8260_s20 + $0x70] sm:$0xff]  ;;  %s9727_s6 = smov (%p5984_p12, %s5983_s6), 0 }
 0x419   : >> { %v5871_v39 = vld [vmem:[%s8260_s20 + $0x80] sm:$0xff]  ;;  %5868 = vst [vmem:[%s8256_s14 + $0x60] sm:$0xff] %v5867_v37  ;;  %5870 = vst [vmem:[%s8256_s14 + $0x70] sm:$0xff] %v5869_v38  ;;  %v5873_v40 = vld [vmem:[%s8260_s20 + $0x90] sm:$0xff]  ;;  %s6672_s7 = sshll.u32 %s9727_s6, 9  ;;  %s9717_s26 = smov %s9727_s6 }
 0x41a   : >> { %5872 = vst [vmem:[%s8256_s14 + $0x80] sm:$0xff] %v5871_v39  ;;  %v5875_v41 = vld [vmem:[%s8260_s20 + $0xa0] sm:$0xff]  ;;  %v5877_v42 = vld [vmem:[%s8260_s20 + $0xb0] sm:$0xff]  ;;  %5874 = vst [vmem:[%s8256_s14 + $0x90] sm:$0xff] %v5873_v40  ;;  %s9573_s8 = scalar_lea.vmem %s8912_s12, %s6672_s7 [#allocation2]   ;;  %s9576_s9 = scalar_lea.vmem %s9500_s29, %s6672_s7  }
 0x41b   : >> { %5876 = vst [vmem:[%s8256_s14 + $0xa0] sm:$0xff] %v5875_v41  ;;  %5878 = vst [vmem:[%s8256_s14 + $0xb0] sm:$0xff] %v5877_v42  ;;  %v5879_v43 = vld [vmem:[%s8260_s20 + $0xc0] sm:$0xff]  ;;  %v5881_v44 = vld [vmem:[%s8260_s20 + $0xd0] sm:$0xff] }
 0x41c   : >> { %v5883_v45 = vld [vmem:[%s8260_s20 + $0xe0] sm:$0xff]  ;;  %5880 = vst [vmem:[%s8256_s14 + $0xc0] sm:$0xff] %v5879_v43  ;;  %5882 = vst [vmem:[%s8256_s14 + $0xd0] sm:$0xff] %v5881_v44  ;;  %v5885_v46 = vld [vmem:[%s8260_s20 + $0xf0] sm:$0xff] }
 0x41d   : >> { %5884 = vst [vmem:[%s8256_s14 + $0xe0] sm:$0xff] %v5883_v45  ;;  %v5887_v47 = vld [vmem:[%s8260_s20 + $0x100] sm:$0xff]  ;;  %v5889_v48 = vld [vmem:[%s8260_s20 + $0x110] sm:$0xff]  ;;  %5886 = vst [vmem:[%s8256_s14 + $0xf0] sm:$0xff] %v5885_v46 }
 0x41e   : >> { %5888 = vst [vmem:[%s8256_s14 + $0x100] sm:$0xff] %v5887_v47  ;;  %5890 = vst [vmem:[%s8256_s14 + $0x110] sm:$0xff] %v5889_v48  ;;  %v5891_v49 = vld [vmem:[%s8260_s20 + $0x120] sm:$0xff]  ;;  %v5893_v50 = vld [vmem:[%s8260_s20 + $0x130] sm:$0xff] }
 0x41f   : >> { %v5895_v51 = vld [vmem:[%s8260_s20 + $0x140] sm:$0xff]  ;;  %5892 = vst [vmem:[%s8256_s14 + $0x120] sm:$0xff] %v5891_v49  ;;  %5894 = vst [vmem:[%s8256_s14 + $0x130] sm:$0xff] %v5893_v50  ;;  %v5897_v52 = vld [vmem:[%s8260_s20 + $0x150] sm:$0xff] }
 0x420   : >> { %5896 = vst [vmem:[%s8256_s14 + $0x140] sm:$0xff] %v5895_v51  ;;  %v5899_v53 = vld [vmem:[%s8260_s20 + $0x160] sm:$0xff]  ;;  %v5901_v54 = vld [vmem:[%s8260_s20 + $0x170] sm:$0xff]  ;;  %5898 = vst [vmem:[%s8256_s14 + $0x150] sm:$0xff] %v5897_v52 }
 0x421   : >> { %5900 = vst [vmem:[%s8256_s14 + $0x160] sm:$0xff] %v5899_v53  ;;  %5902 = vst [vmem:[%s8256_s14 + $0x170] sm:$0xff] %v5901_v54  ;;  %v5903_v55 = vld [vmem:[%s8260_s20 + $0x180] sm:$0xff]  ;;  %v5905_v56 = vld [vmem:[%s8260_s20 + $0x190] sm:$0xff] }
 0x422   : >> { %v5907_v57 = vld [vmem:[%s8260_s20 + $0x1a0] sm:$0xff]  ;;  %5904 = vst [vmem:[%s8256_s14 + $0x180] sm:$0xff] %v5903_v55  ;;  %5906 = vst [vmem:[%s8256_s14 + $0x190] sm:$0xff] %v5905_v56  ;;  %v5909_v58 = vld [vmem:[%s8260_s20 + $0x1b0] sm:$0xff] }
 0x423   : >> { %5908 = vst [vmem:[%s8256_s14 + $0x1a0] sm:$0xff] %v5907_v57  ;;  %v5911_v59 = vld [vmem:[%s8260_s20 + $0x1c0] sm:$0xff]  ;;  %v5913_v60 = vld [vmem:[%s8260_s20 + $0x1d0] sm:$0xff]  ;;  %5910 = vst [vmem:[%s8256_s14 + $0x1b0] sm:$0xff] %v5909_v58 }
 0x424   : >> { %5912 = vst [vmem:[%s8256_s14 + $0x1c0] sm:$0xff] %v5911_v59  ;;  %5914 = vst [vmem:[%s8256_s14 + $0x1d0] sm:$0xff] %v5913_v60  ;;  %v5915_v61 = vld [vmem:[%s8260_s20 + $0x1e0] sm:$0xff]  ;;  %v5917_v62 = vld [vmem:[%s8260_s20 + $0x1f0] sm:$0xff] }
 0x425   : >> { %5916 = vst [vmem:[%s8256_s14 + $0x1e0] sm:$0xff] %v5915_v61  ;;  %5918 = vst [vmem:[%s8256_s14 + $0x1f0] sm:$0xff] %v5917_v62  ;;  %v5921_v0 = vld [vmem:[%s8260_s20 + $0x18] sm:$0xff]  ;;  %v5923_v1 = vld [vmem:[%s8260_s20 + $0x28] sm:$0xff] }
 0x426   : >> { %5920 = vst [vmem:[%s8256_s14 + $0x8] sm:$0xff] %v5919_v63  ;;  %v5925_v2 = vld [vmem:[%s8260_s20 + $0x38] sm:$0xff]  ;;  %5922 = vst [vmem:[%s8256_s14 + $0x18] sm:$0xff] %v5921_v0  ;;  %v5927_v3 = vld [vmem:[%s8260_s20 + $0x48] sm:$0xff] }
 0x427   : >> { %5924 = vst [vmem:[%s8256_s14 + $0x28] sm:$0xff] %v5923_v1  ;;  %5926 = vst [vmem:[%s8256_s14 + $0x38] sm:$0xff] %v5925_v2  ;;  %v5929_v4 = vld [vmem:[%s8260_s20 + $0x58] sm:$0xff]  ;;  %v5931_v5 = vld [vmem:[%s8260_s20 + $0x68] sm:$0xff] }
 0x428   : >> { %5928 = vst [vmem:[%s8256_s14 + $0x48] sm:$0xff] %v5927_v3  ;;  %5930 = vst [vmem:[%s8256_s14 + $0x58] sm:$0xff] %v5929_v4  ;;  %v5933_v6 = vld [vmem:[%s8260_s20 + $0x78] sm:$0xff]  ;;  %v5935_v7 = vld [vmem:[%s8260_s20 + $0x88] sm:$0xff] }
 0x429   : >> { %5932 = vst [vmem:[%s8256_s14 + $0x68] sm:$0xff] %v5931_v5  ;;  %v5937_v8 = vld [vmem:[%s8260_s20 + $0x98] sm:$0xff]  ;;  %5934 = vst [vmem:[%s8256_s14 + $0x78] sm:$0xff] %v5933_v6  ;;  %v5939_v9 = vld [vmem:[%s8260_s20 + $0xa8] sm:$0xff] }
 0x42a   : >> { %5936 = vst [vmem:[%s8256_s14 + $0x88] sm:$0xff] %v5935_v7  ;;  %5938 = vst [vmem:[%s8256_s14 + $0x98] sm:$0xff] %v5937_v8  ;;  %v5941_v10 = vld [vmem:[%s8260_s20 + $0xb8] sm:$0xff]  ;;  %v5943_v11 = vld [vmem:[%s8260_s20 + $0xc8] sm:$0xff] }
 0x42b   : >> { %5940 = vst [vmem:[%s8256_s14 + $0xa8] sm:$0xff] %v5939_v9  ;;  %5942 = vst [vmem:[%s8256_s14 + $0xb8] sm:$0xff] %v5941_v10  ;;  %v5945_v12 = vld [vmem:[%s8260_s20 + $0xd8] sm:$0xff]  ;;  %v5947_v13 = vld [vmem:[%s8260_s20 + $0xe8] sm:$0xff] }
 0x42c   : >> { %5944 = vst [vmem:[%s8256_s14 + $0xc8] sm:$0xff] %v5943_v11  ;;  %v5949_v14 = vld [vmem:[%s8260_s20 + $0xf8] sm:$0xff]  ;;  %5946 = vst [vmem:[%s8256_s14 + $0xd8] sm:$0xff] %v5945_v12  ;;  %v5951_v15 = vld [vmem:[%s8260_s20 + $0x108] sm:$0xff] }
 0x42d   : >> { %5948 = vst [vmem:[%s8256_s14 + $0xe8] sm:$0xff] %v5947_v13  ;;  %5950 = vst [vmem:[%s8256_s14 + $0xf8] sm:$0xff] %v5949_v14  ;;  %v5953_v16 = vld [vmem:[%s8260_s20 + $0x118] sm:$0xff]  ;;  %v5955_v17 = vld [vmem:[%s8260_s20 + $0x128] sm:$0xff] }
 0x42e   : >> { %5952 = vst [vmem:[%s8256_s14 + $0x108] sm:$0xff] %v5951_v15  ;;  %5954 = vst [vmem:[%s8256_s14 + $0x118] sm:$0xff] %v5953_v16  ;;  %v5957_v18 = vld [vmem:[%s8260_s20 + $0x138] sm:$0xff]  ;;  %v5959_v19 = vld [vmem:[%s8260_s20 + $0x148] sm:$0xff] }
 0x42f   : >> { %5956 = vst [vmem:[%s8256_s14 + $0x128] sm:$0xff] %v5955_v17  ;;  %v5961_v20 = vld [vmem:[%s8260_s20 + $0x158] sm:$0xff]  ;;  %5958 = vst [vmem:[%s8256_s14 + $0x138] sm:$0xff] %v5957_v18  ;;  %v5963_v21 = vld [vmem:[%s8260_s20 + $0x168] sm:$0xff]  ;;  %5851 = sbr.rel (!%p5848_p13) target bundleno = 1045 (0x415), region = 100 }
 0x430   : >> { %5960 = vst [vmem:[%s8256_s14 + $0x148] sm:$0xff] %v5959_v19  ;;  %5962 = vst [vmem:[%s8256_s14 + $0x158] sm:$0xff] %v5961_v20  ;;  %v5965_v22 = vld [vmem:[%s8260_s20 + $0x178] sm:$0xff]  ;;  %v5967_v23 = vld [vmem:[%s8260_s20 + $0x188] sm:$0xff] }
 0x431   : >> { %5964 = vst [vmem:[%s8256_s14 + $0x168] sm:$0xff] %v5963_v21  ;;  %5966 = vst [vmem:[%s8256_s14 + $0x178] sm:$0xff] %v5965_v22  ;;  %v5969_v24 = vld [vmem:[%s8260_s20 + $0x198] sm:$0xff]  ;;  %v5971_v25 = vld [vmem:[%s8260_s20 + $0x1a8] sm:$0xff] }
 0x432   : >> { %5968 = vst [vmem:[%s8256_s14 + $0x188] sm:$0xff] %v5967_v23  ;;  %v5973_v30 = vld [vmem:[%s8260_s20 + $0x1b8] sm:$0xff]  ;;  %5970 = vst [vmem:[%s8256_s14 + $0x198] sm:$0xff] %v5969_v24  ;;  %v5975_v31 = vld [vmem:[%s8260_s20 + $0x1c8] sm:$0xff] }
 0x433   : >> { %5972 = vst [vmem:[%s8256_s14 + $0x1a8] sm:$0xff] %v5971_v25  ;;  %5974 = vst [vmem:[%s8256_s14 + $0x1b8] sm:$0xff] %v5973_v30  ;;  %v5977_v32 = vld [vmem:[%s8260_s20 + $0x1d8] sm:$0xff]  ;;  %v5979_v26 = vld [vmem:[%s8260_s20 + $0x1e8] sm:$0xff] }
 0x434   : >> { %5976 = vst [vmem:[%s8256_s14 + $0x1c8] sm:$0xff] %v5975_v31  ;;  %5978 = vst [vmem:[%s8256_s14 + $0x1d8] sm:$0xff] %v5977_v32  ;;  %v5981_v27 = vld [vmem:[%s8260_s20 + $0x1f8] sm:$0xff]  ;;  %s9716_s20 = smov %s9573_s8 }
 0x435   : >> { %5980 = vst [vmem:[%s8256_s14 + $0x1e8] sm:$0xff] %v5979_v26  ;;  %5982 = vst [vmem:[%s8256_s14 + $0x1f8] sm:$0xff] %v5981_v27  ;;  %s9715_s14 = smov %s9576_s9 }
 0x436 PF: > { %s9681_s10 = sand.u32 31, %s9725_s25   ;;  %s6870_s11 = sshll.u32 %s9506_s4, 9 }
 0x437   : > { %s9685_s17 = scalar_lea.vmem %s8912_s12, %s6870_s11 [#allocation2]   ;;  %s5996_s19 = scalar_lea.vmem %s9500_s29, %s6870_s11  }
 0x438   : > { %p6677_p0 = scmp.le.s32.totalorder %s9681_s10, 0 }
 0x439   : > { %s8270_s21 = smov (!%p6677_p0), %s5996_s19   ;;  %s8274_s23 = smov (!%p6677_p0), %s9685_s17  }
 0x43a   : > { %6101 = sbr.rel (%p6677_p0) target bundleno = 1099 (0x44b), region = 105  ;;  %s8278_s24 = smov (!%p6677_p0), 0  }
 0x43b   : > { %s8282_s27 = smov (!%p6677_p0), 0  }
 0x441 LB: >> { %v6006_v28 = vld [vmem:[%s8276_s23] sm:$0xff]  ;;  %v6008_v29 = vld [vmem:[%s8276_s23 + $0x8] sm:$0xff]  ;;  %s6010_s12 = sadd.s32 1, %s8280_s24  ;;  %s6000_s27 = sadd.s32 1, %s8284_s27   ;;  %s8284_s27 = sphi %s8282_s27, %s6000_s27   ;;  %s8280_s24 = sphi %s8278_s24, %s8279_s24   ;;  %s8276_s23 = sphi %s8274_s23, %s6015_s23   ;;  %s8272_s21 = sphi %s8270_s21, %s6016_s21  }
 0x442   : >> { %6007 = vst [vmem:[%s8272_s21] sm:$0xff] %v6006_v28  ;;  %6009 = vst [vmem:[%s8272_s21 + $0x8] sm:$0xff] %v6008_v29  ;;  %p6011_p1 = scmp.ge.s32.totalorder %s6010_s12, %s9681_s10  ;;  %p5999_p2 = scmp.ge.s32.totalorder %s6000_s27, %s9681_s10 }
 0x444   : >> { %s9729_s12 = smov (%p6011_p1, %s6010_s12), 0  ;;  %6002 = sbr.rel (!%p5999_p2) target bundleno = 1089 (0x441), region = 111 }
 0x445   : >> { %s6678_s25 = sshll.u32 %s9729_s12, 4  ;;  %s8279_s24 = smov %s9729_s12  }
 0x446   : >> { %s6015_s23 = scalar_lea.vmem %s9685_s17, %s6678_s25 [#allocation2]   ;;  %s6016_s21 = scalar_lea.vmem %s5996_s19, %s6678_s25  }
 0x44b PF: > { %s13_s16 = sadd.s32 1, %s8252_s16   ;;  %s9718_s12 = smov %s8240_s13 }
 0x44c   : > { %p10_p3 = scmp.ge.s32.totalorder %s13_s16, 5   ;;  %s9719_s13 = smov %s8347_s22 }
 0x44d   : > { %s9720_s14 = smov %s8248_s15  ;;  %s9721_s15 = smov %s9723_s18 }
 0x44e   :  { %12 = sbr.rel (!%p10_p3) target bundleno = 3 (0x3), region = 122 }

// kernel: deconv_head_forward.7
= control target key start
LH: loop header
LB: loop body
LE: loop exit
PB: predicated region body
PF: predicated region fallthrough
CT: control target
= control target key end

     0   :  { %s3933_s12 = smov 0   ;;  %s3935_s13 = smov 0   ;;  %s5012_s0 = inlined_call_operand.vmem [shape: bf16[8712,128], index: 0, kind: input, shape index: {}]   ;;  %s5013_s1 = inlined_call_operand.vmem [shape: bf16[128,128], index: 1, kind: input, shape index: {}]   ;;  %s5014_s2 = inlined_call_operand.vmem [shape: f32[1,128], index: 2, kind: input, shape index: {}]   ;;  %s5015_s3 = inlined_call_operand.vmem [shape: f32[8712,128], index: 3, kind: output, shape index: {}]  }
   0x1   :  { %s3937_s14 = smov 0   ;;  %s3939_s15 = smov 0  }
   0x2   :  { %s3941_s16 = smov 0  }
   0x3 LB: > { %s2852_s17 = sadd.s32 4294967295, %s3877_s16   ;;  %s32_s18 = sadd.s32 1, %s3873_s15  ;;  %s3877_s16 = sphi %s3941_s16, %s13_s16   ;;  %s3873_s15 = sphi %s3939_s15, %s5025_s15   ;;  %s3869_s14 = sphi %s3937_s14, %s5024_s14   ;;  %s3865_s13 = sphi %s3935_s13, %s5023_s13   ;;  %s3861_s12 = sphi %s3933_s12, %s5022_s12  }
   0x4   : > { %p34_p0 = scmp.ge.s32.totalorder %s32_s18, 5  ;;  %s123_s19 = sadd.s32 1, %s3865_s13 }
   0x5   : > { %p133_p1 = scmp.ne.s32.totalorder %s3865_s13, %s3861_s12  ;;  %p134_p2 = scmp.eq.s32.totalorder %s2852_s17, 4 }
   0x6   : > { %s5027_s18 = smov (%p34_p0, %s32_s18), 0  ;;  %p2858_p4 = scmp.ge.s32.totalorder %s3877_s16, 1 }
   0x7   : > { %p3965_p3 = por %p134_p2, %p133_p1  ;;  %s118_s21 = ssub.s32 %s3873_s15, %s5027_s18 }
   0x8   : > { %p196_p5 = scmp.lt.s32.totalorder %s3877_s16, 6  ;;  %p121_p6 = scmp.eq.s32.totalorder %s118_s21, 0 }
   0xa   : > { %p197_p7 = pnand %p2858_p4, %p196_p5 }
   0xb   : > { %s3974_s22 = scalar_select %p121_p6, %s3865_s13, %s123_s19  }
   0xc   : > { %200 = sbr.rel (%p197_p7) target bundleno = 766 (0x2fe), region = 32  ;;  %v3688_v0 = vld [vmem:[%s5013_s1] sm:$0xff] (!%p197_p7)   ;;  %v3911_v1 = vmov (!%p197_p7), 0.0   ;;  %v3689_v2 = vld [vmem:[%s5013_s1 + $0x8] sm:$0xff] (!%p197_p7)   ;;  %vm3912_vm0 = vmmov (!%p197_p7), 0   ;;  %v3690_v3 = vld [vmem:[%s5013_s1 + $0x10] sm:$0xff] (!%p197_p7)  }
   0xd   : > { %3113 = vmatprep.subr.bf16.mxu0 (!%p197_p7), %v3911_v1  ;;  %3565 = vmatprep.subr.bf16.mxu1 (!%p197_p7), %v3911_v1  ;;  %s3985_s27 = smul.u32 (!%p197_p7), 218, %s3869_s14  ;;  %v3691_v4 = vld [vmem:[%s5013_s1 + $0x18] sm:$0xff] (!%p197_p7)   ;;  %v3692_v5 = vld [vmem:[%s5013_s1 + $0x20] sm:$0xff] (!%p197_p7)   ;;  %v3693_v6 = vld [vmem:[%s5013_s1 + $0x28] sm:$0xff] (!%p197_p7)   ;;  %s234_s26 = sand.u32 (!%p197_p7), 1, %s3861_s12  }
   0xe   : > { %3114 = vmatpush3.bf16.msra.mxu0 (!%p197_p7), %v3688_v0  ;;  %3573 = vmatpush3.bf16.msra.mxu1 (!%p197_p7), %v3688_v0  ;;  %v3694_v7 = vld [vmem:[%s5013_s1 + $0x30] sm:$0xff] (!%p197_p7)   ;;  %v3695_v8 = vld [vmem:[%s5013_s1 + $0x38] sm:$0xff] (!%p197_p7)   ;;  %s3581_s28 = smul.u32 (!%p197_p7), 1744, %s234_s26  ;;  %v4192_v63 = vld [vmem:[%s5014_s2] ss:$0 sm:$0xff] (!%p197_p7) }
   0xf   : > { %3115 = vmatprep.subr.bf16.mxu0 (!%p197_p7), %v3911_v1  ;;  %3566 = vmatprep.subr.bf16.mxu1 (!%p197_p7), %v3911_v1  ;;  %p242_p8 = scmp.lt.s32.totalorder (!%p197_p7), %s3985_s27, 1088 }
  0x10   : > { %3129 = vmatprep.mubr.msk.bf16.mxu0 (!%p197_p7), %vm3912_vm0, %v3911_v1  ;;  %3349 = vmatprep.mubr.msk.bf16.mxu1 (!%p197_p7), %vm3912_vm0, %v3911_v1  ;;  %s4202_s12 = scalar_lea.vmem (!%p197_p7), [#allocation2], %s3581_s28  }
  0x12   : > { %3116 = vmatpush3.bf16.msra.mxu0 (!%p197_p7), %v3689_v2  ;;  %3574 = vmatpush3.bf16.msra.mxu1 (!%p197_p7), %v3689_v2 }
  0x13   : > { %s243_s30 = scalar_select %p242_p8, %s3985_s27, 1088  ;;  %3117 = vmatprep.subr.bf16.mxu0 %v3911_v1  ;;  %3567 = vmatprep.subr.bf16.mxu1 %v3911_v1 }
  0x14   : > { %s2346_s8 = ssub.s32 (%p3965_p3), 1089, %s3985_s27  ;;  %s2993_s9 = smul.u32 (%p3965_p3), 1744, %s3869_s14 }
  0x15   : > { %s2859_s4 = sshll.u32 %s243_s30, 2  ;;  %p2347_p9 = scmp.lt.s32.totalorder (%p3965_p3), %s2346_s8, 218 }
  0x16   : > { %s4003_s7 = scalar_lea.vmem %s5012_s0, %s2859_s4  ;;  %3118 = vmatpush3.bf16.msra.mxu0 %v3690_v3  ;;  %3575 = vmatpush3.bf16.msra.mxu1 %v3690_v3  ;;  %s4808_s17 = scalar_lea.vmem (%p3965_p3), %s5015_s3, %s2993_s9  }
  0x17   : > { %3119 = vmatprep.subr.bf16.mxu0 %v3911_v1  ;;  %3568 = vmatprep.subr.bf16.mxu1 %v3911_v1  ;;  %v3696_v9 = vld [vmem:[%s4003_s7] sm:$0xff]   ;;  %v3697_v10 = vld [vmem:[%s4003_s7 + $0x1b8] sm:$0xff]   ;;  %v3698_v11 = vld [vmem:[%s4003_s7 + $0x8] sm:$0xff]  }
  0x18   : > { %v3699_v12 = vld [vmem:[%s4003_s7 + $0x1c0] sm:$0xff]   ;;  %v3700_v13 = vld [vmem:[%s4003_s7 + $0x10] sm:$0xff]   ;;  %v3701_v14 = vld [vmem:[%s4003_s7 + $0x1c8] sm:$0xff]  }
  0x19   : > { %v3702_v15 = vld [vmem:[%s4003_s7 + $0x18] sm:$0xff]   ;;  %v3703_v16 = vld [vmem:[%s4003_s7 + $0x1d0] sm:$0xff]   ;;  %v3704_v17 = vld [vmem:[%s4003_s7 + $0x20] sm:$0xff]  }
  0x1a   : > { %3120 = vmatpush3.bf16.msra.mxu0 %v3691_v4  ;;  %3576 = vmatpush3.bf16.msra.mxu1 %v3691_v4  ;;  %v3705_v18 = vld [vmem:[%s4003_s7 + $0x1d8] sm:$0xff]   ;;  %v3706_v19 = vld [vmem:[%s4003_s7 + $0x28] sm:$0xff]   ;;  %v3707_v20 = vld [vmem:[%s4003_s7 + $0x1e0] sm:$0xff]  }
  0x1b   : > { %3121 = vmatprep.subr.bf16.mxu0 %v3911_v1  ;;  %3569 = vmatprep.subr.bf16.mxu1 %v3911_v1  ;;  %v3708_v21 = vld [vmem:[%s4003_s7 + $0x30] sm:$0xff]   ;;  %v3709_v22 = vld [vmem:[%s4003_s7 + $0x1e8] sm:$0xff]   ;;  %v3710_v23 = vld [vmem:[%s4003_s7 + $0x38] sm:$0xff]  }
  0x1c   : > { %v3711_v24 = vld [vmem:[%s4003_s7 + $0x1f0] sm:$0xff]   ;;  %v3712_v25 = vld [vmem:[%s4003_s7 + $0x40] sm:$0xff]   ;;  %v3713_v26 = vld [vmem:[%s4003_s7 + $0x1f8] sm:$0xff]  }
  0x1d   : > { %v3714_v27 = vld [vmem:[%s4003_s7 + $0x48] sm:$0xff]   ;;  %v3715_v28 = vld [vmem:[%s4003_s7 + $0x200] sm:$0xff]   ;;  %v3716_v29 = vld [vmem:[%s4003_s7 + $0x50] sm:$0xff]  }
  0x1e   : > { %3122 = vmatpush3.bf16.msra.mxu0 %v3692_v5  ;;  %3577 = vmatpush3.bf16.msra.mxu1 %v3692_v5  ;;  %v3717_v30 = vld [vmem:[%s4003_s7 + $0x208] sm:$0xff]   ;;  %v3718_v31 = vld [vmem:[%s4003_s7 + $0x58] sm:$0xff]   ;;  %v3719_v32 = vld [vmem:[%s4003_s7 + $0x210] sm:$0xff]  }
  0x1f   : > { %3123 = vmatprep.subr.bf16.mxu0 %v3911_v1  ;;  %3570 = vmatprep.subr.bf16.mxu1 %v3911_v1  ;;  %v3720_v33 = vld [vmem:[%s4003_s7 + $0x60] sm:$0xff]   ;;  %v3721_v34 = vld [vmem:[%s4003_s7 + $0x218] sm:$0xff]   ;;  %v3722_v35 = vld [vmem:[%s4003_s7 + $0x68] sm:$0xff]  }
  0x20   : > { %v3723_v36 = vld [vmem:[%s4003_s7 + $0x220] sm:$0xff]   ;;  %v3724_v37 = vld [vmem:[%s4003_s7 + $0x70] sm:$0xff]   ;;  %v3725_v38 = vld [vmem:[%s4003_s7 + $0x228] sm:$0xff]  }
  0x21   : > { %v3726_v39 = vld [vmem:[%s4003_s7 + $0x78] sm:$0xff]   ;;  %v3727_v40 = vld [vmem:[%s4003_s7 + $0x230] sm:$0xff]   ;;  %v3728_v41 = vld [vmem:[%s4003_s7 + $0x80] sm:$0xff]  }
  0x22   : > { %3124 = vmatpush3.bf16.msra.mxu0 %v3693_v6  ;;  %3578 = vmatpush3.bf16.msra.mxu1 %v3693_v6  ;;  %v3729_v42 = vld [vmem:[%s4003_s7 + $0x238] sm:$0xff]   ;;  %v3730_v43 = vld [vmem:[%s4003_s7 + $0x88] sm:$0xff]   ;;  %v3731_v44 = vld [vmem:[%s4003_s7 + $0x240] sm:$0xff]  }
  0x23   : > { %3125 = vmatprep.subr.bf16.mxu0 %v3911_v1  ;;  %3571 = vmatprep.subr.bf16.mxu1 %v3911_v1  ;;  %v3732_v45 = vld [vmem:[%s4003_s7 + $0x90] sm:$0xff]   ;;  %v3733_v46 = vld [vmem:[%s4003_s7 + $0x248] sm:$0xff]   ;;  %v3734_v47 = vld [vmem:[%s4003_s7 + $0x98] sm:$0xff]  }
  0x24   : > { %v3735_v48 = vld [vmem:[%s4003_s7 + $0x250] sm:$0xff]   ;;  %v3736_v49 = vld [vmem:[%s4003_s7 + $0xa0] sm:$0xff]   ;;  %v3737_v50 = vld [vmem:[%s4003_s7 + $0x258] sm:$0xff]  }
  0x25   : > { %v3738_v51 = vld [vmem:[%s4003_s7 + $0xa8] sm:$0xff]   ;;  %v3739_v52 = vld [vmem:[%s4003_s7 + $0x260] sm:$0xff]   ;;  %v3740_v53 = vld [vmem:[%s4003_s7 + $0xb0] sm:$0xff]  }
  0x26   : > { %3126 = vmatpush3.bf16.msra.mxu0 %v3694_v7  ;;  %3579 = vmatpush3.bf16.msra.mxu1 %v3694_v7  ;;  %v3741_v54 = vld [vmem:[%s4003_s7 + $0x268] sm:$0xff]   ;;  %v3742_v55 = vld [vmem:[%s4003_s7 + $0xb8] sm:$0xff]   ;;  %v3743_v56 = vld [vmem:[%s4003_s7 + $0x270] sm:$0xff]  }
  0x27   : > { %3127 = vmatprep.subr.bf16.mxu0 %v3911_v1  ;;  %3572 = vmatprep.subr.bf16.mxu1 %v3911_v1  ;;  %v3744_v57 = vld [vmem:[%s4003_s7 + $0xc0] sm:$0xff]   ;;  %v3745_v58 = vld [vmem:[%s4003_s7 + $0x278] sm:$0xff]   ;;  %v3746_v59 = vld [vmem:[%s4003_s7 + $0xc8] sm:$0xff]  }
  0x28   : > { %v3747_v60 = vld [vmem:[%s4003_s7 + $0x280] sm:$0xff]   ;;  %v3748_v61 = vld [vmem:[%s4003_s7 + $0xd0] sm:$0xff]   ;;  %v3749_v62 = vld [vmem:[%s4003_s7 + $0x288] sm:$0xff]  }
  0x29   : > { %v3750_v5 = vld [vmem:[%s4003_s7 + $0xd8] sm:$0xff]  }
  0x2a   : > { %3128 = vmatpush3.bf16.msra.mxu0 %v3695_v8  ;;  %3580 = vmatpush3.bf16.msra.mxu1 %v3695_v8  ;;  %v3751_v8 = vld [vmem:[%s4003_s7 + $0x290] sm:$0xff]  }
  0x2d   : > { %3130 = vmatmul.mubr.bf16.vlgmr.msra.gmra.mrb[0].mxu0 %v3696_v9  ;;  %3350 = vmatmul.mubr.bf16.vlgmr.msra.gmra.mrb[0].mxu1 %v3697_v10 }
  0x2e   : > { %3133 = vmatprep.mubr.msk.bf16.mxu0 %vm3912_vm0, %v3911_v1  ;;  %3353 = vmatprep.mubr.msk.bf16.mxu1 %vm3912_vm0, %v3911_v1 }
  0x35   : > { %3134 = vmatmul.mubr.bf16.gmra.mrb[4].mxu0 %v3698_v11  ;;  %3354 = vmatmul.mubr.bf16.gmra.mrb[4].mxu1 %v3699_v12 }
  0x36   : > { %3137 = vmatprep.mubr.msk.bf16.mxu0 %vm3912_vm0, %v3911_v1  ;;  %3357 = vmatprep.mubr.msk.bf16.mxu1 %vm3912_vm0, %v3911_v1 }
  0x3d   : > { %3138 = vmatmul.mubr.bf16.gmra.mrb[8].mxu0 %v3700_v13  ;;  %3358 = vmatmul.mubr.bf16.gmra.mrb[8].mxu1 %v3701_v14 }
  0x3e   : > { %3141 = vmatprep.mubr.msk.bf16.mxu0 %vm3912_vm0, %v3911_v1  ;;  %3361 = vmatprep.mubr.msk.bf16.mxu1 %vm3912_vm0, %v3911_v1 }
  0x45   : > { %3142 = vmatmul.mubr.bf16.gmra.mrb[12].mxu0 %v3702_v15  ;;  %3362 = vmatmul.mubr.bf16.gmra.mrb[12].mxu1 %v3703_v16 }
  0x46   : > { %3145 = vmatprep.mubr.msk.bf16.mxu0 %vm3912_vm0, %v3911_v1  ;;  %3365 = vmatprep.mubr.msk.bf16.mxu1 %vm3912_vm0, %v3911_v1 }
  0x4d   : > { %3146 = vmatmul.mubr.bf16.gmra.mrb[16].mxu0 %v3704_v17  ;;  %3366 = vmatmul.mubr.bf16.gmra.mrb[16].mxu1 %v3705_v18 }
  0x4e   : > { %3149 = vmatprep.mubr.msk.bf16.mxu0 %vm3912_vm0, %v3911_v1  ;;  %3369 = vmatprep.mubr.msk.bf16.mxu1 %vm3912_vm0, %v3911_v1 }
  0x55   : > { %3150 = vmatmul.mubr.bf16.gmra.mrb[20].mxu0 %v3706_v19  ;;  %3370 = vmatmul.mubr.bf16.gmra.mrb[20].mxu1 %v3707_v20  ;;  %v3752_v19 = vld [vmem:[%s4003_s7 + $0xe0] sm:$0xff]  }
  0x56   : > { %3153 = vmatprep.mubr.msk.bf16.mxu0 %vm3912_vm0, %v3911_v1  ;;  %3373 = vmatprep.mubr.msk.bf16.mxu1 %vm3912_vm0, %v3911_v1 }
  0x5d   : > { %3154 = vmatmul.mubr.bf16.gmra.mrb[24].mxu0 %v3708_v21  ;;  %3374 = vmatmul.mubr.bf16.gmra.mrb[24].mxu1 %v3709_v22  ;;  %v3753_v22 = vld [vmem:[%s4003_s7 + $0x298] sm:$0xff]  }
  0x5e   : > { %3157 = vmatprep.mubr.msk.bf16.mxu0 %vm3912_vm0, %v3911_v1  ;;  %3377 = vmatprep.mubr.msk.bf16.mxu1 %vm3912_vm0, %v3911_v1 }
  0x65   : > { %3158 = vmatmul.mubr.bf16.gmra.mrb[28].mxu0 %v3710_v23  ;;  %3378 = vmatmul.mubr.bf16.gmra.mrb[28].mxu1 %v3711_v24 }
  0x66   : > { %3161 = vmatprep.mubr.msk.bf16.mxu0 %vm3912_vm0, %v3911_v1  ;;  %3381 = vmatprep.mubr.msk.bf16.mxu1 %vm3912_vm0, %v3911_v1 }
  0x6d   : > { %3162 = vmatmul.mubr.bf16.gmra.mrb[32].mxu0 %v3712_v25  ;;  %3382 = vmatmul.mubr.bf16.gmra.mrb[32].mxu1 %v3713_v26 }
  0x6e   : > { %3165 = vmatprep.mubr.msk.bf16.mxu0 %vm3912_vm0, %v3911_v1  ;;  %3385 = vmatprep.mubr.msk.bf16.mxu1 %vm3912_vm0, %v3911_v1 }
  0x75   : > { %3166 = vmatmul.mubr.bf16.gmra.mrb[36].mxu0 %v3714_v27  ;;  %3386 = vmatmul.mubr.bf16.gmra.mrb[36].mxu1 %v3715_v28 }
  0x76   : > { %3169 = vmatprep.mubr.msk.bf16.mxu0 %vm3912_vm0, %v3911_v1  ;;  %3389 = vmatprep.mubr.msk.bf16.mxu1 %vm3912_vm0, %v3911_v1 }
  0x7d   : > { %3170 = vmatmul.mubr.bf16.gmra.mrb[40].mxu0 %v3716_v29  ;;  %3390 = vmatmul.mubr.bf16.gmra.mrb[40].mxu1 %v3717_v30 }
  0x7e   : > { %3173 = vmatprep.mubr.msk.bf16.mxu0 %vm3912_vm0, %v3911_v1  ;;  %3393 = vmatprep.mubr.msk.bf16.mxu1 %vm3912_vm0, %v3911_v1 }
  0x85   : > { %3174 = vmatmul.mubr.bf16.gmra.mrb[44].mxu0 %v3718_v31  ;;  %3394 = vmatmul.mubr.bf16.gmra.mrb[44].mxu1 %v3719_v32 }
  0x86   : > { %3177 = vmatprep.mubr.msk.bf16.mxu0 %vm3912_vm0, %v3911_v1  ;;  %3397 = vmatprep.mubr.msk.bf16.mxu1 %vm3912_vm0, %v3911_v1 }
  0x8d   : > { %3178 = vmatmul.mubr.bf16.gmra.mrb[48].mxu0 %v3720_v33  ;;  %3398 = vmatmul.mubr.bf16.gmra.mrb[48].mxu1 %v3721_v34  ;;  %v3754_v33 = vld [vmem:[%s4003_s7 + $0xe8] sm:$0xff]  }
  0x8e   : > { %3181 = vmatprep.mubr.msk.bf16.mxu0 %vm3912_vm0, %v3911_v1  ;;  %3401 = vmatprep.mubr.msk.bf16.mxu1 %vm3912_vm0, %v3911_v1 }
  0x95   : > { %3182 = vmatmul.mubr.bf16.gmra.mrb[52].mxu0 %v3722_v35  ;;  %3402 = vmatmul.mubr.bf16.gmra.mrb[52].mxu1 %v3723_v36  ;;  %v3755_v36 = vld [vmem:[%s4003_s7 + $0x2a0] sm:$0xff]  }
  0x96   : > { %3185 = vmatprep.mubr.msk.bf16.mxu0 %vm3912_vm0, %v3911_v1  ;;  %3405 = vmatprep.mubr.msk.bf16.mxu1 %vm3912_vm0, %v3911_v1 }
  0x9d   : > { %3186 = vmatmul.mubr.bf16.gmra.mrb[56].mxu0 %v3724_v37  ;;  %3406 = vmatmul.mubr.bf16.gmra.mrb[56].mxu1 %v3725_v38 }
  0x9e   : > { %3189 = vmatprep.mubr.msk.bf16.mxu0 %vm3912_vm0, %v3911_v1  ;;  %3409 = vmatprep.mubr.msk.bf16.mxu1 %vm3912_vm0, %v3911_v1 }
  0xa5   : > { %3190 = vmatmul.mubr.bf16.gmra.mrb[60].mxu0 %v3726_v39  ;;  %3410 = vmatmul.mubr.bf16.gmra.mrb[60].mxu1 %v3727_v40 }
  0xa6   : > { %3193 = vmatprep.mubr.msk.bf16.mxu0 %vm3912_vm0, %v3911_v1  ;;  %3413 = vmatprep.mubr.msk.bf16.mxu1 %vm3912_vm0, %v3911_v1 }
  0xad   : > { %3194 = vmatmul.mubr.bf16.gmra.mrb[64].mxu0 %v3728_v41  ;;  %3414 = vmatmul.mubr.bf16.gmra.mrb[64].mxu1 %v3729_v42 }
  0xae   : > { %3197 = vmatprep.mubr.msk.bf16.mxu0 %vm3912_vm0, %v3911_v1  ;;  %3417 = vmatprep.mubr.msk.bf16.mxu1 %vm3912_vm0, %v3911_v1 }
  0xb5   : > { %3198 = vmatmul.mubr.bf16.gmra.mrb[68].mxu0 %v3730_v43  ;;  %3418 = vmatmul.mubr.bf16.gmra.mrb[68].mxu1 %v3731_v44 }
  0xb6   : > { %3201 = vmatprep.mubr.msk.bf16.mxu0 %vm3912_vm0, %v3911_v1  ;;  %3421 = vmatprep.mubr.msk.bf16.mxu1 %vm3912_vm0, %v3911_v1 }
  0xbd   : > { %3202 = vmatmul.mubr.bf16.gmra.mrb[72].mxu0 %v3732_v45  ;;  %3422 = vmatmul.mubr.bf16.gmra.mrb[72].mxu1 %v3733_v46 }
  0xbe   : > { %3205 = vmatprep.mubr.msk.bf16.mxu0 %vm3912_vm0, %v3911_v1  ;;  %3425 = vmatprep.mubr.msk.bf16.mxu1 %vm3912_vm0, %v3911_v1 }
  0xc5   : > { %3206 = vmatmul.mubr.bf16.gmra.mrb[76].mxu0 %v3734_v47  ;;  %3426 = vmatmul.mubr.bf16.gmra.mrb[76].mxu1 %v3735_v48  ;;  %v3756_v47 = vld [vmem:[%s4003_s7 + $0xf0] sm:$0xff]  }
  0xc6   : > { %3209 = vmatprep.mubr.msk.bf16.mxu0 %vm3912_vm0, %v3911_v1  ;;  %3429 = vmatprep.mubr.msk.bf16.mxu1 %vm3912_vm0, %v3911_v1 }
  0xcd   : > { %3210 = vmatmul.mubr.bf16.gmra.mrb[80].mxu0 %v3736_v49  ;;  %3430 = vmatmul.mubr.bf16.gmra.mrb[80].mxu1 %v3737_v50  ;;  %v3757_v50 = vld [vmem:[%s4003_s7 + $0x2a8] sm:$0xff]  }
  0xce   : > { %3213 = vmatprep.mubr.msk.bf16.mxu0 %vm3912_vm0, %v3911_v1  ;;  %3433 = vmatprep.mubr.msk.bf16.mxu1 %vm3912_vm0, %v3911_v1 }
  0xd5   : > { %3214 = vmatmul.mubr.bf16.gmra.mrb[84].mxu0 %v3738_v51  ;;  %3434 = vmatmul.mubr.bf16.gmra.mrb[84].mxu1 %v3739_v52 }
  0xd6   : > { %3217 = vmatprep.mubr.msk.bf16.mxu0 %vm3912_vm0, %v3911_v1  ;;  %3437 = vmatprep.mubr.msk.bf16.mxu1 %vm3912_vm0, %v3911_v1 }
  0xdd   : > { %3218 = vmatmul.mubr.bf16.gmra.mrb[88].mxu0 %v3740_v53  ;;  %3438 = vmatmul.mubr.bf16.gmra.mrb[88].mxu1 %v3741_v54 }
  0xde   : > { %3221 = vmatprep.mubr.msk.bf16.mxu0 %vm3912_vm0, %v3911_v1  ;;  %3441 = vmatprep.mubr.msk.bf16.mxu1 %vm3912_vm0, %v3911_v1 }
  0xe5   : > { %3222 = vmatmul.mubr.bf16.gmra.mrb[92].mxu0 %v3742_v55  ;;  %3442 = vmatmul.mubr.bf16.gmra.mrb[92].mxu1 %v3743_v56 }
  0xe6   : > { %3225 = vmatprep.mubr.msk.bf16.mxu0 %vm3912_vm0, %v3911_v1  ;;  %3445 = vmatprep.mubr.msk.bf16.mxu1 %vm3912_vm0, %v3911_v1 }
  0xed   : > { %3226 = vmatmul.mubr.bf16.gmra.mrb[96].mxu0 %v3744_v57  ;;  %3446 = vmatmul.mubr.bf16.gmra.mrb[96].mxu1 %v3745_v58 }
  0xee   : > { %3229 = vmatprep.mubr.msk.bf16.mxu0 %vm3912_vm0, %v3911_v1  ;;  %3449 = vmatprep.mubr.msk.bf16.mxu1 %vm3912_vm0, %v3911_v1 }
  0xf5   : > { %3230 = vmatmul.mubr.bf16.gmra.mrb[100].mxu0 %v3746_v59  ;;  %3450 = vmatmul.mubr.bf16.gmra.mrb[100].mxu1 %v3747_v60 }
  0xf6   : > { %3233 = vmatprep.mubr.msk.bf16.mxu0 %vm3912_vm0, %v3911_v1  ;;  %3453 = vmatprep.mubr.msk.bf16.mxu1 %vm3912_vm0, %v3911_v1 }
  0xfd   : > { %3234 = vmatmul.mubr.bf16.gmra.mrb[104].mxu0 %v3748_v61  ;;  %3454 = vmatmul.mubr.bf16.gmra.mrb[104].mxu1 %v3749_v62  ;;  %v3758_v61 = vld [vmem:[%s4003_s7 + $0xf8] sm:$0xff]  }
  0xfe   : > { %3237 = vmatprep.mubr.msk.bf16.mxu0 %vm3912_vm0, %v3911_v1  ;;  %3457 = vmatprep.mubr.msk.bf16.mxu1 %vm3912_vm0, %v3911_v1 }
 0x100   : > { %v1249_v0 = vpop.f32.mrb[0].mxu0  ;;  %v1689_v2 = vpop.f32.mrb[0].mxu1 }
 0x101   : > { %v1250_v3 = vadd.f32 %v4192_v63, %v1249_v0  ;;  %v3131_v4 = vpop.f32.mrb[1].mxu0  ;;  %v1690_v6 = vadd.f32 %v4192_v63, %v1689_v2  ;;  %v3351_v7 = vpop.f32.mrb[1].mxu1  ;;  %v3759_v2 = vld [vmem:[%s4003_s7 + $0x2b0] sm:$0xff]  }
 0x102   : > { %v1252_v9 = vpop.f32.mrb[2].mxu0  ;;  %v1692_v10 = vpop.f32.mrb[2].mxu1 }
 0x103   : > { %2120 = vst [vmem:[%s4202_s12] sm:$0xff] %v1250_v3  ;;  %v1253_v11 = vadd.f32 %v4192_v63, %v1252_v9  ;;  %v3132_v12 = vpop.f32.mrb[3].mxu0  ;;  %2230 = vst [vmem:[%s4202_s12 + $0x370] sm:$0xff] %v1690_v6  ;;  %v1693_v13 = vadd.f32 %v4192_v63, %v1692_v10  ;;  %v3352_v14 = vpop.f32.mrb[3].mxu1 }
 0x105   : > { %2121 = vst [vmem:[%s4202_s12 + $0x8] sm:$0xff] %v1253_v11  ;;  %3238 = vmatmul.mubr.bf16.gmra.mrb[108].mxu0 %v3750_v5  ;;  %2231 = vst [vmem:[%s4202_s12 + $0x378] sm:$0xff] %v1693_v13  ;;  %3458 = vmatmul.mubr.bf16.gmra.mrb[108].mxu1 %v3751_v8  ;;  %v3760_v13 = vld [vmem:[%s4003_s7 + $0x100] sm:$0xff]  }
 0x106   : > { %3241 = vmatprep.mubr.msk.bf16.mxu0 %vm3912_vm0, %v3911_v1  ;;  %3461 = vmatprep.mubr.msk.bf16.mxu1 %vm3912_vm0, %v3911_v1 }
 0x108   : > { %v1257_v15 = vpop.f32.mrb[4].mxu0  ;;  %v1697_v16 = vpop.f32.mrb[4].mxu1 }
 0x109   : > { %v1258_v17 = vadd.f32 %v4192_v63, %v1257_v15  ;;  %v3135_v18 = vpop.f32.mrb[5].mxu0  ;;  %v1698_v20 = vadd.f32 %v4192_v63, %v1697_v16  ;;  %v3355_v21 = vpop.f32.mrb[5].mxu1  ;;  %v3761_v16 = vld [vmem:[%s4003_s7 + $0x2b8] sm:$0xff]  }
 0x10a   : > { %v1260_v23 = vpop.f32.mrb[6].mxu0  ;;  %v1700_v24 = vpop.f32.mrb[6].mxu1 }
 0x10b   : > { %2122 = vst [vmem:[%s4202_s12 + $0x10] sm:$0xff] %v1258_v17  ;;  %v1261_v25 = vadd.f32 %v4192_v63, %v1260_v23  ;;  %v3136_v26 = vpop.f32.mrb[7].mxu0  ;;  %2232 = vst [vmem:[%s4202_s12 + $0x380] sm:$0xff] %v1698_v20  ;;  %v1701_v27 = vadd.f32 %v4192_v63, %v1700_v24  ;;  %v3356_v28 = vpop.f32.mrb[7].mxu1 }
 0x10d   : > { %2123 = vst [vmem:[%s4202_s12 + $0x18] sm:$0xff] %v1261_v25  ;;  %3242 = vmatmul.mubr.bf16.gmra.mrb[112].mxu0 %v3752_v19  ;;  %2233 = vst [vmem:[%s4202_s12 + $0x388] sm:$0xff] %v1701_v27  ;;  %3462 = vmatmul.mubr.bf16.gmra.mrb[112].mxu1 %v3753_v22  ;;  %v3762_v27 = vld [vmem:[%s4003_s7 + $0x108] sm:$0xff]  }
 0x10e   : > { %3245 = vmatprep.mubr.msk.bf16.mxu0 %vm3912_vm0, %v3911_v1  ;;  %3465 = vmatprep.mubr.msk.bf16.mxu1 %vm3912_vm0, %v3911_v1 }
 0x110   : > { %v1265_v29 = vpop.f32.mrb[8].mxu0  ;;  %v1705_v30 = vpop.f32.mrb[8].mxu1 }
 0x111   : > { %v1266_v31 = vadd.f32 %v4192_v63, %v1265_v29  ;;  %v3139_v32 = vpop.f32.mrb[9].mxu0  ;;  %v1706_v34 = vadd.f32 %v4192_v63, %v1705_v30  ;;  %v3359_v35 = vpop.f32.mrb[9].mxu1  ;;  %v3763_v30 = vld [vmem:[%s4003_s7 + $0x2c0] sm:$0xff]  }
 0x112   : > { %v1268_v37 = vpop.f32.mrb[10].mxu0  ;;  %v1708_v38 = vpop.f32.mrb[10].mxu1 }
 0x113   : > { %2124 = vst [vmem:[%s4202_s12 + $0x20] sm:$0xff] %v1266_v31  ;;  %v1269_v39 = vadd.f32 %v4192_v63, %v1268_v37  ;;  %v3140_v40 = vpop.f32.mrb[11].mxu0  ;;  %2234 = vst [vmem:[%s4202_s12 + $0x390] sm:$0xff] %v1706_v34  ;;  %v1709_v41 = vadd.f32 %v4192_v63, %v1708_v38  ;;  %v3360_v42 = vpop.f32.mrb[11].mxu1 }
 0x115   : > { %2125 = vst [vmem:[%s4202_s12 + $0x28] sm:$0xff] %v1269_v39  ;;  %3246 = vmatmul.mubr.bf16.gmra.mrb[116].mxu0 %v3754_v33  ;;  %2235 = vst [vmem:[%s4202_s12 + $0x398] sm:$0xff] %v1709_v41  ;;  %3466 = vmatmul.mubr.bf16.gmra.mrb[116].mxu1 %v3755_v36  ;;  %v3764_v41 = vld [vmem:[%s4003_s7 + $0x110] sm:$0xff]  }
 0x116   : > { %3249 = vmatprep.mubr.msk.bf16.mxu0 %vm3912_vm0, %v3911_v1  ;;  %3469 = vmatprep.mubr.msk.bf16.mxu1 %vm3912_vm0, %v3911_v1 }
 0x118   : > { %v1273_v43 = vpop.f32.mrb[12].mxu0  ;;  %v1713_v44 = vpop.f32.mrb[12].mxu1 }
 0x119   : > { %v1274_v45 = vadd.f32 %v4192_v63, %v1273_v43  ;;  %v3143_v46 = vpop.f32.mrb[13].mxu0  ;;  %v1714_v48 = vadd.f32 %v4192_v63, %v1713_v44  ;;  %v3363_v49 = vpop.f32.mrb[13].mxu1  ;;  %v3765_v44 = vld [vmem:[%s4003_s7 + $0x2c8] sm:$0xff]  }
 0x11a   : > { %v1276_v51 = vpop.f32.mrb[14].mxu0  ;;  %v1716_v52 = vpop.f32.mrb[14].mxu1 }
 0x11b   : > { %2126 = vst [vmem:[%s4202_s12 + $0x30] sm:$0xff] %v1274_v45  ;;  %v1277_v53 = vadd.f32 %v4192_v63, %v1276_v51  ;;  %v3144_v54 = vpop.f32.mrb[15].mxu0  ;;  %2236 = vst [vmem:[%s4202_s12 + $0x3a0] sm:$0xff] %v1714_v48  ;;  %v1717_v55 = vadd.f32 %v4192_v63, %v1716_v52  ;;  %v3364_v56 = vpop.f32.mrb[15].mxu1 }
 0x11d   : > { %2127 = vst [vmem:[%s4202_s12 + $0x38] sm:$0xff] %v1277_v53  ;;  %3250 = vmatmul.mubr.bf16.gmra.mrb[120].mxu0 %v3756_v47  ;;  %2237 = vst [vmem:[%s4202_s12 + $0x3a8] sm:$0xff] %v1717_v55  ;;  %3470 = vmatmul.mubr.bf16.gmra.mrb[120].mxu1 %v3757_v50  ;;  %v3766_v55 = vld [vmem:[%s4003_s7 + $0x118] sm:$0xff]  }
 0x11e   : > { %3253 = vmatprep.mubr.msk.bf16.mxu0 %vm3912_vm0, %v3911_v1  ;;  %3473 = vmatprep.mubr.msk.bf16.mxu1 %vm3912_vm0, %v3911_v1 }
 0x120   : > { %v1281_v57 = vpop.f32.mrb[16].mxu0  ;;  %v1721_v58 = vpop.f32.mrb[16].mxu1 }
 0x121   : > { %v1282_v59 = vadd.f32 %v4192_v63, %v1281_v57  ;;  %v3147_v60 = vpop.f32.mrb[17].mxu0  ;;  %v1722_v62 = vadd.f32 %v4192_v63, %v1721_v58  ;;  %v3367_v0 = vpop.f32.mrb[17].mxu1  ;;  %v3767_v58 = vld [vmem:[%s4003_s7 + $0x2d0] sm:$0xff]  }
 0x122   : > { %v1284_v3 = vpop.f32.mrb[18].mxu0  ;;  %v1724_v4 = vpop.f32.mrb[18].mxu1 }
 0x123   : > { %2128 = vst [vmem:[%s4202_s12 + $0x40] sm:$0xff] %v1282_v59  ;;  %v1285_v5 = vadd.f32 %v4192_v63, %v1284_v3  ;;  %v3148_v6 = vpop.f32.mrb[19].mxu0  ;;  %2238 = vst [vmem:[%s4202_s12 + $0x3b0] sm:$0xff] %v1722_v62  ;;  %v1725_v7 = vadd.f32 %v4192_v63, %v1724_v4  ;;  %v3368_v8 = vpop.f32.mrb[19].mxu1 }
 0x125   : > { %2129 = vst [vmem:[%s4202_s12 + $0x48] sm:$0xff] %v1285_v5  ;;  %3254 = vmatmul.mubr.bf16.gmra.mrb[124].mxu0 %v3758_v61  ;;  %2239 = vst [vmem:[%s4202_s12 + $0x3b8] sm:$0xff] %v1725_v7  ;;  %3474 = vmatmul.mubr.bf16.gmra.mrb[124].mxu1 %v3759_v2  ;;  %v3768_v7 = vld [vmem:[%s4003_s7 + $0x120] sm:$0xff]  }
 0x126   : > { %3257 = vmatprep.mubr.msk.bf16.mxu0 %vm3912_vm0, %v3911_v1  ;;  %3477 = vmatprep.mubr.msk.bf16.mxu1 %vm3912_vm0, %v3911_v1 }
 0x128   : > { %v1289_v9 = vpop.f32.mrb[20].mxu0  ;;  %v1729_v10 = vpop.f32.mrb[20].mxu1 }
 0x129   : > { %v1290_v11 = vadd.f32 %v4192_v63, %v1289_v9  ;;  %v3151_v12 = vpop.f32.mrb[21].mxu0  ;;  %v1730_v14 = vadd.f32 %v4192_v63, %v1729_v10  ;;  %v3371_v15 = vpop.f32.mrb[21].mxu1  ;;  %v3769_v10 = vld [vmem:[%s4003_s7 + $0x2d8] sm:$0xff]  }
 0x12a   : > { %v1292_v17 = vpop.f32.mrb[22].mxu0  ;;  %v1732_v18 = vpop.f32.mrb[22].mxu1 }
 0x12b   : > { %2130 = vst [vmem:[%s4202_s12 + $0x50] sm:$0xff] %v1290_v11  ;;  %v1293_v19 = vadd.f32 %v4192_v63, %v1292_v17  ;;  %v3152_v20 = vpop.f32.mrb[23].mxu0  ;;  %2240 = vst [vmem:[%s4202_s12 + $0x3c0] sm:$0xff] %v1730_v14  ;;  %v1733_v21 = vadd.f32 %v4192_v63, %v1732_v18  ;;  %v3372_v22 = vpop.f32.mrb[23].mxu1 }
 0x12d   : > { %2131 = vst [vmem:[%s4202_s12 + $0x58] sm:$0xff] %v1293_v19  ;;  %3258 = vmatmul.mubr.bf16.gmra.mrb[128].mxu0 %v3760_v13  ;;  %2241 = vst [vmem:[%s4202_s12 + $0x3c8] sm:$0xff] %v1733_v21  ;;  %3478 = vmatmul.mubr.bf16.gmra.mrb[128].mxu1 %v3761_v16  ;;  %v3770_v21 = vld [vmem:[%s4003_s7 + $0x128] sm:$0xff]  }
 0x12e   : > { %3261 = vmatprep.mubr.msk.bf16.mxu0 %vm3912_vm0, %v3911_v1  ;;  %3481 = vmatprep.mubr.msk.bf16.mxu1 %vm3912_vm0, %v3911_v1 }
 0x130   : > { %v1297_v23 = vpop.f32.mrb[24].mxu0  ;;  %v1737_v24 = vpop.f32.mrb[24].mxu1 }
 0x131   : > { %v1298_v25 = vadd.f32 %v4192_v63, %v1297_v23  ;;  %v3155_v26 = vpop.f32.mrb[25].mxu0  ;;  %v1738_v28 = vadd.f32 %v4192_v63, %v1737_v24  ;;  %v3375_v29 = vpop.f32.mrb[25].mxu1  ;;  %v3771_v24 = vld [vmem:[%s4003_s7 + $0x2e0] sm:$0xff]  }
 0x132   : > { %v1300_v31 = vpop.f32.mrb[26].mxu0  ;;  %v1740_v32 = vpop.f32.mrb[26].mxu1 }
 0x133   : > { %2132 = vst [vmem:[%s4202_s12 + $0x60] sm:$0xff] %v1298_v25  ;;  %v1301_v33 = vadd.f32 %v4192_v63, %v1300_v31  ;;  %v3156_v34 = vpop.f32.mrb[27].mxu0  ;;  %2242 = vst [vmem:[%s4202_s12 + $0x3d0] sm:$0xff] %v1738_v28  ;;  %v1741_v35 = vadd.f32 %v4192_v63, %v1740_v32  ;;  %v3376_v36 = vpop.f32.mrb[27].mxu1 }
 0x135   : > { %2133 = vst [vmem:[%s4202_s12 + $0x68] sm:$0xff] %v1301_v33  ;;  %3262 = vmatmul.mubr.bf16.gmra.mrb[132].mxu0 %v3762_v27  ;;  %2243 = vst [vmem:[%s4202_s12 + $0x3d8] sm:$0xff] %v1741_v35  ;;  %3482 = vmatmul.mubr.bf16.gmra.mrb[132].mxu1 %v3763_v30  ;;  %v3772_v35 = vld [vmem:[%s4003_s7 + $0x130] sm:$0xff]  }
 0x136   : > { %3265 = vmatprep.mubr.msk.bf16.mxu0 %vm3912_vm0, %v3911_v1  ;;  %3485 = vmatprep.mubr.msk.bf16.mxu1 %vm3912_vm0, %v3911_v1 }
 0x138   : > { %v1305_v37 = vpop.f32.mrb[28].mxu0  ;;  %v1745_v38 = vpop.f32.mrb[28].mxu1 }
 0x139   : > { %v1306_v39 = vadd.f32 %v4192_v63, %v1305_v37  ;;  %v3159_v40 = vpop.f32.mrb[29].mxu0  ;;  %v1746_v42 = vadd.f32 %v4192_v63, %v1745_v38  ;;  %v3379_v43 = vpop.f32.mrb[29].mxu1  ;;  %v3773_v38 = vld [vmem:[%s4003_s7 + $0x2e8] sm:$0xff]  }
 0x13a   : > { %v1308_v45 = vpop.f32.mrb[30].mxu0  ;;  %v1748_v46 = vpop.f32.mrb[30].mxu1 }
 0x13b   : > { %2134 = vst [vmem:[%s4202_s12 + $0x70] sm:$0xff] %v1306_v39  ;;  %v1309_v47 = vadd.f32 %v4192_v63, %v1308_v45  ;;  %v3160_v48 = vpop.f32.mrb[31].mxu0  ;;  %2244 = vst [vmem:[%s4202_s12 + $0x3e0] sm:$0xff] %v1746_v42  ;;  %v1749_v49 = vadd.f32 %v4192_v63, %v1748_v46  ;;  %v3380_v50 = vpop.f32.mrb[31].mxu1 }
 0x13d   : > { %2135 = vst [vmem:[%s4202_s12 + $0x78] sm:$0xff] %v1309_v47  ;;  %3266 = vmatmul.mubr.bf16.gmra.mrb[136].mxu0 %v3764_v41  ;;  %2245 = vst [vmem:[%s4202_s12 + $0x3e8] sm:$0xff] %v1749_v49  ;;  %3486 = vmatmul.mubr.bf16.gmra.mrb[136].mxu1 %v3765_v44  ;;  %v3774_v49 = vld [vmem:[%s4003_s7 + $0x138] sm:$0xff]  }
 0x13e   : > { %3269 = vmatprep.mubr.msk.bf16.mxu0 %vm3912_vm0, %v3911_v1  ;;  %3489 = vmatprep.mubr.msk.bf16.mxu1 %vm3912_vm0, %v3911_v1 }
 0x140   : > { %v1313_v51 = vpop.f32.mrb[32].mxu0  ;;  %v1753_v52 = vpop.f32.mrb[32].mxu1 }
 0x141   : > { %v1314_v53 = vadd.f32 %v4192_v63, %v1313_v51  ;;  %v3163_v54 = vpop.f32.mrb[33].mxu0  ;;  %v1754_v56 = vadd.f32 %v4192_v63, %v1753_v52  ;;  %v3383_v57 = vpop.f32.mrb[33].mxu1  ;;  %v3775_v52 = vld [vmem:[%s4003_s7 + $0x2f0] sm:$0xff]  }
 0x142   : > { %v1316_v59 = vpop.f32.mrb[34].mxu0  ;;  %v1756_v60 = vpop.f32.mrb[34].mxu1 }
 0x143   : > { %2136 = vst [vmem:[%s4202_s12 + $0x80] sm:$0xff] %v1314_v53  ;;  %v1317_v61 = vadd.f32 %v4192_v63, %v1316_v59  ;;  %v3164_v62 = vpop.f32.mrb[35].mxu0  ;;  %2246 = vst [vmem:[%s4202_s12 + $0x3f0] sm:$0xff] %v1754_v56  ;;  %v1757_v0 = vadd.f32 %v4192_v63, %v1756_v60  ;;  %v3384_v2 = vpop.f32.mrb[35].mxu1 }
 0x145   : > { %2137 = vst [vmem:[%s4202_s12 + $0x88] sm:$0xff] %v1317_v61  ;;  %3270 = vmatmul.mubr.bf16.gmra.mrb[140].mxu0 %v3766_v55  ;;  %2247 = vst [vmem:[%s4202_s12 + $0x3f8] sm:$0xff] %v1757_v0  ;;  %3490 = vmatmul.mubr.bf16.gmra.mrb[140].mxu1 %v3767_v58  ;;  %v3776_v0 = vld [vmem:[%s4003_s7 + $0x140] sm:$0xff]  }
 0x146   : > { %3273 = vmatprep.mubr.msk.bf16.mxu0 %vm3912_vm0, %v3911_v1  ;;  %3493 = vmatprep.mubr.msk.bf16.mxu1 %vm3912_vm0, %v3911_v1 }
 0x148   : > { %v1321_v3 = vpop.f32.mrb[36].mxu0  ;;  %v1761_v4 = vpop.f32.mrb[36].mxu1 }
 0x149   : > { %v1322_v5 = vadd.f32 %v4192_v63, %v1321_v3  ;;  %v3167_v6 = vpop.f32.mrb[37].mxu0  ;;  %v1762_v8 = vadd.f32 %v4192_v63, %v1761_v4  ;;  %v3387_v9 = vpop.f32.mrb[37].mxu1  ;;  %v3777_v4 = vld [vmem:[%s4003_s7 + $0x2f8] sm:$0xff]  }
 0x14a   : > { %v1324_v11 = vpop.f32.mrb[38].mxu0  ;;  %v1764_v12 = vpop.f32.mrb[38].mxu1 }
 0x14b   : > { %2138 = vst [vmem:[%s4202_s12 + $0x90] sm:$0xff] %v1322_v5  ;;  %v1325_v13 = vadd.f32 %v4192_v63, %v1324_v11  ;;  %v3168_v14 = vpop.f32.mrb[39].mxu0  ;;  %2248 = vst [vmem:[%s4202_s12 + $0x400] sm:$0xff] %v1762_v8  ;;  %v1765_v15 = vadd.f32 %v4192_v63, %v1764_v12  ;;  %v3388_v16 = vpop.f32.mrb[39].mxu1 }
 0x14d   : > { %2139 = vst [vmem:[%s4202_s12 + $0x98] sm:$0xff] %v1325_v13  ;;  %3274 = vmatmul.mubr.bf16.gmra.mrb[144].mxu0 %v3768_v7  ;;  %2249 = vst [vmem:[%s4202_s12 + $0x408] sm:$0xff] %v1765_v15  ;;  %3494 = vmatmul.mubr.bf16.gmra.mrb[144].mxu1 %v3769_v10  ;;  %v3778_v15 = vld [vmem:[%s4003_s7 + $0x148] sm:$0xff]  }
 0x14e   : > { %3277 = vmatprep.mubr.msk.bf16.mxu0 %vm3912_vm0, %v3911_v1  ;;  %3497 = vmatprep.mubr.msk.bf16.mxu1 %vm3912_vm0, %v3911_v1 }
 0x150   : > { %v1329_v17 = vpop.f32.mrb[40].mxu0  ;;  %v1769_v18 = vpop.f32.mrb[40].mxu1 }
 0x151   : > { %v1330_v19 = vadd.f32 %v4192_v63, %v1329_v17  ;;  %v3171_v20 = vpop.f32.mrb[41].mxu0  ;;  %v1770_v22 = vadd.f32 %v4192_v63, %v1769_v18  ;;  %v3391_v23 = vpop.f32.mrb[41].mxu1  ;;  %v3779_v18 = vld [vmem:[%s4003_s7 + $0x300] sm:$0xff]  }
 0x152   : > { %v1332_v25 = vpop.f32.mrb[42].mxu0  ;;  %v1772_v26 = vpop.f32.mrb[42].mxu1 }
 0x153   : > { %2140 = vst [vmem:[%s4202_s12 + $0xa0] sm:$0xff] %v1330_v19  ;;  %v1333_v27 = vadd.f32 %v4192_v63, %v1332_v25  ;;  %v3172_v28 = vpop.f32.mrb[43].mxu0  ;;  %2250 = vst [vmem:[%s4202_s12 + $0x410] sm:$0xff] %v1770_v22  ;;  %v1773_v29 = vadd.f32 %v4192_v63, %v1772_v26  ;;  %v3392_v30 = vpop.f32.mrb[43].mxu1 }
 0x155   : > { %2141 = vst [vmem:[%s4202_s12 + $0xa8] sm:$0xff] %v1333_v27  ;;  %3278 = vmatmul.mubr.bf16.gmra.mrb[148].mxu0 %v3770_v21  ;;  %2251 = vst [vmem:[%s4202_s12 + $0x418] sm:$0xff] %v1773_v29  ;;  %3498 = vmatmul.mubr.bf16.gmra.mrb[148].mxu1 %v3771_v24  ;;  %v3780_v29 = vld [vmem:[%s4003_s7 + $0x150] sm:$0xff]  }
 0x156   : > { %3281 = vmatprep.mubr.msk.bf16.mxu0 %vm3912_vm0, %v3911_v1  ;;  %3501 = vmatprep.mubr.msk.bf16.mxu1 %vm3912_vm0, %v3911_v1 }
 0x158   : > { %v1337_v31 = vpop.f32.mrb[44].mxu0  ;;  %v1777_v32 = vpop.f32.mrb[44].mxu1 }
 0x159   : > { %v1338_v33 = vadd.f32 %v4192_v63, %v1337_v31  ;;  %v3175_v34 = vpop.f32.mrb[45].mxu0  ;;  %v1778_v36 = vadd.f32 %v4192_v63, %v1777_v32  ;;  %v3395_v37 = vpop.f32.mrb[45].mxu1  ;;  %v3781_v32 = vld [vmem:[%s4003_s7 + $0x308] sm:$0xff]  }
 0x15a   : > { %v1340_v39 = vpop.f32.mrb[46].mxu0  ;;  %v1780_v40 = vpop.f32.mrb[46].mxu1 }
 0x15b   : > { %2142 = vst [vmem:[%s4202_s12 + $0xb0] sm:$0xff] %v1338_v33  ;;  %v1341_v41 = vadd.f32 %v4192_v63, %v1340_v39  ;;  %v3176_v42 = vpop.f32.mrb[47].mxu0  ;;  %2252 = vst [vmem:[%s4202_s12 + $0x420] sm:$0xff] %v1778_v36  ;;  %v1781_v43 = vadd.f32 %v4192_v63, %v1780_v40  ;;  %v3396_v44 = vpop.f32.mrb[47].mxu1 }
 0x15d   : > { %2143 = vst [vmem:[%s4202_s12 + $0xb8] sm:$0xff] %v1341_v41  ;;  %3282 = vmatmul.mubr.bf16.gmra.mrb[152].mxu0 %v3772_v35  ;;  %2253 = vst [vmem:[%s4202_s12 + $0x428] sm:$0xff] %v1781_v43  ;;  %3502 = vmatmul.mubr.bf16.gmra.mrb[152].mxu1 %v3773_v38  ;;  %v3782_v43 = vld [vmem:[%s4003_s7 + $0x158] sm:$0xff]  }
 0x15e   : > { %3285 = vmatprep.mubr.msk.bf16.mxu0 %vm3912_vm0, %v3911_v1  ;;  %3505 = vmatprep.mubr.msk.bf16.mxu1 %vm3912_vm0, %v3911_v1 }
 0x160   : > { %v1345_v45 = vpop.f32.mrb[48].mxu0  ;;  %v1785_v46 = vpop.f32.mrb[48].mxu1 }
 0x161   : > { %v1346_v47 = vadd.f32 %v4192_v63, %v1345_v45  ;;  %v3179_v48 = vpop.f32.mrb[49].mxu0  ;;  %v1786_v50 = vadd.f32 %v4192_v63, %v1785_v46  ;;  %v3399_v51 = vpop.f32.mrb[49].mxu1  ;;  %v3783_v46 = vld [vmem:[%s4003_s7 + $0x310] sm:$0xff]  }
 0x162   : > { %v1348_v53 = vpop.f32.mrb[50].mxu0  ;;  %v1788_v54 = vpop.f32.mrb[50].mxu1 }
 0x163   : > { %2144 = vst [vmem:[%s4202_s12 + $0xc0] sm:$0xff] %v1346_v47  ;;  %v1349_v55 = vadd.f32 %v4192_v63, %v1348_v53  ;;  %v3180_v56 = vpop.f32.mrb[51].mxu0  ;;  %2254 = vst [vmem:[%s4202_s12 + $0x430] sm:$0xff] %v1786_v50  ;;  %v1789_v57 = vadd.f32 %v4192_v63, %v1788_v54  ;;  %v3400_v58 = vpop.f32.mrb[51].mxu1 }
 0x165   : > { %2145 = vst [vmem:[%s4202_s12 + $0xc8] sm:$0xff] %v1349_v55  ;;  %3286 = vmatmul.mubr.bf16.gmra.mrb[156].mxu0 %v3774_v49  ;;  %2255 = vst [vmem:[%s4202_s12 + $0x438] sm:$0xff] %v1789_v57  ;;  %3506 = vmatmul.mubr.bf16.gmra.mrb[156].mxu1 %v3775_v52  ;;  %v3784_v57 = vld [vmem:[%s4003_s7 + $0x160] sm:$0xff]  }
 0x166   : > { %3289 = vmatprep.mubr.msk.bf16.mxu0 %vm3912_vm0, %v3911_v1  ;;  %3509 = vmatprep.mubr.msk.bf16.mxu1 %vm3912_vm0, %v3911_v1 }
 0x168   : > { %v1353_v59 = vpop.f32.mrb[52].mxu0  ;;  %v1793_v60 = vpop.f32.mrb[52].mxu1 }
 0x169   : > { %v1354_v61 = vadd.f32 %v4192_v63, %v1353_v59  ;;  %v3183_v62 = vpop.f32.mrb[53].mxu0  ;;  %v1794_v2 = vadd.f32 %v4192_v63, %v1793_v60  ;;  %v3403_v3 = vpop.f32.mrb[53].mxu1  ;;  %v3785_v60 = vld [vmem:[%s4003_s7 + $0x318] sm:$0xff]  }
 0x16a   : > { %v1356_v5 = vpop.f32.mrb[54].mxu0  ;;  %v1796_v6 = vpop.f32.mrb[54].mxu1 }
 0x16b   : > { %2146 = vst [vmem:[%s4202_s12 + $0xd0] sm:$0xff] %v1354_v61  ;;  %v1357_v7 = vadd.f32 %v4192_v63, %v1356_v5  ;;  %v3184_v8 = vpop.f32.mrb[55].mxu0  ;;  %2256 = vst [vmem:[%s4202_s12 + $0x440] sm:$0xff] %v1794_v2  ;;  %v1797_v9 = vadd.f32 %v4192_v63, %v1796_v6  ;;  %v3404_v10 = vpop.f32.mrb[55].mxu1 }
 0x16d   : > { %2147 = vst [vmem:[%s4202_s12 + $0xd8] sm:$0xff] %v1357_v7  ;;  %3290 = vmatmul.mubr.bf16.gmra.mrb[160].mxu0 %v3776_v0  ;;  %2257 = vst [vmem:[%s4202_s12 + $0x448] sm:$0xff] %v1797_v9  ;;  %3510 = vmatmul.mubr.bf16.gmra.mrb[160].mxu1 %v3777_v4  ;;  %v3786_v9 = vld [vmem:[%s4003_s7 + $0x168] sm:$0xff]  }
 0x16e   : > { %3293 = vmatprep.mubr.msk.bf16.mxu0 %vm3912_vm0, %v3911_v1  ;;  %3513 = vmatprep.mubr.msk.bf16.mxu1 %vm3912_vm0, %v3911_v1 }
 0x170   : > { %v1361_v11 = vpop.f32.mrb[56].mxu0  ;;  %v1801_v12 = vpop.f32.mrb[56].mxu1 }
 0x171   : > { %v1362_v13 = vadd.f32 %v4192_v63, %v1361_v11  ;;  %v3187_v14 = vpop.f32.mrb[57].mxu0  ;;  %v1802_v16 = vadd.f32 %v4192_v63, %v1801_v12  ;;  %v3407_v17 = vpop.f32.mrb[57].mxu1  ;;  %v3787_v12 = vld [vmem:[%s4003_s7 + $0x320] sm:$0xff]  }
 0x172   : > { %v1364_v19 = vpop.f32.mrb[58].mxu0  ;;  %v1804_v20 = vpop.f32.mrb[58].mxu1 }
 0x173   : > { %2148 = vst [vmem:[%s4202_s12 + $0xe0] sm:$0xff] %v1362_v13  ;;  %v1365_v21 = vadd.f32 %v4192_v63, %v1364_v19  ;;  %v3188_v22 = vpop.f32.mrb[59].mxu0  ;;  %2258 = vst [vmem:[%s4202_s12 + $0x450] sm:$0xff] %v1802_v16  ;;  %v1805_v23 = vadd.f32 %v4192_v63, %v1804_v20  ;;  %v3408_v24 = vpop.f32.mrb[59].mxu1 }
 0x175   : > { %2149 = vst [vmem:[%s4202_s12 + $0xe8] sm:$0xff] %v1365_v21  ;;  %3294 = vmatmul.mubr.bf16.gmra.mrb[164].mxu0 %v3778_v15  ;;  %2259 = vst [vmem:[%s4202_s12 + $0x458] sm:$0xff] %v1805_v23  ;;  %3514 = vmatmul.mubr.bf16.gmra.mrb[164].mxu1 %v3779_v18  ;;  %v3788_v23 = vld [vmem:[%s4003_s7 + $0x170] sm:$0xff]  }
 0x176   : > { %3297 = vmatprep.mubr.msk.bf16.mxu0 %vm3912_vm0, %v3911_v1  ;;  %3517 = vmatprep.mubr.msk.bf16.mxu1 %vm3912_vm0, %v3911_v1 }
 0x178   : > { %v1369_v25 = vpop.f32.mrb[60].mxu0  ;;  %v1809_v26 = vpop.f32.mrb[60].mxu1 }
 0x179   : > { %v1370_v27 = vadd.f32 %v4192_v63, %v1369_v25  ;;  %v3191_v28 = vpop.f32.mrb[61].mxu0  ;;  %v1810_v30 = vadd.f32 %v4192_v63, %v1809_v26  ;;  %v3411_v31 = vpop.f32.mrb[61].mxu1  ;;  %v3789_v26 = vld [vmem:[%s4003_s7 + $0x328] sm:$0xff]  }
 0x17a   : > { %v1372_v33 = vpop.f32.mrb[62].mxu0  ;;  %v1812_v34 = vpop.f32.mrb[62].mxu1 }
 0x17b   : > { %2150 = vst [vmem:[%s4202_s12 + $0xf0] sm:$0xff] %v1370_v27  ;;  %v1373_v35 = vadd.f32 %v4192_v63, %v1372_v33  ;;  %v3192_v36 = vpop.f32.mrb[63].mxu0  ;;  %2260 = vst [vmem:[%s4202_s12 + $0x460] sm:$0xff] %v1810_v30  ;;  %v1813_v37 = vadd.f32 %v4192_v63, %v1812_v34  ;;  %v3412_v38 = vpop.f32.mrb[63].mxu1 }
 0x17d   : > { %2151 = vst [vmem:[%s4202_s12 + $0xf8] sm:$0xff] %v1373_v35  ;;  %3298 = vmatmul.mubr.bf16.gmra.mrb[168].mxu0 %v3780_v29  ;;  %2261 = vst [vmem:[%s4202_s12 + $0x468] sm:$0xff] %v1813_v37  ;;  %3518 = vmatmul.mubr.bf16.gmra.mrb[168].mxu1 %v3781_v32  ;;  %v3790_v37 = vld [vmem:[%s4003_s7 + $0x178] sm:$0xff]  }
 0x17e   : > { %3301 = vmatprep.mubr.msk.bf16.mxu0 %vm3912_vm0, %v3911_v1  ;;  %3521 = vmatprep.mubr.msk.bf16.mxu1 %vm3912_vm0, %v3911_v1 }
 0x180   : > { %v1377_v39 = vpop.f32.mrb[64].mxu0  ;;  %v1817_v40 = vpop.f32.mrb[64].mxu1 }
 0x181   : > { %v1378_v41 = vadd.f32 %v4192_v63, %v1377_v39  ;;  %v3195_v42 = vpop.f32.mrb[65].mxu0  ;;  %v1818_v44 = vadd.f32 %v4192_v63, %v1817_v40  ;;  %v3415_v45 = vpop.f32.mrb[65].mxu1  ;;  %v3791_v40 = vld [vmem:[%s4003_s7 + $0x330] sm:$0xff]  }
 0x182   : > { %v1380_v47 = vpop.f32.mrb[66].mxu0  ;;  %v1820_v48 = vpop.f32.mrb[66].mxu1 }
 0x183   : > { %2152 = vst [vmem:[%s4202_s12 + $0x100] sm:$0xff] %v1378_v41  ;;  %v1381_v49 = vadd.f32 %v4192_v63, %v1380_v47  ;;  %v3196_v50 = vpop.f32.mrb[67].mxu0  ;;  %2262 = vst [vmem:[%s4202_s12 + $0x470] sm:$0xff] %v1818_v44  ;;  %v1821_v51 = vadd.f32 %v4192_v63, %v1820_v48  ;;  %v3416_v52 = vpop.f32.mrb[67].mxu1 }
 0x185   : > { %2153 = vst [vmem:[%s4202_s12 + $0x108] sm:$0xff] %v1381_v49  ;;  %3302 = vmatmul.mubr.bf16.gmra.mrb[172].mxu0 %v3782_v43  ;;  %2263 = vst [vmem:[%s4202_s12 + $0x478] sm:$0xff] %v1821_v51  ;;  %3522 = vmatmul.mubr.bf16.gmra.mrb[172].mxu1 %v3783_v46  ;;  %v3792_v51 = vld [vmem:[%s4003_s7 + $0x180] sm:$0xff]  }
 0x186   : > { %3305 = vmatprep.mubr.msk.bf16.mxu0 %vm3912_vm0, %v3911_v1  ;;  %3525 = vmatprep.mubr.msk.bf16.mxu1 %vm3912_vm0, %v3911_v1 }
 0x188   : > { %v1385_v53 = vpop.f32.mrb[68].mxu0  ;;  %v1825_v54 = vpop.f32.mrb[68].mxu1 }
 0x189   : > { %v1386_v55 = vadd.f32 %v4192_v63, %v1385_v53  ;;  %v3199_v56 = vpop.f32.mrb[69].mxu0  ;;  %v1826_v58 = vadd.f32 %v4192_v63, %v1825_v54  ;;  %v3419_v59 = vpop.f32.mrb[69].mxu1  ;;  %v3793_v54 = vld [vmem:[%s4003_s7 + $0x338] sm:$0xff]  }
 0x18a   : > { %v1388_v61 = vpop.f32.mrb[70].mxu0  ;;  %v1828_v62 = vpop.f32.mrb[70].mxu1 }
 0x18b   : > { %2154 = vst [vmem:[%s4202_s12 + $0x110] sm:$0xff] %v1386_v55  ;;  %v1389_v0 = vadd.f32 %v4192_v63, %v1388_v61  ;;  %v3200_v2 = vpop.f32.mrb[71].mxu0  ;;  %2264 = vst [vmem:[%s4202_s12 + $0x480] sm:$0xff] %v1826_v58  ;;  %v1829_v3 = vadd.f32 %v4192_v63, %v1828_v62  ;;  %v3420_v4 = vpop.f32.mrb[71].mxu1 }
 0x18d   : > { %2155 = vst [vmem:[%s4202_s12 + $0x118] sm:$0xff] %v1389_v0  ;;  %3306 = vmatmul.mubr.bf16.gmra.mrb[176].mxu0 %v3784_v57  ;;  %2265 = vst [vmem:[%s4202_s12 + $0x488] sm:$0xff] %v1829_v3  ;;  %3526 = vmatmul.mubr.bf16.gmra.mrb[176].mxu1 %v3785_v60  ;;  %v3794_v3 = vld [vmem:[%s4003_s7 + $0x188] sm:$0xff]  }
 0x18e   : > { %3309 = vmatprep.mubr.msk.bf16.mxu0 %vm3912_vm0, %v3911_v1  ;;  %3529 = vmatprep.mubr.msk.bf16.mxu1 %vm3912_vm0, %v3911_v1 }
 0x190   : > { %v1393_v5 = vpop.f32.mrb[72].mxu0  ;;  %v1833_v6 = vpop.f32.mrb[72].mxu1 }
 0x191   : > { %v1394_v7 = vadd.f32 %v4192_v63, %v1393_v5  ;;  %v3203_v8 = vpop.f32.mrb[73].mxu0  ;;  %v1834_v10 = vadd.f32 %v4192_v63, %v1833_v6  ;;  %v3423_v11 = vpop.f32.mrb[73].mxu1  ;;  %v3795_v6 = vld [vmem:[%s4003_s7 + $0x340] sm:$0xff]  }
 0x192   : > { %v1396_v13 = vpop.f32.mrb[74].mxu0  ;;  %v1836_v14 = vpop.f32.mrb[74].mxu1 }
 0x193   : > { %2156 = vst [vmem:[%s4202_s12 + $0x120] sm:$0xff] %v1394_v7  ;;  %v1397_v15 = vadd.f32 %v4192_v63, %v1396_v13  ;;  %v3204_v16 = vpop.f32.mrb[75].mxu0  ;;  %2266 = vst [vmem:[%s4202_s12 + $0x490] sm:$0xff] %v1834_v10  ;;  %v1837_v17 = vadd.f32 %v4192_v63, %v1836_v14  ;;  %v3424_v18 = vpop.f32.mrb[75].mxu1 }
 0x195   : > { %2157 = vst [vmem:[%s4202_s12 + $0x128] sm:$0xff] %v1397_v15  ;;  %3310 = vmatmul.mubr.bf16.gmra.mrb[180].mxu0 %v3786_v9  ;;  %2267 = vst [vmem:[%s4202_s12 + $0x498] sm:$0xff] %v1837_v17  ;;  %3530 = vmatmul.mubr.bf16.gmra.mrb[180].mxu1 %v3787_v12  ;;  %v3796_v17 = vld [vmem:[%s4003_s7 + $0x190] sm:$0xff]  }
 0x196   : > { %3313 = vmatprep.mubr.msk.bf16.mxu0 %vm3912_vm0, %v3911_v1  ;;  %3533 = vmatprep.mubr.msk.bf16.mxu1 %vm3912_vm0, %v3911_v1 }
 0x198   : > { %v1401_v19 = vpop.f32.mrb[76].mxu0  ;;  %v1841_v20 = vpop.f32.mrb[76].mxu1 }
 0x199   : > { %v1402_v21 = vadd.f32 %v4192_v63, %v1401_v19  ;;  %v3207_v22 = vpop.f32.mrb[77].mxu0  ;;  %v1842_v24 = vadd.f32 %v4192_v63, %v1841_v20  ;;  %v3427_v25 = vpop.f32.mrb[77].mxu1  ;;  %v3797_v20 = vld [vmem:[%s4003_s7 + $0x348] sm:$0xff]  }
 0x19a   : > { %v1404_v27 = vpop.f32.mrb[78].mxu0  ;;  %v1844_v28 = vpop.f32.mrb[78].mxu1 }
 0x19b   : > { %2158 = vst [vmem:[%s4202_s12 + $0x130] sm:$0xff] %v1402_v21  ;;  %v1405_v29 = vadd.f32 %v4192_v63, %v1404_v27  ;;  %v3208_v30 = vpop.f32.mrb[79].mxu0  ;;  %2268 = vst [vmem:[%s4202_s12 + $0x4a0] sm:$0xff] %v1842_v24  ;;  %v1845_v31 = vadd.f32 %v4192_v63, %v1844_v28  ;;  %v3428_v32 = vpop.f32.mrb[79].mxu1 }
 0x19d   : > { %2159 = vst [vmem:[%s4202_s12 + $0x138] sm:$0xff] %v1405_v29  ;;  %3314 = vmatmul.mubr.bf16.gmra.mrb[184].mxu0 %v3788_v23  ;;  %2269 = vst [vmem:[%s4202_s12 + $0x4a8] sm:$0xff] %v1845_v31  ;;  %3534 = vmatmul.mubr.bf16.gmra.mrb[184].mxu1 %v3789_v26  ;;  %v3798_v31 = vld [vmem:[%s4003_s7 + $0x198] sm:$0xff]  }
 0x19e   : > { %3317 = vmatprep.mubr.msk.bf16.mxu0 %vm3912_vm0, %v3911_v1  ;;  %3537 = vmatprep.mubr.msk.bf16.mxu1 %vm3912_vm0, %v3911_v1 }
 0x1a0   : > { %v1409_v33 = vpop.f32.mrb[80].mxu0  ;;  %v1849_v34 = vpop.f32.mrb[80].mxu1 }
 0x1a1   : > { %v1410_v35 = vadd.f32 %v4192_v63, %v1409_v33  ;;  %v3211_v36 = vpop.f32.mrb[81].mxu0  ;;  %v1850_v38 = vadd.f32 %v4192_v63, %v1849_v34  ;;  %v3431_v39 = vpop.f32.mrb[81].mxu1  ;;  %v3799_v34 = vld [vmem:[%s4003_s7 + $0x350] sm:$0xff]  }
 0x1a2   : > { %v1412_v41 = vpop.f32.mrb[82].mxu0  ;;  %v1852_v42 = vpop.f32.mrb[82].mxu1 }
 0x1a3   : > { %2160 = vst [vmem:[%s4202_s12 + $0x140] sm:$0xff] %v1410_v35  ;;  %v1413_v43 = vadd.f32 %v4192_v63, %v1412_v41  ;;  %v3212_v44 = vpop.f32.mrb[83].mxu0  ;;  %2270 = vst [vmem:[%s4202_s12 + $0x4b0] sm:$0xff] %v1850_v38  ;;  %v1853_v45 = vadd.f32 %v4192_v63, %v1852_v42  ;;  %v3432_v46 = vpop.f32.mrb[83].mxu1 }
 0x1a5   : > { %2161 = vst [vmem:[%s4202_s12 + $0x148] sm:$0xff] %v1413_v43  ;;  %3318 = vmatmul.mubr.bf16.gmra.mrb[188].mxu0 %v3790_v37  ;;  %2271 = vst [vmem:[%s4202_s12 + $0x4b8] sm:$0xff] %v1853_v45  ;;  %3538 = vmatmul.mubr.bf16.gmra.mrb[188].mxu1 %v3791_v40  ;;  %v3800_v45 = vld [vmem:[%s4003_s7 + $0x1a0] sm:$0xff]  }
 0x1a6   : > { %3321 = vmatprep.mubr.msk.bf16.mxu0 %vm3912_vm0, %v3911_v1  ;;  %3541 = vmatprep.mubr.msk.bf16.mxu1 %vm3912_vm0, %v3911_v1 }
 0x1a8   : > { %v1417_v47 = vpop.f32.mrb[84].mxu0  ;;  %v1857_v48 = vpop.f32.mrb[84].mxu1 }
 0x1a9   : > { %v1418_v49 = vadd.f32 %v4192_v63, %v1417_v47  ;;  %v3215_v50 = vpop.f32.mrb[85].mxu0  ;;  %v1858_v52 = vadd.f32 %v4192_v63, %v1857_v48  ;;  %v3435_v53 = vpop.f32.mrb[85].mxu1  ;;  %v3801_v48 = vld [vmem:[%s4003_s7 + $0x358] sm:$0xff]  }
 0x1aa   : > { %v1420_v55 = vpop.f32.mrb[86].mxu0  ;;  %v1860_v56 = vpop.f32.mrb[86].mxu1 }
 0x1ab   : > { %2162 = vst [vmem:[%s4202_s12 + $0x150] sm:$0xff] %v1418_v49  ;;  %v1421_v57 = vadd.f32 %v4192_v63, %v1420_v55  ;;  %v3216_v58 = vpop.f32.mrb[87].mxu0  ;;  %2272 = vst [vmem:[%s4202_s12 + $0x4c0] sm:$0xff] %v1858_v52  ;;  %v1861_v59 = vadd.f32 %v4192_v63, %v1860_v56  ;;  %v3436_v60 = vpop.f32.mrb[87].mxu1 }
 0x1ad   : > { %2163 = vst [vmem:[%s4202_s12 + $0x158] sm:$0xff] %v1421_v57  ;;  %3322 = vmatmul.mubr.bf16.gmra.mrb[192].mxu0 %v3792_v51  ;;  %2273 = vst [vmem:[%s4202_s12 + $0x4c8] sm:$0xff] %v1861_v59  ;;  %3542 = vmatmul.mubr.bf16.gmra.mrb[192].mxu1 %v3793_v54  ;;  %v3802_v59 = vld [vmem:[%s4003_s7 + $0x1a8] sm:$0xff]  }
 0x1ae   : > { %3325 = vmatprep.mubr.msk.bf16.mxu0 %vm3912_vm0, %v3911_v1  ;;  %3545 = vmatprep.mubr.msk.bf16.mxu1 %vm3912_vm0, %v3911_v1 }
 0x1b0   : > { %v1425_v61 = vpop.f32.mrb[88].mxu0  ;;  %v1865_v62 = vpop.f32.mrb[88].mxu1 }
 0x1b1   : > { %v1426_v0 = vadd.f32 %v4192_v63, %v1425_v61  ;;  %v3219_v2 = vpop.f32.mrb[89].mxu0  ;;  %v1866_v4 = vadd.f32 %v4192_v63, %v1865_v62  ;;  %v3439_v5 = vpop.f32.mrb[89].mxu1  ;;  %v3803_v62 = vld [vmem:[%s4003_s7 + $0x360] sm:$0xff]  }
 0x1b2   : > { %v1428_v7 = vpop.f32.mrb[90].mxu0  ;;  %v1868_v8 = vpop.f32.mrb[90].mxu1 }
 0x1b3   : > { %2164 = vst [vmem:[%s4202_s12 + $0x160] sm:$0xff] %v1426_v0  ;;  %v1429_v9 = vadd.f32 %v4192_v63, %v1428_v7  ;;  %v3220_v10 = vpop.f32.mrb[91].mxu0  ;;  %2274 = vst [vmem:[%s4202_s12 + $0x4d0] sm:$0xff] %v1866_v4  ;;  %v1869_v11 = vadd.f32 %v4192_v63, %v1868_v8  ;;  %v3440_v12 = vpop.f32.mrb[91].mxu1  ;;  %v4525_v63 = vld [vmem:[%s5014_s2] ss:$0 sm:$0xff] }
 0x1b5   : > { %2165 = vst [vmem:[%s4202_s12 + $0x168] sm:$0xff] %v1429_v9  ;;  %3326 = vmatmul.mubr.bf16.gmra.mrb[196].mxu0 %v3794_v3  ;;  %2275 = vst [vmem:[%s4202_s12 + $0x4d8] sm:$0xff] %v1869_v11  ;;  %3546 = vmatmul.mubr.bf16.gmra.mrb[196].mxu1 %v3795_v6  ;;  %v3804_v11 = vld [vmem:[%s4003_s7 + $0x1b0] sm:$0xff]  }
 0x1b6   : > { %3329 = vmatprep.mubr.msk.bf16.mxu0 %vm3912_vm0, %v3911_v1  ;;  %3549 = vmatprep.mubr.msk.bf16.mxu1 %vm3912_vm0, %v3911_v1 }
 0x1b8   : > { %v1433_v13 = vpop.f32.mrb[92].mxu0  ;;  %v1873_v14 = vpop.f32.mrb[92].mxu1 }
 0x1b9   : > { %v1434_v15 = vadd.f32 %v4525_v63, %v1433_v13  ;;  %v3223_v16 = vpop.f32.mrb[93].mxu0  ;;  %v1874_v18 = vadd.f32 %v4525_v63, %v1873_v14  ;;  %v3443_v19 = vpop.f32.mrb[93].mxu1 }
 0x1ba   : > { %v1436_v21 = vpop.f32.mrb[94].mxu0  ;;  %v1876_v22 = vpop.f32.mrb[94].mxu1 }
 0x1bb   : > { %2166 = vst [vmem:[%s4202_s12 + $0x170] sm:$0xff] %v1434_v15  ;;  %v1437_v23 = vadd.f32 %v4525_v63, %v1436_v21  ;;  %v3224_v24 = vpop.f32.mrb[95].mxu0  ;;  %2276 = vst [vmem:[%s4202_s12 + $0x4e0] sm:$0xff] %v1874_v18  ;;  %v1877_v25 = vadd.f32 %v4525_v63, %v1876_v22  ;;  %v3444_v26 = vpop.f32.mrb[95].mxu1 }
 0x1bd   : > { %2167 = vst [vmem:[%s4202_s12 + $0x178] sm:$0xff] %v1437_v23  ;;  %3330 = vmatmul.mubr.bf16.gmra.mrb[200].mxu0 %v3796_v17  ;;  %2277 = vst [vmem:[%s4202_s12 + $0x4e8] sm:$0xff] %v1877_v25  ;;  %3550 = vmatmul.mubr.bf16.gmra.mrb[200].mxu1 %v3797_v20 }
 0x1be   : > { %3333 = vmatprep.mubr.msk.bf16.mxu0 %vm3912_vm0, %v3911_v1  ;;  %3553 = vmatprep.mubr.msk.bf16.mxu1 %vm3912_vm0, %v3911_v1 }
 0x1c0   : > { %v1441_v27 = vpop.f32.mrb[96].mxu0  ;;  %v1881_v28 = vpop.f32.mrb[96].mxu1 }
 0x1c1   : > { %v1442_v29 = vadd.f32 %v4525_v63, %v1441_v27  ;;  %v3227_v30 = vpop.f32.mrb[97].mxu0  ;;  %v1882_v32 = vadd.f32 %v4525_v63, %v1881_v28  ;;  %v3447_v33 = vpop.f32.mrb[97].mxu1 }
 0x1c2   : > { %v1444_v35 = vpop.f32.mrb[98].mxu0  ;;  %v1884_v36 = vpop.f32.mrb[98].mxu1 }
 0x1c3   : > { %2168 = vst [vmem:[%s4202_s12 + $0x180] sm:$0xff] %v1442_v29  ;;  %v1445_v37 = vadd.f32 %v4525_v63, %v1444_v35  ;;  %v3228_v38 = vpop.f32.mrb[99].mxu0  ;;  %2278 = vst [vmem:[%s4202_s12 + $0x4f0] sm:$0xff] %v1882_v32  ;;  %v1885_v39 = vadd.f32 %v4525_v63, %v1884_v36  ;;  %v3448_v40 = vpop.f32.mrb[99].mxu1 }
 0x1c5   : > { %2169 = vst [vmem:[%s4202_s12 + $0x188] sm:$0xff] %v1445_v37  ;;  %3334 = vmatmul.mubr.bf16.gmra.mrb[204].mxu0 %v3798_v31  ;;  %2279 = vst [vmem:[%s4202_s12 + $0x4f8] sm:$0xff] %v1885_v39  ;;  %3554 = vmatmul.mubr.bf16.gmra.mrb[204].mxu1 %v3799_v34 }
 0x1c6   : > { %3337 = vmatprep.mubr.msk.bf16.mxu0 %vm3912_vm0, %v3911_v1  ;;  %3557 = vmatprep.mubr.msk.bf16.mxu1 %vm3912_vm0, %v3911_v1 }
 0x1c8   : > { %v1449_v41 = vpop.f32.mrb[100].mxu0  ;;  %v1889_v42 = vpop.f32.mrb[100].mxu1 }
 0x1c9   : > { %v1450_v43 = vadd.f32 %v4525_v63, %v1449_v41  ;;  %v3231_v44 = vpop.f32.mrb[101].mxu0  ;;  %v1890_v46 = vadd.f32 %v4525_v63, %v1889_v42  ;;  %v3451_v47 = vpop.f32.mrb[101].mxu1 }
 0x1ca   : > { %v1452_v49 = vpop.f32.mrb[102].mxu0  ;;  %v1892_v50 = vpop.f32.mrb[102].mxu1 }
 0x1cb   : > { %2170 = vst [vmem:[%s4202_s12 + $0x190] sm:$0xff] %v1450_v43  ;;  %v1453_v51 = vadd.f32 %v4525_v63, %v1452_v49  ;;  %v3232_v52 = vpop.f32.mrb[103].mxu0  ;;  %2280 = vst [vmem:[%s4202_s12 + $0x500] sm:$0xff] %v1890_v46  ;;  %v1893_v53 = vadd.f32 %v4525_v63, %v1892_v50  ;;  %v3452_v54 = vpop.f32.mrb[103].mxu1 }
 0x1cd   : > { %2171 = vst [vmem:[%s4202_s12 + $0x198] sm:$0xff] %v1453_v51  ;;  %3338 = vmatmul.mubr.bf16.gmra.mrb[208].mxu0 %v3800_v45  ;;  %2281 = vst [vmem:[%s4202_s12 + $0x508] sm:$0xff] %v1893_v53  ;;  %3558 = vmatmul.mubr.bf16.gmra.mrb[208].mxu1 %v3801_v48 }
 0x1ce   : > { %3341 = vmatprep.mubr.msk.bf16.mxu0 %vm3912_vm0, %v3911_v1  ;;  %3561 = vmatprep.mubr.msk.bf16.mxu1 %vm3912_vm0, %v3911_v1 }
 0x1d0   : > { %v1457_v55 = vpop.f32.mrb[104].mxu0  ;;  %v1897_v56 = vpop.f32.mrb[104].mxu1 }
 0x1d1   : > { %v1458_v57 = vadd.f32 %v4525_v63, %v1457_v55  ;;  %v3235_v58 = vpop.f32.mrb[105].mxu0  ;;  %v1898_v60 = vadd.f32 %v4525_v63, %v1897_v56  ;;  %v3455_v61 = vpop.f32.mrb[105].mxu1 }
 0x1d2   : > { %v1460_v0 = vpop.f32.mrb[106].mxu0  ;;  %v1900_v2 = vpop.f32.mrb[106].mxu1 }
 0x1d3   : > { %2172 = vst [vmem:[%s4202_s12 + $0x1a0] sm:$0xff] %v1458_v57  ;;  %v1461_v3 = vadd.f32 %v4525_v63, %v1460_v0  ;;  %v3236_v4 = vpop.f32.mrb[107].mxu0  ;;  %2282 = vst [vmem:[%s4202_s12 + $0x510] sm:$0xff] %v1898_v60  ;;  %v1901_v5 = vadd.f32 %v4525_v63, %v1900_v2  ;;  %v3456_v6 = vpop.f32.mrb[107].mxu1 }
 0x1d5   : > { %2173 = vst [vmem:[%s4202_s12 + $0x1a8] sm:$0xff] %v1461_v3  ;;  %3342 = vmatmul.mubr.bf16.gmra.mrb[212].mxu0 %v3802_v59  ;;  %2283 = vst [vmem:[%s4202_s12 + $0x518] sm:$0xff] %v1901_v5  ;;  %3562 = vmatmul.mubr.bf16.gmra.mrb[212].mxu1 %v3803_v62 }
 0x1d6   : > { %3345 = vmatprep.mubr.msk.bf16.mxu0 %vm3912_vm0, %v3911_v1 }
 0x1d8   : > { %v1465_v7 = vpop.f32.mrb[108].mxu0  ;;  %v1905_v8 = vpop.f32.mrb[108].mxu1 }
 0x1d9   : > { %v1466_v9 = vadd.f32 %v4525_v63, %v1465_v7  ;;  %v3239_v10 = vpop.f32.mrb[109].mxu0  ;;  %v1906_v12 = vadd.f32 %v4525_v63, %v1905_v8  ;;  %v3459_v13 = vpop.f32.mrb[109].mxu1 }
 0x1da   : > { %v1468_v14 = vpop.f32.mrb[110].mxu0  ;;  %v1908_v15 = vpop.f32.mrb[110].mxu1 }
 0x1db   : > { %2174 = vst [vmem:[%s4202_s12 + $0x1b0] sm:$0xff] %v1466_v9  ;;  %v1469_v16 = vadd.f32 %v4525_v63, %v1468_v14  ;;  %v3240_v17 = vpop.f32.mrb[111].mxu0  ;;  %2284 = vst [vmem:[%s4202_s12 + $0x520] sm:$0xff] %v1906_v12  ;;  %v1909_v1 = vadd.f32 %v4525_v63, %v1908_v15  ;;  %v3460_v18 = vpop.f32.mrb[111].mxu1 }
 0x1dd   : > { %2175 = vst [vmem:[%s4202_s12 + $0x1b8] sm:$0xff] %v1469_v16  ;;  %3346 = vmatmul.mubr.bf16.gmra.mrb[216].mxu0 %v3804_v11  ;;  %2285 = vst [vmem:[%s4202_s12 + $0x528] sm:$0xff] %v1909_v1 }
 0x1e0   : > { %v1473_v19 = vpop.f32.mrb[112].mxu0  ;;  %v1913_v20 = vpop.f32.mrb[112].mxu1 }
 0x1e1   : > { %v1474_v21 = vadd.f32 %v4525_v63, %v1473_v19  ;;  %v3243_v22 = vpop.f32.mrb[113].mxu0  ;;  %v1914_v23 = vadd.f32 %v4525_v63, %v1913_v20  ;;  %v3463_v24 = vpop.f32.mrb[113].mxu1 }
 0x1e2   : > { %v1476_v25 = vpop.f32.mrb[114].mxu0  ;;  %v1916_v26 = vpop.f32.mrb[114].mxu1 }
 0x1e3   : > { %2176 = vst [vmem:[%s4202_s12 + $0x1c0] sm:$0xff] %v1474_v21  ;;  %v1477_v27 = vadd.f32 %v4525_v63, %v1476_v25  ;;  %v3244_v28 = vpop.f32.mrb[115].mxu0  ;;  %2286 = vst [vmem:[%s4202_s12 + $0x530] sm:$0xff] %v1914_v23  ;;  %v1917_v29 = vadd.f32 %v4525_v63, %v1916_v26  ;;  %v3464_v30 = vpop.f32.mrb[115].mxu1 }
 0x1e5   : > { %2177 = vst [vmem:[%s4202_s12 + $0x1c8] sm:$0xff] %v1477_v27  ;;  %2287 = vst [vmem:[%s4202_s12 + $0x538] sm:$0xff] %v1917_v29 }
 0x1e8   : > { %v1481_v31 = vpop.f32.mrb[116].mxu0  ;;  %v1921_v32 = vpop.f32.mrb[116].mxu1 }
 0x1e9   : > { %v1482_v33 = vadd.f32 %v4525_v63, %v1481_v31  ;;  %v3247_v34 = vpop.f32.mrb[117].mxu0  ;;  %v1922_v35 = vadd.f32 %v4525_v63, %v1921_v32  ;;  %v3467_v36 = vpop.f32.mrb[117].mxu1 }
 0x1ea   : > { %v1484_v37 = vpop.f32.mrb[118].mxu0  ;;  %v1924_v38 = vpop.f32.mrb[118].mxu1 }
 0x1eb   : > { %2178 = vst [vmem:[%s4202_s12 + $0x1d0] sm:$0xff] %v1482_v33  ;;  %v1485_v39 = vadd.f32 %v4525_v63, %v1484_v37  ;;  %v3248_v40 = vpop.f32.mrb[119].mxu0  ;;  %2288 = vst [vmem:[%s4202_s12 + $0x540] sm:$0xff] %v1922_v35  ;;  %v1925_v41 = vadd.f32 %v4525_v63, %v1924_v38  ;;  %v3468_v42 = vpop.f32.mrb[119].mxu1 }
 0x1ed   : > { %2179 = vst [vmem:[%s4202_s12 + $0x1d8] sm:$0xff] %v1485_v39  ;;  %2289 = vst [vmem:[%s4202_s12 + $0x548] sm:$0xff] %v1925_v41 }
 0x1f0   : > { %v1489_v43 = vpop.f32.mrb[120].mxu0  ;;  %v1929_v44 = vpop.f32.mrb[120].mxu1 }
 0x1f1   : > { %v1490_v45 = vadd.f32 %v4525_v63, %v1489_v43  ;;  %v3251_v46 = vpop.f32.mrb[121].mxu0  ;;  %v1930_v47 = vadd.f32 %v4525_v63, %v1929_v44  ;;  %v3471_v48 = vpop.f32.mrb[121].mxu1 }
 0x1f2   : > { %v1492_v49 = vpop.f32.mrb[122].mxu0  ;;  %v1932_v50 = vpop.f32.mrb[122].mxu1 }
 0x1f3   : > { %2180 = vst [vmem:[%s4202_s12 + $0x1e0] sm:$0xff] %v1490_v45  ;;  %v1493_v51 = vadd.f32 %v4525_v63, %v1492_v49  ;;  %v3252_v52 = vpop.f32.mrb[123].mxu0  ;;  %2290 = vst [vmem:[%s4202_s12 + $0x550] sm:$0xff] %v1930_v47  ;;  %v1933_v53 = vadd.f32 %v4525_v63, %v1932_v50  ;;  %v3472_v54 = vpop.f32.mrb[123].mxu1 }
 0x1f5   : > { %2181 = vst [vmem:[%s4202_s12 + $0x1e8] sm:$0xff] %v1493_v51  ;;  %2291 = vst [vmem:[%s4202_s12 + $0x558] sm:$0xff] %v1933_v53 }
 0x1f8   : > { %v1497_v55 = vpop.f32.mrb[124].mxu0  ;;  %v1937_v56 = vpop.f32.mrb[124].mxu1 }
 0x1f9   : > { %v1498_v57 = vadd.f32 %v4525_v63, %v1497_v55  ;;  %v3255_v58 = vpop.f32.mrb[125].mxu0  ;;  %v1938_v59 = vadd.f32 %v4525_v63, %v1937_v56  ;;  %v3475_v60 = vpop.f32.mrb[125].mxu1 }
 0x1fa   : > { %v1500_v61 = vpop.f32.mrb[126].mxu0  ;;  %v1940_v62 = vpop.f32.mrb[126].mxu1 }
 0x1fb   : > { %2182 = vst [vmem:[%s4202_s12 + $0x1f0] sm:$0xff] %v1498_v57  ;;  %v1501_v0 = vadd.f32 %v4525_v63, %v1500_v61  ;;  %v3256_v2 = vpop.f32.mrb[127].mxu0  ;;  %2292 = vst [vmem:[%s4202_s12 + $0x560] sm:$0xff] %v1938_v59  ;;  %v1941_v3 = vadd.f32 %v4525_v63, %v1940_v62  ;;  %v3476_v4 = vpop.f32.mrb[127].mxu1 }
 0x1fd   : > { %2183 = vst [vmem:[%s4202_s12 + $0x1f8] sm:$0xff] %v1501_v0  ;;  %2293 = vst [vmem:[%s4202_s12 + $0x568] sm:$0xff] %v1941_v3 }
 0x200   : > { %v1505_v5 = vpop.f32.mrb[128].mxu0  ;;  %v1945_v6 = vpop.f32.mrb[128].mxu1 }
 0x201   : > { %v1506_v7 = vadd.f32 %v4525_v63, %v1505_v5  ;;  %v3259_v8 = vpop.f32.mrb[129].mxu0  ;;  %v1946_v9 = vadd.f32 %v4525_v63, %v1945_v6  ;;  %v3479_v10 = vpop.f32.mrb[129].mxu1 }
 0x202   : > { %v1508_v11 = vpop.f32.mrb[130].mxu0  ;;  %v1948_v12 = vpop.f32.mrb[130].mxu1 }
 0x203   : > { %2184 = vst [vmem:[%s4202_s12 + $0x200] sm:$0xff] %v1506_v7  ;;  %v1509_v13 = vadd.f32 %v4525_v63, %v1508_v11  ;;  %v3260_v14 = vpop.f32.mrb[131].mxu0  ;;  %2294 = vst [vmem:[%s4202_s12 + $0x570] sm:$0xff] %v1946_v9  ;;  %v1949_v15 = vadd.f32 %v4525_v63, %v1948_v12  ;;  %v3480_v16 = vpop.f32.mrb[131].mxu1 }
 0x205   : > { %2185 = vst [vmem:[%s4202_s12 + $0x208] sm:$0xff] %v1509_v13  ;;  %2295 = vst [vmem:[%s4202_s12 + $0x578] sm:$0xff] %v1949_v15 }
 0x208   : > { %v1513_v17 = vpop.f32.mrb[132].mxu0  ;;  %v1953_v1 = vpop.f32.mrb[132].mxu1 }
 0x209   : > { %v1514_v18 = vadd.f32 %v4525_v63, %v1513_v17  ;;  %v3263_v19 = vpop.f32.mrb[133].mxu0  ;;  %v1954_v20 = vadd.f32 %v4525_v63, %v1953_v1  ;;  %v3483_v21 = vpop.f32.mrb[133].mxu1 }
 0x20a   : > { %v1516_v22 = vpop.f32.mrb[134].mxu0  ;;  %v1956_v23 = vpop.f32.mrb[134].mxu1 }
 0x20b   : > { %2186 = vst [vmem:[%s4202_s12 + $0x210] sm:$0xff] %v1514_v18  ;;  %v1517_v24 = vadd.f32 %v4525_v63, %v1516_v22  ;;  %v3264_v25 = vpop.f32.mrb[135].mxu0  ;;  %2296 = vst [vmem:[%s4202_s12 + $0x580] sm:$0xff] %v1954_v20  ;;  %v1957_v26 = vadd.f32 %v4525_v63, %v1956_v23  ;;  %v3484_v27 = vpop.f32.mrb[135].mxu1 }
 0x20d   : > { %2187 = vst [vmem:[%s4202_s12 + $0x218] sm:$0xff] %v1517_v24  ;;  %2297 = vst [vmem:[%s4202_s12 + $0x588] sm:$0xff] %v1957_v26 }
 0x210   : > { %v1521_v28 = vpop.f32.mrb[136].mxu0  ;;  %v1961_v29 = vpop.f32.mrb[136].mxu1 }
 0x211   : > { %v1522_v30 = vadd.f32 %v4525_v63, %v1521_v28  ;;  %v3267_v31 = vpop.f32.mrb[137].mxu0  ;;  %v1962_v32 = vadd.f32 %v4525_v63, %v1961_v29  ;;  %v3487_v33 = vpop.f32.mrb[137].mxu1 }
 0x212   : > { %v1524_v34 = vpop.f32.mrb[138].mxu0  ;;  %v1964_v35 = vpop.f32.mrb[138].mxu1 }
 0x213   : > { %2188 = vst [vmem:[%s4202_s12 + $0x220] sm:$0xff] %v1522_v30  ;;  %v1525_v36 = vadd.f32 %v4525_v63, %v1524_v34  ;;  %v3268_v37 = vpop.f32.mrb[139].mxu0  ;;  %2298 = vst [vmem:[%s4202_s12 + $0x590] sm:$0xff] %v1962_v32  ;;  %v1965_v38 = vadd.f32 %v4525_v63, %v1964_v35  ;;  %v3488_v39 = vpop.f32.mrb[139].mxu1 }
 0x215   : > { %2189 = vst [vmem:[%s4202_s12 + $0x228] sm:$0xff] %v1525_v36  ;;  %2299 = vst [vmem:[%s4202_s12 + $0x598] sm:$0xff] %v1965_v38 }
 0x218   : > { %v1529_v40 = vpop.f32.mrb[140].mxu0  ;;  %v1969_v41 = vpop.f32.mrb[140].mxu1 }
 0x219   : > { %v1530_v42 = vadd.f32 %v4525_v63, %v1529_v40  ;;  %v3271_v43 = vpop.f32.mrb[141].mxu0  ;;  %v1970_v44 = vadd.f32 %v4525_v63, %v1969_v41  ;;  %v3491_v45 = vpop.f32.mrb[141].mxu1 }
 0x21a   : > { %v1532_v46 = vpop.f32.mrb[142].mxu0  ;;  %v1972_v47 = vpop.f32.mrb[142].mxu1 }
 0x21b   : > { %2190 = vst [vmem:[%s4202_s12 + $0x230] sm:$0xff] %v1530_v42  ;;  %v1533_v48 = vadd.f32 %v4525_v63, %v1532_v46  ;;  %v3272_v49 = vpop.f32.mrb[143].mxu0  ;;  %2300 = vst [vmem:[%s4202_s12 + $0x5a0] sm:$0xff] %v1970_v44  ;;  %v1973_v50 = vadd.f32 %v4525_v63, %v1972_v47  ;;  %v3492_v51 = vpop.f32.mrb[143].mxu1 }
 0x21d   : > { %2191 = vst [vmem:[%s4202_s12 + $0x238] sm:$0xff] %v1533_v48  ;;  %2301 = vst [vmem:[%s4202_s12 + $0x5a8] sm:$0xff] %v1973_v50 }
 0x220   : > { %v1537_v52 = vpop.f32.mrb[144].mxu0  ;;  %v1977_v53 = vpop.f32.mrb[144].mxu1 }
 0x221   : > { %v1538_v54 = vadd.f32 %v4525_v63, %v1537_v52  ;;  %v3275_v55 = vpop.f32.mrb[145].mxu0  ;;  %v1978_v56 = vadd.f32 %v4525_v63, %v1977_v53  ;;  %v3495_v57 = vpop.f32.mrb[145].mxu1 }
 0x222   : > { %v1540_v58 = vpop.f32.mrb[146].mxu0  ;;  %v1980_v59 = vpop.f32.mrb[146].mxu1 }
 0x223   : > { %2192 = vst [vmem:[%s4202_s12 + $0x240] sm:$0xff] %v1538_v54  ;;  %v1541_v60 = vadd.f32 %v4525_v63, %v1540_v58  ;;  %v3276_v61 = vpop.f32.mrb[147].mxu0  ;;  %2302 = vst [vmem:[%s4202_s12 + $0x5b0] sm:$0xff] %v1978_v56  ;;  %v1981_v62 = vadd.f32 %v4525_v63, %v1980_v59  ;;  %v3496_v0 = vpop.f32.mrb[147].mxu1 }
 0x225   : > { %2193 = vst [vmem:[%s4202_s12 + $0x248] sm:$0xff] %v1541_v60  ;;  %2303 = vst [vmem:[%s4202_s12 + $0x5b8] sm:$0xff] %v1981_v62 }
 0x228   : > { %v1545_v2 = vpop.f32.mrb[148].mxu0  ;;  %v1985_v3 = vpop.f32.mrb[148].mxu1 }
 0x229   : > { %v1546_v4 = vadd.f32 %v4525_v63, %v1545_v2  ;;  %v3279_v5 = vpop.f32.mrb[149].mxu0  ;;  %v1986_v6 = vadd.f32 %v4525_v63, %v1985_v3  ;;  %v3499_v7 = vpop.f32.mrb[149].mxu1 }
 0x22a   : > { %v1548_v8 = vpop.f32.mrb[150].mxu0  ;;  %v1988_v9 = vpop.f32.mrb[150].mxu1 }
 0x22b   : > { %2194 = vst [vmem:[%s4202_s12 + $0x250] sm:$0xff] %v1546_v4  ;;  %v1549_v10 = vadd.f32 %v4525_v63, %v1548_v8  ;;  %v3280_v11 = vpop.f32.mrb[151].mxu0  ;;  %2304 = vst [vmem:[%s4202_s12 + $0x5c0] sm:$0xff] %v1986_v6  ;;  %v1989_v12 = vadd.f32 %v4525_v63, %v1988_v9  ;;  %v3500_v13 = vpop.f32.mrb[151].mxu1 }
 0x22d   : > { %2195 = vst [vmem:[%s4202_s12 + $0x258] sm:$0xff] %v1549_v10  ;;  %2305 = vst [vmem:[%s4202_s12 + $0x5c8] sm:$0xff] %v1989_v12 }
 0x230   : > { %v1553_v14 = vpop.f32.mrb[152].mxu0  ;;  %v1993_v15 = vpop.f32.mrb[152].mxu1 }
 0x231   : > { %v1554_v16 = vadd.f32 %v4525_v63, %v1553_v14  ;;  %v3283_v17 = vpop.f32.mrb[153].mxu0  ;;  %v1994_v1 = vadd.f32 %v4525_v63, %v1993_v15  ;;  %v3503_v18 = vpop.f32.mrb[153].mxu1 }
 0x232   : > { %v1556_v19 = vpop.f32.mrb[154].mxu0  ;;  %v1996_v20 = vpop.f32.mrb[154].mxu1 }
 0x233   : > { %2196 = vst [vmem:[%s4202_s12 + $0x260] sm:$0xff] %v1554_v16  ;;  %v1557_v21 = vadd.f32 %v4525_v63, %v1556_v19  ;;  %v3284_v22 = vpop.f32.mrb[155].mxu0  ;;  %2306 = vst [vmem:[%s4202_s12 + $0x5d0] sm:$0xff] %v1994_v1  ;;  %v1997_v23 = vadd.f32 %v4525_v63, %v1996_v20  ;;  %v3504_v24 = vpop.f32.mrb[155].mxu1 }
 0x235   : > { %2197 = vst [vmem:[%s4202_s12 + $0x268] sm:$0xff] %v1557_v21  ;;  %2307 = vst [vmem:[%s4202_s12 + $0x5d8] sm:$0xff] %v1997_v23 }
 0x238   : > { %v1561_v25 = vpop.f32.mrb[156].mxu0  ;;  %v2001_v26 = vpop.f32.mrb[156].mxu1 }
 0x239   : > { %v1562_v27 = vadd.f32 %v4525_v63, %v1561_v25  ;;  %v3287_v28 = vpop.f32.mrb[157].mxu0  ;;  %v2002_v29 = vadd.f32 %v4525_v63, %v2001_v26  ;;  %v3507_v30 = vpop.f32.mrb[157].mxu1 }
 0x23a   : > { %v1564_v31 = vpop.f32.mrb[158].mxu0  ;;  %v2004_v32 = vpop.f32.mrb[158].mxu1 }
 0x23b   : > { %2198 = vst [vmem:[%s4202_s12 + $0x270] sm:$0xff] %v1562_v27  ;;  %v1565_v33 = vadd.f32 %v4525_v63, %v1564_v31  ;;  %v3288_v34 = vpop.f32.mrb[159].mxu0  ;;  %2308 = vst [vmem:[%s4202_s12 + $0x5e0] sm:$0xff] %v2002_v29  ;;  %v2005_v35 = vadd.f32 %v4525_v63, %v2004_v32  ;;  %v3508_v36 = vpop.f32.mrb[159].mxu1 }
 0x23d   : > { %2199 = vst [vmem:[%s4202_s12 + $0x278] sm:$0xff] %v1565_v33  ;;  %2309 = vst [vmem:[%s4202_s12 + $0x5e8] sm:$0xff] %v2005_v35 }
 0x240   : > { %v1569_v37 = vpop.f32.mrb[160].mxu0  ;;  %v2009_v38 = vpop.f32.mrb[160].mxu1 }
 0x241   : > { %v1570_v39 = vadd.f32 %v4525_v63, %v1569_v37  ;;  %v3291_v40 = vpop.f32.mrb[161].mxu0  ;;  %v2010_v41 = vadd.f32 %v4525_v63, %v2009_v38  ;;  %v3511_v42 = vpop.f32.mrb[161].mxu1 }
 0x242   : > { %v1572_v43 = vpop.f32.mrb[162].mxu0  ;;  %v2012_v44 = vpop.f32.mrb[162].mxu1 }
 0x243   : > { %2200 = vst [vmem:[%s4202_s12 + $0x280] sm:$0xff] %v1570_v39  ;;  %v1573_v45 = vadd.f32 %v4525_v63, %v1572_v43  ;;  %v3292_v46 = vpop.f32.mrb[163].mxu0  ;;  %2310 = vst [vmem:[%s4202_s12 + $0x5f0] sm:$0xff] %v2010_v41  ;;  %v2013_v47 = vadd.f32 %v4525_v63, %v2012_v44  ;;  %v3512_v48 = vpop.f32.mrb[163].mxu1 }
 0x245   : > { %2201 = vst [vmem:[%s4202_s12 + $0x288] sm:$0xff] %v1573_v45  ;;  %2311 = vst [vmem:[%s4202_s12 + $0x5f8] sm:$0xff] %v2013_v47 }
 0x248   : > { %v1577_v49 = vpop.f32.mrb[164].mxu0  ;;  %v2017_v50 = vpop.f32.mrb[164].mxu1 }
 0x249   : > { %v1578_v51 = vadd.f32 %v4525_v63, %v1577_v49  ;;  %v3295_v52 = vpop.f32.mrb[165].mxu0  ;;  %v2018_v53 = vadd.f32 %v4525_v63, %v2017_v50  ;;  %v3515_v54 = vpop.f32.mrb[165].mxu1 }
 0x24a   : > { %v1580_v55 = vpop.f32.mrb[166].mxu0  ;;  %v2020_v56 = vpop.f32.mrb[166].mxu1 }
 0x24b   : > { %2202 = vst [vmem:[%s4202_s12 + $0x290] sm:$0xff] %v1578_v51  ;;  %v1581_v57 = vadd.f32 %v4525_v63, %v1580_v55  ;;  %v3296_v58 = vpop.f32.mrb[167].mxu0  ;;  %2312 = vst [vmem:[%s4202_s12 + $0x600] sm:$0xff] %v2018_v53  ;;  %v2021_v59 = vadd.f32 %v4525_v63, %v2020_v56  ;;  %v3516_v60 = vpop.f32.mrb[167].mxu1 }
 0x24d   : > { %2203 = vst [vmem:[%s4202_s12 + $0x298] sm:$0xff] %v1581_v57  ;;  %2313 = vst [vmem:[%s4202_s12 + $0x608] sm:$0xff] %v2021_v59 }
 0x250   : > { %v1585_v61 = vpop.f32.mrb[168].mxu0  ;;  %v2025_v62 = vpop.f32.mrb[168].mxu1 }
 0x251   : > { %v1586_v0 = vadd.f32 %v4525_v63, %v1585_v61  ;;  %v3299_v2 = vpop.f32.mrb[169].mxu0  ;;  %v2026_v3 = vadd.f32 %v4525_v63, %v2025_v62  ;;  %v3519_v4 = vpop.f32.mrb[169].mxu1 }
 0x252   : > { %v1588_v5 = vpop.f32.mrb[170].mxu0  ;;  %v2028_v6 = vpop.f32.mrb[170].mxu1 }
 0x253   : > { %2204 = vst [vmem:[%s4202_s12 + $0x2a0] sm:$0xff] %v1586_v0  ;;  %v1589_v7 = vadd.f32 %v4525_v63, %v1588_v5  ;;  %v3300_v8 = vpop.f32.mrb[171].mxu0  ;;  %2314 = vst [vmem:[%s4202_s12 + $0x610] sm:$0xff] %v2026_v3  ;;  %v2029_v9 = vadd.f32 %v4525_v63, %v2028_v6  ;;  %v3520_v10 = vpop.f32.mrb[171].mxu1 }
 0x255   : > { %2205 = vst [vmem:[%s4202_s12 + $0x2a8] sm:$0xff] %v1589_v7  ;;  %2315 = vst [vmem:[%s4202_s12 + $0x618] sm:$0xff] %v2029_v9 }
 0x258   : > { %v1593_v11 = vpop.f32.mrb[172].mxu0  ;;  %v2033_v12 = vpop.f32.mrb[172].mxu1 }
 0x259   : > { %v1594_v13 = vadd.f32 %v4525_v63, %v1593_v11  ;;  %v3303_v14 = vpop.f32.mrb[173].mxu0  ;;  %v2034_v15 = vadd.f32 %v4525_v63, %v2033_v12  ;;  %v3523_v16 = vpop.f32.mrb[173].mxu1 }
 0x25a   : > { %v1596_v17 = vpop.f32.mrb[174].mxu0  ;;  %v2036_v1 = vpop.f32.mrb[174].mxu1 }
 0x25b   : > { %2206 = vst [vmem:[%s4202_s12 + $0x2b0] sm:$0xff] %v1594_v13  ;;  %v1597_v18 = vadd.f32 %v4525_v63, %v1596_v17  ;;  %v3304_v19 = vpop.f32.mrb[175].mxu0  ;;  %2316 = vst [vmem:[%s4202_s12 + $0x620] sm:$0xff] %v2034_v15  ;;  %v2037_v20 = vadd.f32 %v4525_v63, %v2036_v1  ;;  %v3524_v21 = vpop.f32.mrb[175].mxu1 }
 0x25d   : > { %2207 = vst [vmem:[%s4202_s12 + $0x2b8] sm:$0xff] %v1597_v18  ;;  %2317 = vst [vmem:[%s4202_s12 + $0x628] sm:$0xff] %v2037_v20 }
 0x260   : > { %v1601_v22 = vpop.f32.mrb[176].mxu0  ;;  %v2041_v23 = vpop.f32.mrb[176].mxu1 }
 0x261   : > { %v1602_v24 = vadd.f32 %v4525_v63, %v1601_v22  ;;  %v3307_v25 = vpop.f32.mrb[177].mxu0  ;;  %v2042_v26 = vadd.f32 %v4525_v63, %v2041_v23  ;;  %v3527_v27 = vpop.f32.mrb[177].mxu1 }
 0x262   : > { %v1604_v28 = vpop.f32.mrb[178].mxu0  ;;  %v2044_v29 = vpop.f32.mrb[178].mxu1 }
 0x263   : > { %2208 = vst [vmem:[%s4202_s12 + $0x2c0] sm:$0xff] %v1602_v24  ;;  %v1605_v30 = vadd.f32 %v4525_v63, %v1604_v28  ;;  %v3308_v31 = vpop.f32.mrb[179].mxu0  ;;  %2318 = vst [vmem:[%s4202_s12 + $0x630] sm:$0xff] %v2042_v26  ;;  %v2045_v32 = vadd.f32 %v4525_v63, %v2044_v29  ;;  %v3528_v33 = vpop.f32.mrb[179].mxu1 }
 0x265   : > { %2209 = vst [vmem:[%s4202_s12 + $0x2c8] sm:$0xff] %v1605_v30  ;;  %2319 = vst [vmem:[%s4202_s12 + $0x638] sm:$0xff] %v2045_v32 }
 0x268   : > { %v1609_v34 = vpop.f32.mrb[180].mxu0  ;;  %v2049_v35 = vpop.f32.mrb[180].mxu1 }
 0x269   : > { %v1610_v36 = vadd.f32 %v4525_v63, %v1609_v34  ;;  %v3311_v37 = vpop.f32.mrb[181].mxu0  ;;  %v2050_v38 = vadd.f32 %v4525_v63, %v2049_v35  ;;  %v3531_v39 = vpop.f32.mrb[181].mxu1 }
 0x26a   : > { %v1612_v40 = vpop.f32.mrb[182].mxu0  ;;  %v2052_v41 = vpop.f32.mrb[182].mxu1 }
 0x26b   : > { %2210 = vst [vmem:[%s4202_s12 + $0x2d0] sm:$0xff] %v1610_v36  ;;  %v1613_v42 = vadd.f32 %v4525_v63, %v1612_v40  ;;  %v3312_v43 = vpop.f32.mrb[183].mxu0  ;;  %2320 = vst [vmem:[%s4202_s12 + $0x640] sm:$0xff] %v2050_v38  ;;  %v2053_v44 = vadd.f32 %v4525_v63, %v2052_v41  ;;  %v3532_v45 = vpop.f32.mrb[183].mxu1 }
 0x26d   : > { %2211 = vst [vmem:[%s4202_s12 + $0x2d8] sm:$0xff] %v1613_v42  ;;  %2321 = vst [vmem:[%s4202_s12 + $0x648] sm:$0xff] %v2053_v44 }
 0x270   : > { %v1617_v46 = vpop.f32.mrb[184].mxu0  ;;  %v2057_v47 = vpop.f32.mrb[184].mxu1 }
 0x271   : > { %v1618_v48 = vadd.f32 %v4525_v63, %v1617_v46  ;;  %v3315_v49 = vpop.f32.mrb[185].mxu0  ;;  %v2058_v50 = vadd.f32 %v4525_v63, %v2057_v47  ;;  %v3535_v51 = vpop.f32.mrb[185].mxu1 }
 0x272   : > { %v1620_v52 = vpop.f32.mrb[186].mxu0  ;;  %v2060_v53 = vpop.f32.mrb[186].mxu1 }
 0x273   : > { %2212 = vst [vmem:[%s4202_s12 + $0x2e0] sm:$0xff] %v1618_v48  ;;  %v1621_v54 = vadd.f32 %v4525_v63, %v1620_v52  ;;  %v3316_v55 = vpop.f32.mrb[187].mxu0  ;;  %2322 = vst [vmem:[%s4202_s12 + $0x650] sm:$0xff] %v2058_v50  ;;  %v2061_v56 = vadd.f32 %v4525_v63, %v2060_v53  ;;  %v3536_v57 = vpop.f32.mrb[187].mxu1 }
 0x275   : > { %2213 = vst [vmem:[%s4202_s12 + $0x2e8] sm:$0xff] %v1621_v54  ;;  %2323 = vst [vmem:[%s4202_s12 + $0x658] sm:$0xff] %v2061_v56 }
 0x278   : > { %v1625_v58 = vpop.f32.mrb[188].mxu0  ;;  %v2065_v59 = vpop.f32.mrb[188].mxu1 }
 0x279   : > { %v1626_v60 = vadd.f32 %v4525_v63, %v1625_v58  ;;  %v3319_v61 = vpop.f32.mrb[189].mxu0  ;;  %v2066_v62 = vadd.f32 %v4525_v63, %v2065_v59  ;;  %v3539_v0 = vpop.f32.mrb[189].mxu1 }
 0x27a   : > { %v1628_v2 = vpop.f32.mrb[190].mxu0  ;;  %v2068_v3 = vpop.f32.mrb[190].mxu1 }
 0x27b   : > { %2214 = vst [vmem:[%s4202_s12 + $0x2f0] sm:$0xff] %v1626_v60  ;;  %v1629_v4 = vadd.f32 %v4525_v63, %v1628_v2  ;;  %v3320_v5 = vpop.f32.mrb[191].mxu0  ;;  %2324 = vst [vmem:[%s4202_s12 + $0x660] sm:$0xff] %v2066_v62  ;;  %v2069_v6 = vadd.f32 %v4525_v63, %v2068_v3  ;;  %v3540_v7 = vpop.f32.mrb[191].mxu1 }
 0x27d   : > { %2215 = vst [vmem:[%s4202_s12 + $0x2f8] sm:$0xff] %v1629_v4  ;;  %2325 = vst [vmem:[%s4202_s12 + $0x668] sm:$0xff] %v2069_v6 }
 0x280   : > { %v1633_v8 = vpop.f32.mrb[192].mxu0  ;;  %v2073_v9 = vpop.f32.mrb[192].mxu1 }
 0x281   : > { %v1634_v10 = vadd.f32 %v4525_v63, %v1633_v8  ;;  %v3323_v11 = vpop.f32.mrb[193].mxu0  ;;  %v2074_v12 = vadd.f32 %v4525_v63, %v2073_v9  ;;  %v3543_v13 = vpop.f32.mrb[193].mxu1 }
 0x282   : > { %v1636_v14 = vpop.f32.mrb[194].mxu0  ;;  %v2076_v15 = vpop.f32.mrb[194].mxu1  ;;  %v3806_v13 = vld [vmem:[%s5014_s2] ss:$0 sm:$0xff] }
 0x283   : > { %2216 = vst [vmem:[%s4202_s12 + $0x300] sm:$0xff] %v1634_v10  ;;  %v1637_v16 = vadd.f32 %v4525_v63, %v1636_v14  ;;  %v3324_v17 = vpop.f32.mrb[195].mxu0  ;;  %2326 = vst [vmem:[%s4202_s12 + $0x670] sm:$0xff] %v2074_v12  ;;  %v2077_v1 = vadd.f32 %v4525_v63, %v2076_v15  ;;  %v3544_v18 = vpop.f32.mrb[195].mxu1 }
 0x285   : > { %2217 = vst [vmem:[%s4202_s12 + $0x308] sm:$0xff] %v1637_v16  ;;  %2327 = vst [vmem:[%s4202_s12 + $0x678] sm:$0xff] %v2077_v1 }
 0x288   : > { %v1641_v19 = vpop.f32.mrb[196].mxu0  ;;  %v2081_v20 = vpop.f32.mrb[196].mxu1 }
 0x289   : > { %v1642_v21 = vadd.f32 %v4525_v63, %v1641_v19  ;;  %v3327_v22 = vpop.f32.mrb[197].mxu0  ;;  %v2082_v23 = vadd.f32 %v4525_v63, %v2081_v20  ;;  %v3547_v24 = vpop.f32.mrb[197].mxu1 }
 0x28a   : > { %v1644_v25 = vpop.f32.mrb[198].mxu0  ;;  %v2084_v26 = vpop.f32.mrb[198].mxu1 }
 0x28b   : > { %2218 = vst [vmem:[%s4202_s12 + $0x310] sm:$0xff] %v1642_v21  ;;  %v1645_v27 = vadd.f32 %v4525_v63, %v1644_v25  ;;  %v3328_v28 = vpop.f32.mrb[199].mxu0  ;;  %2328 = vst [vmem:[%s4202_s12 + $0x680] sm:$0xff] %v2082_v23  ;;  %v2085_v29 = vadd.f32 %v4525_v63, %v2084_v26  ;;  %v3548_v30 = vpop.f32.mrb[199].mxu1 }
 0x28d   : > { %2219 = vst [vmem:[%s4202_s12 + $0x318] sm:$0xff] %v1645_v27  ;;  %2329 = vst [vmem:[%s4202_s12 + $0x688] sm:$0xff] %v2085_v29 }
 0x290   : > { %v1649_v31 = vpop.f32.mrb[200].mxu0  ;;  %v2089_v32 = vpop.f32.mrb[200].mxu1 }
 0x291   : > { %v1650_v33 = vadd.f32 %v4525_v63, %v1649_v31  ;;  %v3331_v34 = vpop.f32.mrb[201].mxu0  ;;  %v2090_v35 = vadd.f32 %v4525_v63, %v2089_v32  ;;  %v3551_v36 = vpop.f32.mrb[201].mxu1 }
 0x292   : > { %v1652_v37 = vpop.f32.mrb[202].mxu0  ;;  %v2092_v38 = vpop.f32.mrb[202].mxu1 }
 0x293   : > { %2220 = vst [vmem:[%s4202_s12 + $0x320] sm:$0xff] %v1650_v33  ;;  %v1653_v39 = vadd.f32 %v4525_v63, %v1652_v37  ;;  %v3332_v40 = vpop.f32.mrb[203].mxu0  ;;  %2330 = vst [vmem:[%s4202_s12 + $0x690] sm:$0xff] %v2090_v35  ;;  %v2093_v41 = vadd.f32 %v4525_v63, %v2092_v38  ;;  %v3552_v42 = vpop.f32.mrb[203].mxu1 }
 0x295   : > { %2221 = vst [vmem:[%s4202_s12 + $0x328] sm:$0xff] %v1653_v39  ;;  %2331 = vst [vmem:[%s4202_s12 + $0x698] sm:$0xff] %v2093_v41 }
 0x298   : > { %v1657_v43 = vpop.f32.mrb[204].mxu0  ;;  %v2097_v44 = vpop.f32.mrb[204].mxu1 }
 0x299   : > { %v1658_v45 = vadd.f32 %v4525_v63, %v1657_v43  ;;  %v3335_v46 = vpop.f32.mrb[205].mxu0  ;;  %v2098_v47 = vadd.f32 %v4525_v63, %v2097_v44  ;;  %v3555_v48 = vpop.f32.mrb[205].mxu1 }
 0x29a   : > { %v1660_v49 = vpop.f32.mrb[206].mxu0  ;;  %v2100_v50 = vpop.f32.mrb[206].mxu1 }
 0x29b   : > { %2222 = vst [vmem:[%s4202_s12 + $0x330] sm:$0xff] %v1658_v45  ;;  %v1661_v51 = vadd.f32 %v4525_v63, %v1660_v49  ;;  %v3336_v52 = vpop.f32.mrb[207].mxu0  ;;  %2332 = vst [vmem:[%s4202_s12 + $0x6a0] sm:$0xff] %v2098_v47  ;;  %v2101_v53 = vadd.f32 %v4525_v63, %v2100_v50  ;;  %v3556_v54 = vpop.f32.mrb[207].mxu1 }
 0x29d   : > { %2223 = vst [vmem:[%s4202_s12 + $0x338] sm:$0xff] %v1661_v51  ;;  %2333 = vst [vmem:[%s4202_s12 + $0x6a8] sm:$0xff] %v2101_v53 }
 0x2a0   : > { %v1665_v55 = vpop.f32.mrb[208].mxu0  ;;  %v2105_v56 = vpop.f32.mrb[208].mxu1 }
 0x2a1   : > { %v1666_v57 = vadd.f32 %v4525_v63, %v1665_v55  ;;  %v3339_v58 = vpop.f32.mrb[209].mxu0  ;;  %v2106_v59 = vadd.f32 %v4525_v63, %v2105_v56  ;;  %v3559_v60 = vpop.f32.mrb[209].mxu1 }
 0x2a2   : > { %v1668_v61 = vpop.f32.mrb[210].mxu0  ;;  %v2108_v62 = vpop.f32.mrb[210].mxu1 }
 0x2a3   : > { %2224 = vst [vmem:[%s4202_s12 + $0x340] sm:$0xff] %v1666_v57  ;;  %v1669_v0 = vadd.f32 %v4525_v63, %v1668_v61  ;;  %v3340_v2 = vpop.f32.mrb[211].mxu0  ;;  %2334 = vst [vmem:[%s4202_s12 + $0x6b0] sm:$0xff] %v2106_v59  ;;  %v2109_v3 = vadd.f32 %v4525_v63, %v2108_v62  ;;  %v3560_v4 = vpop.f32.mrb[211].mxu1 }
 0x2a5   : > { %2225 = vst [vmem:[%s4202_s12 + $0x348] sm:$0xff] %v1669_v0  ;;  %2335 = vst [vmem:[%s4202_s12 + $0x6b8] sm:$0xff] %v2109_v3 }
 0x2a8   : > { %v1673_v5 = vpop.f32.mrb[212].mxu0  ;;  %v2113_v6 = vpop.f32.mrb[212].mxu1 }
 0x2a9   : > { %v1674_v7 = vadd.f32 %v4525_v63, %v1673_v5  ;;  %v3343_v8 = vpop.f32.mrb[213].mxu0  ;;  %v2114_v9 = vadd.f32 %v4525_v63, %v2113_v6  ;;  %v3563_v10 = vpop.f32.mrb[213].mxu1 }
 0x2aa   : > { %v1676_v11 = vpop.f32.mrb[214].mxu0  ;;  %v2116_v12 = vpop.f32.mrb[214].mxu1 }
 0x2ab   : > { %2226 = vst [vmem:[%s4202_s12 + $0x350] sm:$0xff] %v1674_v7  ;;  %v1677_v14 = vadd.f32 %v3806_v13, %v1676_v11  ;;  %v3344_v15 = vpop.f32.mrb[215].mxu0  ;;  %2336 = vst [vmem:[%s4202_s12 + $0x6c0] sm:$0xff] %v2114_v9  ;;  %v2117_v16 = vadd.f32 %v3806_v13, %v2116_v12  ;;  %v3564_v17 = vpop.f32.mrb[215].mxu1 }
 0x2ad   : > { %2227 = vst [vmem:[%s4202_s12 + $0x358] sm:$0xff] %v1677_v14  ;;  %2337 = vst [vmem:[%s4202_s12 + $0x6c8] sm:$0xff] %v2117_v16 }
 0x2af   : > { %2344 = sbr.rel (!%p3965_p3) target bundleno = 766 (0x2fe), region = 36 }
 0x2b0   : > { %v1681_v1 = vpop.f32.mrb[216].mxu0 }
 0x2b1   : > { %v1682_v18 = vadd.f32 %v3806_v13, %v1681_v1  ;;  %v3347_v63 = vpop.f32.mrb[217].mxu0 }
 0x2b2   : > { %v1684_v19 = vpop.f32.mrb[218].mxu0 }
 0x2b3   : > { %2228 = vst [vmem:[%s4202_s12 + $0x360] sm:$0xff] %v1682_v18  ;;  %v1685_v20 = vadd.f32 %v3806_v13, %v1684_v19  ;;  %v3348_v21 = vpop.f32.mrb[219].mxu0 }
 0x2b5   : > { %2229 = vst [vmem:[%s4202_s12 + $0x368] sm:$0xff] %v1685_v20 }
 0x2b6   : > { %s5029_s8 = smov (!%p2347_p9, %s2346_s8), 218 }
 0x2b7   : > { %s2978_s19 = sshll.u32 %s5029_s8, 7 }
 0x2b8   : > { %p2981_p10 = scmp.eq.s32.totalorder %s2978_s19, 0 }
 0x2b9   : > { %s4814_s21 = sshrl.u32 (!%p2981_p10), %s5029_s8, 6 }
 0x2ba   : > { %2356 = sbr.rel (%p2981_p10) target bundleno = 766 (0x2fe), region = 40  ;;  %p2982_p11 = scmp.le.s32.totalorder (!%p2981_p10), %s4814_s21, 0 }
 0x2c1   : > { %2779 = sbr.rel (%p2982_p11) target bundleno = 745 (0x2e9), region = 122  ;;  %s5017_s14 = smov (!%p2982_p11), %s4808_s17 }
 0x2c2   : > { %s5018_s20 = smov (!%p2982_p11), %s4202_s12  ;;  %s4823_s27 = smov (!%p2982_p11), 0  }
 0x2c3   : > { %s4825_s23 = smov (!%p2982_p11), 0  }
 0x2c8 LB: >> { %v2544_v22 = vld [vmem:[%s3885_s20] sm:$0xff]  ;;  %v2546_v23 = vld [vmem:[%s3885_s20 + $0x8] sm:$0xff]  ;;  %v2548_v24 = vld [vmem:[%s3885_s20 + $0x10] sm:$0xff]  ;;  %s2672_s24 = sadd.s32 1, %s3889_s27  ;;  %s2538_s23 = sadd.s32 1, %s3893_s23   ;;  %s3893_s23 = sphi %s4825_s23, %s2538_s23   ;;  %s3889_s27 = sphi %s4823_s27, %s5021_s27   ;;  %s3885_s20 = sphi %s5018_s20, %s5020_s20   ;;  %s3881_s14 = sphi %s5017_s14, %s5019_s14  }
 0x2c9   : >> { %2545 = vst [vmem:[%s3881_s14] sm:$0xff] %v2544_v22  ;;  %2547 = vst [vmem:[%s3881_s14 + $0x8] sm:$0xff] %v2546_v23  ;;  %v2550_v25 = vld [vmem:[%s3885_s20 + $0x18] sm:$0xff]  ;;  %v2552_v26 = vld [vmem:[%s3885_s20 + $0x20] sm:$0xff]  ;;  %p2673_p12 = scmp.ge.s32.totalorder %s2672_s24, %s4814_s21  ;;  %p2537_p13 = scmp.ge.s32.totalorder %s2538_s23, %s4814_s21 }
 0x2ca   : >> { %2549 = vst [vmem:[%s3881_s14 + $0x10] sm:$0xff] %v2548_v24  ;;  %v2554_v27 = vld [vmem:[%s3885_s20 + $0x28] sm:$0xff]  ;;  %2551 = vst [vmem:[%s3881_s14 + $0x18] sm:$0xff] %v2550_v25  ;;  %v2556_v28 = vld [vmem:[%s3885_s20 + $0x30] sm:$0xff] }
 0x2cb   : >> { %2553 = vst [vmem:[%s3881_s14 + $0x20] sm:$0xff] %v2552_v26  ;;  %2555 = vst [vmem:[%s3881_s14 + $0x28] sm:$0xff] %v2554_v27  ;;  %v2558_v29 = vld [vmem:[%s3885_s20 + $0x38] sm:$0xff]  ;;  %v2560_v30 = vld [vmem:[%s3885_s20 + $0x40] sm:$0xff]  ;;  %s5031_s24 = smov (%p2673_p12, %s2672_s24), 0 }
 0x2cc   : >> { %2557 = vst [vmem:[%s3881_s14 + $0x30] sm:$0xff] %v2556_v28  ;;  %2559 = vst [vmem:[%s3881_s14 + $0x38] sm:$0xff] %v2558_v29  ;;  %v2562_v31 = vld [vmem:[%s3885_s20 + $0x48] sm:$0xff]  ;;  %v2564_v32 = vld [vmem:[%s3885_s20 + $0x50] sm:$0xff]  ;;  %s2983_s25 = sshll.u32 %s5031_s24, 9  ;;  %s5021_s27 = smov %s5031_s24 }
 0x2cd   : >> { %2561 = vst [vmem:[%s3881_s14 + $0x40] sm:$0xff] %v2560_v30  ;;  %v2566_v33 = vld [vmem:[%s3885_s20 + $0x58] sm:$0xff]  ;;  %2563 = vst [vmem:[%s3881_s14 + $0x48] sm:$0xff] %v2562_v31  ;;  %v2568_v34 = vld [vmem:[%s3885_s20 + $0x60] sm:$0xff]  ;;  %s4881_s26 = scalar_lea.vmem %s4202_s12, %s2983_s25 [#allocation2]   ;;  %s4884_s28 = scalar_lea.vmem %s4808_s17, %s2983_s25  }
 0x2ce   : >> { %2565 = vst [vmem:[%s3881_s14 + $0x50] sm:$0xff] %v2564_v32  ;;  %2567 = vst [vmem:[%s3881_s14 + $0x58] sm:$0xff] %v2566_v33  ;;  %v2570_v35 = vld [vmem:[%s3885_s20 + $0x68] sm:$0xff]  ;;  %v2572_v36 = vld [vmem:[%s3885_s20 + $0x70] sm:$0xff] }
 0x2cf   : >> { %2569 = vst [vmem:[%s3881_s14 + $0x60] sm:$0xff] %v2568_v34  ;;  %2571 = vst [vmem:[%s3881_s14 + $0x68] sm:$0xff] %v2570_v35  ;;  %v2574_v37 = vld [vmem:[%s3885_s20 + $0x78] sm:$0xff]  ;;  %v2576_v38 = vld [vmem:[%s3885_s20 + $0x80] sm:$0xff] }
 0x2d0   : >> { %2573 = vst [vmem:[%s3881_s14 + $0x70] sm:$0xff] %v2572_v36  ;;  %v2578_v39 = vld [vmem:[%s3885_s20 + $0x88] sm:$0xff]  ;;  %2575 = vst [vmem:[%s3881_s14 + $0x78] sm:$0xff] %v2574_v37  ;;  %v2580_v40 = vld [vmem:[%s3885_s20 + $0x90] sm:$0xff] }
 0x2d1   : >> { %2577 = vst [vmem:[%s3881_s14 + $0x80] sm:$0xff] %v2576_v38  ;;  %2579 = vst [vmem:[%s3881_s14 + $0x88] sm:$0xff] %v2578_v39  ;;  %v2582_v41 = vld [vmem:[%s3885_s20 + $0x98] sm:$0xff]  ;;  %v2584_v42 = vld [vmem:[%s3885_s20 + $0xa0] sm:$0xff] }
 0x2d2   : >> { %2581 = vst [vmem:[%s3881_s14 + $0x90] sm:$0xff] %v2580_v40  ;;  %2583 = vst [vmem:[%s3881_s14 + $0x98] sm:$0xff] %v2582_v41  ;;  %v2586_v43 = vld [vmem:[%s3885_s20 + $0xa8] sm:$0xff]  ;;  %v2588_v44 = vld [vmem:[%s3885_s20 + $0xb0] sm:$0xff] }
 0x2d3   : >> { %2585 = vst [vmem:[%s3881_s14 + $0xa0] sm:$0xff] %v2584_v42  ;;  %v2590_v45 = vld [vmem:[%s3885_s20 + $0xb8] sm:$0xff]  ;;  %2587 = vst [vmem:[%s3881_s14 + $0xa8] sm:$0xff] %v2586_v43  ;;  %v2592_v46 = vld [vmem:[%s3885_s20 + $0xc0] sm:$0xff] }
 0x2d4   : >> { %2589 = vst [vmem:[%s3881_s14 + $0xb0] sm:$0xff] %v2588_v44  ;;  %2591 = vst [vmem:[%s3881_s14 + $0xb8] sm:$0xff] %v2590_v45  ;;  %v2594_v47 = vld [vmem:[%s3885_s20 + $0xc8] sm:$0xff]  ;;  %v2596_v48 = vld [vmem:[%s3885_s20 + $0xd0] sm:$0xff] }
 0x2d5   : >> { %2593 = vst [vmem:[%s3881_s14 + $0xc0] sm:$0xff] %v2592_v46  ;;  %2595 = vst [vmem:[%s3881_s14 + $0xc8] sm:$0xff] %v2594_v47  ;;  %v2598_v49 = vld [vmem:[%s3885_s20 + $0xd8] sm:$0xff]  ;;  %v2600_v50 = vld [vmem:[%s3885_s20 + $0xe0] sm:$0xff] }
 0x2d6   : >> { %2597 = vst [vmem:[%s3881_s14 + $0xd0] sm:$0xff] %v2596_v48  ;;  %v2602_v51 = vld [vmem:[%s3885_s20 + $0xe8] sm:$0xff]  ;;  %2599 = vst [vmem:[%s3881_s14 + $0xd8] sm:$0xff] %v2598_v49  ;;  %v2604_v52 = vld [vmem:[%s3885_s20 + $0xf0] sm:$0xff] }
 0x2d7   : >> { %2601 = vst [vmem:[%s3881_s14 + $0xe0] sm:$0xff] %v2600_v50  ;;  %2603 = vst [vmem:[%s3881_s14 + $0xe8] sm:$0xff] %v2602_v51  ;;  %v2606_v53 = vld [vmem:[%s3885_s20 + $0xf8] sm:$0xff]  ;;  %v2608_v54 = vld [vmem:[%s3885_s20 + $0x100] sm:$0xff] }
 0x2d8   : >> { %2605 = vst [vmem:[%s3881_s14 + $0xf0] sm:$0xff] %v2604_v52  ;;  %2607 = vst [vmem:[%s3881_s14 + $0xf8] sm:$0xff] %v2606_v53  ;;  %v2610_v55 = vld [vmem:[%s3885_s20 + $0x108] sm:$0xff]  ;;  %v2612_v56 = vld [vmem:[%s3885_s20 + $0x110] sm:$0xff] }
 0x2d9   : >> { %2609 = vst [vmem:[%s3881_s14 + $0x100] sm:$0xff] %v2608_v54  ;;  %v2614_v57 = vld [vmem:[%s3885_s20 + $0x118] sm:$0xff]  ;;  %2611 = vst [vmem:[%s3881_s14 + $0x108] sm:$0xff] %v2610_v55  ;;  %v2616_v58 = vld [vmem:[%s3885_s20 + $0x120] sm:$0xff] }
 0x2da   : >> { %2613 = vst [vmem:[%s3881_s14 + $0x110] sm:$0xff] %v2612_v56  ;;  %2615 = vst [vmem:[%s3881_s14 + $0x118] sm:$0xff] %v2614_v57  ;;  %v2618_v59 = vld [vmem:[%s3885_s20 + $0x128] sm:$0xff]  ;;  %v2620_v60 = vld [vmem:[%s3885_s20 + $0x130] sm:$0xff] }
 0x2db   : >> { %2617 = vst [vmem:[%s3881_s14 + $0x120] sm:$0xff] %v2616_v58  ;;  %2619 = vst [vmem:[%s3881_s14 + $0x128] sm:$0xff] %v2618_v59  ;;  %v2622_v61 = vld [vmem:[%s3885_s20 + $0x138] sm:$0xff]  ;;  %v2624_v62 = vld [vmem:[%s3885_s20 + $0x140] sm:$0xff] }
 0x2dc   : >> { %2621 = vst [vmem:[%s3881_s14 + $0x130] sm:$0xff] %v2620_v60  ;;  %v2626_v0 = vld [vmem:[%s3885_s20 + $0x148] sm:$0xff]  ;;  %2623 = vst [vmem:[%s3881_s14 + $0x138] sm:$0xff] %v2622_v61  ;;  %v2628_v2 = vld [vmem:[%s3885_s20 + $0x150] sm:$0xff] }
 0x2dd   : >> { %2625 = vst [vmem:[%s3881_s14 + $0x140] sm:$0xff] %v2624_v62  ;;  %2627 = vst [vmem:[%s3881_s14 + $0x148] sm:$0xff] %v2626_v0  ;;  %v2630_v3 = vld [vmem:[%s3885_s20 + $0x158] sm:$0xff]  ;;  %v2632_v4 = vld [vmem:[%s3885_s20 + $0x160] sm:$0xff] }
 0x2de   : >> { %2629 = vst [vmem:[%s3881_s14 + $0x150] sm:$0xff] %v2628_v2  ;;  %2631 = vst [vmem:[%s3881_s14 + $0x158] sm:$0xff] %v2630_v3  ;;  %v2634_v5 = vld [vmem:[%s3885_s20 + $0x168] sm:$0xff]  ;;  %v2636_v6 = vld [vmem:[%s3885_s20 + $0x170] sm:$0xff] }
 0x2df   : >> { %2633 = vst [vmem:[%s3881_s14 + $0x160] sm:$0xff] %v2632_v4  ;;  %v2638_v7 = vld [vmem:[%s3885_s20 + $0x178] sm:$0xff]  ;;  %2635 = vst [vmem:[%s3881_s14 + $0x168] sm:$0xff] %v2634_v5  ;;  %v2640_v8 = vld [vmem:[%s3885_s20 + $0x180] sm:$0xff] }
 0x2e0   : >> { %2637 = vst [vmem:[%s3881_s14 + $0x170] sm:$0xff] %v2636_v6  ;;  %2639 = vst [vmem:[%s3881_s14 + $0x178] sm:$0xff] %v2638_v7  ;;  %v2642_v9 = vld [vmem:[%s3885_s20 + $0x188] sm:$0xff]  ;;  %v2644_v10 = vld [vmem:[%s3885_s20 + $0x190] sm:$0xff] }
 0x2e1   : >> { %2641 = vst [vmem:[%s3881_s14 + $0x180] sm:$0xff] %v2640_v8  ;;  %2643 = vst [vmem:[%s3881_s14 + $0x188] sm:$0xff] %v2642_v9  ;;  %v2646_v11 = vld [vmem:[%s3885_s20 + $0x198] sm:$0xff]  ;;  %v2648_v12 = vld [vmem:[%s3885_s20 + $0x1a0] sm:$0xff] }
 0x2e2   : >> { %2645 = vst [vmem:[%s3881_s14 + $0x190] sm:$0xff] %v2644_v10  ;;  %v2650_v13 = vld [vmem:[%s3885_s20 + $0x1a8] sm:$0xff]  ;;  %2647 = vst [vmem:[%s3881_s14 + $0x198] sm:$0xff] %v2646_v11  ;;  %v2652_v14 = vld [vmem:[%s3885_s20 + $0x1b0] sm:$0xff]  ;;  %2540 = sbr.rel (!%p2537_p13) target bundleno = 712 (0x2c8), region = 128 }
 0x2e3   : >> { %2649 = vst [vmem:[%s3881_s14 + $0x1a0] sm:$0xff] %v2648_v12  ;;  %2651 = vst [vmem:[%s3881_s14 + $0x1a8] sm:$0xff] %v2650_v13  ;;  %v2654_v15 = vld [vmem:[%s3885_s20 + $0x1b8] sm:$0xff]  ;;  %v2656_v16 = vld [vmem:[%s3885_s20 + $0x1c0] sm:$0xff] }
 0x2e4   : >> { %2653 = vst [vmem:[%s3881_s14 + $0x1b0] sm:$0xff] %v2652_v14  ;;  %2655 = vst [vmem:[%s3881_s14 + $0x1b8] sm:$0xff] %v2654_v15  ;;  %v2658_v17 = vld [vmem:[%s3885_s20 + $0x1c8] sm:$0xff]  ;;  %v2660_v1 = vld [vmem:[%s3885_s20 + $0x1d0] sm:$0xff] }
 0x2e5   : >> { %2657 = vst [vmem:[%s3881_s14 + $0x1c0] sm:$0xff] %v2656_v16  ;;  %v2662_v18 = vld [vmem:[%s3885_s20 + $0x1d8] sm:$0xff]  ;;  %2659 = vst [vmem:[%s3881_s14 + $0x1c8] sm:$0xff] %v2658_v17  ;;  %v2664_v63 = vld [vmem:[%s3885_s20 + $0x1e0] sm:$0xff] }
 0x2e6   : >> { %2661 = vst [vmem:[%s3881_s14 + $0x1d0] sm:$0xff] %v2660_v1  ;;  %2663 = vst [vmem:[%s3881_s14 + $0x1d8] sm:$0xff] %v2662_v18  ;;  %v2666_v19 = vld [vmem:[%s3885_s20 + $0x1e8] sm:$0xff]  ;;  %v2668_v20 = vld [vmem:[%s3885_s20 + $0x1f0] sm:$0xff] }
 0x2e7   : >> { %2665 = vst [vmem:[%s3881_s14 + $0x1e0] sm:$0xff] %v2664_v63  ;;  %2667 = vst [vmem:[%s3881_s14 + $0x1e8] sm:$0xff] %v2666_v19  ;;  %v2670_v21 = vld [vmem:[%s3885_s20 + $0x1f8] sm:$0xff]  ;;  %s5020_s20 = smov %s4881_s26 }
 0x2e8   : >> { %2669 = vst [vmem:[%s3881_s14 + $0x1f0] sm:$0xff] %v2668_v20  ;;  %2671 = vst [vmem:[%s3881_s14 + $0x1f8] sm:$0xff] %v2670_v21  ;;  %s5019_s14 = smov %s4884_s28 }
 0x2e9 PF: > { %s4989_s29 = sand.u32 63, %s5029_s8   ;;  %s2994_s30 = sshll.u32 %s4814_s21, 9 }
 0x2ea   : > { %s2683_s4 = scalar_lea.vmem %s4202_s12, %s2994_s30 [#allocation2]   ;;  %s2685_s5 = scalar_lea.vmem %s4808_s17, %s2994_s30  }
 0x2eb   : > { %p2988_p0 = scmp.le.s32.totalorder %s4989_s29, 0 }
 0x2ec   : > { %s3895_s6 = smov (!%p2988_p0), %s2685_s5   ;;  %s3899_s7 = smov (!%p2988_p0), %s2683_s4  }
 0x2ed   : > { %2793 = sbr.rel (%p2988_p0) target bundleno = 766 (0x2fe), region = 133  ;;  %s3903_s9 = smov (!%p2988_p0), 0  }
 0x2ee   : > { %s3907_s10 = smov (!%p2988_p0), 0  }
 0x2f4 LB: >> { %v2695_v22 = vld [vmem:[%s3901_s7] sm:$0xff]  ;;  %s2697_s8 = sadd.s32 1, %s3905_s9  ;;  %s2689_s10 = sadd.s32 1, %s3909_s10   ;;  %s3909_s10 = sphi %s3907_s10, %s2689_s10   ;;  %s3905_s9 = sphi %s3903_s9, %s3904_s9   ;;  %s3901_s7 = sphi %s3899_s7, %s2702_s7   ;;  %s3897_s6 = sphi %s3895_s6, %s2703_s6  }
 0x2f5   : >> { %2696 = vst [vmem:[%s3897_s6] sm:$0xff] %v2695_v22  ;;  %p2698_p1 = scmp.ge.s32.totalorder %s2697_s8, %s4989_s29  ;;  %p2688_p2 = scmp.ge.s32.totalorder %s2689_s10, %s4989_s29 }
 0x2f7   : >> { %s5033_s8 = smov (%p2698_p1, %s2697_s8), 0  ;;  %2691 = sbr.rel (!%p2688_p2) target bundleno = 756 (0x2f4), region = 139 }
 0x2f8   : >> { %s2989_s12 = sshll.u32 %s5033_s8, 3  ;;  %s3904_s9 = smov %s5033_s8  }
 0x2f9   : >> { %s2702_s7 = scalar_lea.vmem %s2683_s4, %s2989_s12 [#allocation2]   ;;  %s2703_s6 = scalar_lea.vmem %s2685_s5, %s2989_s12  }
 0x2fe PF: > { %s13_s16 = sadd.s32 1, %s3877_s16   ;;  %s5022_s12 = smov %s3865_s13 }
 0x2ff   : > { %p10_p3 = scmp.ge.s32.totalorder %s13_s16, 7   ;;  %s5023_s13 = smov %s3974_s22 }
 0x300   : > { %s5024_s14 = smov %s3873_s15  ;;  %s5025_s15 = smov %s5027_s18 }
 0x301   :  { %12 = sbr.rel (!%p10_p3) target bundleno = 3 (0x3), region = 150 }

</bundles_post_ra>
